<compile_context>
chip_gen: v7x
topology: tpu7x:2x2x1
jax: 0.10.0
libtpu: 0.0.40
codegen_flags: <defaults>
</compile_context>

<pallas_src>
import functools

import jax
import jax.numpy as jnp
from jax.experimental import pallas as pl
from jax.experimental.pallas import tpu as pltpu  # noqa: F401  (TPU backend assumed)


# ----------------------------------------------------------------------------
# Pallas kernel: one full GATConv layer (all heads) in a single invocation
# ----------------------------------------------------------------------------
def _gat_layer_kernel(x_ref, w_ref, asrc_ref, adst_ref, bias_ref, adjb_ref, o_ref,
                      *, heads, f_pad, valid_f, apply_relu, apply_log_softmax,
                      neg_slope):
    n = x_ref.shape[0]

    # Batched per-head projection: (N, Din) @ (Din, H*F) -> (N, H*F).
    # bf16 operands, f32 accumulation (MXU-native throughput).
    x_bf = x_ref[...].astype(jnp.bfloat16)
    w_bf = w_ref[...].astype(jnp.bfloat16)
    h_all = jnp.dot(x_bf, w_bf, preferred_element_type=jnp.float32)      # (N, H*F) f32
    h_all_bf = h_all.astype(jnp.bfloat16)

    # Attention logits for all heads at once.  Both dot_generals contract on the
    # feature axis ((M,K) x (N,K) -> (M,N)), keeping the work on the MXU and
    # avoiding per-head (N,1)->(1,N) transposes through the XLU.
    #   a_dst_all[i, h] = <Hh[i], att_dst_h>        a_src_all[h, j] = <Hh[j], att_src_h>
    a_dst_all = jax.lax.dot_general(h_all, adst_ref[...],
                                    (((1,), (1,)), ((), ())),
                                    preferred_element_type=jnp.float32)  # (N, H)
    a_src_all = jax.lax.dot_general(asrc_ref[...], h_all,
                                    (((1,), (1,)), ((), ())),
                                    preferred_element_type=jnp.float32)  # (H, N)

    adj_bias = adjb_ref[...]                                             # (N, N) additive mask

    acc = jnp.zeros((n, f_pad), jnp.float32)
    for h in range(heads):                       # static unroll over heads (single grid step)
        e = a_dst_all[:, h:h + 1] + a_src_all[h:h + 1, :]                # e[i,j] = a_dst[i]+a_src[j]
        e = jnp.where(e > 0, e, neg_slope * e)                           # LeakyReLU(0.2)
        e = e + adj_bias                                                 # mask non-edges (additive)

        # Softmax over source nodes j with deferred normalization.
        m = jnp.max(e, axis=-1, keepdims=True)
        p = jnp.exp(e - m)                                               # unnormalized (N, N)
        denom = jnp.sum(p, axis=-1, keepdims=True)                       # (N, 1)

        hh_bf = h_all_bf[:, h * f_pad:(h + 1) * f_pad]                   # (N, F) per-head features
        num = jnp.dot(p.astype(jnp.bfloat16), hh_bf,
                      preferred_element_type=jnp.float32)                # (N, F)
        acc = acc + num * pl.reciprocal(denom, approx=True)

    # concat=False -> mean over heads, then fused epilogue.
    out = acc * (1.0 / heads) + bias_ref[...]
    if apply_relu:
        out = jnp.maximum(out, 0.0)
    if apply_log_softmax:
        if valid_f < f_pad:
            col = jax.lax.broadcasted_iota(jnp.int32, out.shape, 1)
            out = jnp.where(col < valid_f, out, jnp.float32(-1e30))      # mask padded classes
        mm = jnp.max(out, axis=-1, keepdims=True)
        s = out - mm
        lse = jnp.log(jnp.sum(jnp.exp(s), axis=-1, keepdims=True))
        out = s - lse
    o_ref[...] = out.astype(o_ref.dtype)


# ----------------------------------------------------------------------------
# Wrappers
# ----------------------------------------------------------------------------
def _round_up(v, m):
    return (v + m - 1) // m * m


def _row_block_diag(att):
    """(H, F) -> (H, H*F) with row h holding att[h] in block h, zeros elsewhere."""
    h, f = att.shape
    eye = jnp.eye(h, dtype=att.dtype)
    return (eye[:, :, None] * att[None, :, :]).reshape(h, h * f)


def gat_conv(x, w, att_src, att_dst, bias, adj_bias, *,
             apply_relu=False, apply_log_softmax=False):
    """One GATConv layer (concat=False, mean over heads).

    x:        (N, Din)
    w:        (H, Din, F)   per-head projection weights
    att_src:  (H, F)        per-head source attention vector
    att_dst:  (H, F)        per-head destination attention vector
    bias:     (1, F)
    adj_bias: (N, N)        additive mask: 0 where edge j->i (incl. self loops), -1e30 else
    """
    n, din = x.shape
    heads, w_din, f = w.shape
    assert din == w_din

    # Lane-dense padding of the class dim for the final (log-softmax) layer so the
    # output store is an unmasked, 128-lane-multiple write.
    f_pad = _round_up(f, 128) if apply_log_softmax else f
    if f_pad != f:
        w = jnp.pad(w, ((0, 0), (0, 0), (0, f_pad - f)))
        att_src = jnp.pad(att_src, ((0, 0), (0, f_pad - f)))
        att_dst = jnp.pad(att_dst, ((0, 0), (0, f_pad - f)))
        bias = jnp.pad(bias, ((0, 0), (0, f_pad - f)))

    # (H, Din, F) -> (Din, H*F): one wide projection matmul inside the kernel.
    w_all = jnp.transpose(w, (1, 0, 2)).reshape(din, heads * f_pad)
    asrc_bd = _row_block_diag(att_src)      # (H, H*F)
    adst_bd = _row_block_diag(att_dst)      # (H, H*F)

    kernel = functools.partial(
        _gat_layer_kernel, heads=heads, f_pad=f_pad, valid_f=f,
        apply_relu=apply_relu, apply_log_softmax=apply_log_softmax, neg_slope=0.2)

    out = pl.pallas_call(
        kernel,
        out_shape=jax.ShapeDtypeStruct((n, f_pad), jnp.float32),
    )(x, w_all, asrc_bd, adst_bd, bias, adj_bias)

    if f_pad != f:
        out = out[:, :f]
    return out


class GAT:
    """JAX/Pallas port of the PyTorch GAT module (eval-mode forward)."""

    def __init__(self, in_feats, h_feats, out_feats, *, heads=8, key=None):
        if key is None:
            key = jax.random.PRNGKey(0)
        k = jax.random.split(key, 6)
        s = 0.1  # deterministic small-scale init
        self.heads = heads
        # conv1: GATConv(in_feats, h_feats, heads=8, concat=False)
        self.w1 = s * jax.random.normal(k[0], (heads, in_feats, h_feats), jnp.float32)
        self.asrc1 = s * jax.random.normal(k[1], (heads, h_feats), jnp.float32)
        self.adst1 = s * jax.random.normal(k[2], (heads, h_feats), jnp.float32)
        self.b1 = jnp.zeros((1, h_feats), jnp.float32)
        # conv2: GATConv(in_feats, out_feats, heads=8, concat=False)
        # NOTE: the reference module declares conv2 with in_feats, so the forward
        # only type-checks when in_feats == h_feats (as chosen in __main__).
        self.w2 = s * jax.random.normal(k[3], (heads, in_feats, out_feats), jnp.float32)
        self.asrc2 = s * jax.random.normal(k[4], (heads, out_feats), jnp.float32)
        self.adst2 = s * jax.random.normal(k[5], (heads, out_feats), jnp.float32)
        self.b2 = jnp.zeros((1, out_feats), jnp.float32)

    def __call__(self, x, adj_bias):
        # x = F.relu(conv1(x, edge_index))   (ReLU fused into the layer-1 epilogue)
        x = gat_conv(x, self.w1, self.asrc1, self.adst1, self.b1, adj_bias,
                     apply_relu=True)
        # x = F.dropout(x, training=self.training)
        # TODO(synk): dropout implemented as identity (eval-mode semantics).
        # x = F.log_softmax(conv2(x, edge_index), dim=1)  (fused into layer-2 epilogue)
        x = gat_conv(x, self.w2, self.asrc2, self.adst2, self.b2, adj_bias,
                     apply_log_softmax=True)
        return x


# ----------------------------------------------------------------------------
# Example run
# ----------------------------------------------------------------------------
if __name__ == "__main__":
    N = 64          # nodes
    in_feats = 32   # == h_feats so conv2's declared input dim matches the forward
    h_feats = 32
    out_feats = 8   # classes
    E = 200         # random edges

    key = jax.random.PRNGKey(0)
    kx, ke_src, ke_dst, kp = jax.random.split(key, 4)

    # data.x
    x = jax.random.normal(kx, (N, in_feats), jnp.float32)

    # data.edge_index: (2, E) with row 0 = source, row 1 = destination
    src = jax.random.randint(ke_src, (E,), 0, N)
    dst = jax.random.randint(ke_dst, (E,), 0, N)
    edge_index = jnp.stack([src, dst])

    # Dense adjacency adj[dst, src] = 1, plus self loops (PyG default), converted once
    # to an ADDITIVE bias mask (0 on edges, -1e30 off-edges) consumed by the kernel.
    adj = jnp.zeros((N, N), jnp.float32).at[edge_index[1], edge_index[0]].set(1.0)
    adj = jnp.maximum(adj, jnp.eye(N, dtype=jnp.float32))
    adj_bias = jnp.where(adj > 0, 0.0, -1e30).astype(jnp.float32)

    model = GAT(in_feats, h_feats, out_feats, heads=8, key=kp)
    fwd = jax.jit(model.__call__)
    out = fwd(x, adj_bias)
    out = jax.block_until_ready(out)

    assert out.shape == (N, out_feats)
    # log_softmax rows should sum to ~1 in probability space
    assert jnp.allclose(jnp.sum(jnp.exp(out), axis=1), 1.0, atol=1e-4)
    print("KERNEL_OK")
</pallas_src>

<mosaic_0001>
module attributes {stable_mosaic.version = 11 : i64} {
  func.func @_gat_layer_kernel(%arg0: memref<64x32xf32, #tpu.memory_space<vmem>>, %arg1: memref<32x256xf32, #tpu.memory_space<vmem>>, %arg2: memref<8x256xf32, #tpu.memory_space<vmem>>, %arg3: memref<8x256xf32, #tpu.memory_space<vmem>>, %arg4: memref<1x32xf32, #tpu.memory_space<vmem>>, %arg5: memref<64x64xf32, #tpu.memory_space<vmem>>, %arg6: memref<64x32xf32, #tpu.memory_space<vmem>>) attributes {dimension_semantics = [], scalar_prefetch = 0 : i64, scratch_operands = 0 : i64, tpu.core_type = #tpu.core_type<tc>} {
    %c0 = arith.constant 0 : index
    %c0_0 = arith.constant 0 : index
    %0 = vector.load %arg0[%c0, %c0_0] : memref<64x32xf32, #tpu.memory_space<vmem>>, vector<64x32xf32>
    %1 = arith.truncf %0 : vector<64x32xf32> to vector<64x32xbf16>
    %c0_1 = arith.constant 0 : index
    %c0_2 = arith.constant 0 : index
    %2 = vector.load %arg1[%c0_1, %c0_2] : memref<32x256xf32, #tpu.memory_space<vmem>>, vector<32x256xf32>
    %3 = arith.truncf %2 : vector<32x256xf32> to vector<32x256xbf16>
    %cst = arith.constant dense<0.000000e+00> : vector<64x256xf32>
    %4 = tpu.matmul %1, %3, %cst {dimension_numbers = #tpu.dot_dimension_numbers<[1], [0], [0], [1], [0, 0, 1, 1], [], []>} : vector<64x32xbf16>, vector<32x256xbf16>, vector<64x256xf32> -> vector<64x256xf32>
    %5 = arith.truncf %4 : vector<64x256xf32> to vector<64x256xbf16>
    %c0_3 = arith.constant 0 : index
    %c0_4 = arith.constant 0 : index
    %6 = vector.load %arg3[%c0_3, %c0_4] : memref<8x256xf32, #tpu.memory_space<vmem>>, vector<8x256xf32>
    %cst_5 = arith.constant dense<0.000000e+00> : vector<64x8xf32>
    %7 = tpu.matmul %4, %6, %cst_5 {dimension_numbers = #tpu.dot_dimension_numbers<[1], [1], [0], [0], [0, 0, 1, 0], [], []>} : vector<64x256xf32>, vector<8x256xf32>, vector<64x8xf32> -> vector<64x8xf32>
    %c0_6 = arith.constant 0 : index
    %c0_7 = arith.constant 0 : index
    %8 = vector.load %arg2[%c0_6, %c0_7] : memref<8x256xf32, #tpu.memory_space<vmem>>, vector<8x256xf32>
    %cst_8 = arith.constant dense<0.000000e+00> : vector<8x64xf32>
    %9 = tpu.matmul %8, %4, %cst_8 {dimension_numbers = #tpu.dot_dimension_numbers<[1], [1], [0], [0], [0, 0, 1, 0], [], []>} : vector<8x256xf32>, vector<64x256xf32>, vector<8x64xf32> -> vector<8x64xf32>
    %c0_9 = arith.constant 0 : index
    %c0_10 = arith.constant 0 : index
    %10 = vector.load %arg5[%c0_9, %c0_10] : memref<64x64xf32, #tpu.memory_space<vmem>>, vector<64x64xf32>
    %cst_11 = arith.constant 0.000000e+00 : f32
    %11 = vector.broadcast %cst_11 : f32 to vector<64x32xf32>
    %12 = vector.extract_strided_slice %7 {offsets = [0, 0], sizes = [64, 1], strides = [1, 1]} : vector<64x8xf32> to vector<64x1xf32>
    %13 = vector.extract_strided_slice %9 {offsets = [0, 0], sizes = [1, 64], strides = [1, 1]} : vector<8x64xf32> to vector<1x64xf32>
    %14 = vector.broadcast %12 : vector<64x1xf32> to vector<64x64xf32>
    %15 = vector.broadcast %13 : vector<1x64xf32> to vector<64x64xf32>
    %16 = arith.addf %14, %15 : vector<64x64xf32>
    %cst_12 = arith.constant 0.000000e+00 : f32
    %17 = vector.broadcast %cst_12 : f32 to vector<64x64xf32>
    %18 = arith.cmpf ogt, %16, %17 : vector<64x64xf32>
    %cst_13 = arith.constant 2.000000e-01 : f32
    %19 = vector.broadcast %cst_13 : f32 to vector<64x64xf32>
    %20 = arith.mulf %19, %16 : vector<64x64xf32>
    %21 = arith.select %18, %16, %20 : vector<64x64xi1>, vector<64x64xf32>
    %22 = arith.addf %21, %10 : vector<64x64xf32>
    %cst_14 = arith.constant dense<0xFF800000> : vector<64xf32>
    %23 = vector.multi_reduction <maximumf>, %22, %cst_14 [1] : vector<64x64xf32> to vector<64xf32>
    %24 = vector.shape_cast %23 : vector<64xf32> to vector<64x1xf32>
    %25 = vector.broadcast %24 : vector<64x1xf32> to vector<64x64xf32>
    %26 = arith.subf %22, %25 : vector<64x64xf32>
    %27 = math.exp %26 : vector<64x64xf32>
    %cst_15 = arith.constant dense<0.000000e+00> : vector<64xf32>
    %28 = vector.multi_reduction <add>, %27, %cst_15 [1] : vector<64x64xf32> to vector<64xf32>
    %29 = vector.shape_cast %28 : vector<64xf32> to vector<64x1xf32>
    %30 = vector.extract_strided_slice %5 {offsets = [0, 0], sizes = [64, 32], strides = [1, 1]} : vector<64x256xbf16> to vector<64x32xbf16>
    %31 = arith.truncf %27 : vector<64x64xf32> to vector<64x64xbf16>
    %cst_16 = arith.constant dense<0.000000e+00> : vector<64x32xf32>
    %32 = tpu.matmul %31, %30, %cst_16 {dimension_numbers = #tpu.dot_dimension_numbers<[1], [0], [0], [1], [0, 0, 1, 1], [], []>} : vector<64x64xbf16>, vector<64x32xbf16>, vector<64x32xf32> -> vector<64x32xf32>
    %33 = tpu.reciprocal %29 {approx = true} : vector<64x1xf32> -> vector<64x1xf32>
    %34 = vector.broadcast %33 : vector<64x1xf32> to vector<64x32xf32>
    %35 = arith.mulf %32, %34 : vector<64x32xf32>
    %36 = arith.addf %11, %35 : vector<64x32xf32>
    %37 = vector.extract_strided_slice %7 {offsets = [0, 1], sizes = [64, 1], strides = [1, 1]} : vector<64x8xf32> to vector<64x1xf32>
    %38 = vector.extract_strided_slice %9 {offsets = [1, 0], sizes = [1, 64], strides = [1, 1]} : vector<8x64xf32> to vector<1x64xf32>
    %39 = vector.broadcast %37 : vector<64x1xf32> to vector<64x64xf32>
    %40 = vector.broadcast %38 : vector<1x64xf32> to vector<64x64xf32>
    %41 = arith.addf %39, %40 : vector<64x64xf32>
    %cst_17 = arith.constant 0.000000e+00 : f32
    %42 = vector.broadcast %cst_17 : f32 to vector<64x64xf32>
    %43 = arith.cmpf ogt, %41, %42 : vector<64x64xf32>
    %cst_18 = arith.constant 2.000000e-01 : f32
    %44 = vector.broadcast %cst_18 : f32 to vector<64x64xf32>
    %45 = arith.mulf %44, %41 : vector<64x64xf32>
    %46 = arith.select %43, %41, %45 : vector<64x64xi1>, vector<64x64xf32>
    %47 = arith.addf %46, %10 : vector<64x64xf32>
    %cst_19 = arith.constant dense<0xFF800000> : vector<64xf32>
    %48 = vector.multi_reduction <maximumf>, %47, %cst_19 [1] : vector<64x64xf32> to vector<64xf32>
    %49 = vector.shape_cast %48 : vector<64xf32> to vector<64x1xf32>
    %50 = vector.broadcast %49 : vector<64x1xf32> to vector<64x64xf32>
    %51 = arith.subf %47, %50 : vector<64x64xf32>
    %52 = math.exp %51 : vector<64x64xf32>
    %cst_20 = arith.constant dense<0.000000e+00> : vector<64xf32>
    %53 = vector.multi_reduction <add>, %52, %cst_20 [1] : vector<64x64xf32> to vector<64xf32>
    %54 = vector.shape_cast %53 : vector<64xf32> to vector<64x1xf32>
    %55 = vector.extract_strided_slice %5 {offsets = [0, 32], sizes = [64, 32], strides = [1, 1]} : vector<64x256xbf16> to vector<64x32xbf16>
    %56 = arith.truncf %52 : vector<64x64xf32> to vector<64x64xbf16>
    %cst_21 = arith.constant dense<0.000000e+00> : vector<64x32xf32>
    %57 = tpu.matmul %56, %55, %cst_21 {dimension_numbers = #tpu.dot_dimension_numbers<[1], [0], [0], [1], [0, 0, 1, 1], [], []>} : vector<64x64xbf16>, vector<64x32xbf16>, vector<64x32xf32> -> vector<64x32xf32>
    %58 = tpu.reciprocal %54 {approx = true} : vector<64x1xf32> -> vector<64x1xf32>
    %59 = vector.broadcast %58 : vector<64x1xf32> to vector<64x32xf32>
    %60 = arith.mulf %57, %59 : vector<64x32xf32>
    %61 = arith.addf %36, %60 : vector<64x32xf32>
    %62 = vector.extract_strided_slice %7 {offsets = [0, 2], sizes = [64, 1], strides = [1, 1]} : vector<64x8xf32> to vector<64x1xf32>
    %63 = vector.extract_strided_slice %9 {offsets = [2, 0], sizes = [1, 64], strides = [1, 1]} : vector<8x64xf32> to vector<1x64xf32>
    %64 = vector.broadcast %62 : vector<64x1xf32> to vector<64x64xf32>
    %65 = vector.broadcast %63 : vector<1x64xf32> to vector<64x64xf32>
    %66 = arith.addf %64, %65 : vector<64x64xf32>
    %cst_22 = arith.constant 0.000000e+00 : f32
    %67 = vector.broadcast %cst_22 : f32 to vector<64x64xf32>
    %68 = arith.cmpf ogt, %66, %67 : vector<64x64xf32>
    %cst_23 = arith.constant 2.000000e-01 : f32
    %69 = vector.broadcast %cst_23 : f32 to vector<64x64xf32>
    %70 = arith.mulf %69, %66 : vector<64x64xf32>
    %71 = arith.select %68, %66, %70 : vector<64x64xi1>, vector<64x64xf32>
    %72 = arith.addf %71, %10 : vector<64x64xf32>
    %cst_24 = arith.constant dense<0xFF800000> : vector<64xf32>
    %73 = vector.multi_reduction <maximumf>, %72, %cst_24 [1] : vector<64x64xf32> to vector<64xf32>
    %74 = vector.shape_cast %73 : vector<64xf32> to vector<64x1xf32>
    %75 = vector.broadcast %74 : vector<64x1xf32> to vector<64x64xf32>
    %76 = arith.subf %72, %75 : vector<64x64xf32>
    %77 = math.exp %76 : vector<64x64xf32>
    %cst_25 = arith.constant dense<0.000000e+00> : vector<64xf32>
    %78 = vector.multi_reduction <add>, %77, %cst_25 [1] : vector<64x64xf32> to vector<64xf32>
    %79 = vector.shape_cast %78 : vector<64xf32> to vector<64x1xf32>
    %80 = vector.extract_strided_slice %5 {offsets = [0, 64], sizes = [64, 32], strides = [1, 1]} : vector<64x256xbf16> to vector<64x32xbf16>
    %81 = arith.truncf %77 : vector<64x64xf32> to vector<64x64xbf16>
    %cst_26 = arith.constant dense<0.000000e+00> : vector<64x32xf32>
    %82 = tpu.matmul %81, %80, %cst_26 {dimension_numbers = #tpu.dot_dimension_numbers<[1], [0], [0], [1], [0, 0, 1, 1], [], []>} : vector<64x64xbf16>, vector<64x32xbf16>, vector<64x32xf32> -> vector<64x32xf32>
    %83 = tpu.reciprocal %79 {approx = true} : vector<64x1xf32> -> vector<64x1xf32>
    %84 = vector.broadcast %83 : vector<64x1xf32> to vector<64x32xf32>
    %85 = arith.mulf %82, %84 : vector<64x32xf32>
    %86 = arith.addf %61, %85 : vector<64x32xf32>
    %87 = vector.extract_strided_slice %7 {offsets = [0, 3], sizes = [64, 1], strides = [1, 1]} : vector<64x8xf32> to vector<64x1xf32>
    %88 = vector.extract_strided_slice %9 {offsets = [3, 0], sizes = [1, 64], strides = [1, 1]} : vector<8x64xf32> to vector<1x64xf32>
    %89 = vector.broadcast %87 : vector<64x1xf32> to vector<64x64xf32>
    %90 = vector.broadcast %88 : vector<1x64xf32> to vector<64x64xf32>
    %91 = arith.addf %89, %90 : vector<64x64xf32>
    %cst_27 = arith.constant 0.000000e+00 : f32
    %92 = vector.broadcast %cst_27 : f32 to vector<64x64xf32>
    %93 = arith.cmpf ogt, %91, %92 : vector<64x64xf32>
    %cst_28 = arith.constant 2.000000e-01 : f32
    %94 = vector.broadcast %cst_28 : f32 to vector<64x64xf32>
    %95 = arith.mulf %94, %91 : vector<64x64xf32>
    %96 = arith.select %93, %91, %95 : vector<64x64xi1>, vector<64x64xf32>
    %97 = arith.addf %96, %10 : vector<64x64xf32>
    %cst_29 = arith.constant dense<0xFF800000> : vector<64xf32>
    %98 = vector.multi_reduction <maximumf>, %97, %cst_29 [1] : vector<64x64xf32> to vector<64xf32>
    %99 = vector.shape_cast %98 : vector<64xf32> to vector<64x1xf32>
    %100 = vector.broadcast %99 : vector<64x1xf32> to vector<64x64xf32>
    %101 = arith.subf %97, %100 : vector<64x64xf32>
    %102 = math.exp %101 : vector<64x64xf32>
    %cst_30 = arith.constant dense<0.000000e+00> : vector<64xf32>
    %103 = vector.multi_reduction <add>, %102, %cst_30 [1] : vector<64x64xf32> to vector<64xf32>
    %104 = vector.shape_cast %103 : vector<64xf32> to vector<64x1xf32>
    %105 = vector.extract_strided_slice %5 {offsets = [0, 96], sizes = [64, 32], strides = [1, 1]} : vector<64x256xbf16> to vector<64x32xbf16>
    %106 = arith.truncf %102 : vector<64x64xf32> to vector<64x64xbf16>
    %cst_31 = arith.constant dense<0.000000e+00> : vector<64x32xf32>
    %107 = tpu.matmul %106, %105, %cst_31 {dimension_numbers = #tpu.dot_dimension_numbers<[1], [0], [0], [1], [0, 0, 1, 1], [], []>} : vector<64x64xbf16>, vector<64x32xbf16>, vector<64x32xf32> -> vector<64x32xf32>
    %108 = tpu.reciprocal %104 {approx = true} : vector<64x1xf32> -> vector<64x1xf32>
    %109 = vector.broadcast %108 : vector<64x1xf32> to vector<64x32xf32>
    %110 = arith.mulf %107, %109 : vector<64x32xf32>
    %111 = arith.addf %86, %110 : vector<64x32xf32>
    %112 = vector.extract_strided_slice %7 {offsets = [0, 4], sizes = [64, 1], strides = [1, 1]} : vector<64x8xf32> to vector<64x1xf32>
    %113 = vector.extract_strided_slice %9 {offsets = [4, 0], sizes = [1, 64], strides = [1, 1]} : vector<8x64xf32> to vector<1x64xf32>
    %114 = vector.broadcast %112 : vector<64x1xf32> to vector<64x64xf32>
    %115 = vector.broadcast %113 : vector<1x64xf32> to vector<64x64xf32>
    %116 = arith.addf %114, %115 : vector<64x64xf32>
    %cst_32 = arith.constant 0.000000e+00 : f32
    %117 = vector.broadcast %cst_32 : f32 to vector<64x64xf32>
    %118 = arith.cmpf ogt, %116, %117 : vector<64x64xf32>
    %cst_33 = arith.constant 2.000000e-01 : f32
    %119 = vector.broadcast %cst_33 : f32 to vector<64x64xf32>
    %120 = arith.mulf %119, %116 : vector<64x64xf32>
    %121 = arith.select %118, %116, %120 : vector<64x64xi1>, vector<64x64xf32>
    %122 = arith.addf %121, %10 : vector<64x64xf32>
    %cst_34 = arith.constant dense<0xFF800000> : vector<64xf32>
    %123 = vector.multi_reduction <maximumf>, %122, %cst_34 [1] : vector<64x64xf32> to vector<64xf32>
    %124 = vector.shape_cast %123 : vector<64xf32> to vector<64x1xf32>
    %125 = vector.broadcast %124 : vector<64x1xf32> to vector<64x64xf32>
    %126 = arith.subf %122, %125 : vector<64x64xf32>
    %127 = math.exp %126 : vector<64x64xf32>
    %cst_35 = arith.constant dense<0.000000e+00> : vector<64xf32>
    %128 = vector.multi_reduction <add>, %127, %cst_35 [1] : vector<64x64xf32> to vector<64xf32>
    %129 = vector.shape_cast %128 : vector<64xf32> to vector<64x1xf32>
    %130 = vector.extract_strided_slice %5 {offsets = [0, 128], sizes = [64, 32], strides = [1, 1]} : vector<64x256xbf16> to vector<64x32xbf16>
    %131 = arith.truncf %127 : vector<64x64xf32> to vector<64x64xbf16>
    %cst_36 = arith.constant dense<0.000000e+00> : vector<64x32xf32>
    %132 = tpu.matmul %131, %130, %cst_36 {dimension_numbers = #tpu.dot_dimension_numbers<[1], [0], [0], [1], [0, 0, 1, 1], [], []>} : vector<64x64xbf16>, vector<64x32xbf16>, vector<64x32xf32> -> vector<64x32xf32>
    %133 = tpu.reciprocal %129 {approx = true} : vector<64x1xf32> -> vector<64x1xf32>
    %134 = vector.broadcast %133 : vector<64x1xf32> to vector<64x32xf32>
    %135 = arith.mulf %132, %134 : vector<64x32xf32>
    %136 = arith.addf %111, %135 : vector<64x32xf32>
    %137 = vector.extract_strided_slice %7 {offsets = [0, 5], sizes = [64, 1], strides = [1, 1]} : vector<64x8xf32> to vector<64x1xf32>
    %138 = vector.extract_strided_slice %9 {offsets = [5, 0], sizes = [1, 64], strides = [1, 1]} : vector<8x64xf32> to vector<1x64xf32>
    %139 = vector.broadcast %137 : vector<64x1xf32> to vector<64x64xf32>
    %140 = vector.broadcast %138 : vector<1x64xf32> to vector<64x64xf32>
    %141 = arith.addf %139, %140 : vector<64x64xf32>
    %cst_37 = arith.constant 0.000000e+00 : f32
    %142 = vector.broadcast %cst_37 : f32 to vector<64x64xf32>
    %143 = arith.cmpf ogt, %141, %142 : vector<64x64xf32>
    %cst_38 = arith.constant 2.000000e-01 : f32
    %144 = vector.broadcast %cst_38 : f32 to vector<64x64xf32>
    %145 = arith.mulf %144, %141 : vector<64x64xf32>
    %146 = arith.select %143, %141, %145 : vector<64x64xi1>, vector<64x64xf32>
    %147 = arith.addf %146, %10 : vector<64x64xf32>
    %cst_39 = arith.constant dense<0xFF800000> : vector<64xf32>
    %148 = vector.multi_reduction <maximumf>, %147, %cst_39 [1] : vector<64x64xf32> to vector<64xf32>
    %149 = vector.shape_cast %148 : vector<64xf32> to vector<64x1xf32>
    %150 = vector.broadcast %149 : vector<64x1xf32> to vector<64x64xf32>
    %151 = arith.subf %147, %150 : vector<64x64xf32>
    %152 = math.exp %151 : vector<64x64xf32>
    %cst_40 = arith.constant dense<0.000000e+00> : vector<64xf32>
    %153 = vector.multi_reduction <add>, %152, %cst_40 [1] : vector<64x64xf32> to vector<64xf32>
    %154 = vector.shape_cast %153 : vector<64xf32> to vector<64x1xf32>
    %155 = vector.extract_strided_slice %5 {offsets = [0, 160], sizes = [64, 32], strides = [1, 1]} : vector<64x256xbf16> to vector<64x32xbf16>
    %156 = arith.truncf %152 : vector<64x64xf32> to vector<64x64xbf16>
    %cst_41 = arith.constant dense<0.000000e+00> : vector<64x32xf32>
    %157 = tpu.matmul %156, %155, %cst_41 {dimension_numbers = #tpu.dot_dimension_numbers<[1], [0], [0], [1], [0, 0, 1, 1], [], []>} : vector<64x64xbf16>, vector<64x32xbf16>, vector<64x32xf32> -> vector<64x32xf32>
    %158 = tpu.reciprocal %154 {approx = true} : vector<64x1xf32> -> vector<64x1xf32>
    %159 = vector.broadcast %158 : vector<64x1xf32> to vector<64x32xf32>
    %160 = arith.mulf %157, %159 : vector<64x32xf32>
    %161 = arith.addf %136, %160 : vector<64x32xf32>
    %162 = vector.extract_strided_slice %7 {offsets = [0, 6], sizes = [64, 1], strides = [1, 1]} : vector<64x8xf32> to vector<64x1xf32>
    %163 = vector.extract_strided_slice %9 {offsets = [6, 0], sizes = [1, 64], strides = [1, 1]} : vector<8x64xf32> to vector<1x64xf32>
    %164 = vector.broadcast %162 : vector<64x1xf32> to vector<64x64xf32>
    %165 = vector.broadcast %163 : vector<1x64xf32> to vector<64x64xf32>
    %166 = arith.addf %164, %165 : vector<64x64xf32>
    %cst_42 = arith.constant 0.000000e+00 : f32
    %167 = vector.broadcast %cst_42 : f32 to vector<64x64xf32>
    %168 = arith.cmpf ogt, %166, %167 : vector<64x64xf32>
    %cst_43 = arith.constant 2.000000e-01 : f32
    %169 = vector.broadcast %cst_43 : f32 to vector<64x64xf32>
    %170 = arith.mulf %169, %166 : vector<64x64xf32>
    %171 = arith.select %168, %166, %170 : vector<64x64xi1>, vector<64x64xf32>
    %172 = arith.addf %171, %10 : vector<64x64xf32>
    %cst_44 = arith.constant dense<0xFF800000> : vector<64xf32>
    %173 = vector.multi_reduction <maximumf>, %172, %cst_44 [1] : vector<64x64xf32> to vector<64xf32>
    %174 = vector.shape_cast %173 : vector<64xf32> to vector<64x1xf32>
    %175 = vector.broadcast %174 : vector<64x1xf32> to vector<64x64xf32>
    %176 = arith.subf %172, %175 : vector<64x64xf32>
    %177 = math.exp %176 : vector<64x64xf32>
    %cst_45 = arith.constant dense<0.000000e+00> : vector<64xf32>
    %178 = vector.multi_reduction <add>, %177, %cst_45 [1] : vector<64x64xf32> to vector<64xf32>
    %179 = vector.shape_cast %178 : vector<64xf32> to vector<64x1xf32>
    %180 = vector.extract_strided_slice %5 {offsets = [0, 192], sizes = [64, 32], strides = [1, 1]} : vector<64x256xbf16> to vector<64x32xbf16>
    %181 = arith.truncf %177 : vector<64x64xf32> to vector<64x64xbf16>
    %cst_46 = arith.constant dense<0.000000e+00> : vector<64x32xf32>
    %182 = tpu.matmul %181, %180, %cst_46 {dimension_numbers = #tpu.dot_dimension_numbers<[1], [0], [0], [1], [0, 0, 1, 1], [], []>} : vector<64x64xbf16>, vector<64x32xbf16>, vector<64x32xf32> -> vector<64x32xf32>
    %183 = tpu.reciprocal %179 {approx = true} : vector<64x1xf32> -> vector<64x1xf32>
    %184 = vector.broadcast %183 : vector<64x1xf32> to vector<64x32xf32>
    %185 = arith.mulf %182, %184 : vector<64x32xf32>
    %186 = arith.addf %161, %185 : vector<64x32xf32>
    %187 = vector.extract_strided_slice %7 {offsets = [0, 7], sizes = [64, 1], strides = [1, 1]} : vector<64x8xf32> to vector<64x1xf32>
    %188 = vector.extract_strided_slice %9 {offsets = [7, 0], sizes = [1, 64], strides = [1, 1]} : vector<8x64xf32> to vector<1x64xf32>
    %189 = vector.broadcast %187 : vector<64x1xf32> to vector<64x64xf32>
    %190 = vector.broadcast %188 : vector<1x64xf32> to vector<64x64xf32>
    %191 = arith.addf %189, %190 : vector<64x64xf32>
    %cst_47 = arith.constant 0.000000e+00 : f32
    %192 = vector.broadcast %cst_47 : f32 to vector<64x64xf32>
    %193 = arith.cmpf ogt, %191, %192 : vector<64x64xf32>
    %cst_48 = arith.constant 2.000000e-01 : f32
    %194 = vector.broadcast %cst_48 : f32 to vector<64x64xf32>
    %195 = arith.mulf %194, %191 : vector<64x64xf32>
    %196 = arith.select %193, %191, %195 : vector<64x64xi1>, vector<64x64xf32>
    %197 = arith.addf %196, %10 : vector<64x64xf32>
    %cst_49 = arith.constant dense<0xFF800000> : vector<64xf32>
    %198 = vector.multi_reduction <maximumf>, %197, %cst_49 [1] : vector<64x64xf32> to vector<64xf32>
    %199 = vector.shape_cast %198 : vector<64xf32> to vector<64x1xf32>
    %200 = vector.broadcast %199 : vector<64x1xf32> to vector<64x64xf32>
    %201 = arith.subf %197, %200 : vector<64x64xf32>
    %202 = math.exp %201 : vector<64x64xf32>
    %cst_50 = arith.constant dense<0.000000e+00> : vector<64xf32>
    %203 = vector.multi_reduction <add>, %202, %cst_50 [1] : vector<64x64xf32> to vector<64xf32>
    %204 = vector.shape_cast %203 : vector<64xf32> to vector<64x1xf32>
    %205 = vector.extract_strided_slice %5 {offsets = [0, 224], sizes = [64, 32], strides = [1, 1]} : vector<64x256xbf16> to vector<64x32xbf16>
    %206 = arith.truncf %202 : vector<64x64xf32> to vector<64x64xbf16>
    %cst_51 = arith.constant dense<0.000000e+00> : vector<64x32xf32>
    %207 = tpu.matmul %206, %205, %cst_51 {dimension_numbers = #tpu.dot_dimension_numbers<[1], [0], [0], [1], [0, 0, 1, 1], [], []>} : vector<64x64xbf16>, vector<64x32xbf16>, vector<64x32xf32> -> vector<64x32xf32>
    %208 = tpu.reciprocal %204 {approx = true} : vector<64x1xf32> -> vector<64x1xf32>
    %209 = vector.broadcast %208 : vector<64x1xf32> to vector<64x32xf32>
    %210 = arith.mulf %207, %209 : vector<64x32xf32>
    %211 = arith.addf %186, %210 : vector<64x32xf32>
    %cst_52 = arith.constant 1.250000e-01 : f32
    %212 = vector.broadcast %cst_52 : f32 to vector<64x32xf32>
    %213 = arith.mulf %211, %212 : vector<64x32xf32>
    %c0_53 = arith.constant 0 : index
    %c0_54 = arith.constant 0 : index
    %214 = vector.load %arg4[%c0_53, %c0_54] : memref<1x32xf32, #tpu.memory_space<vmem>>, vector<1x32xf32>
    %215 = vector.broadcast %214 : vector<1x32xf32> to vector<64x32xf32>
    %216 = arith.addf %213, %215 : vector<64x32xf32>
    %cst_55 = arith.constant 0.000000e+00 : f32
    %217 = vector.broadcast %cst_55 : f32 to vector<64x32xf32>
    %218 = arith.maximumf %216, %217 : vector<64x32xf32>
    %c0_56 = arith.constant 0 : index
    %c0_57 = arith.constant 0 : index
    %219 = vector.load %arg6[%c0_56, %c0_57] : memref<64x32xf32, #tpu.memory_space<vmem>>, vector<64x32xf32>
    tpu.vector_store %arg6[%c0_56, %c0_57], %218 {strides = array<i32>} : memref<64x32xf32, #tpu.memory_space<vmem>>, vector<64x32xf32>,
    return
  }
}

module attributes {stable_mosaic.version = 11 : i64} {
  func.func @_gat_layer_kernel(%arg0: memref<64x32xf32, #tpu.memory_space<vmem>>, %arg1: memref<32x1024xf32, #tpu.memory_space<vmem>>, %arg2: memref<8x1024xf32, #tpu.memory_space<vmem>>, %arg3: memref<8x1024xf32, #tpu.memory_space<vmem>>, %arg4: memref<1x128xf32, #tpu.memory_space<vmem>>, %arg5: memref<64x64xf32, #tpu.memory_space<vmem>>, %arg6: memref<64x128xf32, #tpu.memory_space<vmem>>) attributes {dimension_semantics = [], scalar_prefetch = 0 : i64, scratch_operands = 0 : i64, tpu.core_type = #tpu.core_type<tc>} {
    %c0 = arith.constant 0 : index
    %c0_0 = arith.constant 0 : index
    %0 = vector.load %arg0[%c0, %c0_0] : memref<64x32xf32, #tpu.memory_space<vmem>>, vector<64x32xf32>
    %1 = arith.truncf %0 : vector<64x32xf32> to vector<64x32xbf16>
    %c0_1 = arith.constant 0 : index
    %c0_2 = arith.constant 0 : index
    %2 = vector.load %arg1[%c0_1, %c0_2] : memref<32x1024xf32, #tpu.memory_space<vmem>>, vector<32x1024xf32>
    %3 = arith.truncf %2 : vector<32x1024xf32> to vector<32x1024xbf16>
    %cst = arith.constant dense<0.000000e+00> : vector<64x1024xf32>
    %4 = tpu.matmul %1, %3, %cst {dimension_numbers = #tpu.dot_dimension_numbers<[1], [0], [0], [1], [0, 0, 1, 1], [], []>} : vector<64x32xbf16>, vector<32x1024xbf16>, vector<64x1024xf32> -> vector<64x1024xf32>
    %5 = arith.truncf %4 : vector<64x1024xf32> to vector<64x1024xbf16>
    %c0_3 = arith.constant 0 : index
    %c0_4 = arith.constant 0 : index
    %6 = vector.load %arg3[%c0_3, %c0_4] : memref<8x1024xf32, #tpu.memory_space<vmem>>, vector<8x1024xf32>
    %cst_5 = arith.constant dense<0.000000e+00> : vector<64x8xf32>
    %7 = tpu.matmul %4, %6, %cst_5 {dimension_numbers = #tpu.dot_dimension_numbers<[1], [1], [0], [0], [0, 0, 1, 0], [], []>} : vector<64x1024xf32>, vector<8x1024xf32>, vector<64x8xf32> -> vector<64x8xf32>
    %c0_6 = arith.constant 0 : index
    %c0_7 = arith.constant 0 : index
    %8 = vector.load %arg2[%c0_6, %c0_7] : memref<8x1024xf32, #tpu.memory_space<vmem>>, vector<8x1024xf32>
    %cst_8 = arith.constant dense<0.000000e+00> : vector<8x64xf32>
    %9 = tpu.matmul %8, %4, %cst_8 {dimension_numbers = #tpu.dot_dimension_numbers<[1], [1], [0], [0], [0, 0, 1, 0], [], []>} : vector<8x1024xf32>, vector<64x1024xf32>, vector<8x64xf32> -> vector<8x64xf32>
    %c0_9 = arith.constant 0 : index
    %c0_10 = arith.constant 0 : index
    %10 = vector.load %arg5[%c0_9, %c0_10] : memref<64x64xf32, #tpu.memory_space<vmem>>, vector<64x64xf32>
    %cst_11 = arith.constant 0.000000e+00 : f32
    %11 = vector.broadcast %cst_11 : f32 to vector<64x128xf32>
    %12 = vector.extract_strided_slice %7 {offsets = [0, 0], sizes = [64, 1], strides = [1, 1]} : vector<64x8xf32> to vector<64x1xf32>
    %13 = vector.extract_strided_slice %9 {offsets = [0, 0], sizes = [1, 64], strides = [1, 1]} : vector<8x64xf32> to vector<1x64xf32>
    %14 = vector.broadcast %12 : vector<64x1xf32> to vector<64x64xf32>
    %15 = vector.broadcast %13 : vector<1x64xf32> to vector<64x64xf32>
    %16 = arith.addf %14, %15 : vector<64x64xf32>
    %cst_12 = arith.constant 0.000000e+00 : f32
    %17 = vector.broadcast %cst_12 : f32 to vector<64x64xf32>
    %18 = arith.cmpf ogt, %16, %17 : vector<64x64xf32>
    %cst_13 = arith.constant 2.000000e-01 : f32
    %19 = vector.broadcast %cst_13 : f32 to vector<64x64xf32>
    %20 = arith.mulf %19, %16 : vector<64x64xf32>
    %21 = arith.select %18, %16, %20 : vector<64x64xi1>, vector<64x64xf32>
    %22 = arith.addf %21, %10 : vector<64x64xf32>
    %cst_14 = arith.constant dense<0xFF800000> : vector<64xf32>
    %23 = vector.multi_reduction <maximumf>, %22, %cst_14 [1] : vector<64x64xf32> to vector<64xf32>
    %24 = vector.shape_cast %23 : vector<64xf32> to vector<64x1xf32>
    %25 = vector.broadcast %24 : vector<64x1xf32> to vector<64x64xf32>
    %26 = arith.subf %22, %25 : vector<64x64xf32>
    %27 = math.exp %26 : vector<64x64xf32>
    %cst_15 = arith.constant dense<0.000000e+00> : vector<64xf32>
    %28 = vector.multi_reduction <add>, %27, %cst_15 [1] : vector<64x64xf32> to vector<64xf32>
    %29 = vector.shape_cast %28 : vector<64xf32> to vector<64x1xf32>
    %30 = vector.extract_strided_slice %5 {offsets = [0, 0], sizes = [64, 128], strides = [1, 1]} : vector<64x1024xbf16> to vector<64x128xbf16>
    %31 = arith.truncf %27 : vector<64x64xf32> to vector<64x64xbf16>
    %cst_16 = arith.constant dense<0.000000e+00> : vector<64x128xf32>
    %32 = tpu.matmul %31, %30, %cst_16 {dimension_numbers = #tpu.dot_dimension_numbers<[1], [0], [0], [1], [0, 0, 1, 1], [], []>} : vector<64x64xbf16>, vector<64x128xbf16>, vector<64x128xf32> -> vector<64x128xf32>
    %33 = tpu.reciprocal %29 {approx = true} : vector<64x1xf32> -> vector<64x1xf32>
    %34 = vector.broadcast %33 : vector<64x1xf32> to vector<64x128xf32>
    %35 = arith.mulf %32, %34 : vector<64x128xf32>
    %36 = arith.addf %11, %35 : vector<64x128xf32>
    %37 = vector.extract_strided_slice %7 {offsets = [0, 1], sizes = [64, 1], strides = [1, 1]} : vector<64x8xf32> to vector<64x1xf32>
    %38 = vector.extract_strided_slice %9 {offsets = [1, 0], sizes = [1, 64], strides = [1, 1]} : vector<8x64xf32> to vector<1x64xf32>
    %39 = vector.broadcast %37 : vector<64x1xf32> to vector<64x64xf32>
    %40 = vector.broadcast %38 : vector<1x64xf32> to vector<64x64xf32>
    %41 = arith.addf %39, %40 : vector<64x64xf32>
    %cst_17 = arith.constant 0.000000e+00 : f32
    %42 = vector.broadcast %cst_17 : f32 to vector<64x64xf32>
    %43 = arith.cmpf ogt, %41, %42 : vector<64x64xf32>
    %cst_18 = arith.constant 2.000000e-01 : f32
    %44 = vector.broadcast %cst_18 : f32 to vector<64x64xf32>
    %45 = arith.mulf %44, %41 : vector<64x64xf32>
    %46 = arith.select %43, %41, %45 : vector<64x64xi1>, vector<64x64xf32>
    %47 = arith.addf %46, %10 : vector<64x64xf32>
    %cst_19 = arith.constant dense<0xFF800000> : vector<64xf32>
    %48 = vector.multi_reduction <maximumf>, %47, %cst_19 [1] : vector<64x64xf32> to vector<64xf32>
    %49 = vector.shape_cast %48 : vector<64xf32> to vector<64x1xf32>
    %50 = vector.broadcast %49 : vector<64x1xf32> to vector<64x64xf32>
    %51 = arith.subf %47, %50 : vector<64x64xf32>
    %52 = math.exp %51 : vector<64x64xf32>
    %cst_20 = arith.constant dense<0.000000e+00> : vector<64xf32>
    %53 = vector.multi_reduction <add>, %52, %cst_20 [1] : vector<64x64xf32> to vector<64xf32>
    %54 = vector.shape_cast %53 : vector<64xf32> to vector<64x1xf32>
    %55 = vector.extract_strided_slice %5 {offsets = [0, 128], sizes = [64, 128], strides = [1, 1]} : vector<64x1024xbf16> to vector<64x128xbf16>
    %56 = arith.truncf %52 : vector<64x64xf32> to vector<64x64xbf16>
    %cst_21 = arith.constant dense<0.000000e+00> : vector<64x128xf32>
    %57 = tpu.matmul %56, %55, %cst_21 {dimension_numbers = #tpu.dot_dimension_numbers<[1], [0], [0], [1], [0, 0, 1, 1], [], []>} : vector<64x64xbf16>, vector<64x128xbf16>, vector<64x128xf32> -> vector<64x128xf32>
    %58 = tpu.reciprocal %54 {approx = true} : vector<64x1xf32> -> vector<64x1xf32>
    %59 = vector.broadcast %58 : vector<64x1xf32> to vector<64x128xf32>
    %60 = arith.mulf %57, %59 : vector<64x128xf32>
    %61 = arith.addf %36, %60 : vector<64x128xf32>
    %62 = vector.extract_strided_slice %7 {offsets = [0, 2], sizes = [64, 1], strides = [1, 1]} : vector<64x8xf32> to vector<64x1xf32>
    %63 = vector.extract_strided_slice %9 {offsets = [2, 0], sizes = [1, 64], strides = [1, 1]} : vector<8x64xf32> to vector<1x64xf32>
    %64 = vector.broadcast %62 : vector<64x1xf32> to vector<64x64xf32>
    %65 = vector.broadcast %63 : vector<1x64xf32> to vector<64x64xf32>
    %66 = arith.addf %64, %65 : vector<64x64xf32>
    %cst_22 = arith.constant 0.000000e+00 : f32
    %67 = vector.broadcast %cst_22 : f32 to vector<64x64xf32>
    %68 = arith.cmpf ogt, %66, %67 : vector<64x64xf32>
    %cst_23 = arith.constant 2.000000e-01 : f32
    %69 = vector.broadcast %cst_23 : f32 to vector<64x64xf32>
    %70 = arith.mulf %69, %66 : vector<64x64xf32>
    %71 = arith.select %68, %66, %70 : vector<64x64xi1>, vector<64x64xf32>
    %72 = arith.addf %71, %10 : vector<64x64xf32>
    %cst_24 = arith.constant dense<0xFF800000> : vector<64xf32>
    %73 = vector.multi_reduction <maximumf>, %72, %cst_24 [1] : vector<64x64xf32> to vector<64xf32>
    %74 = vector.shape_cast %73 : vector<64xf32> to vector<64x1xf32>
    %75 = vector.broadcast %74 : vector<64x1xf32> to vector<64x64xf32>
    %76 = arith.subf %72, %75 : vector<64x64xf32>
    %77 = math.exp %76 : vector<64x64xf32>
    %cst_25 = arith.constant dense<0.000000e+00> : vector<64xf32>
    %78 = vector.multi_reduction <add>, %77, %cst_25 [1] : vector<64x64xf32> to vector<64xf32>
    %79 = vector.shape_cast %78 : vector<64xf32> to vector<64x1xf32>
    %80 = vector.extract_strided_slice %5 {offsets = [0, 256], sizes = [64, 128], strides = [1, 1]} : vector<64x1024xbf16> to vector<64x128xbf16>
    %81 = arith.truncf %77 : vector<64x64xf32> to vector<64x64xbf16>
    %cst_26 = arith.constant dense<0.000000e+00> : vector<64x128xf32>
    %82 = tpu.matmul %81, %80, %cst_26 {dimension_numbers = #tpu.dot_dimension_numbers<[1], [0], [0], [1], [0, 0, 1, 1], [], []>} : vector<64x64xbf16>, vector<64x128xbf16>, vector<64x128xf32> -> vector<64x128xf32>
    %83 = tpu.reciprocal %79 {approx = true} : vector<64x1xf32> -> vector<64x1xf32>
    %84 = vector.broadcast %83 : vector<64x1xf32> to vector<64x128xf32>
    %85 = arith.mulf %82, %84 : vector<64x128xf32>
    %86 = arith.addf %61, %85 : vector<64x128xf32>
    %87 = vector.extract_strided_slice %7 {offsets = [0, 3], sizes = [64, 1], strides = [1, 1]} : vector<64x8xf32> to vector<64x1xf32>
    %88 = vector.extract_strided_slice %9 {offsets = [3, 0], sizes = [1, 64], strides = [1, 1]} : vector<8x64xf32> to vector<1x64xf32>
    %89 = vector.broadcast %87 : vector<64x1xf32> to vector<64x64xf32>
    %90 = vector.broadcast %88 : vector<1x64xf32> to vector<64x64xf32>
    %91 = arith.addf %89, %90 : vector<64x64xf32>
    %cst_27 = arith.constant 0.000000e+00 : f32
    %92 = vector.broadcast %cst_27 : f32 to vector<64x64xf32>
    %93 = arith.cmpf ogt, %91, %92 : vector<64x64xf32>
    %cst_28 = arith.constant 2.000000e-01 : f32
    %94 = vector.broadcast %cst_28 : f32 to vector<64x64xf32>
    %95 = arith.mulf %94, %91 : vector<64x64xf32>
    %96 = arith.select %93, %91, %95 : vector<64x64xi1>, vector<64x64xf32>
    %97 = arith.addf %96, %10 : vector<64x64xf32>
    %cst_29 = arith.constant dense<0xFF800000> : vector<64xf32>
    %98 = vector.multi_reduction <maximumf>, %97, %cst_29 [1] : vector<64x64xf32> to vector<64xf32>
    %99 = vector.shape_cast %98 : vector<64xf32> to vector<64x1xf32>
    %100 = vector.broadcast %99 : vector<64x1xf32> to vector<64x64xf32>
    %101 = arith.subf %97, %100 : vector<64x64xf32>
    %102 = math.exp %101 : vector<64x64xf32>
    %cst_30 = arith.constant dense<0.000000e+00> : vector<64xf32>
    %103 = vector.multi_reduction <add>, %102, %cst_30 [1] : vector<64x64xf32> to vector<64xf32>
    %104 = vector.shape_cast %103 : vector<64xf32> to vector<64x1xf32>
    %105 = vector.extract_strided_slice %5 {offsets = [0, 384], sizes = [64, 128], strides = [1, 1]} : vector<64x1024xbf16> to vector<64x128xbf16>
    %106 = arith.truncf %102 : vector<64x64xf32> to vector<64x64xbf16>
    %cst_31 = arith.constant dense<0.000000e+00> : vector<64x128xf32>
    %107 = tpu.matmul %106, %105, %cst_31 {dimension_numbers = #tpu.dot_dimension_numbers<[1], [0], [0], [1], [0, 0, 1, 1], [], []>} : vector<64x64xbf16>, vector<64x128xbf16>, vector<64x128xf32> -> vector<64x128xf32>
    %108 = tpu.reciprocal %104 {approx = true} : vector<64x1xf32> -> vector<64x1xf32>
    %109 = vector.broadcast %108 : vector<64x1xf32> to vector<64x128xf32>
    %110 = arith.mulf %107, %109 : vector<64x128xf32>
    %111 = arith.addf %86, %110 : vector<64x128xf32>
    %112 = vector.extract_strided_slice %7 {offsets = [0, 4], sizes = [64, 1], strides = [1, 1]} : vector<64x8xf32> to vector<64x1xf32>
    %113 = vector.extract_strided_slice %9 {offsets = [4, 0], sizes = [1, 64], strides = [1, 1]} : vector<8x64xf32> to vector<1x64xf32>
    %114 = vector.broadcast %112 : vector<64x1xf32> to vector<64x64xf32>
    %115 = vector.broadcast %113 : vector<1x64xf32> to vector<64x64xf32>
    %116 = arith.addf %114, %115 : vector<64x64xf32>
    %cst_32 = arith.constant 0.000000e+00 : f32
    %117 = vector.broadcast %cst_32 : f32 to vector<64x64xf32>
    %118 = arith.cmpf ogt, %116, %117 : vector<64x64xf32>
    %cst_33 = arith.constant 2.000000e-01 : f32
    %119 = vector.broadcast %cst_33 : f32 to vector<64x64xf32>
    %120 = arith.mulf %119, %116 : vector<64x64xf32>
    %121 = arith.select %118, %116, %120 : vector<64x64xi1>, vector<64x64xf32>
    %122 = arith.addf %121, %10 : vector<64x64xf32>
    %cst_34 = arith.constant dense<0xFF800000> : vector<64xf32>
    %123 = vector.multi_reduction <maximumf>, %122, %cst_34 [1] : vector<64x64xf32> to vector<64xf32>
    %124 = vector.shape_cast %123 : vector<64xf32> to vector<64x1xf32>
    %125 = vector.broadcast %124 : vector<64x1xf32> to vector<64x64xf32>
    %126 = arith.subf %122, %125 : vector<64x64xf32>
    %127 = math.exp %126 : vector<64x64xf32>
    %cst_35 = arith.constant dense<0.000000e+00> : vector<64xf32>
    %128 = vector.multi_reduction <add>, %127, %cst_35 [1] : vector<64x64xf32> to vector<64xf32>
    %129 = vector.shape_cast %128 : vector<64xf32> to vector<64x1xf32>
    %130 = vector.extract_strided_slice %5 {offsets = [0, 512], sizes = [64, 128], strides = [1, 1]} : vector<64x1024xbf16> to vector<64x128xbf16>
    %131 = arith.truncf %127 : vector<64x64xf32> to vector<64x64xbf16>
    %cst_36 = arith.constant dense<0.000000e+00> : vector<64x128xf32>
    %132 = tpu.matmul %131, %130, %cst_36 {dimension_numbers = #tpu.dot_dimension_numbers<[1], [0], [0], [1], [0, 0, 1, 1], [], []>} : vector<64x64xbf16>, vector<64x128xbf16>, vector<64x128xf32> -> vector<64x128xf32>
    %133 = tpu.reciprocal %129 {approx = true} : vector<64x1xf32> -> vector<64x1xf32>
    %134 = vector.broadcast %133 : vector<64x1xf32> to vector<64x128xf32>
    %135 = arith.mulf %132, %134 : vector<64x128xf32>
    %136 = arith.addf %111, %135 : vector<64x128xf32>
    %137 = vector.extract_strided_slice %7 {offsets = [0, 5], sizes = [64, 1], strides = [1, 1]} : vector<64x8xf32> to vector<64x1xf32>
    %138 = vector.extract_strided_slice %9 {offsets = [5, 0], sizes = [1, 64], strides = [1, 1]} : vector<8x64xf32> to vector<1x64xf32>
    %139 = vector.broadcast %137 : vector<64x1xf32> to vector<64x64xf32>
    %140 = vector.broadcast %138 : vector<1x64xf32> to vector<64x64xf32>
    %141 = arith.addf %139, %140 : vector<64x64xf32>
    %cst_37 = arith.constant 0.000000e+00 : f32
    %142 = vector.broadcast %cst_37 : f32 to vector<64x64xf32>
    %143 = arith.cmpf ogt, %141, %142 : vector<64x64xf32>
    %cst_38 = arith.constant 2.000000e-01 : f32
    %144 = vector.broadcast %cst_38 : f32 to vector<64x64xf32>
    %145 = arith.mulf %144, %141 : vector<64x64xf32>
    %146 = arith.select %143, %141, %145 : vector<64x64xi1>, vector<64x64xf32>
    %147 = arith.addf %146, %10 : vector<64x64xf32>
    %cst_39 = arith.constant dense<0xFF800000> : vector<64xf32>
    %148 = vector.multi_reduction <maximumf>, %147, %cst_39 [1] : vector<64x64xf32> to vector<64xf32>
    %149 = vector.shape_cast %148 : vector<64xf32> to vector<64x1xf32>
    %150 = vector.broadcast %149 : vector<64x1xf32> to vector<64x64xf32>
    %151 = arith.subf %147, %150 : vector<64x64xf32>
    %152 = math.exp %151 : vector<64x64xf32>
    %cst_40 = arith.constant dense<0.000000e+00> : vector<64xf32>
    %153 = vector.multi_reduction <add>, %152, %cst_40 [1] : vector<64x64xf32> to vector<64xf32>
    %154 = vector.shape_cast %153 : vector<64xf32> to vector<64x1xf32>
    %155 = vector.extract_strided_slice %5 {offsets = [0, 640], sizes = [64, 128], strides = [1, 1]} : vector<64x1024xbf16> to vector<64x128xbf16>
    %156 = arith.truncf %152 : vector<64x64xf32> to vector<64x64xbf16>
    %cst_41 = arith.constant dense<0.000000e+00> : vector<64x128xf32>
    %157 = tpu.matmul %156, %155, %cst_41 {dimension_numbers = #tpu.dot_dimension_numbers<[1], [0], [0], [1], [0, 0, 1, 1], [], []>} : vector<64x64xbf16>, vector<64x128xbf16>, vector<64x128xf32> -> vector<64x128xf32>
    %158 = tpu.reciprocal %154 {approx = true} : vector<64x1xf32> -> vector<64x1xf32>
    %159 = vector.broadcast %158 : vector<64x1xf32> to vector<64x128xf32>
    %160 = arith.mulf %157, %159 : vector<64x128xf32>
    %161 = arith.addf %136, %160 : vector<64x128xf32>
    %162 = vector.extract_strided_slice %7 {offsets = [0, 6], sizes = [64, 1], strides = [1, 1]} : vector<64x8xf32> to vector<64x1xf32>
    %163 = vector.extract_strided_slice %9 {offsets = [6, 0], sizes = [1, 64], strides = [1, 1]} : vector<8x64xf32> to vector<1x64xf32>
    %164 = vector.broadcast %162 : vector<64x1xf32> to vector<64x64xf32>
    %165 = vector.broadcast %163 : vector<1x64xf32> to vector<64x64xf32>
    %166 = arith.addf %164, %165 : vector<64x64xf32>
    %cst_42 = arith.constant 0.000000e+00 : f32
    %167 = vector.broadcast %cst_42 : f32 to vector<64x64xf32>
    %168 = arith.cmpf ogt, %166, %167 : vector<64x64xf32>
    %cst_43 = arith.constant 2.000000e-01 : f32
    %169 = vector.broadcast %cst_43 : f32 to vector<64x64xf32>
    %170 = arith.mulf %169, %166 : vector<64x64xf32>
    %171 = arith.select %168, %166, %170 : vector<64x64xi1>, vector<64x64xf32>
    %172 = arith.addf %171, %10 : vector<64x64xf32>
    %cst_44 = arith.constant dense<0xFF800000> : vector<64xf32>
    %173 = vector.multi_reduction <maximumf>, %172, %cst_44 [1] : vector<64x64xf32> to vector<64xf32>
    %174 = vector.shape_cast %173 : vector<64xf32> to vector<64x1xf32>
    %175 = vector.broadcast %174 : vector<64x1xf32> to vector<64x64xf32>
    %176 = arith.subf %172, %175 : vector<64x64xf32>
    %177 = math.exp %176 : vector<64x64xf32>
    %cst_45 = arith.constant dense<0.000000e+00> : vector<64xf32>
    %178 = vector.multi_reduction <add>, %177, %cst_45 [1] : vector<64x64xf32> to vector<64xf32>
    %179 = vector.shape_cast %178 : vector<64xf32> to vector<64x1xf32>
    %180 = vector.extract_strided_slice %5 {offsets = [0, 768], sizes = [64, 128], strides = [1, 1]} : vector<64x1024xbf16> to vector<64x128xbf16>
    %181 = arith.truncf %177 : vector<64x64xf32> to vector<64x64xbf16>
    %cst_46 = arith.constant dense<0.000000e+00> : vector<64x128xf32>
    %182 = tpu.matmul %181, %180, %cst_46 {dimension_numbers = #tpu.dot_dimension_numbers<[1], [0], [0], [1], [0, 0, 1, 1], [], []>} : vector<64x64xbf16>, vector<64x128xbf16>, vector<64x128xf32> -> vector<64x128xf32>
    %183 = tpu.reciprocal %179 {approx = true} : vector<64x1xf32> -> vector<64x1xf32>
    %184 = vector.broadcast %183 : vector<64x1xf32> to vector<64x128xf32>
    %185 = arith.mulf %182, %184 : vector<64x128xf32>
    %186 = arith.addf %161, %185 : vector<64x128xf32>
    %187 = vector.extract_strided_slice %7 {offsets = [0, 7], sizes = [64, 1], strides = [1, 1]} : vector<64x8xf32> to vector<64x1xf32>
    %188 = vector.extract_strided_slice %9 {offsets = [7, 0], sizes = [1, 64], strides = [1, 1]} : vector<8x64xf32> to vector<1x64xf32>
    %189 = vector.broadcast %187 : vector<64x1xf32> to vector<64x64xf32>
    %190 = vector.broadcast %188 : vector<1x64xf32> to vector<64x64xf32>
    %191 = arith.addf %189, %190 : vector<64x64xf32>
    %cst_47 = arith.constant 0.000000e+00 : f32
    %192 = vector.broadcast %cst_47 : f32 to vector<64x64xf32>
    %193 = arith.cmpf ogt, %191, %192 : vector<64x64xf32>
    %cst_48 = arith.constant 2.000000e-01 : f32
    %194 = vector.broadcast %cst_48 : f32 to vector<64x64xf32>
    %195 = arith.mulf %194, %191 : vector<64x64xf32>
    %196 = arith.select %193, %191, %195 : vector<64x64xi1>, vector<64x64xf32>
    %197 = arith.addf %196, %10 : vector<64x64xf32>
    %cst_49 = arith.constant dense<0xFF800000> : vector<64xf32>
    %198 = vector.multi_reduction <maximumf>, %197, %cst_49 [1] : vector<64x64xf32> to vector<64xf32>
    %199 = vector.shape_cast %198 : vector<64xf32> to vector<64x1xf32>
    %200 = vector.broadcast %199 : vector<64x1xf32> to vector<64x64xf32>
    %201 = arith.subf %197, %200 : vector<64x64xf32>
    %202 = math.exp %201 : vector<64x64xf32>
    %cst_50 = arith.constant dense<0.000000e+00> : vector<64xf32>
    %203 = vector.multi_reduction <add>, %202, %cst_50 [1] : vector<64x64xf32> to vector<64xf32>
    %204 = vector.shape_cast %203 : vector<64xf32> to vector<64x1xf32>
    %205 = vector.extract_strided_slice %5 {offsets = [0, 896], sizes = [64, 128], strides = [1, 1]} : vector<64x1024xbf16> to vector<64x128xbf16>
    %206 = arith.truncf %202 : vector<64x64xf32> to vector<64x64xbf16>
    %cst_51 = arith.constant dense<0.000000e+00> : vector<64x128xf32>
    %207 = tpu.matmul %206, %205, %cst_51 {dimension_numbers = #tpu.dot_dimension_numbers<[1], [0], [0], [1], [0, 0, 1, 1], [], []>} : vector<64x64xbf16>, vector<64x128xbf16>, vector<64x128xf32> -> vector<64x128xf32>
    %208 = tpu.reciprocal %204 {approx = true} : vector<64x1xf32> -> vector<64x1xf32>
    %209 = vector.broadcast %208 : vector<64x1xf32> to vector<64x128xf32>
    %210 = arith.mulf %207, %209 : vector<64x128xf32>
    %211 = arith.addf %186, %210 : vector<64x128xf32>
    %cst_52 = arith.constant 1.250000e-01 : f32
    %212 = vector.broadcast %cst_52 : f32 to vector<64x128xf32>
    %213 = arith.mulf %211, %212 : vector<64x128xf32>
    %c0_53 = arith.constant 0 : index
    %c0_54 = arith.constant 0 : index
    %214 = vector.load %arg4[%c0_53, %c0_54] : memref<1x128xf32, #tpu.memory_space<vmem>>, vector<1x128xf32>
    %215 = vector.broadcast %214 : vector<1x128xf32> to vector<64x128xf32>
    %216 = arith.addf %213, %215 : vector<64x128xf32>
    %217 = tpu.iota {dimensions = array<i32: 1>} : vector<64x128xi32>
    %c8_i32 = arith.constant 8 : i32
    %218 = vector.broadcast %c8_i32 : i32 to vector<64x128xi32>
    %219 = arith.cmpi slt, %217, %218 : vector<64x128xi32>
    %cst_55 = arith.constant -1.000000e+30 : f32
    %220 = vector.broadcast %cst_55 : f32 to vector<64x128xf32>
    %221 = arith.select %219, %216, %220 : vector<64x128xi1>, vector<64x128xf32>
    %cst_56 = arith.constant dense<0xFF800000> : vector<64xf32>
    %222 = vector.multi_reduction <maximumf>, %221, %cst_56 [1] : vector<64x128xf32> to vector<64xf32>
    %223 = vector.shape_cast %222 : vector<64xf32> to vector<64x1xf32>
    %224 = vector.broadcast %223 : vector<64x1xf32> to vector<64x128xf32>
    %225 = arith.subf %221, %224 : vector<64x128xf32>
    %226 = math.exp %225 : vector<64x128xf32>
    %cst_57 = arith.constant dense<0.000000e+00> : vector<64xf32>
    %227 = vector.multi_reduction <add>, %226, %cst_57 [1] : vector<64x128xf32> to vector<64xf32>
    %228 = vector.shape_cast %227 : vector<64xf32> to vector<64x1xf32>
    %229 = math.log %228 : vector<64x1xf32>
    %230 = vector.broadcast %229 : vector<64x1xf32> to vector<64x128xf32>
    %231 = arith.subf %225, %230 : vector<64x128xf32>
    %c0_58 = arith.constant 0 : index
    %c0_59 = arith.constant 0 : index
    %232 = vector.load %arg6[%c0_58, %c0_59] : memref<64x128xf32, #tpu.memory_space<vmem>>, vector<64x128xf32>
    tpu.vector_store %arg6[%c0_58, %c0_59], %231 {strides = array<i32>} : memref<64x128xf32, #tpu.memory_space<vmem>>, vector<64x128xf32>,
    return
  }
}

</mosaic_0001>

<bundles_post_ra>
// kernel: a_call__.2
= control target key start
LH: loop header
LB: loop body
LE: loop exit
PB: predicated region body
PF: predicated region fallthrough
CT: control target
= control target key end

     0   :  { %v3068_v3 = vmov 0   ;;  %vm48_vm0 = vcmask 261120   ;;  %s3069_s8 = smov 64   ;;  %v3072_v44 = vmov 1   ;;  %vm413_vm2 = vcmask 523264   ;;  %s4586_s1 = inlined_call_operand.vmem [shape: f32[32,256], index: 1, kind: input, shape index: {}]   ;;  %s4587_s0 = inlined_call_operand.vmem [shape: f32[64,32], index: 0, kind: input, shape index: {}]   ;;  %s4588_s3 = inlined_call_operand.vmem [shape: f32[8,256], index: 3, kind: input, shape index: {}]   ;;  %s4589_s2 = inlined_call_operand.vmem [shape: f32[8,256], index: 2, kind: input, shape index: {}]   ;;  %s4590_s5 = inlined_call_operand.vmem [shape: f32[64,64], index: 5, kind: input, shape index: {}]   ;;  %s4591_s4 = inlined_call_operand.vmem [shape: f32[1,32], index: 4, kind: input, shape index: {}]   ;;  %s4592_s6 = inlined_call_operand.vmem [shape: f32[64,32], index: 6, kind: output, shape index: {}]  }
   0x1   :  { %v37_v0 = vld [vmem:[%s4586_s1 + $0x8] sm:$0xff]  ;;  %v39_v1 = vld [vmem:[%s4586_s1 + $0x18] sm:$0xff]  ;;  %v36_v2 = vld [vmem:[%s4586_s1] sm:$0xff]  ;;  %93 = vmatprep.mubr.bf16.mxu0 %v3068_v3  ;;  %2749 = vset.pattern.permute.xlu0 %v3068_v3 }
   0x2   :  { %v45_v4 = vpack.c.bf16 %v39_v1, %v37_v0  ;;  %v38_v5 = vld [vmem:[%s4586_s1 + $0x10] sm:$0xff]  ;;  %v41_v6 = vld [vmem:[%s4586_s1 + $0x28] sm:$0xff]  ;;  %v43_v7 = vld [vmem:[%s4586_s1 + $0x38] sm:$0xff]  ;;  %2750 = vset.pattern.permute.xlu1 %v3072_v44 }
   0x3   :  { %v44_v8 = vpack.c.bf16 %v38_v5, %v36_v2  ;;  %v47_v9 = vpack.c.bf16 %v43_v7, %v41_v6  ;;  %v40_v10 = vld [vmem:[%s4586_s1 + $0x20] sm:$0xff]  ;;  %v42_v11 = vld [vmem:[%s4586_s1 + $0x30] sm:$0xff]  ;;  %v25_v14 = vld [vmem:[%s4587_s0 + $0x8] sm:$0xff]  ;;  %v3073_v5 = vmov 2   ;;  %v3074_v6 = vmov 3  }
   0x4   :  { %61 = vmatprep.subr.bf16.mxu0 %v45_v4  ;;  %v46_v12 = vpack.c.bf16 %v42_v11, %v40_v10  ;;  %v24_v13 = vld [vmem:[%s4587_s0] sm:$0xff]  ;;  %v143_v15 = vld [vmem:[%s4588_s3 + $0x8] sm:$0xff]  ;;  %v26_v17 = vld [vmem:[%s4587_s0 + $0x10] sm:$0xff]  ;;  %v3076_v10 = vmov 6  }
   0x5   :  { %62 = vmatpush1.bf16.msra.mxu0 %v44_v8  ;;  %144 = vmatprep.subr.mxu1 %v143_v15  ;;  %v32_v16 = vpack.c.bf16 %v25_v14, %v24_v13  ;;  %v27_v18 = vld [vmem:[%s4587_s0 + $0x18] sm:$0xff]  ;;  %v28_v20 = vld [vmem:[%s4587_s0 + $0x20] sm:$0xff]  ;;  %v29_v21 = vld [vmem:[%s4587_s0 + $0x28] sm:$0xff]  ;;  %v3077_v13 = vmov 5  }
   0x6   :  { %63 = vmatprep.subr.bf16.mxu0 %v47_v9  ;;  %v33_v19 = vpack.c.bf16 %v27_v18, %v26_v17  ;;  %v34_v22 = vpack.c.bf16 %v29_v21, %v28_v20  ;;  %v30_v23 = vld [vmem:[%s4587_s0 + $0x30] sm:$0xff]  ;;  %v31_v24 = vld [vmem:[%s4587_s0 + $0x38] sm:$0xff]  ;;  %v142_v26 = vld [vmem:[%s4588_s3] sm:$0xff]  ;;  %s3070_s0 = smov 96   ;;  %s3071_s3 = smov 32   ;;  %v3075_v9 = vmov 4  }
   0x7   :  { %v35_v25 = vpack.c.bf16 %v31_v24, %v30_v23  ;;  %145 = vmatpush1.xpose.msra.mxu1 %v142_v26  ;;  %v250_v52 = vld [vmem:[%s4589_s2 + $0x8] sm:$0xff]  ;;  %v249_v53 = vld [vmem:[%s4589_s2] sm:$0xff] }
   0x9   :  { %64 = vmatpush1.bf16.msra.mxu0 %v46_v12 }
   0xc   :  { %2485 = vmatmul.mubr.msk.bf16.vlgmr.msra.gmra.mrb[0].mxu0 %vm48_vm0, %v32_v16  ;;  %v3078_v16 = vmov 7  }
   0xd   :  { %103 = vmatprep.mubr.bf16.mxu0 %v3068_v3 }
  0x14   :  { %2486 = vmatmul.mubr.msk.bf16.gmra.mrb[4].mxu0 %vm48_vm0, %v33_v19 }
  0x15   :  { %113 = vmatprep.mubr.bf16.mxu0 %v3068_v3 }
  0x1c   :  { %2487 = vmatmul.mubr.msk.bf16.gmra.mrb[8].mxu0 %vm48_vm0, %v34_v22  ;;  %v369_v22 = vlaneseq }
  0x1d   :  { %123 = vmatprep.mubr.bf16.mxu0 %v3068_v3 }
  0x1e   :  { %v3250_v24 = vshrl.u32 %v369_v22, 7 }
  0x24   :  { %2488 = vmatmul.mubr.msk.bf16.gmra.mrb[12].mxu0 %vm48_vm0, %v35_v25  ;;  %v2211_v25 = vsub.s32 7, %v3250_v24 }
  0xdf   :  { %v95_v27 = vpop.f32.mrb[0].mxu0 }
  0xe0   :  { %v97_v28 = vpop.f32.mrb[1].mxu0 }
  0xe1   :  { %v99_v29 = vpop.f32.mrb[2].mxu0  ;;  %208 = vmatprep.mubr.f32.mxu1 %v97_v28 }
  0xe2   :  { %v134_v30 = vpack.c.bf16 %v99_v29, %v95_v27  ;;  %v101_v31 = vpop.f32.mrb[3].mxu0  ;;  %209 = vmatmul.mubr.f32.vlgmr.msra.gmra.mrb[0].mxu1 %v95_v27 }
  0xe3   :  { %v3177_v32 = vpack.c.bf16 %v101_v31, %v97_v28  ;;  %213 = vmatprep.mubr.f32.mxu1 %v101_v31  ;;  %v371_v31 = vsub.s32 0, %v3250_v24 }
  0xe4   :  { %1012 = vrot.lane.b32.xlu0 %v134_v30, %s3069_s8  ;;  %747 = vrot.lane.b32.xlu1 %v134_v30, %s3070_s0 }
  0xe5   :  { %2586 = vmatprep.subr.bf16.mxu0 %v134_v30  ;;  %2715 = vmatprep.subr.bf16.mxu1 %v3177_v32 }
  0xe6   :  { %2587 = vmatpush3.bf16.msra.mxu0 %v134_v30  ;;  %214 = vmatmul.mubr.f32.gmra.mrb[2].mxu1 %v99_v29 }
  0xe7   :  { %2717 = vmatpush1.bf16.xpose.msra.mxu1 %v134_v30  ;;  %v105_v33 = vpop.f32.mrb[4].mxu0 }
  0xe8   :  { %1277 = vrot.lane.b32.xlu1 %v134_v30, %s3071_s3  ;;  %1799 = vrot.lane.b32.xlu0 %v3177_v32, %s3070_s0  ;;  %v107_v34 = vpop.f32.mrb[5].mxu0 }
  0xe9   :  { %v109_v35 = vpop.f32.mrb[6].mxu0  ;;  %218 = vmatprep.mubr.f32.mxu1 %v107_v34 }
  0xea   :  { %v136_v36 = vpack.c.bf16 %v109_v35, %v105_v33  ;;  %v111_v37 = vpop.f32.mrb[7].mxu0  ;;  %219 = vmatmul.mubr.f32.gmra.mrb[4].mxu1 %v105_v33 }
  0xeb   :  { %v3185_v38 = vpack.c.bf16 %v111_v37, %v107_v34  ;;  %223 = vmatprep.mubr.f32.mxu1 %v111_v37 }
  0xec   :  { %2064 = vrot.lane.b32.xlu1 %v3177_v32, %s3069_s8  ;;  %749 = vrot.lane.b32.xlu0 %v136_v36, %s3070_s0 }
  0xed   :  { %2719 = vmatprep.subr.bf16.mxu1 %v3185_v38  ;;  %2588 = vmatprep.subr.bf16.mxu0 %v136_v36 }
  0xee   :  { %224 = vmatmul.mubr.f32.gmra.mrb[6].mxu1 %v109_v35  ;;  %2589 = vmatpush3.bf16.msra.mxu0 %v136_v36 }
  0xef   :  { %v115_v39 = vpop.f32.mrb[8].mxu0  ;;  %2721 = vmatpush1.bf16.xpose.msra.mxu1 %v136_v36 }
  0xf0   :  { %1014 = vrot.lane.b32.xlu1 %v136_v36, %s3069_s8  ;;  %v117_v40 = vpop.f32.mrb[9].mxu0  ;;  %1279 = vrot.lane.b32.xlu0 %v136_v36, %s3071_s3  ;;  %v1159_v36 = vsub.s32 3, %v3250_v24 }
  0xf1   :  { %v119_v41 = vpop.f32.mrb[10].mxu0  ;;  %228 = vmatprep.mubr.f32.mxu1 %v117_v40 }
  0xf2   :  { %v138_v42 = vpack.c.bf16 %v119_v41, %v115_v39  ;;  %v121_v43 = vpop.f32.mrb[11].mxu0  ;;  %229 = vmatmul.mubr.f32.gmra.mrb[8].mxu1 %v115_v39 }
  0xf3   :  { %v3194_v45 = vpack.c.bf16 %v121_v43, %v117_v40  ;;  %233 = vmatprep.mubr.f32.mxu1 %v121_v43  ;;  %v1946_v43 = vsub.s32 6, %v3250_v24 }
  0xf4   :  { %751 = vrot.lane.b32.xlu1 %v138_v42, %s3070_s0  ;;  %2590 = vmatprep.subr.bf16.mxu0 %v138_v42 }
  0xf5   :  { %2723 = vmatprep.subr.bf16.mxu1 %v3194_v45  ;;  %1281 = vrot.lane.b32.xlu0 %v138_v42, %s3071_s3 }
  0xf6   :  { %234 = vmatmul.mubr.f32.gmra.mrb[10].mxu1 %v119_v41  ;;  %2591 = vmatpush3.bf16.msra.mxu0 %v138_v42 }
  0xf7   :  { %v125_v46 = vpop.f32.mrb[12].mxu0  ;;  %2725 = vmatpush1.bf16.xpose.msra.mxu1 %v138_v42 }
  0xf8   :  { %1016 = vrot.lane.b32.xlu1 %v138_v42, %s3069_s8  ;;  %v127_v47 = vpop.f32.mrb[13].mxu0 }
  0xf9   :  { %v129_v48 = vpop.f32.mrb[14].mxu0  ;;  %238 = vmatprep.mubr.f32.mxu1 %v127_v47 }
  0xfa   :  { %v140_v49 = vpack.c.bf16 %v129_v48, %v125_v46  ;;  %239 = vmatmul.mubr.f32.gmra.mrb[12].mxu1 %v125_v46  ;;  %v131_v50 = vpop.f32.mrb[15].mxu0 }
  0xfb   :  { %v3200_v51 = vpack.c.bf16 %v131_v50, %v127_v47  ;;  %243 = vmatprep.mubr.f32.mxu1 %v131_v50 }
  0xfc   :  { %753 = vrot.lane.b32.xlu1 %v140_v49, %s3070_s0  ;;  %2592 = vmatprep.subr.bf16.mxu0 %v140_v49 }
  0xfd   :  { %2727 = vmatprep.subr.bf16.mxu1 %v3200_v51  ;;  %2593 = vmatpush3.bf16.msra.mxu0 %v140_v49 }
  0xfe   :  { %244 = vmatmul.mubr.f32.gmra.mrb[14].mxu1 %v129_v48  ;;  %1018 = vrot.lane.b32.xlu0 %v140_v49, %s3069_s8  ;;  %v3352_v48 = vld [vmem:[%s4590_s5] sm:$0xff] }
  0xff   :  { %2729 = vmatpush1.bf16.xpose.msra.mxu1 %v140_v49  ;;  %315 = vmatprep.mubr.f32.mxu1 %v250_v52  ;;  %v1677_v52 = vsub.s32 5, %v3250_v24 }
 0x100   :  { %1283 = vrot.lane.b32.xlu1 %v140_v49, %s3071_s3 }
 0x106   :  { %316 = vmatmul.mubr.f32.vlgmr.msra.gmra.mrb[16].mxu1 %v249_v53 }
 0x156   :  { %v3212_v54 = vpop.permute.xlu0 %1012  ;;  %v748_v55 = vpop.permute.xlu1 %747 }
 0x157   :  { %2602 = vmatprep.subr.bf16.mxu1 %v748_v55  ;;  %2618 = vmatprep.subr.bf16.mxu0 %v3212_v54 }
 0x158   :  { %2603 = vmatpush3.bf16.msra.mxu1 %v748_v55 }
 0x15a   :  { %v3215_v56 = vpop.permute.xlu1 %1277  ;;  %v3217_v57 = vpop.permute.xlu0 %1799 }
 0x15b   :  { %4636 = vst [vmem:[#allocation2_spill] sm:$0xff] %v3215_v56  ;;  %4637 = vst [vmem:[#allocation3_spill] sm:$0xff] %v3217_v57 }
 0x15e   :  { %v3219_v58 = vpop.permute.xlu1 %2064  ;;  %v750_v59 = vpop.permute.xlu0 %749 }
 0x15f   :  { %4638 = vst [vmem:[#allocation4_spill] sm:$0xff] %v3219_v58  ;;  %2604 = vmatprep.subr.bf16.mxu1 %v750_v59 }
 0x160   :  { %2605 = vmatpush3.bf16.msra.mxu1 %v750_v59 }
 0x162   :  { %v3221_v60 = vpop.permute.xlu1 %1014  ;;  %v3320_v29 = vpop.permute.xlu0 %1279 }
 0x163   :  { %4640 = vst [vmem:[#allocation6_spill] sm:$0xff] %v3320_v29 }
 0x166   :  { %v752_v61 = vpop.permute.xlu1 %751 }
 0x167   :  { %2606 = vmatprep.subr.bf16.mxu1 %v752_v61  ;;  %v3323_v30 = vpop.permute.xlu0 %1281 }
 0x168   :  { %2607 = vmatpush3.bf16.msra.mxu1 %v752_v61  ;;  %4641 = vst [vmem:[#allocation7_spill] sm:$0xff] %v3323_v30 }
 0x16a   :  { %v3223_v62 = vpop.permute.xlu1 %1016 }
 0x16b   :  { %4639 = vst [vmem:[#allocation5_spill] sm:$0xff] %v3223_v62 }
 0x16e   :  { %v754_v63 = vpop.permute.xlu1 %753 }
 0x16f   :  { %2608 = vmatprep.subr.bf16.mxu1 %v754_v63 }
 0x170   :  { %2609 = vmatpush3.bf16.msra.mxu1 %v754_v63  ;;  %v3328_v33 = vpop.permute.xlu0 %1018 }
 0x171   :  { %2634 = vmatprep.subr.bf16.mxu1 %v3215_v56  ;;  %4642 = vst [vmem:[#allocation8_spill] sm:$0xff] %v3328_v33 }
 0x172   :  { %v3330_v34 = vpop.permute.xlu1 %1283 }
 0x173   :  { %4643 = vst [vmem:[#allocation9_spill] sm:$0xff] %v3330_v34 }
 0x1b5   :  { %v210_v0 = vpop.f32.mrb[0].mxu1 }
 0x1b6   :  { %v212_v1 = vpop.f32.mrb[1].mxu1  ;;  %331 = vperm.xlu0 %2749, %v210_v0   ;;  %592 = vperm.xlu1 %2750, %v210_v0  }
 0x1b9   :  { %v215_v2 = vpop.f32.mrb[2].mxu1 }
 0x1ba   :  { %v217_v4 = vpop.f32.mrb[3].mxu1  ;;  %2751 = vset.pattern.permute.xlu0 %v3073_v5  ;;  %2752 = vset.pattern.permute.xlu1 %v3074_v6 }
 0x1bb   :  { %861 = vperm.xlu0 %2751, %v210_v0   ;;  %1126 = vperm.xlu1 %2752, %v210_v0  }
 0x1bd   :  { %v3228_v7 = vpop.f32.mrb[4].mxu1 }
 0x1be   :  { %v222_v8 = vpop.f32.mrb[5].mxu1 }
 0x1bf   :  { %2753 = vset.pattern.permute.xlu0 %v3075_v9  ;;  %2755 = vset.pattern.permute.xlu1 %v3076_v10 }
 0x1c0   :  { %1391 = vperm.xlu0 %2753, %v210_v0   ;;  %1913 = vperm.xlu1 %2755, %v210_v0  }
 0x1c1   :  { %v3232_v11 = vpop.f32.mrb[6].mxu1 }
 0x1c2   :  { %v227_v12 = vpop.f32.mrb[7].mxu1 }
 0x1c4   :  { %2754 = vset.pattern.permute.xlu0 %v3077_v13  ;;  %2759 = vset.pattern.permute.xlu1 %v3073_v5 }
 0x1c5   :  { %1644 = vperm.xlu0 %2754, %v210_v0   ;;  %865 = vperm.xlu1 %2759, %v215_v2   ;;  %v3236_v14 = vpop.f32.mrb[8].mxu1 }
 0x1c6   :  { %v232_v15 = vpop.f32.mrb[9].mxu1 }
 0x1c9   :  { %2756 = vset.pattern.permute.xlu0 %v3078_v16  ;;  %2761 = vset.pattern.permute.xlu1 %v3075_v9  ;;  %v3240_v17 = vpop.f32.mrb[10].mxu1 }
 0x1ca   :  { %2178 = vperm.xlu0 %2756, %v210_v0   ;;  %1395 = vperm.xlu1 %2761, %v215_v2   ;;  %v237_v18 = vpop.f32.mrb[11].mxu1 }
 0x1cd   :  { %v3242_v19 = vpop.f32.mrb[12].mxu1 }
 0x1ce   :  { %2757 = vset.pattern.permute.xlu0 %v3068_v3  ;;  %2762 = vset.pattern.permute.xlu1 %v3077_v13  ;;  %v242_v20 = vpop.f32.mrb[13].mxu1 }
 0x1cf   :  { %336 = vperm.xlu0 %2757, %v215_v2   ;;  %1648 = vperm.xlu1 %2762, %v215_v2  }
 0x1d1   :  { %v3246_v21 = vpop.f32.mrb[14].mxu1 }
 0x1d2   :  { %v247_v23 = vpop.f32.mrb[15].mxu1 }
 0x1d3   :  { %2758 = vset.pattern.permute.xlu0 %v3072_v44  ;;  %2764 = vset.pattern.permute.xlu1 %v3078_v16 }
 0x1d4   :  { %596 = vperm.xlu0 %2758, %v215_v2   ;;  %2182 = vperm.xlu1 %2764, %v215_v2  }
 0x1d8   :  { %2760 = vset.pattern.permute.xlu0 %v3074_v6  ;;  %2765 = vset.pattern.permute.xlu1 %v3068_v3 }
 0x1d9   :  { %1130 = vperm.xlu0 %2760, %v215_v2   ;;  %341 = vperm.xlu1 %2765, %v3228_v7   ;;  %v3256_v26 = vpop.f32.mrb[16].mxu1 }
 0x1da   :  { %v319_v27 = vpop.f32.mrb[17].mxu1  ;;  %v3259_v28 = vrot.slane %v3256_v26, %v2211_v25  ;;  %v3334_v35 = vrot.slane %v3256_v26, %v371_v31  ;;  %v3342_v41 = vrot.slane %v3256_v26, %v1159_v36  ;;  %v3358_v53 = vrot.slane %v3256_v26, %v1946_v43 }
 0x1db   :  { %v3367_v1 = vrot.slane %v3256_v26, %v1677_v52  ;;  %v894_v27 = vsub.s32 2, %v3250_v24 }
 0x1dd   :  { %2763 = vset.pattern.permute.xlu0 %v3076_v10  ;;  %2766 = vset.pattern.permute.xlu1 %v3072_v44 }
 0x1de   :  { %1917 = vperm.xlu0 %2763, %v215_v2   ;;  %600 = vperm.xlu1 %2766, %v3228_v7  }
 0x1e2   :  { %1921 = vperm.xlu0 %2763, %v3228_v7   ;;  %2767 = vset.pattern.permute.xlu1 %v3073_v5 }
 0x1e3   :  { %869 = vperm.xlu1 %2767, %v3228_v7  }
 0x1e6   :  { %2774 = vset.pattern.permute.xlu0 %v3073_v5 }
 0x1e7   :  { %873 = vperm.xlu0 %2774, %v3232_v11   ;;  %2768 = vset.pattern.permute.xlu1 %v3074_v6 }
 0x1e8   :  { %1134 = vperm.xlu1 %2768, %v3228_v7  }
 0x1eb   :  { %2779 = vset.pattern.permute.xlu0 %v3078_v16 }
 0x1ec   :  { %2190 = vperm.xlu0 %2779, %v3232_v11   ;;  %2769 = vset.pattern.permute.xlu1 %v3075_v9 }
 0x1ed   :  { %1399 = vperm.xlu1 %2769, %v3228_v7  }
 0x1f0   :  { %2780 = vset.pattern.permute.xlu0 %v3068_v3 }
 0x1f1   :  { %351 = vperm.xlu0 %2780, %v3236_v14   ;;  %2770 = vset.pattern.permute.xlu1 %v3077_v13 }
 0x1f2   :  { %1652 = vperm.xlu1 %2770, %v3228_v7  }
 0x1f5   :  { %2783 = vset.pattern.permute.xlu0 %v3074_v6 }
 0x1f6   :  { %1142 = vperm.xlu0 %2783, %v3236_v14   ;;  %2771 = vset.pattern.permute.xlu1 %v3078_v16 }
 0x1f7   :  { %2186 = vperm.xlu1 %2771, %v3228_v7  }
 0x1fa   :  { %2785 = vset.pattern.permute.xlu0 %v3077_v13 }
 0x1fb   :  { %1660 = vperm.xlu0 %2785, %v3236_v14   ;;  %2772 = vset.pattern.permute.xlu1 %v3068_v3 }
 0x1fc   :  { %346 = vperm.xlu1 %2772, %v3232_v11  }
 0x1ff   :  { %2790 = vset.pattern.permute.xlu0 %v3073_v5 }
 0x200   :  { %881 = vperm.xlu0 %2790, %v3240_v17   ;;  %2773 = vset.pattern.permute.xlu1 %v3072_v44 }
 0x201   :  { %604 = vperm.xlu1 %2773, %v3232_v11  }
 0x204   :  { %2794 = vset.pattern.permute.xlu0 %v3076_v10 }
 0x205   :  { %1933 = vperm.xlu0 %2794, %v3240_v17   ;;  %2775 = vset.pattern.permute.xlu1 %v3074_v6 }
 0x206   :  { %1138 = vperm.xlu1 %2775, %v3232_v11  }
 0x209   :  { %2795 = vset.pattern.permute.xlu0 %v3078_v16 }
 0x20a   :  { %2198 = vperm.xlu0 %2795, %v3240_v17   ;;  %2776 = vset.pattern.permute.xlu1 %v3075_v9 }
 0x20b   :  { %1403 = vperm.xlu1 %2776, %v3232_v11  }
 0x20e   :  { %2796 = vset.pattern.permute.xlu0 %v3068_v3 }
 0x20f   :  { %361 = vperm.xlu0 %2796, %v3242_v19   ;;  %2777 = vset.pattern.permute.xlu1 %v3077_v13 }
 0x210   :  { %1656 = vperm.xlu1 %2777, %v3232_v11  }
 0x213   :  { %2799 = vset.pattern.permute.xlu0 %v3074_v6 }
 0x214   :  { %1150 = vperm.xlu0 %2799, %v3242_v19   ;;  %2778 = vset.pattern.permute.xlu1 %v3076_v10 }
 0x215   :  { %1925 = vperm.xlu1 %2778, %v3232_v11  }
 0x218   :  { %2802 = vset.pattern.permute.xlu0 %v3076_v10 }
 0x219   :  { %1937 = vperm.xlu0 %2802, %v3242_v19   ;;  %2781 = vset.pattern.permute.xlu1 %v3072_v44 }
 0x21a   :  { %608 = vperm.xlu1 %2781, %v3236_v14  }
 0x21d   :  { %2806 = vset.pattern.permute.xlu0 %v3073_v5 }
 0x21e   :  { %2782 = vset.pattern.permute.xlu1 %v3073_v5  ;;  %889 = vperm.xlu0 %2806, %v3246_v21  }
 0x21f   :  { %877 = vperm.xlu1 %2782, %v3236_v14  }
 0x222   :  { %2811 = vset.pattern.permute.xlu0 %v3078_v16 }
 0x223   :  { %2784 = vset.pattern.permute.xlu1 %v3075_v9  ;;  %2206 = vperm.xlu0 %2811, %v3246_v21  }
 0x224   :  { %1407 = vperm.xlu1 %2784, %v3236_v14  }
 0x228   :  { %2786 = vset.pattern.permute.xlu1 %v3076_v10 }
 0x229   :  { %1929 = vperm.xlu1 %2786, %v3236_v14  }
 0x22d   :  { %2787 = vset.pattern.permute.xlu1 %v3078_v16 }
 0x22e   :  { %2194 = vperm.xlu1 %2787, %v3236_v14  }
 0x232   :  { %2788 = vset.pattern.permute.xlu1 %v3068_v3 }
 0x233   :  { %356 = vperm.xlu1 %2788, %v3240_v17  }
 0x235   :  { %v332_v37 = vpop.permute.xlu0 %331  ;;  %v3338_v39 = vpop.permute.xlu1 %592 }
 0x236   :  { %v373_v40 = vadd.f32 %v3334_v35, %v332_v37  ;;  %v625_v37 = vsub.s32 1, %v3250_v24 }
 0x237   :  { %2789 = vset.pattern.permute.xlu1 %v3072_v44 }
 0x238   :  { %v389_v42 = vmul.f32 0.2, %v373_v40  ;;  %612 = vperm.xlu1 %2789, %v3240_v17   ;;  %vm381_vm1 = vcmp.gt.f32.partialorder %v373_v40, 0.0  ;;  %v3408_v52 = vrot.slane %v3256_v26, %v625_v37 }
 0x23a   :  { %v3347_v46 = vpop.permute.xlu0 %861  ;;  %v1127_v47 = vpop.permute.xlu1 %1126  ;;  %v397_v49 = vsel %vm381_vm1, %v373_v40, %v389_v42  ;;  %v3397_v40 = vrot.slane %v3256_v26, %v894_v27  ;;  %v1424_v42 = vsub.s32 4, %v3250_v24 }
 0x23b   :  { %v1161_v50 = vadd.f32 %v3342_v41, %v1127_v47  ;;  %v3362_v59 = vadd.f32 %v397_v49, %v3352_v48 }
 0x23c   :  { %2791 = vset.pattern.permute.xlu1 %v3074_v6 }
 0x23d   :  { %v1177_v55 = vmul.f32 0.2, %v1161_v50  ;;  %1146 = vperm.xlu1 %2791, %v3240_v17   ;;  %vm1169_vm3 = vcmp.gt.f32.partialorder %v1161_v50, 0.0  ;;  %v414_v4 = vsel %vm413_vm2, %v3362_v59, -inf }
 0x23f   :  { %v3364_v61 = vpop.permute.xlu0 %1391  ;;  %v1914_v63 = vpop.permute.xlu1 %1913  ;;  %v1185_v0 = vsel %vm1169_vm3, %v1161_v50, %v1177_v55  ;;  %v3411_v55 = vrot.slane %v3256_v26, %v1424_v42 }
 0x240   :  { %v1948_v2 = vadd.f32 %v3358_v53, %v1914_v63  ;;  %v3374_v7 = vadd.f32 %v1185_v0, %v3352_v48 }
 0x241   :  { %2792 = vset.pattern.permute.xlu1 %v3075_v9 }
 0x242   :  { %1411 = vperm.xlu1 %2792, %v3240_v17   ;;  %415 = vmax.xlane.f32.xlu0 %v414_v4  ;;  %v1964_v12 = vmul.f32 0.2, %v1948_v2  ;;  %v1201_v15 = vsel %vm413_vm2, %v3374_v7, -inf  ;;  %vm1956_vm4 = vcmp.gt.f32.partialorder %v1948_v2, 0.0 }
 0x244   :  { %v1645_v8 = vpop.permute.xlu0 %1644  ;;  %v866_v11 = vpop.permute.xlu1 %865  ;;  %v1972_v25 = vsel %vm1956_vm4, %v1948_v2, %v1964_v12 }
 0x245   :  { %v1679_v14 = vadd.f32 %v3367_v1, %v1645_v8  ;;  %v897_v49 = vadd.f32 %v3397_v40, %v866_v11 }
 0x246   :  { %2793 = vset.pattern.permute.xlu1 %v3077_v13  ;;  %1202 = vmax.xlane.f32.xlu0 %v1201_v15 }
 0x247   :  { %v1695_v18 = vmul.f32 0.2, %v1679_v14  ;;  %1664 = vperm.xlu1 %2793, %v3240_v17   ;;  %vm1687_vm5 = vcmp.gt.f32.partialorder %v1679_v14, 0.0  ;;  %v3393_v17 = vadd.f32 %v1972_v25, %v3352_v48  ;;  %v913_v0 = vmul.f32 0.2, %v897_v49 }
 0x248   :  { %vm905_vm6 = vcmp.gt.f32.partialorder %v897_v49, 0.0 }
 0x249   :  { %v3382_v20 = vpop.permute.xlu0 %2178  ;;  %v1396_v22 = vpop.permute.xlu1 %1395  ;;  %v1703_v23 = vsel %vm1687_vm5, %v1679_v14, %v1695_v18  ;;  %4645 = vst [vmem:[#allocation11_spill] sm:$0xff] %v3393_v17  ;;  %v1988_v50 = vsel %vm413_vm2, %v3393_v17, -inf  ;;  %v3425_v14 = vld [vmem:[%s4590_s5 + $0x8] sm:$0xff]  ;;  %v921_v18 = vsel %vm905_vm6, %v897_v49, %v913_v0 }
 0x24a   :  { %v3386_v31 = vadd.f32 %v1703_v23, %v3352_v48  ;;  %v1427_v2 = vadd.f32 %v3411_v55, %v1396_v22  ;;  %v3435_v25 = vadd.f32 %v921_v18, %v3425_v14 }
 0x24b   :  { %2797 = vset.pattern.permute.xlu1 %v3072_v44 }
 0x24c   :  { %4644 = vst [vmem:[#allocation10_spill] sm:$0xff] %v3386_v31  ;;  %616 = vperm.xlu1 %2797, %v3242_v19   ;;  %v1719_v36 = vsel %vm413_vm2, %v3386_v31, -inf  ;;  %v1443_v8 = vmul.f32 0.2, %v1427_v2  ;;  %vm1435_vm8 = vcmp.gt.f32.partialorder %v1427_v2, 0.0  ;;  %4646 = vst [vmem:[#allocation12_spill] sm:$0xff] %v3435_v25 }
 0x24d   :  { %1720 = vmax.xlane.f32.xlu0 %v1719_v36  ;;  %v939_v49 = vsel %vm413_vm2, %v3435_v25, -inf }
 0x24e   :  { %v3400_v43 = vpop.permute.xlu0 %336  ;;  %v1649_v47 = vpop.permute.xlu1 %1648  ;;  %v1451_v36 = vsel %vm1435_vm8, %v1427_v2, %v1443_v8 }
 0x24f   :  { %v1680_v11 = vadd.f32 %v3367_v1, %v1649_v47 }
 0x250   :  { %2798 = vset.pattern.permute.xlu1 %v3073_v5 }
 0x251   :  { %885 = vperm.xlu1 %2798, %v3242_v19   ;;  %1989 = vmax.xlane.f32.xlu0 %v1988_v50  ;;  %v1696_v27 = vmul.f32 0.2, %v1680_v11  ;;  %vm1688_vm9 = vcmp.gt.f32.partialorder %v1680_v11, 0.0  ;;  %v3444_v50 = vadd.f32 %v1451_v36, %v3425_v14 }
 0x253   :  { %v597_v24 = vpop.permute.xlu0 %596  ;;  %v3413_v63 = vpop.permute.xlu1 %2182  ;;  %v1704_v2 = vsel %vm1688_vm9, %v1680_v11, %v1696_v27 }
 0x254   :  { %v628_v5 = vadd.f32 %v3408_v52, %v597_v24 }
 0x255   :  { %2800 = vset.pattern.permute.xlu1 %v3075_v9 }
 0x256   :  { %v644_v4 = vmul.f32 0.2, %v628_v5  ;;  %1415 = vperm.xlu1 %2800, %v3242_v19   ;;  %vm636_vm7 = vcmp.gt.f32.partialorder %v628_v5, 0.0 }
 0x258   :  { %v3420_v26 = vpop.permute.xlu0 %1130  ;;  %v342_v12 = vpop.permute.xlu1 %341  ;;  %v652_v15 = vsel %vm636_vm7, %v628_v5, %v644_v4  ;;  %v1469_v4 = vsel %vm413_vm2, %v3444_v50, -inf }
 0x259   :  { %v3428_v22 = vadd.f32 %v652_v15, %v3425_v14  ;;  %v375_v24 = vadd.f32 %v3334_v35, %v342_v12 }
 0x25a   :  { %2801 = vset.pattern.permute.xlu1 %v3077_v13 }
 0x25b   :  { %1668 = vperm.xlu1 %2801, %v3242_v19   ;;  %v670_v23 = vsel %vm413_vm2, %v3428_v22, -inf  ;;  %v391_v8 = vmul.f32 0.2, %v375_v24  ;;  %vm383_vm11 = vcmp.gt.f32.partialorder %v375_v24, 0.0 }
 0x25c   :  { %671 = vmax.xlane.f32.xlu0 %v670_v23 }
 0x25d   :  { %v1918_v37 = vpop.permute.xlu0 %1917  ;;  %v3437_v42 = vpop.permute.xlu1 %600  ;;  %v399_v36 = vsel %vm383_vm11, %v375_v24, %v391_v8 }
 0x25e   :  { %v1949_v47 = vadd.f32 %v3358_v53, %v1918_v37 }
 0x25f   :  { %2803 = vset.pattern.permute.xlu1 %v3078_v16  ;;  %v3451_v16 = vadd.f32 %v1704_v2, %v3425_v14 }
 0x260   :  { %v1965_v0 = vmul.f32 0.2, %v1949_v47  ;;  %2202 = vperm.xlu1 %2803, %v3242_v19   ;;  %940 = vmax.xlane.f32.xlu0 %v939_v49  ;;  %vm1957_vm10 = vcmp.gt.f32.partialorder %v1949_v47, 0.0 }
 0x261   :  { %4647 = vst [vmem:[#allocation13_spill] sm:$0xff] %v3451_v16  ;;  %v1722_v11 = vsel %vm413_vm2, %v3451_v16, -inf }
 0x262   :  { %v870_v5 = vpop.permute.xlu1 %869  ;;  %v1973_v12 = vsel %vm1957_vm10, %v1949_v47, %v1965_v0 }
 0x263   :  { %v898_v15 = vadd.f32 %v3397_v40, %v870_v5  ;;  %v3459_v18 = vadd.f32 %v1973_v12, %v3425_v14  ;;  %v1922_v5 = vpop.permute.xlu0 %1921 }
 0x264   :  { %2804 = vset.pattern.permute.xlu1 %v3068_v3  ;;  %1470 = vmax.xlane.f32.xlu0 %v1469_v4  ;;  %v3465_v3 = vld [vmem:[%s4590_s5 + $0x10] sm:$0xff]  ;;  %v1950_v8 = vadd.f32 %v3358_v53, %v1922_v5 }
 0x265   :  { %366 = vperm.xlu1 %2804, %v3246_v21   ;;  %4648 = vst [vmem:[#allocation14_spill] sm:$0xff] %v3459_v18  ;;  %v914_v23 = vmul.f32 0.2, %v898_v15  ;;  %vm906_vm12 = vcmp.gt.f32.partialorder %v898_v15, 0.0  ;;  %v1991_v37 = vsel %vm413_vm2, %v3459_v18, -inf  ;;  %v3472_v47 = vadd.f32 %v399_v36, %v3465_v3 }
 0x266   :  { %vm1958_vm15 = vcmp.gt.f32.partialorder %v1950_v8, 0.0 }
 0x267   :  { %v1135_v19 = vpop.permute.xlu1 %1134  ;;  %v922_v2 = vsel %vm906_vm12, %v898_v15, %v914_v23  ;;  %v1966_v23 = vmul.f32 0.2, %v1950_v8 }
 0x268   :  { %v1163_v27 = vadd.f32 %v3342_v41, %v1135_v19  ;;  %1723 = vmax.xlane.f32.xlu0 %v1722_v11  ;;  %v3480_v24 = vadd.f32 %v922_v2, %v3465_v3 }
 0x269   :  { %2805 = vset.pattern.permute.xlu1 %v3072_v44  ;;  %v420_v44 = vsel %vm413_vm2, %v3472_v47, -inf }
 0x26a   :  { %620 = vperm.xlu1 %2805, %v3246_v21   ;;  %v1179_v49 = vmul.f32 0.2, %v1163_v27  ;;  %vm1171_vm13 = vcmp.gt.f32.partialorder %v1163_v27, 0.0 }
 0x26c   :  { %v1400_v0 = vpop.permute.xlu1 %1399  ;;  %1992 = vmax.xlane.f32.xlu0 %v1991_v37  ;;  %v1187_v19 = vsel %vm1171_vm13, %v1163_v27, %v1179_v49 }
 0x26d   :  { %v1428_v4 = vadd.f32 %v3411_v55, %v1400_v0  ;;  %v3489_v11 = vadd.f32 %v1187_v19, %v3465_v3 }
 0x26e   :  { %2807 = vset.pattern.permute.xlu1 %v3074_v6  ;;  %v942_v6 = vsel %vm413_vm2, %v3480_v24, -inf }
 0x26f   :  { %1154 = vperm.xlu1 %2807, %v3246_v21   ;;  %v1444_v12 = vmul.f32 0.2, %v1428_v4  ;;  %vm1436_vm14 = vcmp.gt.f32.partialorder %v1428_v4, 0.0  ;;  %v1207_v27 = vsel %vm413_vm2, %v3489_v11, -inf }
 0x270   :  { %421 = vmax.xlane.f32.xlu0 %v420_v44 }
 0x271   :  { %v3483_v15 = vpop.permute.xlu1 %1652  ;;  %v1452_v36 = vsel %vm1436_vm14, %v1428_v4, %v1444_v12  ;;  %v3514_v12 = vld [vmem:[%s4590_s5 + $0x18] sm:$0xff] }
 0x272   :  { %v3497_v49 = vadd.f32 %v1452_v36, %v3465_v3 }
 0x273   :  { %2808 = vset.pattern.permute.xlu1 %v3075_v9  ;;  %v1974_v9 = vsel %vm1958_vm15, %v1950_v8, %v1966_v23 }
 0x274   :  { %1419 = vperm.xlu1 %2808, %v3246_v21   ;;  %943 = vmax.xlane.f32.xlu0 %v942_v6  ;;  %4649 = vst [vmem:[#allocation15_spill] sm:$0xff] %v3497_v49  ;;  %v1472_v2 = vsel %vm413_vm2, %v3497_v49, -inf  ;;  %v3504_v5 = vadd.f32 %v1974_v9, %v3465_v3 }
 0x276   :  { %v3492_v37 = vpop.permute.xlu1 %2186  ;;  %4650 = vst [vmem:[#allocation16_spill] sm:$0xff] %v3504_v5 }
 0x278   :  { %2809 = vset.pattern.permute.xlu1 %v3077_v13  ;;  %1208 = vmax.xlane.f32.xlu0 %v1207_v27  ;;  %v1994_v13 = vsel %vm413_vm2, %v3504_v5, -inf }
 0x279   :  { %1672 = vperm.xlu1 %2809, %v3246_v21  }
 0x27b   :  { %v347_v0 = vpop.permute.xlu1 %346 }
 0x27c   :  { %v376_v4 = vadd.f32 %v3334_v35, %v347_v0  ;;  %1473 = vmax.xlane.f32.xlu0 %v1472_v2 }
 0x27d   :  { %2810 = vset.pattern.permute.xlu1 %v3076_v10 }
 0x27e   :  { %v392_v44 = vmul.f32 0.2, %v376_v4  ;;  %1941 = vperm.xlu1 %2810, %v3246_v21   ;;  %vm384_vm1 = vcmp.gt.f32.partialorder %v376_v4, 0.0 }
 0x280   :  { %v605_v8 = vpop.permute.xlu1 %604  ;;  %1995 = vmax.xlane.f32.xlu0 %v1994_v13  ;;  %v400_v19 = vsel %vm384_vm1, %v376_v4, %v392_v44 }
 0x281   :  { %v630_v6 = vadd.f32 %v3408_v52, %v605_v8  ;;  %v3518_v23 = vadd.f32 %v400_v19, %v3514_v12 }
 0x283   :  { %v646_v10 = vmul.f32 0.2, %v630_v6  ;;  %v423_v21 = vsel %vm413_vm2, %v3518_v23, -inf  ;;  %vm638_vm3 = vcmp.gt.f32.partialorder %v630_v6, 0.0 }
 0x284   :  { %424 = vmax.xlane.f32.xlu0 %v423_v21  ;;  %v627_v21 = vadd.f32 %v3408_v52, %v3338_v39 }
 0x285   :  { %v1139_v36 = vpop.permute.xlu1 %1138  ;;  %v654_v27 = vsel %vm638_vm3, %v630_v6, %v646_v10 }
 0x286   :  { %v1164_v9 = vadd.f32 %v3342_v41, %v1139_v36  ;;  %v3524_v0 = vadd.f32 %v654_v27, %v3514_v12  ;;  %vm635_vm6 = vcmp.gt.f32.partialorder %v627_v21, 0.0 }
 0x288   :  { %v1180_v2 = vmul.f32 0.2, %v1164_v9  ;;  %v676_v4 = vsel %vm413_vm2, %v3524_v0, -inf  ;;  %vm1172_vm4 = vcmp.gt.f32.partialorder %v1164_v9, 0.0 }
 0x289   :  { %677 = vmax.xlane.f32.xlu0 %v676_v4 }
 0x28a   :  { %v3528_v44 = vpop.permute.xlu1 %1403  ;;  %v1188_v13 = vsel %vm1172_vm4, %v1164_v9, %v1180_v2  ;;  %v643_v2 = vmul.f32 0.2, %v627_v21 }
 0x28b   :  { %v3531_v8 = vadd.f32 %v1188_v13, %v3514_v12  ;;  %v896_v13 = vadd.f32 %v3397_v40, %v3347_v46 }
 0x28c   :  { %v651_v46 = vsel %vm635_vm6, %v627_v21, %v643_v2 }
 0x28d   :  { %4651 = vst [vmem:[#allocation17_spill] sm:$0xff] %v3531_v8  ;;  %v1210_v19 = vsel %vm413_vm2, %v3531_v8, -inf  ;;  %vm904_vm8 = vcmp.gt.f32.partialorder %v896_v13, 0.0 }
 0x28e   :  { %1211 = vmax.xlane.f32.xlu0 %v1210_v19  ;;  %v3544_v19 = vpop.permute.xlu0 %873 }
 0x28f   :  { %v1657_v6 = vpop.permute.xlu1 %1656 }
 0x290   :  { %v1682_v10 = vadd.f32 %v3367_v1, %v1657_v6 }
 0x292   :  { %v1698_v36 = vmul.f32 0.2, %v1682_v10  ;;  %vm1690_vm5 = vcmp.gt.f32.partialorder %v1682_v10, 0.0  ;;  %v3555_v17 = vpop.permute.xlu0 %2190 }
 0x294   :  { %v1926_v27 = vpop.permute.xlu1 %1925  ;;  %v1706_v4 = vsel %vm1690_vm5, %v1682_v10, %v1698_v36  ;;  %v912_v36 = vmul.f32 0.2, %v896_v13 }
 0x295   :  { %v1951_v5 = vadd.f32 %v3358_v53, %v1926_v27  ;;  %v3540_v9 = vadd.f32 %v1706_v4, %v3514_v12  ;;  %v1426_v27 = vadd.f32 %v3411_v55, %v3364_v61 }
 0x296   :  { %v920_v61 = vsel %vm904_vm8, %v896_v13, %v912_v36  ;;  %v3565_v21 = vpop.permute.xlu0 %351  ;;  %v3579_v36 = vld [vmem:[%s4590_s5 + $0x20] sm:$0xff] }
 0x297   :  { %4652 = vst [vmem:[#allocation18_spill] sm:$0xff] %v3540_v9  ;;  %v1967_v6 = vmul.f32 0.2, %v1951_v5  ;;  %v1728_v39 = vsel %vm413_vm2, %v3540_v9, -inf  ;;  %vm1959_vm7 = vcmp.gt.f32.partialorder %v1951_v5, 0.0  ;;  %vm1434_vm9 = vcmp.gt.f32.partialorder %v1426_v27, 0.0 }
 0x298   :  { %1729 = vmax.xlane.f32.xlu0 %v1728_v39  ;;  %v3560_v39 = vadd.f32 %v651_v46, %v3352_v48  ;;  %v1442_v9 = vmul.f32 0.2, %v1426_v27  ;;  %v377_v8 = vadd.f32 %v3334_v35, %v3565_v21 }
 0x299   :  { %v3548_v58 = vpop.permute.xlu1 %608  ;;  %v1975_v10 = vsel %vm1959_vm7, %v1951_v5, %v1967_v6  ;;  %v2213_v5 = vadd.f32 %v3259_v28, %v3382_v20 }
 0x29a   :  { %v3553_v4 = vadd.f32 %v1975_v10, %v3514_v12  ;;  %v667_v31 = vsel %vm413_vm2, %v3560_v39, -inf  ;;  %v1450_v20 = vsel %vm1434_vm9, %v1426_v27, %v1442_v9  ;;  %v3591_v27 = vpop.permute.xlu0 %1142  ;;  %v393_v56 = vmul.f32 0.2, %v377_v8 }
 0x29b   :  { %v2229_v46 = vmul.f32 0.2, %v2213_v5  ;;  %vm2221_vm11 = vcmp.gt.f32.partialorder %v2213_v5, 0.0  ;;  %vm385_vm6 = vcmp.gt.f32.partialorder %v377_v8, 0.0 }
 0x29c   :  { %4653 = vst [vmem:[#allocation19_spill] sm:$0xff] %v3553_v4  ;;  %v1997_v18 = vsel %vm413_vm2, %v3553_v4, -inf  ;;  %v374_v4 = vadd.f32 %v3334_v35, %v3400_v43  ;;  %v401_v62 = vsel %vm385_vm6, %v377_v8, %v393_v56 }
 0x29d   :  { %1998 = vmax.xlane.f32.xlu0 %v1997_v18  ;;  %v3570_v18 = vadd.f32 %v920_v61, %v3352_v48  ;;  %v1162_v61 = vadd.f32 %v3342_v41, %v3420_v26  ;;  %v3683_v56 = vadd.f32 %v401_v62, %v3579_v36 }
 0x29e   :  { %v878_v6 = vpop.permute.xlu1 %877  ;;  %v390_v9 = vmul.f32 0.2, %v374_v4  ;;  %vm382_vm12 = vcmp.gt.f32.partialorder %v374_v4, 0.0  ;;  %v3604_v34 = vpop.permute.xlu0 %1660 }
 0x29f   :  { %v900_v10 = vadd.f32 %v3397_v40, %v878_v6  ;;  %v936_v43 = vsel %vm413_vm2, %v3570_v18, -inf  ;;  %vm1170_vm13 = vcmp.gt.f32.partialorder %v1162_v61, 0.0  ;;  %4662 = vst [vmem:[#allocation28_spill] sm:$0xff] %v3683_v56  ;;  %v426_v62 = vsel %vm413_vm2, %v3683_v56, -inf }
 0x2a1   :  { %v916_v2 = vmul.f32 0.2, %v900_v10  ;;  %vm908_vm10 = vcmp.gt.f32.partialorder %v900_v10, 0.0 }
 0x2a2   :  { %668 = vmax.xlane.f32.xlu1 %v667_v31  ;;  %v3589_v31 = vadd.f32 %v1450_v20, %v3352_v48  ;;  %v629_v20 = vadd.f32 %v3408_v52, %v3437_v42 }
 0x2a3   :  { %v3574_v13 = vpop.permute.xlu1 %1407  ;;  %v924_v6 = vsel %vm908_vm10, %v900_v10, %v916_v2  ;;  %v2237_v10 = vsel %vm2221_vm11, %v2213_v5, %v2229_v46 }
 0x2a4   :  { %v3582_v16 = vadd.f32 %v924_v6, %v3579_v36  ;;  %v1178_v6 = vmul.f32 0.2, %v1162_v61  ;;  %v1466_v26 = vsel %vm413_vm2, %v3589_v31, -inf  ;;  %v3600_v49 = vadd.f32 %v2237_v10, %v3352_v48 }
 0x2a5   :  { %v645_v30 = vmul.f32 0.2, %v629_v20  ;;  %v1681_v48 = vadd.f32 %v3367_v1, %v3483_v15  ;;  %vm637_vm14 = vcmp.gt.f32.partialorder %v629_v20, 0.0 }
 0x2a6   :  { %4654 = vst [vmem:[#allocation20_spill] sm:$0xff] %v3582_v16  ;;  %937 = vmax.xlane.f32.xlu1 %v936_v43  ;;  %v948_v57 = vsel %vm413_vm2, %v3582_v16, -inf  ;;  %4655 = vst [vmem:[#allocation21_spill] sm:$0xff] %v3600_v49  ;;  %v398_v43 = vsel %vm382_vm12, %v374_v4, %v390_v9  ;;  %v1186_v16 = vsel %vm1170_vm13, %v1162_v61, %v1178_v6 }
 0x2a7   :  { %949 = vmax.xlane.f32.xlu0 %v948_v57  ;;  %v2253_v57 = vsel %vm413_vm2, %v3600_v49, -inf  ;;  %v3611_v46 = vadd.f32 %v398_v43, %v3425_v14  ;;  %v3616_v42 = vadd.f32 %v1186_v16, %v3425_v14  ;;  %v899_v4 = vadd.f32 %v3397_v40, %v3544_v19 }
 0x2a8   :  { %v3595_v2 = vpop.permute.xlu1 %1929  ;;  %v1697_v10 = vmul.f32 0.2, %v1681_v48  ;;  %v653_v61 = vsel %vm637_vm14, %v629_v20, %v645_v30  ;;  %vm1689_vm15 = vcmp.gt.f32.partialorder %v1681_v48, 0.0  ;;  %v1429_v49 = vadd.f32 %v3411_v55, %v3528_v44  ;;  %v3635_v30 = vld [vmem:[%s4590_s5 + $0x28] sm:$0xff] }
 0x2a9   :  { %4656 = vst [vmem:[#allocation22_spill] sm:$0xff] %v3616_v42  ;;  %v417_v9 = vsel %vm413_vm2, %v3611_v46, -inf  ;;  %v1204_v6 = vsel %vm413_vm2, %v3616_v42, -inf  ;;  %v915_v16 = vmul.f32 0.2, %v899_v4  ;;  %v3628_v19 = vadd.f32 %v653_v61, %v3465_v3 }
 0x2aa   :  { %1467 = vmax.xlane.f32.xlu1 %v1466_v26  ;;  %v3622_v26 = vpop.permute.xlu0 %881  ;;  %vm907_vm3 = vcmp.gt.f32.partialorder %v899_v4, 0.0  ;;  %v1705_v33 = vsel %vm1689_vm15, %v1681_v48, %v1697_v10  ;;  %vm1437_vm5 = vcmp.gt.f32.partialorder %v1429_v49, 0.0 }
 0x2ab   :  { %v673_v44 = vsel %vm413_vm2, %v3628_v19, -inf  ;;  %v3648_v48 = vadd.f32 %v1705_v33, %v3465_v3  ;;  %v923_v10 = vsel %vm907_vm3, %v899_v4, %v915_v16 }
 0x2ac   :  { %v3653_v21 = vadd.f32 %v923_v10, %v3514_v12 }
 0x2ad   :  { %v3606_v5 = vpop.permute.xlu1 %2194  ;;  %4657 = vst [vmem:[#allocation23_spill] sm:$0xff] %v3648_v48  ;;  %v1725_v33 = vsel %vm413_vm2, %v3648_v48, -inf }
 0x2ae   :  { %2254 = vmax.xlane.f32.xlu1 %v2253_v57  ;;  %4658 = vst [vmem:[#allocation24_spill] sm:$0xff] %v3653_v21 }
 0x2b2   :  { %v357_v43 = vpop.permute.xlu1 %356  ;;  %418 = vmax.xlane.f32.xlu1 %v417_v9 }
 0x2b3   :  { %v378_v15 = vadd.f32 %v3334_v35, %v357_v43  ;;  %v3637_v43 = vpop.permute.xlu0 %1933 }
 0x2b5   :  { %vm386_vm1 = vcmp.gt.f32.partialorder %v378_v15, 0.0  ;;  %v394_v57 = vmul.f32 0.2, %v378_v15 }
 0x2b6   :  { %1205 = vmax.xlane.f32.xlu1 %v1204_v6  ;;  %v1445_v6 = vmul.f32 0.2, %v1429_v49 }
 0x2b7   :  { %v613_v9 = vpop.permute.xlu1 %612  ;;  %v402_v20 = vsel %vm386_vm1, %v378_v15, %v394_v57  ;;  %v3661_v16 = vpop.permute.xlu0 %2198 }
 0x2b8   :  { %v632_v29 = vadd.f32 %v3408_v52, %v613_v9  ;;  %v3641_v61 = vadd.f32 %v402_v20, %v3635_v30 }
 0x2ba   :  { %vm640_vm4 = vcmp.gt.f32.partialorder %v632_v29, 0.0  ;;  %v648_v15 = vmul.f32 0.2, %v632_v29  ;;  %674 = vmax.xlane.f32.xlu1 %v673_v44  ;;  %v429_v57 = vsel %vm413_vm2, %v3641_v61, -inf  ;;  %v631_v44 = vadd.f32 %v3408_v52, %v3548_v58 }
 0x2bb   :  { %430 = vmax.xlane.f32.xlu0 %v429_v57  ;;  %v1165_v58 = vadd.f32 %v3342_v41, %v3591_v27 }
 0x2bc   :  { %v1147_v9 = vpop.permute.xlu1 %1146  ;;  %v656_v20 = vsel %vm640_vm4, %v632_v29, %v648_v15  ;;  %v1453_v29 = vsel %vm1437_vm5, %v1429_v49, %v1445_v6  ;;  %vm639_vm8 = vcmp.gt.f32.partialorder %v631_v44, 0.0 }
 0x2bd   :  { %v1166_v42 = vadd.f32 %v3342_v41, %v1147_v9  ;;  %v3659_v4 = vadd.f32 %v656_v20, %v3635_v30  ;;  %v945_v9 = vsel %vm413_vm2, %v3653_v21, -inf  ;;  %v3670_v48 = vadd.f32 %v1453_v29, %v3514_v12 }
 0x2be   :  { %1726 = vmax.xlane.f32.xlu1 %v1725_v33  ;;  %v647_v33 = vmul.f32 0.2, %v631_v44  ;;  %v1181_v27 = vmul.f32 0.2, %v1165_v58  ;;  %v1430_v29 = vadd.f32 %v3411_v55, %v3574_v13  ;;  %vm1173_vm10 = vcmp.gt.f32.partialorder %v1165_v58, 0.0 }
 0x2bf   :  { %4659 = vst [vmem:[#allocation25_spill] sm:$0xff] %v3659_v4  ;;  %vm1174_vm7 = vcmp.gt.f32.partialorder %v1166_v42, 0.0  ;;  %v1182_v10 = vmul.f32 0.2, %v1166_v42  ;;  %v682_v15 = vsel %vm413_vm2, %v3659_v4, -inf  ;;  %4660 = vst [vmem:[#allocation26_spill] sm:$0xff] %v3670_v48 }
 0x2c0   :  { %683 = vmax.xlane.f32.xlu0 %v682_v15  ;;  %v3678_v15 = vpop.permute.xlu0 %361  ;;  %v1475_v8 = vsel %vm413_vm2, %v3670_v48, -inf  ;;  %vm1438_vm12 = vcmp.gt.f32.partialorder %v1430_v29, 0.0 }
 0x2c1   :  { %v1412_v57 = vpop.permute.xlu1 %1411  ;;  %v1190_v20 = vsel %vm1174_vm7, %v1166_v42, %v1182_v10 }
 0x2c2   :  { %v1431_v49 = vadd.f32 %v3411_v55, %v1412_v57  ;;  %946 = vmax.xlane.f32.xlu1 %v945_v9  ;;  %v3676_v6 = vadd.f32 %v1190_v20, %v3635_v30  ;;  %v655_v9 = vsel %vm639_vm8, %v631_v44, %v647_v33  ;;  %v1446_v33 = vmul.f32 0.2, %v1430_v29 }
 0x2c3   :  { %v3698_v13 = vadd.f32 %v655_v9, %v3579_v36 }
 0x2c4   :  { %4661 = vst [vmem:[#allocation27_spill] sm:$0xff] %v3676_v6  ;;  %vm1439_vm9 = vcmp.gt.f32.partialorder %v1431_v49, 0.0  ;;  %v1447_v21 = vmul.f32 0.2, %v1431_v49  ;;  %v1216_v42 = vsel %vm413_vm2, %v3676_v6, -inf  ;;  %v1151_v44 = vpop.permute.xlu0 %1150 }
 0x2c5   :  { %1217 = vmax.xlane.f32.xlu0 %v1216_v42  ;;  %4664 = vst [vmem:[#allocation30_spill] sm:$0xff] %v3698_v13 }
 0x2c6   :  { %v1665_v10 = vpop.permute.xlu1 %1664  ;;  %1476 = vmax.xlane.f32.xlu1 %v1475_v8  ;;  %v1455_v57 = vsel %vm1439_vm9, %v1431_v49, %v1447_v21  ;;  %v1683_v21 = vadd.f32 %v3367_v1, %v3604_v34  ;;  %v1189_v49 = vsel %vm1173_vm10, %v1165_v58, %v1181_v27  ;;  %v1952_v34 = vadd.f32 %v3358_v53, %v3595_v2 }
 0x2c7   :  { %v1684_v20 = vadd.f32 %v3367_v1, %v1665_v10  ;;  %v3691_v6 = vadd.f32 %v1455_v57, %v3635_v30  ;;  %v3708_v9 = vadd.f32 %v1189_v49, %v3579_v36  ;;  %v1454_v58 = vsel %vm1438_vm12, %v1430_v29, %v1446_v33 }
 0x2c8   :  { %v1699_v56 = vmul.f32 0.2, %v1683_v21  ;;  %vm1691_vm13 = vcmp.gt.f32.partialorder %v1683_v21, 0.0  ;;  %v3714_v27 = vpop.permute.xlu0 %1937  ;;  %v3720_v49 = vadd.f32 %v1454_v58, %v3579_v36  ;;  %v901_v2 = vadd.f32 %v3397_v40, %v3622_v26 }
 0x2c9   :  { %4663 = vst [vmem:[#allocation29_spill] sm:$0xff] %v3691_v6  ;;  %vm1692_vm11 = vcmp.gt.f32.partialorder %v1684_v20, 0.0  ;;  %v1700_v42 = vmul.f32 0.2, %v1684_v20  ;;  %v1481_v48 = vsel %vm413_vm2, %v3691_v6, -inf  ;;  %v679_v6 = vsel %vm413_vm2, %v3698_v13, -inf }
 0x2ca   :  { %427 = vmax.xlane.f32.xlu1 %v426_v62  ;;  %1482 = vmax.xlane.f32.xlu0 %v1481_v48  ;;  %4666 = vst [vmem:[#allocation32_spill] sm:$0xff] %v3708_v9  ;;  %4667 = vst [vmem:[#allocation33_spill] sm:$0xff] %v3720_v49  ;;  %vm1960_vm14 = vcmp.gt.f32.partialorder %v1952_v34, 0.0  ;;  %v917_v26 = vmul.f32 0.2, %v901_v2  ;;  %vm909_vm1 = vcmp.gt.f32.partialorder %v901_v2, 0.0 }
 0x2cb   :  { %v617_v8 = vpop.permute.xlu1 %616  ;;  %v1708_v10 = vsel %vm1692_vm11, %v1684_v20, %v1700_v42  ;;  %v1213_v42 = vsel %vm413_vm2, %v3708_v9, -inf }
 0x2cc   :  { %v3703_v57 = vadd.f32 %v1708_v10, %v3635_v30  ;;  %v1707_v10 = vsel %vm1691_vm13, %v1683_v21, %v1699_v56  ;;  %v1953_v56 = vadd.f32 %v3358_v53, %v3637_v43  ;;  %v3736_v21 = vpop.permute.xlu0 %889  ;;  %v379_v43 = vadd.f32 %v3334_v35, %v3678_v15 }
 0x2ce   :  { %4665 = vst [vmem:[#allocation31_spill] sm:$0xff] %v3703_v57  ;;  %680 = vmax.xlane.f32.xlu1 %v679_v6  ;;  %v1734_v48 = vsel %vm413_vm2, %v3703_v57, -inf  ;;  %v1968_v6 = vmul.f32 0.2, %v1952_v34  ;;  %v3732_v57 = vadd.f32 %v1707_v10, %v3579_v36  ;;  %vm1961_vm3 = vcmp.gt.f32.partialorder %v1953_v56, 0.0 }
 0x2cf   :  { %1735 = vmax.xlane.f32.xlu0 %v1734_v48  ;;  %v1478_v48 = vsel %vm413_vm2, %v3720_v49, -inf  ;;  %vm387_vm4 = vcmp.gt.f32.partialorder %v379_v43, 0.0 }
 0x2d0   :  { %v886_v20 = vpop.permute.xlu1 %885  ;;  %4668 = vst [vmem:[#allocation34_spill] sm:$0xff] %v3732_v57  ;;  %v1976_v49 = vsel %vm1960_vm14, %v1952_v34, %v1968_v6  ;;  %v3750_v34 = vpop.permute.xlu0 %2206 }
 0x2d1   :  { %v902_v62 = vadd.f32 %v3397_v40, %v886_v20  ;;  %v3729_v20 = vld [vmem:[%s4590_s5 + $0x30] sm:$0xff]  ;;  %v3746_v10 = vadd.f32 %v1976_v49, %v3579_v36  ;;  %v633_v49 = vadd.f32 %v3408_v52, %v617_v8 }
 0x2d2   :  { %1214 = vmax.xlane.f32.xlu1 %v1213_v42 }
 0x2d3   :  { %vm910_vm15 = vcmp.gt.f32.partialorder %v902_v62, 0.0  ;;  %v918_v29 = vmul.f32 0.2, %v902_v62  ;;  %4670 = vst [vmem:[#allocation36_spill] sm:$0xff] %v3746_v10  ;;  %v2000_v6 = vsel %vm413_vm2, %v3746_v10, -inf  ;;  %vm641_vm5 = vcmp.gt.f32.partialorder %v633_v49, 0.0 }
 0x2d4   :  { %v3760_v15 = vpop.xlane.xlu0 %415 }
 0x2d5   :  { %v1416_v33 = vpop.permute.xlu1 %1415  ;;  %v926_v58 = vsel %vm910_vm15, %v902_v62, %v918_v29  ;;  %v1731_v62 = vsel %vm413_vm2, %v3732_v57, -inf  ;;  %v1969_v29 = vmul.f32 0.2, %v1953_v56  ;;  %v395_v57 = vmul.f32 0.2, %v379_v43 }
 0x2d6   :  { %1479 = vmax.xlane.f32.xlu1 %v1478_v48  ;;  %v3739_v42 = vadd.f32 %v926_v58, %v3729_v20  ;;  %v925_v58 = vsel %vm909_vm1, %v901_v2, %v917_v26  ;;  %v1167_v2 = vadd.f32 %v3342_v41, %v1151_v44 }
 0x2d7   :  { %v403_v10 = vsel %vm387_vm4, %v379_v43, %v395_v57 }
 0x2d8   :  { %4669 = vst [vmem:[#allocation35_spill] sm:$0xff] %v3739_v42  ;;  %v954_v9 = vsel %vm413_vm2, %v3739_v42, -inf  ;;  %v1977_v42 = vsel %vm1961_vm3, %v1953_v56, %v1969_v29  ;;  %v3772_v4 = vadd.f32 %v403_v10, %v3729_v20  ;;  %vm1175_vm6 = vcmp.gt.f32.partialorder %v1167_v2, 0.0  ;;  %v3774_v44 = vpop.xlane.xlu0 %1202 }
 0x2d9   :  { %955 = vmax.xlane.f32.xlu0 %v954_v9  ;;  %v3755_v9 = vadd.f32 %v925_v58, %v3635_v30  ;;  %v649_v58 = vmul.f32 0.2, %v633_v49 }
 0x2da   :  { %v1669_v48 = vpop.permute.xlu1 %1668  ;;  %1732 = vmax.xlane.f32.xlu1 %v1731_v62  ;;  %v3766_v62 = vadd.f32 %v1977_v42, %v3635_v30  ;;  %4673 = vst [vmem:[#allocation39_spill] sm:$0xff] %v3772_v4  ;;  %v1432_v42 = vadd.f32 %v3411_v55, %v1416_v33 }
 0x2db   :  { %4671 = vst [vmem:[#allocation37_spill] sm:$0xff] %v3755_v9  ;;  %v951_v26 = vsel %vm413_vm2, %v3755_v9, -inf  ;;  %v657_v9 = vsel %vm641_vm5, %v633_v49, %v649_v58  ;;  %v1685_v33 = vadd.f32 %v3367_v1, %v1669_v48 }
 0x2dc   :  { %4672 = vst [vmem:[#allocation38_spill] sm:$0xff] %v3766_v62  ;;  %v2003_v29 = vsel %vm413_vm2, %v3766_v62, -inf  ;;  %v1448_v25 = vmul.f32 0.2, %v1432_v42  ;;  %v3788_v49 = vpop.xlane.xlu0 %1720  ;;  %vm1440_vm8 = vcmp.gt.f32.partialorder %v1432_v42, 0.0 }
 0x2dd   :  { %4674 = vst [vmem:[#allocation40_spill] sm:$0xff] %v3788_v49  ;;  %vm1693_vm10 = vcmp.gt.f32.partialorder %v1685_v33, 0.0 }
 0x2de   :  { %2001 = vmax.xlane.f32.xlu1 %v2000_v6  ;;  %v1183_v6 = vmul.f32 0.2, %v1167_v2 }
 0x2df   :  { %v3758_v13 = vpop.permute.xlu1 %2202 }
 0x2e0   :  { %v1191_v62 = vsel %vm1175_vm6, %v1167_v2, %v1183_v6  ;;  %v1701_v2 = vmul.f32 0.2, %v1685_v33 }
 0x2e2   :  { %952 = vmax.xlane.f32.xlu1 %v951_v26  ;;  %v432_v26 = vsel %vm413_vm2, %v3772_v4, -inf }
 0x2e4   :  { %v367_v8 = vpop.permute.xlu1 %366 }
 0x2e5   :  { %v380_v56 = vadd.f32 %v3334_v35, %v367_v8  ;;  %v3782_v35 = vld [vmem:[%s4590_s5 + $0x38] sm:$0xff]  ;;  %v3785_v8 = vadd.f32 %v657_v9, %v3729_v20  ;;  %v3797_v9 = vadd.f32 %v1191_v62, %v3729_v20 }
 0x2e6   :  { %2004 = vmax.xlane.f32.xlu1 %v2003_v29 }
 0x2e7   :  { %vm388_vm7 = vcmp.gt.f32.partialorder %v380_v56, 0.0  ;;  %v396_v57 = vmul.f32 0.2, %v380_v56  ;;  %4675 = vst [vmem:[#allocation41_spill] sm:$0xff] %v3797_v9  ;;  %v685_v48 = vsel %vm413_vm2, %v3785_v8, -inf  ;;  %v1219_v49 = vsel %vm413_vm2, %v3797_v9, -inf }
 0x2e9   :  { %v621_v43 = vpop.permute.xlu1 %620  ;;  %v404_v10 = vsel %vm388_vm7, %v380_v56, %v396_v57 }
 0x2ea   :  { %v634_v58 = vadd.f32 %v3408_v52, %v621_v43  ;;  %433 = vmax.xlane.f32.xlu1 %v432_v26  ;;  %v3792_v29 = vadd.f32 %v404_v10, %v3782_v35  ;;  %v1954_v52 = vadd.f32 %v3358_v53, %v3714_v27  ;;  %v1456_v43 = vsel %vm1440_vm8, %v1432_v42, %v1448_v25 }
 0x2eb   :  { %v2214_v26 = vadd.f32 %v3259_v28, %v3413_v63  ;;  %v3816_v25 = vadd.f32 %v1456_v43, %v3729_v20  ;;  %v1709_v42 = vsel %vm1693_vm10, %v1685_v33, %v1701_v2 }
 0x2ec   :  { %vm642_vm9 = vcmp.gt.f32.partialorder %v634_v58, 0.0  ;;  %v650_v4 = vmul.f32 0.2, %v634_v58  ;;  %v435_v56 = vsel %vm413_vm2, %v3792_v29, -inf  ;;  %v1970_v63 = vmul.f32 0.2, %v1954_v52 }
 0x2ed   :  { %436 = vmax.xlane.f32.xlu0 %v435_v56  ;;  %v3809_v56 = vpop.xlane.xlu0 %1989  ;;  %vm1962_vm12 = vcmp.gt.f32.partialorder %v1954_v52, 0.0  ;;  %vm2222_vm13 = vcmp.gt.f32.partialorder %v2214_v26, 0.0 }
 0x2ee   :  { %v1155_v6 = vpop.permute.xlu1 %1154  ;;  %686 = vmax.xlane.f32.xlu1 %v685_v48  ;;  %v658_v57 = vsel %vm642_vm9, %v634_v58, %v650_v4  ;;  %4676 = vst [vmem:[#allocation42_spill] sm:$0xff] %v3809_v56  ;;  %v2230_v58 = vmul.f32 0.2, %v2214_v26  ;;  %v1978_v2 = vsel %vm1962_vm12, %v1954_v52, %v1970_v63 }
 0x2ef   :  { %v1168_v10 = vadd.f32 %v3342_v41, %v1155_v6  ;;  %v3807_v62 = vadd.f32 %v658_v57, %v3782_v35  ;;  %v903_v41 = vadd.f32 %v3397_v40, %v3736_v21  ;;  %v2218_v57 = vadd.f32 %v3259_v28, %v3661_v16 }
 0x2f0   :  { %v1484_v40 = vsel %vm413_vm2, %v3816_v25, -inf  ;;  %v3831_v21 = vadd.f32 %v1709_v42, %v3729_v20  ;;  %v3844_v63 = vadd.f32 %v1978_v2, %v3729_v20 }
 0x2f1   :  { %vm1176_vm11 = vcmp.gt.f32.partialorder %v1168_v10, 0.0  ;;  %v1184_v27 = vmul.f32 0.2, %v1168_v10  ;;  %v688_v4 = vsel %vm413_vm2, %v3807_v62, -inf  ;;  %v3822_v56 = vpop.xlane.xlu0 %671  ;;  %v919_v33 = vmul.f32 0.2, %v903_v41 }
 0x2f2   :  { %1220 = vmax.xlane.f32.xlu1 %v1219_v49  ;;  %689 = vmax.xlane.f32.xlu0 %v688_v4  ;;  %vm911_vm15 = vcmp.gt.f32.partialorder %v903_v41, 0.0  ;;  %vm2226_vm1 = vcmp.gt.f32.partialorder %v2218_v57, 0.0 }
 0x2f3   :  { %v1420_v48 = vpop.permute.xlu1 %1419  ;;  %v1192_v6 = vsel %vm1176_vm11, %v1168_v10, %v1184_v27  ;;  %v2238_v10 = vsel %vm2222_vm13, %v2214_v26, %v2230_v58  ;;  %v2234_v27 = vmul.f32 0.2, %v2218_v57 }
 0x2f4   :  { %v1433_v43 = vadd.f32 %v3411_v55, %v1420_v48  ;;  %v3826_v9 = vadd.f32 %v1192_v6, %v3782_v35  ;;  %v2216_v55 = vadd.f32 %v3259_v28, %v3555_v17  ;;  %v1737_v6 = vsel %vm413_vm2, %v3831_v21, -inf }
 0x2f5   :  { %v3846_v26 = vpop.xlane.xlu0 %940  ;;  %v927_v17 = vsel %vm911_vm15, %v903_v41, %v919_v33  ;;  %v2242_v2 = vsel %vm2226_vm1, %v2218_v57, %v2234_v27  ;;  %v2006_v41 = vsel %vm413_vm2, %v3844_v63, -inf }
 0x2f6   :  { %vm1441_vm14 = vcmp.gt.f32.partialorder %v1433_v43, 0.0  ;;  %v1449_v49 = vmul.f32 0.2, %v1433_v43  ;;  %1485 = vmax.xlane.f32.xlu1 %v1484_v40  ;;  %v1222_v16 = vsel %vm413_vm2, %v3826_v9, -inf  ;;  %v2232_v40 = vmul.f32 0.2, %v2216_v55 }
 0x2f7   :  { %1223 = vmax.xlane.f32.xlu0 %v1222_v16  ;;  %vm2224_vm4 = vcmp.gt.f32.partialorder %v2216_v55, 0.0  ;;  %v3859_v33 = vadd.f32 %v927_v17, %v3782_v35  ;;  %v3867_v57 = vadd.f32 %v2242_v2, %v3635_v30 }
 0x2f8   :  { %v1673_v4 = vpop.permute.xlu1 %1672  ;;  %v1457_v48 = vsel %vm1441_vm14, %v1433_v43, %v1449_v49  ;;  %v2220_v49 = vadd.f32 %v3259_v28, %v3750_v34  ;;  %v2240_v17 = vsel %vm2224_vm4, %v2216_v55, %v2232_v40 }
 0x2f9   :  { %v1686_v42 = vadd.f32 %v3367_v1, %v1673_v4  ;;  %v3841_v52 = vadd.f32 %v1457_v48, %v3782_v35  ;;  %v3851_v1 = vadd.f32 %v2238_v10, %v3425_v14  ;;  %v2217_v4 = vadd.f32 %v3259_v28, %v3606_v5  ;;  %v3869_v48 = vpop.xlane.xlu0 %1470 }
 0x2fa   :  { %1738 = vmax.xlane.f32.xlu1 %v1737_v6  ;;  %v2236_v27 = vmul.f32 0.2, %v2220_v49  ;;  %vm2228_vm6 = vcmp.gt.f32.partialorder %v2220_v49, 0.0  ;;  %v957_v5 = vsel %vm413_vm2, %v3859_v33, -inf  ;;  %v3881_v2 = vadd.f32 %v2240_v17, %v3514_v12 }
 0x2fb   :  { %vm1694_vm3 = vcmp.gt.f32.partialorder %v1686_v42, 0.0  ;;  %v1702_v58 = vmul.f32 0.2, %v1686_v42  ;;  %v1487_v43 = vsel %vm413_vm2, %v3841_v52, -inf  ;;  %v2256_v34 = vsel %vm413_vm2, %v3851_v1, -inf }
 0x2fc   :  { %1488 = vmax.xlane.f32.xlu0 %v1487_v43  ;;  %vm2225_vm7 = vcmp.gt.f32.partialorder %v2217_v4, 0.0  ;;  %v2268_v43 = vsel %vm413_vm2, %v3867_v57, -inf  ;;  %4677 = vst [vmem:[#allocation43_spill] sm:$0xff] %v3881_v2  ;;  %v2244_v55 = vsel %vm2228_vm6, %v2220_v49, %v2236_v27  ;;  %v2262_v12 = vsel %vm413_vm2, %v3881_v2, -inf }
 0x2fd   :  { %v1942_v16 = vpop.permute.xlu1 %1941  ;;  %v1710_v10 = vsel %vm1694_vm3, %v1686_v42, %v1702_v58  ;;  %v2215_v42 = vadd.f32 %v3259_v28, %v3492_v37  ;;  %v2233_v58 = vmul.f32 0.2, %v2217_v4  ;;  %v2219_v37 = vadd.f32 %v3259_v28, %v3758_v13 }
 0x2fe   :  { %v1955_v14 = vadd.f32 %v3358_v53, %v1942_v16  ;;  %2007 = vmax.xlane.f32.xlu1 %v2006_v41  ;;  %v3874_v53 = vadd.f32 %v1710_v10, %v3782_v35  ;;  %v3895_v49 = vadd.f32 %v2244_v55, %v3782_v35 }
 0x2ff   :  { %v2231_v41 = vmul.f32 0.2, %v2215_v42  ;;  %v2241_v10 = vsel %vm2225_vm7, %v2217_v4, %v2233_v58  ;;  %vm2223_vm8 = vcmp.gt.f32.partialorder %v2215_v42, 0.0  ;;  %vm2227_vm9 = vcmp.gt.f32.partialorder %v2219_v37, 0.0 }
 0x300   :  { %vm1963_vm5 = vcmp.gt.f32.partialorder %v1955_v14, 0.0  ;;  %v1971_v6 = vmul.f32 0.2, %v1955_v14  ;;  %2257 = vmax.xlane.f32.xlu0 %v2256_v34  ;;  %v1740_v40 = vsel %vm413_vm2, %v3874_v53, -inf  ;;  %4678 = vst [vmem:[#allocation44_spill] sm:$0xff] %v3895_v49  ;;  %v3900_v27 = vadd.f32 %v2241_v10, %v3579_v36 }
 0x301   :  { %v2239_v28 = vsel %vm2223_vm8, %v2215_v42, %v2231_v41  ;;  %v2274_v13 = vsel %vm413_vm2, %v3895_v49, -inf }
 0x302   :  { %958 = vmax.xlane.f32.xlu1 %v957_v5  ;;  %v1979_v30 = vsel %vm1963_vm5, %v1955_v14, %v1971_v6  ;;  %v3890_v14 = vpop.xlane.xlu0 %1723  ;;  %v2235_v6 = vmul.f32 0.2, %v2219_v37  ;;  %v3909_v17 = vadd.f32 %v2239_v28, %v3465_v3 }
 0x303   :  { %v3886_v16 = vadd.f32 %v1979_v30, %v3782_v35  ;;  %v2265_v35 = vsel %vm413_vm2, %v3900_v27, -inf }
 0x304   :  { %2269 = vmax.xlane.f32.xlu0 %v2268_v43  ;;  %4679 = vst [vmem:[#allocation45_spill] sm:$0xff] %v3909_v17  ;;  %v2243_v5 = vsel %vm2227_vm9, %v2219_v37, %v2235_v6  ;;  %v2259_v36 = vsel %vm413_vm2, %v3909_v17, -inf }
 0x305   :  { %v2009_v34 = vsel %vm413_vm2, %v3886_v16, -inf  ;;  %v3914_v42 = vadd.f32 %v2243_v5, %v3729_v20 }
 0x306   :  { %1741 = vmax.xlane.f32.xlu1 %v1740_v40  ;;  %v3904_v4 = vpop.xlane.xlu0 %1992  ;;  %v692_v40 = vsub.f32 %v3428_v22, %v3822_v56 }
 0x307   :  { %4680 = vst [vmem:[#allocation46_spill] sm:$0xff] %v3914_v42  ;;  %v2271_v30 = vsel %vm413_vm2, %v3914_v42, -inf  ;;  %v4703_v42 = vld [vmem:[#allocation39_spill] sm:$0xff] }
 0x308   :  { %2263 = vmax.xlane.f32.xlu0 %v2262_v12  ;;  %v701_v41 = vmul.f32 1.442695, %v692_v40 }
 0x30a   :  { %2010 = vmax.xlane.f32.xlu1 %v2009_v34  ;;  %v422_v58 = vpop.xlane.xlu0 %421  ;;  %2812 = vpow2.f32 %v701_v41 }
 0x30b   :  { %v440_v41 = vsub.f32 %v3472_v47, %v422_v58 }
 0x30c   :  { %2275 = vmax.xlane.f32.xlu0 %v2274_v13  ;;  %v438_v13 = vsub.f32 %v3362_v59, %v3760_v15 }
 0x30e   :  { %2266 = vmax.xlane.f32.xlu1 %v2265_v35  ;;  %v3918_v43 = vpop.xlane.xlu0 %943  ;;  %v446_v40 = vmul.f32 1.442695, %v438_v13 }
 0x312   :  { %2260 = vmax.xlane.f32.xlu1 %v2259_v36  ;;  %v3920_v55 = vpop.xlane.xlu0 %1208 }
 0x316   :  { %2272 = vmax.xlane.f32.xlu1 %v2271_v30  ;;  %v3924_v3 = vpop.xlane.xlu0 %1473  ;;  %v3961_v30 = vpop.eup %2812 }
 0x31a   :  { %v3930_v20 = vpop.xlane.xlu0 %1995 }
 0x31e   :  { %v425_v10 = vpop.xlane.xlu0 %424 }
 0x31f   :  { %v441_v35 = vsub.f32 %v3518_v23, %v425_v10 }
 0x321   :  { %v452_v15 = vmul.f32 1.442695, %v441_v35 }
 0x322   :  { %2066 = vrot.lane.b32.xlu0 %v3185_v38, %s3069_s8  ;;  %v678_v22 = vpop.xlane.xlu0 %677 }
 0x323   :  { %v694_v47 = vsub.f32 %v3524_v0, %v678_v22  ;;  %v962_v22 = vsub.f32 %v3480_v24, %v3918_v43  ;;  %v1227_v24 = vsub.f32 %v3489_v11, %v3920_v55 }
 0x325   :  { %v705_v13 = vmul.f32 1.442695, %v694_v47  ;;  %v1237_v11 = vmul.f32 1.442695, %v1227_v24 }
 0x326   :  { %1805 = vrot.lane.b32.xlu0 %v3200_v51, %s3070_s0 }
 0x327   :  { %1801 = vrot.lane.b32.xlu1 %v3185_v38, %s3070_s0 }
 0x32a   :  { %2329 = vrot.lane.b32.xlu0 %v3177_v32, %s3071_s3 }
 0x32b   :  { %1803 = vrot.lane.b32.xlu1 %v3194_v45, %s3070_s0 }
 0x32e   :  { %2333 = vrot.lane.b32.xlu0 %v3194_v45, %s3071_s3 }
 0x32f   :  { %v669_v37 = vpop.xlane.xlu1 %668  ;;  %2068 = vrot.lane.b32.xlu1 %v3194_v45, %s3069_s8 }
 0x330   :  { %v691_v12 = vsub.f32 %v3560_v39, %v669_v37  ;;  %v1225_v39 = vsub.f32 %v3374_v7, %v3774_v44 }
 0x332   :  { %v699_v34 = vmul.f32 1.442695, %v691_v12  ;;  %v1233_v59 = vmul.f32 1.442695, %v1225_v39  ;;  %v450_v12 = vmul.f32 1.442695, %v440_v41 }
 0x333   :  { %v938_v6 = vpop.xlane.xlu1 %937  ;;  %2070 = vrot.lane.b32.xlu1 %v3200_v51, %s3069_s8 }
 0x334   :  { %2814 = vpow2.f32 %v699_v34  ;;  %v960_v56 = vsub.f32 %v3570_v18, %v938_v6  ;;  %v3959_v18 = vpop.xlane.xlu0 %1211 }
 0x336   :  { %v968_v5 = vmul.f32 1.442695, %v960_v56  ;;  %v1491_v56 = vsub.f32 %v3444_v50, %v3869_v48 }
 0x337   :  { %v3946_v28 = vpop.xlane.xlu1 %1467  ;;  %2331 = vrot.lane.b32.xlu1 %v3185_v38, %s3071_s3 }
 0x338   :  { %2816 = vpow2.f32 %v968_v5  ;;  %v3968_v44 = vpop.xlane.xlu0 %1729  ;;  %v1500_v0 = vmul.f32 1.442695, %v1491_v56  ;;  %v1490_v56 = vsub.f32 %v3589_v31, %v3946_v28  ;;  %v4682_v31 = vld [vmem:[#allocation12_spill] sm:$0xff] }
 0x339   :  { %2818 = vpow2.f32 %v446_v40  ;;  %v961_v28 = vsub.f32 %v4682_v31, %v3846_v26 }
 0x33a   :  { %2820 = vpow2.f32 %v1233_v59 }
 0x33b   :  { %v3955_v36 = vpop.xlane.xlu1 %2254  ;;  %2335 = vrot.lane.b32.xlu1 %v3200_v51, %s3071_s3  ;;  %2822 = vpow2.f32 %v452_v15  ;;  %v970_v26 = vmul.f32 1.442695, %v961_v28 }
 0x33c   :  { %4681 = vst [vmem:[#allocation47_spill] sm:$0xff] %v3955_v36  ;;  %v3975_v6 = vpop.xlane.xlu0 %1998 }
 0x33e   :  { %v3964_v37 = vpop.eup %2814 }
 0x33f   :  { %v419_v7 = vpop.xlane.xlu1 %418  ;;  %v739_v23 = vpack.c.bf16 %v3961_v30, %v3964_v37 }
 0x340   :  { %v439_v10 = vsub.f32 %v3611_v46, %v419_v7  ;;  %v3982_v5 = vpop.xlane.xlu0 %949 }
 0x341   :  { %2610 = vmatprep.mubr.msk.bf16.mxu1 %vm413_vm2, %v739_v23 }
 0x342   :  { %v448_v34 = vmul.f32 1.442695, %v439_v10  ;;  %v3980_v35 = vpop.eup %2816  ;;  %v972_v10 = vmul.f32 1.442695, %v962_v22  ;;  %v1498_v22 = vmul.f32 1.442695, %v1490_v56 }
 0x343   :  { %v3973_v58 = vpop.xlane.xlu1 %1205  ;;  %v3984_v41 = vpop.eup %2818  ;;  %v984_v50 = vsel %vm413_vm2, %v3980_v35, 0.0 }
 0x344   :  { %2824 = vpow2.f32 %v448_v34  ;;  %v3990_v15 = vpop.eup %2820 }
 0x345   :  { %2826 = vpow2.f32 %v450_v12  ;;  %v1249_v47 = vsel %vm413_vm2, %v3990_v15, 0.0 }
 0x346   :  { %2828 = vpow2.f32 %v705_v13 }
 0x347   :  { %v675_v46 = vpop.xlane.xlu1 %674 }
 0x348   :  { %v693_v39 = vsub.f32 %v3628_v19, %v675_v46  ;;  %v3994_v19 = vpop.eup %2822  ;;  %v431_v7 = vpop.xlane.xlu0 %430 }
 0x349   :  { %v443_v55 = vsub.f32 %v3641_v61, %v431_v7  ;;  %v4683_v61 = vld [vmem:[#allocation25_spill] sm:$0xff] }
 0x34a   :  { %v703_v40 = vmul.f32 1.442695, %v693_v39 }
 0x34b   :  { %v3988_v59 = vpop.xlane.xlu1 %1726 }
 0x34c   :  { %2830 = vpow2.f32 %v703_v40 }
 0x34d   :  { %985 = vadd.xlane.f32.xlu0 %v984_v50  ;;  %2832 = vpow2.f32 %v1500_v0  ;;  %v684_v46 = vpop.xlane.xlu0 %683  ;;  %v456_v50 = vmul.f32 1.442695, %v443_v55  ;;  %v4687_v55 = vld [vmem:[#allocation2_spill] sm:$0xff] }
 0x34e   :  { %v2825_v48 = vpop.eup %2824  ;;  %2834 = vpow2.f32 %v972_v10  ;;  %v696_v7 = vsub.f32 %v4683_v61, %v684_v46  ;;  %v4688_v46 = vld [vmem:[#allocation17_spill] sm:$0xff] }
 0x34f   :  { %v3996_v23 = vpop.eup %2826  ;;  %v4000_v43 = vpop.xlane.xlu1 %946  ;;  %v486_v12 = vpack.c.bf16 %v2825_v48, %v3984_v41  ;;  %v465_v39 = vsel %vm413_vm2, %v2825_v48, 0.0  ;;  %2836 = vpow2.f32 %v1237_v11  ;;  %v4684_v48 = vld [vmem:[#allocation28_spill] sm:$0xff] }
 0x350   :  { %v487_v34 = vpack.c.bf16 %v3994_v19, %v3996_v23  ;;  %v4015_v40 = vpop.eup %2828  ;;  %2838 = vpow2.f32 %v1498_v22  ;;  %v709_v31 = vmul.f32 1.442695, %v696_v7  ;;  %v4691_v22 = vld [vmem:[#allocation8_spill] sm:$0xff] }
 0x351   :  { %2594 = vmatprep.mubr.msk.bf16.mxu0 %vm413_vm2, %v486_v12  ;;  %1250 = vadd.xlane.f32.xlu0 %v1249_v47  ;;  %v4685_v12 = vld [vmem:[#allocation5_spill] sm:$0xff]  ;;  %2840 = vpow2.f32 %v456_v50 }
 0x352   :  { %2595 = vmatmul.mubr.msk.bf16.vlgmr.msra.gmra.mrb[16].mxu0 %vm413_vm2, %v487_v34  ;;  %v718_v34 = vsel %vm413_vm2, %v3961_v30, 0.0  ;;  %v4689_v30 = vld [vmem:[#allocation6_spill] sm:$0xff] }
 0x353   :  { %2619 = vmatpush3.bf16.msra.mxu0 %v3212_v54  ;;  %v1477_v13 = vpop.xlane.xlu1 %1476 }
 0x354   :  { %2620 = vmatprep.subr.bf16.mxu0 %v3221_v60 }
 0x355   :  { %466 = vadd.xlane.f32.xlu0 %v465_v39  ;;  %v1228_v39 = vsub.f32 %v4688_v46, %v3959_v18 }
 0x356   :  { %v4017_v0 = vpop.eup %2830 }
 0x357   :  { %2621 = vmatpush3.bf16.msra.mxu0 %v3221_v60  ;;  %v428_v54 = vpop.xlane.xlu1 %427  ;;  %v740_v10 = vpack.c.bf16 %v4015_v40, %v4017_v0  ;;  %v4029_v47 = vpop.eup %2832  ;;  %v4686_v60 = vld [vmem:[#allocation22_spill] sm:$0xff]  ;;  %v1239_v7 = vmul.f32 1.442695, %v1228_v39 }
 0x358   :  { %v442_v24 = vsub.f32 %v4684_v48, %v428_v54  ;;  %2622 = vmatprep.subr.bf16.mxu0 %v4685_v12  ;;  %v1226_v56 = vsub.f32 %v4686_v60, %v3973_v58  ;;  %v4690_v54 = vld [vmem:[#allocation30_spill] sm:$0xff]  ;;  %v1517_v58 = vsel %vm413_vm2, %v4029_v47, 0.0  ;;  %v462_v60 = vsel %vm413_vm2, %v3984_v41, 0.0  ;;  %v4695_v41 = vld [vmem:[#allocation9_spill] sm:$0xff] }
 0x359   :  { %719 = vadd.xlane.f32.xlu0 %v718_v34  ;;  %2611 = vmatmul.mubr.msk.bf16.vlgmr.msra.gmra.mrb[20].mxu1 %vm413_vm2, %v740_v10  ;;  %v4043_v10 = vpop.eup %2834  ;;  %v4692_v48 = vld [vmem:[#allocation26_spill] sm:$0xff] }
 0x35a   :  { %v454_v11 = vmul.f32 1.442695, %v442_v24  ;;  %2635 = vmatpush3.bf16.msra.mxu1 %v4687_v55  ;;  %v1235_v18 = vmul.f32 1.442695, %v1226_v56  ;;  %v1493_v24 = vsub.f32 %v4692_v48, %v1477_v13  ;;  %v4056_v56 = vpop.eup %2836  ;;  %v1218_v13 = vpop.xlane.xlu0 %1217 }
 0x35b   :  { %2623 = vmatpush3.bf16.msra.mxu0 %v4685_v12  ;;  %2636 = vmatprep.subr.bf16.mxu1 %v4689_v30  ;;  %v681_v61 = vpop.xlane.xlu1 %680  ;;  %v4693_v12 = vld [vmem:[#allocation7_spill] sm:$0xff] }
 0x35c   :  { %2842 = vpow2.f32 %v454_v11  ;;  %v695_v28 = vsub.f32 %v4690_v54, %v681_v61  ;;  %2624 = vmatprep.subr.bf16.mxu0 %v4691_v22  ;;  %v4694_v11 = vld [vmem:[#allocation20_spill] sm:$0xff]  ;;  %v1504_v46 = vmul.f32 1.442695, %v1493_v24  ;;  %v1255_v61 = vsel %vm413_vm2, %v4056_v56, 0.0 }
 0x35d   :  { %1518 = vadd.xlane.f32.xlu0 %v1517_v58  ;;  %2844 = vpow2.f32 %v970_v26  ;;  %v990_v26 = vsel %vm413_vm2, %v4043_v10, 0.0  ;;  %v964_v55 = vsub.f32 %v4694_v11, %v3982_v5  ;;  %v4696_v5 = vld [vmem:[#allocation15_spill] sm:$0xff]  ;;  %v4698_v11 = vld [vmem:[#allocation24_spill] sm:$0xff] }
 0x35e   :  { %v707_v50 = vmul.f32 1.442695, %v695_v28  ;;  %2637 = vmatpush3.bf16.msra.mxu1 %v4689_v30  ;;  %2846 = vpow2.f32 %v709_v31  ;;  %v715_v31 = vsel %vm413_vm2, %v3964_v37, 0.0  ;;  %v4066_v30 = vpop.eup %2838  ;;  %v1483_v24 = vpop.xlane.xlu0 %1482 }
 0x35f   :  { %2625 = vmatpush3.bf16.msra.mxu0 %v4691_v22  ;;  %2638 = vmatprep.subr.bf16.mxu1 %v4693_v12  ;;  %v4049_v34 = vpop.xlane.xlu1 %1214  ;;  %v4070_v54 = vpop.eup %2840  ;;  %v1492_v22 = vsub.f32 %v4696_v5, %v3924_v3  ;;  %v976_v58 = vmul.f32 1.442695, %v964_v55  ;;  %v471_v3 = vsel %vm413_vm2, %v3994_v19, 0.0  ;;  %v963_v55 = vsub.f32 %v4698_v11, %v4000_v43 }
 0x360   :  { %2848 = vpow2.f32 %v707_v50  ;;  %463 = vadd.xlane.f32.xlu1 %v462_v60  ;;  %2650 = vmatprep.subr.bf16.mxu0 %v3177_v32  ;;  %v1514_v50 = vsel %vm413_vm2, %v4066_v30, 0.0 }
 0x361   :  { %991 = vadd.xlane.f32.xlu0 %v990_v26  ;;  %2850 = vpow2.f32 %v1235_v18  ;;  %v4697_v18 = vld [vmem:[#allocation3_spill] sm:$0xff]  ;;  %v1502_v26 = vmul.f32 1.442695, %v1492_v22  ;;  %v974_v43 = vmul.f32 1.442695, %v963_v55 }
 0x362   :  { %2639 = vmatpush3.bf16.msra.mxu1 %v4693_v12  ;;  %2852 = vpow2.f32 %v1239_v7  ;;  %v4108_v22 = vpop.xlane.xlu0 %1735 }
 0x363   :  { %2640 = vmatprep.subr.bf16.mxu1 %v4695_v41  ;;  %v4062_v39 = vpop.xlane.xlu1 %1479  ;;  %2854 = vpow2.f32 %v1504_v46 }
 0x364   :  { %716 = vadd.xlane.f32.xlu1 %v715_v31  ;;  %2856 = vpow2.f32 %v976_v58  ;;  %v4699_v58 = vld [vmem:[#allocation27_spill] sm:$0xff] }
 0x365   :  { %1256 = vadd.xlane.f32.xlu0 %v1255_v61  ;;  %v724_v61 = vsel %vm413_vm2, %v4015_v40, 0.0  ;;  %2858 = vpow2.f32 %v1502_v26  ;;  %v4700_v26 = vld [vmem:[#allocation29_spill] sm:$0xff] }
 0x366   :  { %v4072_v28 = vpop.eup %2842  ;;  %2641 = vmatpush3.bf16.msra.mxu1 %v4695_v41  ;;  %2860 = vpow2.f32 %v974_v43  ;;  %v1495_v55 = vsub.f32 %v4700_v26, %v1483_v24  ;;  %v721_v26 = vsel %vm413_vm2, %v4017_v0, 0.0 }
 0x367   :  { %2666 = vmatprep.subr.bf16.mxu1 %v4697_v18  ;;  %v4078_v37 = vpop.xlane.xlu1 %1732  ;;  %v488_v7 = vpack.c.bf16 %v4070_v54, %v4072_v28  ;;  %v4084_v48 = vpop.eup %2844 }
 0x368   :  { %1515 = vadd.xlane.f32.xlu1 %v1514_v50  ;;  %v4088_v12 = vpop.eup %2846  ;;  %v987_v41 = vsel %vm413_vm2, %v4084_v48, 0.0  ;;  %v1230_v50 = vsub.f32 %v4699_v58, %v1218_v13  ;;  %v468_v13 = vsel %vm413_vm2, %v3996_v23, 0.0  ;;  %v4701_v58 = vld [vmem:[#allocation32_spill] sm:$0xff] }
 0x369   :  { %472 = vadd.xlane.f32.xlu0 %v471_v3  ;;  %2598 = vmatprep.mubr.msk.bf16.mxu0 %vm413_vm2, %v488_v7  ;;  %v1229_v17 = vsub.f32 %v4701_v58, %v4049_v34 }
 0x36a   :  { %v4091_v60 = vpop.eup %2848 }
 0x36b   :  { %v4095_v46 = vpop.xlane.xlu1 %2001  ;;  %v741_v19 = vpack.c.bf16 %v4088_v12, %v4091_v60  ;;  %v4101_v31 = vpop.eup %2850  ;;  %v1241_v23 = vmul.f32 1.442695, %v1229_v17 }
 0x36c   :  { %988 = vadd.xlane.f32.xlu1 %v987_v41  ;;  %v4105_v5 = vpop.eup %2852  ;;  %v1252_v3 = vsel %vm413_vm2, %v4101_v31, 0.0  ;;  %v956_v41 = vpop.xlane.xlu0 %955 }
 0x36d   :  { %725 = vadd.xlane.f32.xlu0 %v724_v61  ;;  %2614 = vmatprep.mubr.msk.bf16.mxu1 %vm413_vm2, %v741_v19  ;;  %v1258_v11 = vsel %vm413_vm2, %v4105_v5, 0.0  ;;  %v4115_v40 = vpop.eup %2854  ;;  %v1243_v19 = vmul.f32 1.442695, %v1230_v50  ;;  %v1508_v50 = vmul.f32 1.442695, %v1495_v55 }
 0x36e   :  { %v4126_v49 = vpop.eup %2856 }
 0x36f   :  { %v953_v7 = vpop.xlane.xlu1 %952  ;;  %2862 = vpow2.f32 %v1243_v19  ;;  %v4131_v2 = vpop.eup %2858 }
 0x370   :  { %1253 = vadd.xlane.f32.xlu1 %v1252_v3  ;;  %v1523_v3 = vsel %vm413_vm2, %v4115_v40, 0.0  ;;  %2864 = vpow2.f32 %v1508_v50  ;;  %v1520_v17 = vsel %vm413_vm2, %v4131_v2, 0.0  ;;  %v4141_v36 = vpop.eup %2860  ;;  %v4705_v50 = vld [vmem:[#allocation37_spill] sm:$0xff] }
 0x371   :  { %1259 = vadd.xlane.f32.xlu0 %v1258_v11  ;;  %v4702_v11 = vld [vmem:[#allocation35_spill] sm:$0xff]  ;;  %2866 = vpow2.f32 %v1241_v23 }
 0x372   :  { %v966_v43 = vsub.f32 %v4702_v11, %v956_v41  ;;  %v4704_v41 = vld [vmem:[#allocation33_spill] sm:$0xff] }
 0x373   :  { %v4118_v61 = vpop.xlane.xlu1 %2004 }
 0x374   :  { %469 = vadd.xlane.f32.xlu1 %v468_v13  ;;  %v996_v13 = vsel %vm413_vm2, %v4126_v49, 0.0  ;;  %v980_v58 = vmul.f32 1.442695, %v966_v43  ;;  %v477_v43 = vsel %vm413_vm2, %v4070_v54, 0.0  ;;  %v730_v54 = vsel %vm413_vm2, %v4088_v12, 0.0 }
 0x375   :  { %1524 = vadd.xlane.f32.xlu0 %v1523_v3  ;;  %v1494_v3 = vsub.f32 %v4704_v41, %v4062_v39 }
 0x376   :  { %2868 = vpow2.f32 %v980_v58 }
 0x377   :  { %v434_v24 = vpop.xlane.xlu1 %433 }
 0x378   :  { %v444_v34 = vsub.f32 %v4703_v42, %v434_v24  ;;  %722 = vadd.xlane.f32.xlu1 %v721_v26  ;;  %v1506_v24 = vmul.f32 1.442695, %v1494_v3  ;;  %v965_v26 = vsub.f32 %v4705_v50, %v953_v7 }
 0x379   :  { %997 = vadd.xlane.f32.xlu0 %v996_v13  ;;  %v4152_v58 = vpop.eup %2862 }
 0x37a   :  { %v458_v19 = vmul.f32 1.442695, %v444_v34  ;;  %v437_v55 = vpop.xlane.xlu0 %436  ;;  %v993_v34 = vsel %vm413_vm2, %v4141_v36, 0.0  ;;  %v978_v41 = vmul.f32 1.442695, %v965_v26 }
 0x37b   :  { %v445_v11 = vsub.f32 %v3792_v29, %v437_v55  ;;  %v687_v0 = vpop.xlane.xlu1 %686  ;;  %v1264_v55 = vsel %vm413_vm2, %v4152_v58, 0.0 }
 0x37c   :  { %v697_v42 = vsub.f32 %v3785_v8, %v687_v0  ;;  %1521 = vadd.xlane.f32.xlu1 %v1520_v17  ;;  %2870 = vpow2.f32 %v458_v19  ;;  %v474_v19 = vsel %vm413_vm2, %v4072_v28, 0.0  ;;  %v727_v28 = vsel %vm413_vm2, %v4091_v60, 0.0 }
 0x37d   :  { %v460_v39 = vmul.f32 1.442695, %v445_v11  ;;  %478 = vadd.xlane.f32.xlu0 %v477_v43  ;;  %v4158_v11 = vpop.eup %2864 }
 0x37e   :  { %v711_v23 = vmul.f32 1.442695, %v697_v42  ;;  %v4160_v12 = vpop.eup %2866 }
 0x37f   :  { %2872 = vpow2.f32 %v460_v39  ;;  %v1221_v29 = vpop.xlane.xlu1 %1220  ;;  %v690_v13 = vpop.xlane.xlu0 %689  ;;  %v1529_v39 = vsel %vm413_vm2, %v4158_v11, 0.0 }
 0x380   :  { %994 = vadd.xlane.f32.xlu1 %v993_v34  ;;  %v698_v8 = vsub.f32 %v3807_v62, %v690_v13  ;;  %2874 = vpow2.f32 %v1506_v24  ;;  %v4163_v17 = vpop.eup %2868  ;;  %v4706_v34 = vld [vmem:[#allocation41_spill] sm:$0xff] }
 0x381   :  { %731 = vadd.xlane.f32.xlu0 %v730_v54  ;;  %2876 = vpow2.f32 %v711_v23  ;;  %v1231_v13 = vsub.f32 %v4706_v34, %v1221_v29 }
 0x382   :  { %v713_v7 = vmul.f32 1.442695, %v698_v8  ;;  %v4707_v8 = vld [vmem:[#allocation13_spill] sm:$0xff] }
 0x383   :  { %v1486_v3 = vpop.xlane.xlu1 %1485  ;;  %v1744_v54 = vsub.f32 %v4707_v8, %v3890_v14 }
 0x384   :  { %475 = vadd.xlane.f32.xlu1 %v474_v19  ;;  %2878 = vpow2.f32 %v713_v7  ;;  %v1224_v62 = vpop.xlane.xlu0 %1223  ;;  %v1008_v7 = vpack.c.bf16 %v4084_v48, %v3980_v35  ;;  %v1496_v48 = vsub.f32 %v3816_v25, %v1486_v3  ;;  %v1273_v25 = vpack.c.bf16 %v4101_v31, %v3990_v15 }
 0x385   :  { %1265 = vadd.xlane.f32.xlu0 %v1264_v55  ;;  %2880 = vpow2.f32 %v978_v41  ;;  %v1232_v0 = vsub.f32 %v3826_v9, %v1224_v62  ;;  %v1261_v41 = vsel %vm413_vm2, %v4160_v12, 0.0  ;;  %v4708_v55 = vld [vmem:[#allocation40_spill] sm:$0xff]  ;;  %v4709_v62 = vld [vmem:[#allocation10_spill] sm:$0xff]  ;;  %v1753_v35 = vmul.f32 1.442695, %v1744_v54 }
 0x386   :  { %v4169_v43 = vpop.eup %2870  ;;  %v1009_v54 = vpack.c.bf16 %v4141_v36, %v4043_v10  ;;  %v4711_v36 = vld [vmem:[#allocation31_spill] sm:$0xff] }
 0x387   :  { %v4165_v42 = vpop.xlane.xlu1 %1738  ;;  %v1247_v50 = vmul.f32 1.442695, %v1232_v0  ;;  %v1743_v0 = vsub.f32 %v4709_v62, %v4708_v55  ;;  %v1748_v10 = vsub.f32 %v4711_v36, %v4108_v22  ;;  %v1274_v22 = vpack.c.bf16 %v4105_v5, %v4056_v56 }
 0x388   :  { %728 = vadd.xlane.f32.xlu1 %v727_v28  ;;  %v1245_v28 = vmul.f32 1.442695, %v1231_v13 }
 0x389   :  { %v2873_v24 = vpop.eup %2872  ;;  %1530 = vadd.xlane.f32.xlu0 %v1529_v39  ;;  %v1489_v26 = vpop.xlane.xlu0 %1488  ;;  %2882 = vpow2.f32 %v1247_v50  ;;  %v1751_v3 = vmul.f32 1.442695, %v1743_v0  ;;  %v480_v0 = vsel %vm413_vm2, %v4169_v43, 0.0 }
 0x38a   :  { %v1497_v9 = vsub.f32 %v3841_v52, %v1489_v26  ;;  %v489_v23 = vpack.c.bf16 %v2873_v24, %v4169_v43  ;;  %v4184_v19 = vpop.eup %2874  ;;  %v1002_v52 = vsel %vm413_vm2, %v4163_v17, 0.0  ;;  %v483_v8 = vsel %vm413_vm2, %v2873_v24, 0.0 }
 0x38b   :  { %v4178_v60 = vpop.xlane.xlu1 %2007  ;;  %v2877_v14 = vpop.eup %2876  ;;  %v1275_v43 = vpack.c.bf16 %v4152_v58, %v4160_v12 }
 0x38c   :  { %1262 = vadd.xlane.f32.xlu1 %v1261_v41  ;;  %2599 = vmatmul.mubr.msk.bf16.gmra.mrb[20].mxu0 %vm413_vm2, %v489_v23  ;;  %v1512_v29 = vmul.f32 1.442695, %v1497_v9  ;;  %v1526_v23 = vsel %vm413_vm2, %v4184_v19, 0.0 }
 0x38d   :  { %1003 = vadd.xlane.f32.xlu0 %v1002_v52  ;;  %2626 = vmatprep.mubr.msk.bf16.mxu0 %vm413_vm2, %v1008_v7  ;;  %v4193_v26 = vpop.xlane.xlu0 %2257  ;;  %v4710_v7 = vld [vmem:[#allocation18_spill] sm:$0xff] }
 0x38e   :  { %v2879_v39 = vpop.eup %2878  ;;  %v1746_v13 = vsub.f32 %v4710_v7, %v3968_v44  ;;  %2884 = vpow2.f32 %v1512_v29  ;;  %v4716_v7 = vld [vmem:[#allocation11_spill] sm:$0xff] }
 0x38f   :  { %v959_v34 = vpop.xlane.xlu1 %958  ;;  %v2881_v50 = vpop.eup %2880  ;;  %v742_v41 = vpack.c.bf16 %v2879_v39, %v2877_v14  ;;  %2886 = vpow2.f32 %v1245_v28  ;;  %v736_v55 = vsel %vm413_vm2, %v2879_v39, 0.0  ;;  %v4712_v39 = vld [vmem:[#allocation23_spill] sm:$0xff] }
 0x390   :  { %v967_v9 = vsub.f32 %v3859_v33, %v959_v34  ;;  %1527 = vadd.xlane.f32.xlu1 %v1526_v23  ;;  %2888 = vpow2.f32 %v1753_v35  ;;  %v1510_v33 = vmul.f32 1.442695, %v1496_v48  ;;  %v999_v44 = vsel %vm413_vm2, %v2881_v50, 0.0  ;;  %v4713_v23 = vld [vmem:[#allocation14_spill] sm:$0xff] }
 0x391   :  { %484 = vadd.xlane.f32.xlu0 %v483_v8  ;;  %2615 = vmatmul.mubr.msk.bf16.gmra.mrb[24].mxu1 %vm413_vm2, %v742_v41  ;;  %v1010_v29 = vpack.c.bf16 %v2881_v50, %v4126_v49  ;;  %v1757_v15 = vmul.f32 1.442695, %v1746_v13  ;;  %v4212_v31 = vpop.xlane.xlu0 %2269  ;;  %v1745_v35 = vsub.f32 %v4712_v39, %v3988_v59  ;;  %v2013_v50 = vsub.f32 %v4713_v23, %v3904_v4  ;;  %v4715_v41 = vld [vmem:[#allocation42_spill] sm:$0xff] }
 0x392   :  { %v982_v52 = vmul.f32 1.442695, %v967_v9  ;;  %2642 = vmatprep.mubr.msk.bf16.mxu1 %vm413_vm2, %v1273_v25  ;;  %v2012_v13 = vsub.f32 %v4716_v7, %v4715_v41 }
 0x393   :  { %v1742_v24 = vpop.xlane.xlu1 %1741  ;;  %v2883_v49 = vpop.eup %2882  ;;  %v1755_v9 = vmul.f32 1.442695, %v1745_v35 }
 0x394   :  { %2890 = vpow2.f32 %v982_v52  ;;  %1000 = vadd.xlane.f32.xlu1 %v999_v44  ;;  %2627 = vmatmul.mubr.msk.bf16.vlgmr.msra.gmra.mrb[24].mxu0 %vm413_vm2, %v1009_v54  ;;  %v1750_v28 = vsub.f32 %v3874_v53, %v1742_v24  ;;  %v1270_v48 = vsel %vm413_vm2, %v2883_v49, 0.0  ;;  %v733_v53 = vsel %vm413_vm2, %v2877_v14, 0.0 }
 0x395   :  { %2651 = vmatpush3.bf16.msra.mxu0 %v3177_v32  ;;  %2630 = vmatprep.mubr.msk.bf16.mxu0 %vm413_vm2, %v1010_v29  ;;  %2892 = vpow2.f32 %v1751_v3  ;;  %v1761_v32 = vmul.f32 1.442695, %v1748_v10  ;;  %v4235_v5 = vpop.xlane.xlu0 %2263  ;;  %v2022_v52 = vmul.f32 1.442695, %v2013_v50 }
 0x396   :  { %2652 = vmatprep.subr.bf16.mxu0 %v3185_v38  ;;  %737 = vadd.xlane.f32.xlu0 %v736_v55  ;;  %2894 = vpow2.f32 %v1510_v33  ;;  %v1765_v58 = vmul.f32 1.442695, %v1750_v28  ;;  %v4717_v33 = vld [vmem:[#allocation19_spill] sm:$0xff]  ;;  %v1749_v55 = vsub.f32 %v3831_v21, %v4165_v42 }
 0x397   :  { %v4218_v62 = vpop.xlane.xlu1 %2010  ;;  %2896 = vpow2.f32 %v1757_v15  ;;  %v2015_v24 = vsub.f32 %v4717_v33, %v3975_v6  ;;  %v2020_v6 = vmul.f32 1.442695, %v2012_v13  ;;  %v4724_v13 = vld [vmem:[#allocation46_spill] sm:$0xff] }
 0x398   :  { %481 = vadd.xlane.f32.xlu1 %v480_v0  ;;  %v4233_v56 = vpop.eup %2884  ;;  %2898 = vpow2.f32 %v1761_v32  ;;  %v4719_v0 = vld [vmem:[#allocation16_spill] sm:$0xff]  ;;  %v4720_v32 = vld [vmem:[#allocation38_spill] sm:$0xff]  ;;  %v1763_v35 = vmul.f32 1.442695, %v1749_v55 }
 0x399   :  { %2653 = vmatpush3.bf16.msra.mxu0 %v3185_v38  ;;  %2643 = vmatmul.mubr.msk.bf16.vlgmr.msra.gmra.mrb[28].mxu1 %vm413_vm2, %v1274_v22  ;;  %v2887_v59 = vpop.eup %2886  ;;  %v1535_v14 = vsel %vm413_vm2, %v4233_v56, 0.0  ;;  %2900 = vpow2.f32 %v1765_v58  ;;  %v4262_v44 = vpop.xlane.xlu0 %2275  ;;  %v2014_v22 = vsub.f32 %v4719_v0, %v3930_v20  ;;  %v2017_v21 = vsub.f32 %v4720_v32, %v4118_v61  ;;  %v4721_v20 = vld [vmem:[#allocation36_spill] sm:$0xff] }
 0x39a   :  { %2654 = vmatprep.subr.bf16.mxu0 %v3194_v45  ;;  %2667 = vmatpush3.bf16.msra.mxu1 %v4697_v18  ;;  %v2889_v34 = vpop.eup %2888  ;;  %v4714_v18 = vld [vmem:[#allocation34_spill] sm:$0xff]  ;;  %v1267_v4 = vsel %vm413_vm2, %v2887_v59, 0.0  ;;  %v1276_v54 = vpack.c.bf16 %v2883_v49, %v2887_v59  ;;  %2902 = vpow2.f32 %v1755_v9  ;;  %v2016_v39 = vsub.f32 %v4721_v20, %v4095_v46 }
 0x39b   :  { %1271 = vadd.xlane.f32.xlu0 %v1270_v48  ;;  %v4238_v38 = vpop.xlane.xlu1 %2266  ;;  %2646 = vmatprep.mubr.msk.bf16.mxu1 %vm413_vm2, %v1275_v43  ;;  %v1747_v8 = vsub.f32 %v4714_v18, %v4078_v37  ;;  %v1770_v29 = vsel %vm413_vm2, %v2889_v34, 0.0  ;;  %2904 = vpow2.f32 %v2022_v52  ;;  %v1539_v59 = vpack.c.bf16 %v4115_v40, %v4131_v2  ;;  %v4723_v18 = vld [vmem:[#allocation21_spill] sm:$0xff]  ;;  %v4725_v52 = vld [vmem:[#allocation43_spill] sm:$0xff] }
 0x39c   :  { %734 = vadd.xlane.f32.xlu1 %v733_v53  ;;  %v2024_v53 = vmul.f32 1.442695, %v2014_v22  ;;  %v2019_v61 = vsub.f32 %v3886_v16, %v4218_v62  ;;  %v2030_v23 = vmul.f32 1.442695, %v2017_v21  ;;  %v2281_v50 = vsub.f32 %v3900_v27, %v4238_v38 }
 0x39d   :  { %2655 = vmatpush3.bf16.msra.mxu0 %v3194_v45  ;;  %v1759_v15 = vmul.f32 1.442695, %v1747_v8  ;;  %v2067_v48 = vpop.permute.xlu0 %2066  ;;  %v1540_v2 = vpack.c.bf16 %v4158_v11, %v4184_v19  ;;  %v2028_v16 = vmul.f32 1.442695, %v2016_v39  ;;  %v2282_v62 = vsub.f32 %v3867_v57, %v4212_v31 }
 0x39e   :  { %v2891_v12 = vpop.eup %2890  ;;  %2656 = vmatprep.subr.bf16.mxu0 %v3200_v51  ;;  %v2018_v58 = vsub.f32 %v3844_v63, %v4178_v60  ;;  %v2278_v57 = vsub.f32 %v3851_v1, %v4193_v26  ;;  %v2293_v19 = vmul.f32 1.442695, %v2281_v50  ;;  %v4722_v60 = vld [vmem:[#allocation47_spill] sm:$0xff]  ;;  %v2280_v33 = vsub.f32 %v4725_v52, %v4235_v5 }
 0x39f   :  { %1536 = vadd.xlane.f32.xlu0 %v1535_v14  ;;  %v4252_v25 = vpop.xlane.xlu1 %2260  ;;  %v1011_v45 = vpack.c.bf16 %v2891_v12, %v4163_v17  ;;  %v4256_v3 = vpop.eup %2892  ;;  %v1538_v17 = vpack.c.bf16 %v4029_v47, %v4066_v30  ;;  %v2026_v30 = vmul.f32 1.442695, %v2015_v24  ;;  %2906 = vpow2.f32 %v1759_v15  ;;  %v4726_v24 = vld [vmem:[#allocation44_spill] sm:$0xff] }
 0x3a0   :  { %1268 = vadd.xlane.f32.xlu1 %v1267_v4  ;;  %v4258_v37 = vpop.eup %2894  ;;  %v1791_v36 = vpack.c.bf16 %v2889_v34, %v4256_v3  ;;  %2908 = vpow2.f32 %v2020_v6  ;;  %v1005_v34 = vsel %vm413_vm2, %v2891_v12, 0.0  ;;  %v2034_v12 = vmul.f32 1.442695, %v2019_v61 }
 0x3a1   :  { %2657 = vmatpush3.bf16.msra.mxu0 %v3200_v51  ;;  %2647 = vmatmul.mubr.msk.bf16.gmra.mrb[32].mxu1 %vm413_vm2, %v1276_v54  ;;  %v4271_v10 = vpop.eup %2896  ;;  %v4718_v51 = vld [vmem:[#allocation4_spill] sm:$0xff]  ;;  %v1532_v47 = vsel %vm413_vm2, %v4258_v37, 0.0  ;;  %2910 = vpow2.f32 %v2026_v30  ;;  %v1767_v11 = vsel %vm413_vm2, %v4256_v3, 0.0  ;;  %v1806_v31 = vpop.permute.xlu0 %1805  ;;  %v2277_v8 = vsub.f32 %v4723_v18, %v4722_v60 }
 0x3a2   :  { %2631 = vmatmul.mubr.msk.bf16.gmra.mrb[28].mxu0 %vm413_vm2, %v1011_v45  ;;  %2682 = vmatprep.subr.bf16.mxu0 %v4718_v51  ;;  %v1776_v42 = vsel %vm413_vm2, %v4271_v10, 0.0  ;;  %v4288_v28 = vpop.eup %2898  ;;  %2912 = vpow2.f32 %v1763_v35  ;;  %v2295_v14 = vmul.f32 1.442695, %v2282_v62  ;;  %v2032_v26 = vmul.f32 1.442695, %v2018_v58 }
 0x3a3   :  { %1771 = vadd.xlane.f32.xlu0 %v1770_v29  ;;  %v4276_v49 = vpop.xlane.xlu1 %2272  ;;  %2658 = vmatprep.mubr.msk.bf16.mxu0 %vm413_vm2, %v1538_v17  ;;  %v1782_v46 = vsel %vm413_vm2, %v4288_v28, 0.0  ;;  %v4304_v40 = vpop.eup %2900  ;;  %2914 = vpow2.f32 %v2024_v53  ;;  %v1541_v45 = vpack.c.bf16 %v4233_v56, %v4258_v37  ;;  %v2287_v54 = vmul.f32 1.442695, %v2278_v57 }
 0x3a4   :  { %2674 = vmatprep.mubr.msk.bf16.mxu1 %vm413_vm2, %v1791_v36  ;;  %1533 = vadd.xlane.f32.xlu1 %v1532_v47  ;;  %v2903_v38 = vpop.eup %2902  ;;  %2916 = vpow2.f32 %v2030_v23  ;;  %v1788_v9 = vsel %vm413_vm2, %v4304_v40, 0.0  ;;  %v2283_v4 = vsub.f32 %v4724_v13, %v4276_v49  ;;  %v2284_v29 = vsub.f32 %v4726_v24, %v4262_v44  ;;  %v4727_v44 = vld [vmem:[#allocation45_spill] sm:$0xff] }
 0x3a5   :  { %v2905_v63 = vpop.eup %2904  ;;  %2918 = vpow2.f32 %v2028_v16  ;;  %v1773_v7 = vsel %vm413_vm2, %v2903_v38, 0.0  ;;  %v2285_v56 = vmul.f32 1.442695, %v2277_v8  ;;  %v1792_v37 = vpack.c.bf16 %v4271_v10, %v2903_v38  ;;  %v2330_v6 = vpop.permute.xlu0 %2329 }
 0x3a6   :  { %2920 = vpow2.f32 %v2034_v12  ;;  %v2039_v15 = vsel %vm413_vm2, %v2905_v63, 0.0  ;;  %v2297_v49 = vmul.f32 1.442695, %v2283_v4  ;;  %v2291_v10 = vmul.f32 1.442695, %v2280_v33 }
 0x3a7   :  { %1777 = vadd.xlane.f32.xlu0 %v1776_v42  ;;  %v1802_v43 = vpop.permute.xlu1 %1801  ;;  %2922 = vpow2.f32 %v2293_v19  ;;  %v2299_v30 = vmul.f32 1.442695, %v2284_v29 }
 0x3a8   :  { %2668 = vmatprep.subr.bf16.mxu1 %v1802_v43  ;;  %1006 = vadd.xlane.f32.xlu1 %v1005_v34  ;;  %2924 = vpow2.f32 %v2295_v14 }
 0x3a9   :  { %2669 = vmatpush3.bf16.msra.mxu1 %v1802_v43  ;;  %v2907_v1 = vpop.eup %2906  ;;  %2926 = vpow2.f32 %v2032_v26 }
 0x3aa   :  { %2659 = vmatmul.mubr.msk.bf16.vlgmr.msra.gmra.mrb[32].mxu0 %vm413_vm2, %v1539_v59  ;;  %v4325_v3 = vpop.eup %2908  ;;  %v1779_v55 = vsel %vm413_vm2, %v2907_v1, 0.0  ;;  %v1793_v0 = vpack.c.bf16 %v4288_v28, %v2907_v1  ;;  %2928 = vpow2.f32 %v2287_v54  ;;  %v2334_v59 = vpop.permute.xlu0 %2333 }
 0x3ab   :  { %2683 = vmatpush3.bf16.msra.mxu0 %v4718_v51  ;;  %1783 = vadd.xlane.f32.xlu0 %v1782_v46  ;;  %v1804_v27 = vpop.permute.xlu1 %1803  ;;  %v2060_v17 = vpack.c.bf16 %v2905_v63, %v4325_v3  ;;  %v2911_v36 = vpop.eup %2910  ;;  %v2279_v51 = vsub.f32 %v4727_v44, %v4252_v25  ;;  %2930 = vpow2.f32 %v2285_v56  ;;  %v2036_v23 = vsel %vm413_vm2, %v4325_v3, 0.0 }
 0x3ac   :  { %2662 = vmatprep.mubr.msk.bf16.mxu0 %vm413_vm2, %v1540_v2  ;;  %2684 = vmatprep.subr.bf16.mxu0 %v2067_v48  ;;  %v2913_v22 = vpop.eup %2912  ;;  %v2045_v32 = vsel %vm413_vm2, %v2911_v36, 0.0  ;;  %2932 = vpow2.f32 %v2297_v49 }
 0x3ad   :  { %1768 = vadd.xlane.f32.xlu1 %v1767_v11  ;;  %2670 = vmatprep.subr.bf16.mxu1 %v1804_v27  ;;  %v2915_v47 = vpop.eup %2914  ;;  %v2289_v28 = vmul.f32 1.442695, %v2279_v51  ;;  %v1785_v20 = vsel %vm413_vm2, %v2913_v22, 0.0  ;;  %2934 = vpow2.f32 %v2291_v10  ;;  %v1794_v61 = vpack.c.bf16 %v4304_v40, %v2913_v22 }
 0x3ae   :  { %2671 = vmatpush3.bf16.msra.mxu1 %v1804_v27  ;;  %v2917_v25 = vpop.eup %2916  ;;  %v2061_v42 = vpack.c.bf16 %v2911_v36, %v2915_v47  ;;  %2936 = vpow2.f32 %v2299_v30  ;;  %v2042_v38 = vsel %vm413_vm2, %v2915_v47, 0.0 }
 0x3af   :  { %1789 = vadd.xlane.f32.xlu0 %v1788_v9  ;;  %2685 = vmatpush3.bf16.msra.mxu0 %v2067_v48  ;;  %v2069_v41 = vpop.permute.xlu1 %2068  ;;  %v2919_v39 = vpop.eup %2918  ;;  %v2051_v48 = vsel %vm413_vm2, %v2917_v25, 0.0  ;;  %2938 = vpow2.f32 %v2289_v28 }
 0x3b0   :  { %2672 = vmatprep.subr.bf16.mxu1 %v1806_v31  ;;  %2686 = vmatprep.subr.bf16.mxu0 %v2069_v41  ;;  %v2921_v35 = vpop.eup %2920  ;;  %v2062_v43 = vpack.c.bf16 %v2917_v25, %v2919_v39  ;;  %v2048_v9 = vsel %vm413_vm2, %v2919_v39, 0.0 }
 0x3b1   :  { %1774 = vadd.xlane.f32.xlu1 %v1773_v7  ;;  %v2923_v53 = vpop.eup %2922  ;;  %v2057_v46 = vsel %vm413_vm2, %v2921_v35, 0.0 }
 0x3b2   :  { %2663 = vmatmul.mubr.msk.bf16.gmra.mrb[36].mxu0 %vm413_vm2, %v1541_v45  ;;  %2673 = vmatpush3.bf16.msra.mxu1 %v1806_v31  ;;  %v2925_v34 = vpop.eup %2924  ;;  %v2313_v26 = vsel %vm413_vm2, %v2923_v53, 0.0 }
 0x3b3   :  { %2040 = vadd.xlane.f32.xlu0 %v2039_v15  ;;  %2687 = vmatpush3.bf16.msra.mxu0 %v2069_v41  ;;  %v2071_v5 = vpop.permute.xlu1 %2070  ;;  %v2927_v50 = vpop.eup %2926  ;;  %v2327_v2 = vpack.c.bf16 %v2925_v34, %v2923_v53  ;;  %v2316_v14 = vsel %vm413_vm2, %v2925_v34, 0.0 }
 0x3b4   :  { %2690 = vmatprep.mubr.msk.bf16.mxu0 %vm413_vm2, %v2060_v17  ;;  %2730 = vmatprep.subr.bf16.mxu1 %v2330_v6  ;;  %v2929_v16 = vpop.eup %2928  ;;  %v2063_v40 = vpack.c.bf16 %v2921_v35, %v2927_v50  ;;  %v2054_v8 = vsel %vm413_vm2, %v2927_v50, 0.0 }
 0x3b5   :  { %1780 = vadd.xlane.f32.xlu1 %v1779_v55  ;;  %2675 = vmatmul.mubr.msk.bf16.vlgmr.msra.gmra.mrb[36].mxu1 %vm413_vm2, %v1792_v37  ;;  %v2931_v27 = vpop.eup %2930  ;;  %v2304_v12 = vsel %vm413_vm2, %v2929_v16, 0.0 }
 0x3b6   :  { %2688 = vmatprep.subr.bf16.mxu0 %v2071_v5  ;;  %2678 = vmatprep.mubr.msk.bf16.mxu1 %vm413_vm2, %v1793_v0  ;;  %v2933_v58 = vpop.eup %2932  ;;  %v2325_v57 = vpack.c.bf16 %v2929_v16, %v2931_v27  ;;  %v2301_v41 = vsel %vm413_vm2, %v2931_v27, 0.0 }
 0x3b7   :  { %2046 = vadd.xlane.f32.xlu0 %v2045_v32  ;;  %2689 = vmatpush3.bf16.msra.mxu0 %v2071_v5  ;;  %v2332_v21 = vpop.permute.xlu1 %2331  ;;  %v2935_v11 = vpop.eup %2934  ;;  %v2319_v13 = vsel %vm413_vm2, %v2933_v58, 0.0 }
 0x3b8   :  { %2734 = vmatpush3.bf16.msra.mxu1 %v2330_v6  ;;  %2698 = vmatprep.subr.bf16.mxu0 %v2330_v6  ;;  %v2937_v19 = vpop.eup %2936  ;;  %v2310_v60 = vsel %vm413_vm2, %v2935_v11, 0.0 }
 0x3b9   :  { %1786 = vadd.xlane.f32.xlu1 %v1785_v20  ;;  %2731 = vmatprep.subr.bf16.mxu1 %v2332_v21  ;;  %v2328_v31 = vpack.c.bf16 %v2937_v19, %v2933_v58  ;;  %v2939_v63 = vpop.eup %2938  ;;  %v2322_v7 = vsel %vm413_vm2, %v2937_v19, 0.0 }
 0x3ba   :  { %2691 = vmatmul.mubr.msk.bf16.vlgmr.msra.gmra.mrb[40].mxu0 %vm413_vm2, %v2061_v42  ;;  %v2326_v18 = vpack.c.bf16 %v2935_v11, %v2939_v63  ;;  %v2307_v1 = vsel %vm413_vm2, %v2939_v63, 0.0 }
 0x3bb   :  { %2052 = vadd.xlane.f32.xlu0 %v2051_v48  ;;  %2699 = vmatpush3.bf16.msra.mxu0 %v2330_v6  ;;  %v2336_v62 = vpop.permute.xlu1 %2335 }
 0x3bc   :  { %2735 = vmatpush3.bf16.msra.mxu1 %v2332_v21  ;;  %2694 = vmatprep.mubr.msk.bf16.mxu0 %vm413_vm2, %v2062_v43 }
 0x3bd   :  { %2700 = vmatprep.subr.bf16.mxu0 %v2332_v21  ;;  %2732 = vmatprep.subr.bf16.mxu1 %v2334_v59 }
 0x3be   :  { %2037 = vadd.xlane.f32.xlu1 %v2036_v23  ;;  %2679 = vmatmul.mubr.msk.bf16.gmra.mrb[40].mxu1 %vm413_vm2, %v1794_v61 }
 0x3bf   :  { %2058 = vadd.xlane.f32.xlu0 %v2057_v46  ;;  %2701 = vmatpush3.bf16.msra.mxu0 %v2332_v21 }
 0x3c0   :  { %2736 = vmatpush3.bf16.msra.mxu1 %v2334_v59  ;;  %2710 = vmatprep.mubr.msk.bf16.mxu1 %vm413_vm2, %v2327_v2 }
 0x3c1   :  { %2702 = vmatprep.subr.bf16.mxu0 %v2334_v59  ;;  %2733 = vmatprep.subr.bf16.mxu1 %v2336_v62 }
 0x3c2   :  { %2043 = vadd.xlane.f32.xlu1 %v2042_v38  ;;  %2695 = vmatmul.mubr.msk.bf16.gmra.mrb[44].mxu0 %vm413_vm2, %v2063_v40 }
 0x3c3   :  { %2305 = vadd.xlane.f32.xlu0 %v2304_v12  ;;  %2703 = vmatpush3.bf16.msra.mxu0 %v2334_v59 }
 0x3c4   :  { %2737 = vmatpush3.bf16.msra.mxu1 %v2336_v62  ;;  %2704 = vmatprep.subr.bf16.mxu0 %v2336_v62 }
 0x3c5   :  { %2706 = vmatprep.mubr.msk.bf16.mxu0 %vm413_vm2, %v2325_v57 }
 0x3c6   :  { %2049 = vadd.xlane.f32.xlu1 %v2048_v9 }
 0x3c7   :  { %2711 = vmatmul.mubr.msk.bf16.vlgmr.msra.gmra.mrb[44].mxu1 %vm413_vm2, %v2328_v31  ;;  %2311 = vadd.xlane.f32.xlu0 %v2310_v60 }
 0x3c8   :  { %2705 = vmatpush3.bf16.msra.mxu0 %v2336_v62 }
 0x3ca   :  { %2055 = vadd.xlane.f32.xlu1 %v2054_v8 }
 0x3cb   :  { %2317 = vadd.xlane.f32.xlu0 %v2316_v14  ;;  %2707 = vmatmul.mubr.msk.bf16.vlgmr.msra.gmra.mrb[48].mxu0 %vm413_vm2, %v2326_v18 }
 0x3ce   :  { %2302 = vadd.xlane.f32.xlu1 %v2301_v41 }
 0x3cf   :  { %2323 = vadd.xlane.f32.xlu0 %v2322_v7 }
 0x3d2   :  { %2308 = vadd.xlane.f32.xlu1 %v2307_v1 }
 0x3d6   :  { %2314 = vadd.xlane.f32.xlu1 %v2313_v26 }
 0x3da   :  { %2320 = vadd.xlane.f32.xlu1 %v2319_v13  ;;  %v4368_v4 = vpop.xlane.xlu0 %985 }
 0x3de   :  { %v4370_v45 = vpop.xlane.xlu0 %1250 }
 0x3e2   :  { %v467_v3 = vpop.xlane.xlu0 %466 }
 0x3e6   :  { %v720_v54 = vpop.xlane.xlu0 %719 }
 0x3ea   :  { %v4372_v52 = vpop.xlane.xlu0 %1518 }
 0x3ed   :  { %v464_v33 = vpop.xlane.xlu1 %463 }
 0x3ee   :  { %v4374_v24 = vpop.xlane.xlu0 %991 }
 0x3f1   :  { %v717_v29 = vpop.xlane.xlu1 %716 }
 0x3f2   :  { %v4376_v15 = vpop.xlane.xlu0 %1256 }
 0x3f5   :  { %v4378_v17 = vpop.xlane.xlu1 %1515 }
 0x3f6   :  { %v473_v36 = vpop.xlane.xlu0 %472 }
 0x3f9   :  { %v4380_v56 = vpop.xlane.xlu1 %988 }
 0x3fa   :  { %v726_v37 = vpop.xlane.xlu0 %725 }
 0x3fd   :  { %v4382_v6 = vpop.xlane.xlu1 %1253 }
 0x3fe   :  { %v4384_v5 = vpop.xlane.xlu0 %1259 }
 0x401   :  { %v470_v55 = vpop.xlane.xlu1 %469 }
 0x402   :  { %v4386_v51 = vpop.xlane.xlu0 %1524  ;;  %2940 = vrcp.f32 %v470_v55 }
 0x403   :  { %2942 = vrcp.f32 %v464_v33 }
 0x404   :  { %2944 = vrcp.f32 %v473_v36 }
 0x405   :  { %v723_v44 = vpop.xlane.xlu1 %722  ;;  %2946 = vrcp.f32 %v467_v3 }
 0x406   :  { %v4390_v0 = vpop.xlane.xlu0 %997  ;;  %2948 = vrcp.f32 %v723_v44 }
 0x407   :  { %2950 = vrcp.f32 %v717_v29 }
 0x408   :  { %2952 = vrcp.f32 %v726_v37 }
 0x409   :  { %v4388_v49 = vpop.xlane.xlu1 %1521  ;;  %2954 = vrcp.f32 %v720_v54 }
 0x40a   :  { %v479_v47 = vpop.xlane.xlu0 %478 }
 0x40c   :  { %v2941_v20 = vpop.eup %2940 }
 0x40d   :  { %v4392_v22 = vpop.xlane.xlu1 %994  ;;  %v2943_v48 = vpop.eup %2942 }
 0x40e   :  { %v4394_v32 = vpop.xlane.xlu0 %731  ;;  %v2945_v59 = vpop.eup %2944 }
 0x40f   :  { %v2947_v23 = vpop.eup %2946 }
 0x410   :  { %v2949_v40 = vpop.eup %2948 }
 0x411   :  { %v476_v10 = vpop.xlane.xlu1 %475  ;;  %v2951_v38 = vpop.eup %2950 }
 0x412   :  { %v4398_v21 = vpop.xlane.xlu0 %1265  ;;  %v2953_v11 = vpop.eup %2952  ;;  %2956 = vrcp.f32 %v476_v10 }
 0x413   :  { %v2955_v31 = vpop.eup %2954  ;;  %2958 = vrcp.f32 %v4374_v24 }
 0x414   :  { %2960 = vrcp.f32 %v479_v47 }
 0x415   :  { %v729_v30 = vpop.xlane.xlu1 %728 }
 0x416   :  { %v4402_v28 = vpop.xlane.xlu0 %1530  ;;  %2962 = vrcp.f32 %v729_v30 }
 0x419   :  { %v4396_v25 = vpop.xlane.xlu1 %1262 }
 0x41a   :  { %v4406_v16 = vpop.xlane.xlu0 %1003 }
 0x41d   :  { %v4400_v42 = vpop.xlane.xlu1 %1527 }
 0x41e   :  { %v485_v18 = vpop.xlane.xlu0 %484 }
 0x421   :  { %v4404_v39 = vpop.xlane.xlu1 %1000 }
 0x423   :  { %v738_v26 = vpop.xlane.xlu0 %737 }
 0x425   :  { %v2596_v35 = vpop.f32.mrb[16].mxu0  ;;  %v482_v62 = vpop.xlane.xlu1 %481 }
 0x426   :  { %v577_v43 = vmul.f32 %v2941_v20, %v2596_v35  ;;  %v536_v53 = vpop.f32.mrb[17].mxu0  ;;  %2964 = vrcp.f32 %v482_v62 }
 0x427   :  { %v575_v61 = vmul.f32 %v2943_v48, %v536_v53  ;;  %v2597_v34 = vpop.f32.mrb[18].mxu0 }
 0x428   :  { %v578_v50 = vmul.f32 %v2945_v59, %v2597_v34  ;;  %v539_v46 = vpop.f32.mrb[19].mxu0  ;;  %v4418_v3 = vpop.xlane.xlu0 %1271 }
 0x429   :  { %v576_v2 = vmul.f32 %v2947_v23, %v539_v46  ;;  %v735_v41 = vpop.xlane.xlu1 %734  ;;  %v2957_v59 = vpop.eup %2956 }
 0x42a   :  { %2966 = vrcp.f32 %v735_v41  ;;  %v2959_v47 = vpop.eup %2958 }
 0x42b   :  { %2968 = vrcp.f32 %v485_v18  ;;  %v2961_v23 = vpop.eup %2960 }
 0x42c   :  { %v2612_v27 = vpop.f32.mrb[20].mxu1  ;;  %v4422_v33 = vpop.xlane.xlu0 %1536  ;;  %2970 = vrcp.f32 %v738_v26 }
 0x42d   :  { %v846_v58 = vmul.f32 %v2949_v40, %v2612_v27  ;;  %v805_v12 = vpop.f32.mrb[21].mxu1  ;;  %v4416_v13 = vpop.xlane.xlu1 %1268  ;;  %2972 = vrcp.f32 %v4394_v32 }
 0x42e   :  { %v844_v57 = vmul.f32 %v2951_v38, %v805_v12  ;;  %v2613_v19 = vpop.f32.mrb[22].mxu1  ;;  %2974 = vrcp.f32 %v4368_v4  ;;  %v2963_v46 = vpop.eup %2962 }
 0x42f   :  { %v4408_v9 = vadd.f32 %v846_v58, %v577_v43  ;;  %v847_v63 = vmul.f32 %v2953_v11, %v2613_v19  ;;  %v808_v60 = vpop.f32.mrb[23].mxu1  ;;  %2976 = vrcp.f32 %v4392_v22 }
 0x430   :  { %v4410_v8 = vadd.f32 %v844_v57, %v575_v61  ;;  %v845_v14 = vmul.f32 %v2955_v31, %v808_v60  ;;  %v4426_v36 = vpop.xlane.xlu0 %1771  ;;  %2978 = vrcp.f32 %v4380_v56  ;;  %v2965_v32 = vpop.eup %2964 }
 0x431   :  { %v4412_v7 = vadd.f32 %v847_v63, %v578_v50  ;;  %v4420_v54 = vpop.xlane.xlu1 %1533  ;;  %2980 = vrcp.f32 %v4376_v15 }
 0x432   :  { %v4414_v1 = vadd.f32 %v845_v14, %v576_v2  ;;  %2982 = vrcp.f32 %v4370_v45 }
 0x433   :  { %2984 = vrcp.f32 %v4384_v5 }
 0x434   :  { %v4430_v55 = vpop.xlane.xlu0 %1777  ;;  %v2967_v22 = vpop.eup %2966  ;;  %2986 = vrcp.f32 %v4382_v6 }
 0x435   :  { %v4424_v29 = vpop.xlane.xlu1 %1006  ;;  %v2969_v62 = vpop.eup %2968  ;;  %2988 = vrcp.f32 %v4390_v0 }
 0x436   :  { %v2971_v58 = vpop.eup %2970  ;;  %2990 = vrcp.f32 %v4398_v21 }
 0x437   :  { %v2973_v57 = vpop.eup %2972  ;;  %2992 = vrcp.f32 %v4396_v25 }
 0x438   :  { %v4434_v20 = vpop.xlane.xlu0 %1783  ;;  %v2975_v6 = vpop.eup %2974  ;;  %2994 = vrcp.f32 %v4406_v16 }
 0x439   :  { %v2977_v26 = vpop.eup %2976  ;;  %2996 = vrcp.f32 %v4416_v13 }
 0x43a   :  { %v4428_v37 = vpop.xlane.xlu1 %1768  ;;  %2998 = vrcp.f32 %v4424_v29 }
 0x43b   :  { %3000 = vrcp.f32 %v4404_v39 }
 0x43c   :  { %v4439_v48 = vpop.xlane.xlu0 %1789  ;;  %3002 = vrcp.f32 %v4418_v3 }
 0x43d   :  { %3004 = vrcp.f32 %v4388_v49 }
 0x43e   :  { %v4432_v44 = vpop.xlane.xlu1 %1774  ;;  %3006 = vrcp.f32 %v4378_v17 }
 0x43f   :  { %3008 = vrcp.f32 %v4386_v51 }
 0x440   :  { %v4446_v10 = vpop.xlane.xlu0 %2040 }
 0x442   :  { %v4436_v35 = vpop.xlane.xlu1 %1780 }
 0x444   :  { %v4455_v56 = vpop.xlane.xlu0 %2046 }
 0x446   :  { %v4441_v43 = vpop.xlane.xlu1 %1786 }
 0x448   :  { %v4475_v25 = vpop.xlane.xlu0 %2052 }
 0x44b   :  { %v4449_v30 = vpop.xlane.xlu1 %2037 }
 0x44c   :  { %v4493_v3 = vpop.xlane.xlu0 %2058 }
 0x44f   :  { %v4457_v12 = vpop.xlane.xlu1 %2043 }
 0x45f   :  { %v2600_v53 = vpop.f32.mrb[20].mxu0 }
 0x460   :  { %v552_v24 = vpop.f32.mrb[21].mxu0  ;;  %v581_v40 = vmul.f32 %v2965_v32, %v2600_v53 }
 0x461   :  { %v579_v61 = vmul.f32 %v2957_v59, %v552_v24  ;;  %v2601_v34 = vpop.f32.mrb[22].mxu0  ;;  %v2979_v24 = vpop.eup %2978  ;;  %3010 = vrcp.f32 %v4372_v52 }
 0x462   :  { %v555_v50 = vpop.f32.mrb[23].mxu0  ;;  %v582_v45 = vmul.f32 %v2969_v62, %v2601_v34 }
 0x463   :  { %v580_v4 = vmul.f32 %v2961_v23, %v555_v50 }
 0x464   :  { %v2616_v2 = vpop.f32.mrb[24].mxu1 }
 0x465   :  { %v850_v27 = vmul.f32 %v2967_v22, %v2616_v2  ;;  %v821_v38 = vpop.f32.mrb[25].mxu1 }
 0x466   :  { %v848_v15 = vmul.f32 %v2963_v46, %v821_v38  ;;  %v2617_v11 = vpop.f32.mrb[26].mxu1  ;;  %v2981_v46 = vpop.eup %2980  ;;  %3012 = vrcp.f32 %v4402_v28 }
 0x467   :  { %v4460_v19 = vadd.f32 %v850_v27, %v581_v40  ;;  %v851_v5 = vmul.f32 %v2971_v58, %v2617_v11  ;;  %v824_v31 = vpop.f32.mrb[27].mxu1  ;;  %v2628_v63 = vpop.f32.mrb[24].mxu0 }
 0x468   :  { %v4463_v60 = vadd.f32 %v848_v15, %v579_v61  ;;  %v849_v18 = vmul.f32 %v2973_v57, %v824_v31  ;;  %v1111_v14 = vmul.f32 %v2959_v47, %v2628_v63  ;;  %v1070_v41 = vpop.f32.mrb[25].mxu0  ;;  %v2983_v16 = vpop.eup %2982  ;;  %3014 = vrcp.f32 %v4420_v54 }
 0x469   :  { %v4466_v53 = vadd.f32 %v851_v5, %v582_v45  ;;  %v1109_v0 = vmul.f32 %v2975_v6, %v1070_v41  ;;  %v2629_v59 = vpop.f32.mrb[26].mxu0  ;;  %v2985_v62 = vpop.eup %2984  ;;  %3016 = vrcp.f32 %v4400_v42 }
 0x46a   :  { %v4469_v34 = vadd.f32 %v849_v18, %v580_v4  ;;  %v1119_v23 = vadd.f32 %v1111_v14, %v4408_v9  ;;  %v1112_v21 = vmul.f32 %v2977_v26, %v2629_v59  ;;  %v1073_v61 = vpop.f32.mrb[27].mxu0  ;;  %v4479_v4 = vpop.xlane.xlu1 %2049 }
 0x46b   :  { %v1117_v47 = vadd.f32 %v1109_v0, %v4410_v8  ;;  %v1110_v50 = vmul.f32 %v2979_v24, %v1073_v61  ;;  %v2987_v29 = vpop.eup %2986  ;;  %3018 = vrcp.f32 %v4422_v33 }
 0x46c   :  { %v1120_v32 = vadd.f32 %v1112_v21, %v4412_v7  ;;  %v2644_v22 = vpop.f32.mrb[28].mxu1  ;;  %v2989_v39 = vpop.eup %2988  ;;  %3020 = vrcp.f32 %v4432_v44 }
 0x46d   :  { %v1118_v9 = vadd.f32 %v1110_v50, %v4414_v1  ;;  %v1376_v2 = vmul.f32 %v2981_v46, %v2644_v22  ;;  %v1335_v13 = vpop.f32.mrb[29].mxu1  ;;  %v2991_v57 = vpop.eup %2990  ;;  %3022 = vrcp.f32 %v4428_v37 }
 0x46e   :  { %v1374_v8 = vmul.f32 %v2983_v16, %v1335_v13  ;;  %v2645_v40 = vpop.f32.mrb[30].mxu1  ;;  %v2993_v45 = vpop.eup %2992  ;;  %3024 = vrcp.f32 %v4430_v55 }
 0x46f   :  { %v4483_v27 = vadd.f32 %v1376_v2, %v1119_v23  ;;  %v1377_v38 = vmul.f32 %v2985_v62, %v2645_v40  ;;  %v1338_v7 = vpop.f32.mrb[31].mxu1  ;;  %v4495_v5 = vpop.xlane.xlu1 %2055 }
 0x470   :  { %v4485_v58 = vadd.f32 %v1374_v8, %v1117_v47  ;;  %v1375_v15 = vmul.f32 %v2987_v29, %v1338_v7  ;;  %v2995_v31 = vpop.eup %2994  ;;  %3026 = vrcp.f32 %v4426_v36 }
 0x471   :  { %v4487_v11 = vadd.f32 %v1377_v38, %v1120_v32  ;;  %v2997_v18 = vpop.eup %2996  ;;  %3028 = vrcp.f32 %v4457_v12 }
 0x472   :  { %v4490_v1 = vadd.f32 %v1375_v15, %v1118_v9  ;;  %v2999_v26 = vpop.eup %2998  ;;  %3030 = vrcp.f32 %v4449_v30 }
 0x473   :  { %v3001_v23 = vpop.eup %3000  ;;  %v4504_v13 = vpop.xlane.xlu1 %2302  ;;  %3032 = vrcp.f32 %v4455_v56 }
 0x474   :  { %v2648_v6 = vpop.f32.mrb[32].mxu1  ;;  %v3003_v46 = vpop.eup %3002  ;;  %3034 = vrcp.f32 %v4446_v10 }
 0x475   :  { %v2632_v63 = vpop.f32.mrb[28].mxu0  ;;  %v1351_v49 = vpop.f32.mrb[33].mxu1  ;;  %v1380_v61 = vmul.f32 %v2997_v18, %v2648_v6 }
 0x476   :  { %v1115_v14 = vmul.f32 %v2995_v31, %v2632_v63  ;;  %v1086_v41 = vpop.f32.mrb[29].mxu0  ;;  %v1378_v59 = vmul.f32 %v2993_v45, %v1351_v49  ;;  %v2649_v17 = vpop.f32.mrb[34].mxu1 }
 0x477   :  { %v1113_v0 = vmul.f32 %v2989_v39, %v1086_v41  ;;  %v2633_v24 = vpop.f32.mrb[30].mxu0  ;;  %v1354_v51 = vpop.f32.mrb[35].mxu1  ;;  %v1381_v2 = vmul.f32 %v3003_v46, %v2649_v17 }
 0x478   :  { %v1123_v21 = vadd.f32 %v1115_v14, %v4460_v19  ;;  %v1116_v47 = vmul.f32 %v2999_v26, %v2633_v24  ;;  %v1089_v50 = vpop.f32.mrb[31].mxu0  ;;  %v1379_v52 = vmul.f32 %v2991_v57, %v1354_v51  ;;  %v3005_v40 = vpop.eup %3004  ;;  %3036 = vrcp.f32 %v4441_v43 }
 0x479   :  { %v1121_v32 = vadd.f32 %v1113_v0, %v4463_v60  ;;  %v1114_v22 = vmul.f32 %v3001_v23, %v1089_v50  ;;  %v4509_v60 = vpop.xlane.xlu0 %2305  ;;  %v3007_v38 = vpop.eup %3006  ;;  %3038 = vrcp.f32 %v4436_v35 }
 0x47a   :  { %v1388_v16 = vadd.f32 %v1380_v61, %v1123_v21  ;;  %v1124_v9 = vadd.f32 %v1116_v47, %v4466_v53  ;;  %v3009_v7 = vpop.eup %3008  ;;  %v4516_v45 = vpop.xlane.xlu1 %2308  ;;  %3040 = vrcp.f32 %v4439_v48 }
 0x47b   :  { %v1386_v19 = vadd.f32 %v1378_v59, %v1121_v32  ;;  %v1122_v62 = vadd.f32 %v1114_v22, %v4469_v34  ;;  %v3011_v39 = vpop.eup %3010  ;;  %3042 = vrcp.f32 %v4434_v20 }
 0x47c   :  { %v1389_v8 = vadd.f32 %v1381_v2, %v1124_v9  ;;  %v3013_v55 = vpop.eup %3012  ;;  %3044 = vrcp.f32 %v4495_v5 }
 0x47d   :  { %v1387_v28 = vadd.f32 %v1379_v52, %v1122_v62  ;;  %v2660_v29 = vpop.f32.mrb[32].mxu0  ;;  %v4521_v37 = vpop.xlane.xlu0 %2311 }
 0x47e   :  { %v1629_v53 = vmul.f32 %v3005_v40, %v2660_v29  ;;  %v1588_v54 = vpop.f32.mrb[33].mxu0  ;;  %v2315_v12 = vpop.xlane.xlu1 %2314 }
 0x47f   :  { %v1627_v15 = vmul.f32 %v3007_v38, %v1588_v54  ;;  %v2661_v34 = vpop.f32.mrb[34].mxu0 }
 0x480   :  { %v1637_v42 = vadd.f32 %v1629_v53, %v4483_v27  ;;  %v1630_v33 = vmul.f32 %v3009_v7, %v2661_v34  ;;  %v1591_v57 = vpop.f32.mrb[35].mxu0  ;;  %v3015_v27 = vpop.eup %3014  ;;  %3046 = vrcp.f32 %v4479_v4 }
 0x481   :  { %v1635_v44 = vadd.f32 %v1627_v15, %v4485_v58  ;;  %v1628_v31 = vmul.f32 %v3011_v39, %v1591_v57  ;;  %v3017_v18 = vpop.eup %3016  ;;  %v2318_v24 = vpop.xlane.xlu0 %2317  ;;  %3048 = vrcp.f32 %v4493_v3 }
 0x482   :  { %v1638_v63 = vadd.f32 %v1630_v33, %v4487_v11  ;;  %v3019_v41 = vpop.eup %3018  ;;  %v2321_v9 = vpop.xlane.xlu1 %2320  ;;  %3050 = vrcp.f32 %v4475_v25 }
 0x483   :  { %v1636_v6 = vadd.f32 %v1628_v31, %v4490_v1  ;;  %v3021_v26 = vpop.eup %3020  ;;  %3052 = vrcp.f32 %v2321_v9  ;;  %v2521_v9 = vld [vmem:[%s4591_s4] ss:$0 sm:$0xff] }
 0x484   :  { %v3023_v56 = vpop.eup %3022  ;;  %3054 = vrcp.f32 %v2315_v12 }
 0x485   :  { %v2664_v36 = vpop.f32.mrb[36].mxu0  ;;  %v3025_v61 = vpop.eup %3024 }
 0x486   :  { %v1633_v58 = vmul.f32 %v3015_v27, %v2664_v36  ;;  %v1604_v14 = vpop.f32.mrb[37].mxu0  ;;  %v3027_v51 = vpop.eup %3026 }
 0x487   :  { %v1631_v11 = vmul.f32 %v3017_v18, %v1604_v14  ;;  %v2665_v49 = vpop.f32.mrb[38].mxu0 }
 0x488   :  { %v1641_v1 = vadd.f32 %v1633_v58, %v1388_v16  ;;  %v1634_v30 = vmul.f32 %v3019_v41, %v2665_v49  ;;  %v1607_v0 = vpop.f32.mrb[39].mxu0  ;;  %v2676_v59 = vpop.f32.mrb[36].mxu1 }
 0x489   :  { %v1639_v10 = vadd.f32 %v1631_v11, %v1386_v19  ;;  %v1632_v17 = vmul.f32 %v3013_v55, %v1607_v0  ;;  %v1898_v23 = vmul.f32 %v3021_v26, %v2676_v59  ;;  %v1857_v21 = vpop.f32.mrb[37].mxu1  ;;  %v3029_v16 = vpop.eup %3028 }
 0x48a   :  { %v1642_v43 = vadd.f32 %v1634_v30, %v1389_v8  ;;  %v1896_v47 = vmul.f32 %v3023_v56, %v1857_v21  ;;  %v2677_v50 = vpop.f32.mrb[38].mxu1  ;;  %v3031_v19 = vpop.eup %3030 }
 0x48b   :  { %v1640_v35 = vadd.f32 %v1632_v17, %v1387_v28  ;;  %v1906_v46 = vadd.f32 %v1898_v23, %v1637_v42  ;;  %v1899_v32 = vmul.f32 %v3025_v61, %v2677_v50  ;;  %v1860_v22 = vpop.f32.mrb[39].mxu1  ;;  %v3033_v40 = vpop.eup %3032 }
 0x48c   :  { %v1904_v48 = vadd.f32 %v1896_v47, %v1635_v44  ;;  %v1897_v52 = vmul.f32 %v3027_v51, %v1860_v22  ;;  %v2324_v28 = vpop.xlane.xlu0 %2323  ;;  %v3035_v53 = vpop.eup %3034 }
 0x48d   :  { %v1907_v2 = vadd.f32 %v1899_v32, %v1638_v63  ;;  %v2692_v20 = vpop.f32.mrb[40].mxu0  ;;  %v3037_v3 = vpop.eup %3036  ;;  %3056 = vrcp.f32 %v2324_v28 }
 0x48e   :  { %v1905_v62 = vadd.f32 %v1897_v52, %v1636_v6  ;;  %v2163_v8 = vmul.f32 %v3029_v16, %v2692_v20  ;;  %v2122_v5 = vpop.f32.mrb[41].mxu0  ;;  %v3039_v25 = vpop.eup %3038  ;;  %3058 = vrcp.f32 %v2318_v24 }
 0x48f   :  { %v2161_v29 = vmul.f32 %v3031_v19, %v2122_v5  ;;  %v2693_v38 = vpop.f32.mrb[42].mxu0  ;;  %v3041_v44 = vpop.eup %3040  ;;  %3060 = vrcp.f32 %v4516_v45 }
 0x490   :  { %v4535_v4 = vadd.f32 %v2163_v8, %v1906_v46  ;;  %v2164_v54 = vmul.f32 %v3033_v40, %v2693_v38  ;;  %v2125_v7 = vpop.f32.mrb[43].mxu0  ;;  %v3043_v55 = vpop.eup %3042  ;;  %3062 = vrcp.f32 %v4504_v13 }
 0x491   :  { %v4537_v15 = vadd.f32 %v2161_v29, %v1904_v48  ;;  %v2680_v34 = vpop.f32.mrb[40].mxu1  ;;  %v2162_v39 = vmul.f32 %v3035_v53, %v2125_v7  ;;  %v3045_v58 = vpop.eup %3044  ;;  %3064 = vrcp.f32 %v4521_v37 }
 0x492   :  { %v4539_v42 = vadd.f32 %v2164_v54, %v1907_v2  ;;  %v1902_v33 = vmul.f32 %v3037_v3, %v2680_v34  ;;  %v1873_v57 = vpop.f32.mrb[41].mxu1  ;;  %v3047_v11 = vpop.eup %3046  ;;  %3066 = vrcp.f32 %v4509_v60 }
 0x493   :  { %v4541_v31 = vadd.f32 %v2162_v39, %v1905_v62  ;;  %v1900_v63 = vmul.f32 %v3039_v25, %v1873_v57  ;;  %v2681_v6 = vpop.f32.mrb[42].mxu1  ;;  %v3049_v0 = vpop.eup %3048 }
 0x494   :  { %v1910_v27 = vadd.f32 %v1902_v33, %v1641_v1  ;;  %v1903_v36 = vmul.f32 %v3041_v44, %v2681_v6  ;;  %v1876_v18 = vpop.f32.mrb[43].mxu1  ;;  %v3051_v56 = vpop.eup %3050 }
 0x495   :  { %v1908_v14 = vadd.f32 %v1900_v63, %v1639_v10  ;;  %v1901_v41 = vmul.f32 %v3043_v55, %v1876_v18  ;;  %v2696_v12 = vpop.f32.mrb[44].mxu0  ;;  %v3053_v21 = vpop.eup %3052 }
 0x496   :  { %v1911_v49 = vadd.f32 %v1903_v36, %v1642_v43  ;;  %v2167_v26 = vmul.f32 %v3045_v58, %v2696_v12  ;;  %v2138_v30 = vpop.f32.mrb[45].mxu0  ;;  %v3055_v50 = vpop.eup %3054 }
 0x497   :  { %v1909_v59 = vadd.f32 %v1901_v41, %v1640_v35  ;;  %v2165_v45 = vmul.f32 %v3047_v11, %v2138_v30  ;;  %v2697_v1 = vpop.f32.mrb[46].mxu0  ;;  %v3057_v46 = vpop.eup %3056 }
 0x498   :  { %v2175_v24 = vadd.f32 %v2167_v26, %v1910_v27  ;;  %v2168_v17 = vmul.f32 %v3049_v0, %v2697_v1  ;;  %v2141_v23 = vpop.f32.mrb[47].mxu0  ;;  %v3059_v60 = vpop.eup %3058 }
 0x499   :  { %v2173_v13 = vadd.f32 %v2165_v45, %v1908_v14  ;;  %v2166_v10 = vmul.f32 %v3051_v56, %v2141_v23  ;;  %v3061_v16 = vpop.eup %3060 }
 0x49a   :  { %v2176_v61 = vadd.f32 %v2168_v17, %v1911_v49  ;;  %v2712_v47 = vpop.f32.mrb[44].mxu1  ;;  %v3063_v62 = vpop.eup %3062 }
 0x49b   :  { %v2174_v37 = vadd.f32 %v2166_v10, %v1909_v59  ;;  %v2432_v43 = vmul.f32 %v3053_v21, %v2712_v47  ;;  %v2403_v51 = vpop.f32.mrb[45].mxu1  ;;  %v3065_v29 = vpop.eup %3064 }
 0x49c   :  { %v2430_v32 = vmul.f32 %v3055_v50, %v2403_v51  ;;  %v2713_v22 = vpop.f32.mrb[46].mxu1  ;;  %v3067_v3 = vpop.eup %3066 }
 0x49d   :  { %v2440_v35 = vadd.f32 %v2432_v43, %v2175_v24  ;;  %v2433_v48 = vmul.f32 %v3057_v46, %v2713_v22  ;;  %v2406_v52 = vpop.f32.mrb[47].mxu1 }
 0x49e   :  { %v2438_v2 = vadd.f32 %v2430_v32, %v2173_v13  ;;  %v2431_v20 = vmul.f32 %v3059_v60, %v2406_v52  ;;  %v2708_v19 = vpop.f32.mrb[48].mxu0 }
 0x49f   :  { %v2448_v8 = vmul.f32 0.125, %v2440_v35  ;;  %v2441_v5 = vadd.f32 %v2433_v48, %v2176_v61  ;;  %v2428_v40 = vmul.f32 %v3061_v16, %v2708_v19  ;;  %v2387_v28 = vpop.f32.mrb[49].mxu0 }
 0x4a0   :  { %v2446_v38 = vmul.f32 0.125, %v2438_v2  ;;  %v2439_v53 = vadd.f32 %v2431_v20, %v2174_v37  ;;  %v2426_v54 = vmul.f32 %v3063_v62, %v2387_v28  ;;  %v2709_v7 = vpop.f32.mrb[50].mxu0 }
 0x4a1   :  { %v2463_v34 = vadd.f32 %v2521_v9, %v2448_v8  ;;  %v2449_v39 = vmul.f32 0.125, %v2441_v5  ;;  %v2436_v25 = vadd.f32 %v2428_v40, %v4535_v4  ;;  %v2429_v33 = vmul.f32 %v3065_v29, %v2709_v7  ;;  %v2390_v57 = vpop.f32.mrb[51].mxu0 }
 0x4a2   :  { %v2461_v44 = vadd.f32 %v2521_v9, %v2446_v38  ;;  %v2447_v63 = vmul.f32 0.125, %v2439_v53  ;;  %v2434_v6 = vadd.f32 %v2426_v54, %v4537_v15  ;;  %v2427_v55 = vmul.f32 %v3067_v3, %v2390_v57 }
 0x4a3   :  { %v2471_v27 = vmax.f32 %v2463_v34, 0.0  ;;  %v2464_v36 = vadd.f32 %v2521_v9, %v2449_v39  ;;  %v2444_v18 = vmul.f32 0.125, %v2436_v25  ;;  %v2437_v58 = vadd.f32 %v2429_v33, %v4539_v42 }
 0x4a4   :  { %v2469_v14 = vmax.f32 %v2461_v44, 0.0  ;;  %v2462_v41 = vadd.f32 %v2521_v9, %v2447_v63  ;;  %v2442_v12 = vmul.f32 0.125, %v2434_v6  ;;  %v2435_v11 = vadd.f32 %v2427_v55, %v4541_v31 }
 0x4a5   :  { %2479 = vst.msk [vmem:[%s4592_s6 + $0x30] sm:$0xff] %vm48_vm0, %v2471_v27  ;;  %v2472_v4 = vmax.f32 %v2464_v36, 0.0  ;;  %v2459_v49 = vadd.f32 %v2521_v9, %v2444_v18  ;;  %v2445_v26 = vmul.f32 0.125, %v2437_v58 }
 0x4a6   :  { %2477 = vst.msk [vmem:[%s4592_s6 + $0x20] sm:$0xff] %vm48_vm0, %v2469_v14  ;;  %v2470_v15 = vmax.f32 %v2462_v41, 0.0  ;;  %v2457_v42 = vadd.f32 %v2521_v9, %v2442_v12  ;;  %v2443_v30 = vmul.f32 0.125, %v2435_v11 }
 0x4a7   :  { %2480 = vst.msk [vmem:[%s4592_s6 + $0x38] sm:$0xff] %vm48_vm0, %v2472_v4  ;;  %v2467_v31 = vmax.f32 %v2459_v49, 0.0  ;;  %v2460_v0 = vadd.f32 %v2521_v9, %v2445_v26 }
 0x4a8   :  { %2478 = vst.msk [vmem:[%s4592_s6 + $0x28] sm:$0xff] %vm48_vm0, %v2470_v15  ;;  %v2465_v59 = vmax.f32 %v2457_v42, 0.0  ;;  %v2458_v45 = vadd.f32 %v2521_v9, %v2443_v30 }
 0x4a9   :  { %2475 = vst.msk [vmem:[%s4592_s6 + $0x10] sm:$0xff] %vm48_vm0, %v2467_v31  ;;  %v2468_v1 = vmax.f32 %v2460_v0, 0.0 }
 0x4aa   :  { %2473 = vst.msk [vmem:[%s4592_s6] sm:$0xff] %vm48_vm0, %v2465_v59  ;;  %v2466_v56 = vmax.f32 %v2458_v45, 0.0 }
 0x4ab   :  { %2476 = vst.msk [vmem:[%s4592_s6 + $0x18] sm:$0xff] %vm48_vm0, %v2468_v1 }
 0x4ac   :  { %2474 = vst.msk [vmem:[%s4592_s6 + $0x8] sm:$0xff] %vm48_vm0, %v2466_v56 }

// kernel: a_call__.3
= control target key start
LH: loop header
LB: loop body
LE: loop exit
PB: predicated region body
PF: predicated region fallthrough
CT: control target
= control target key end

     0   :  { %v5993_v3 = vmov 0   ;;  %vm84_vm0 = vcmask 261120   ;;  %vm1229_vm2 = vcmask 523264   ;;  %s5984_s1 = inlined_call_operand.vmem [shape: f32[32,1024], index: 1, kind: input, shape index: {}]   ;;  %s5985_s0 = inlined_call_operand.vmem [shape: f32[64,32], index: 0, kind: input, shape index: {}]   ;;  %s5986_s3 = inlined_call_operand.vmem [shape: f32[8,1024], index: 3, kind: input, shape index: {}]   ;;  %s5987_s2 = inlined_call_operand.vmem [shape: f32[8,1024], index: 2, kind: input, shape index: {}]   ;;  %s5988_s5 = inlined_call_operand.vmem [shape: f32[64,64], index: 5, kind: input, shape index: {}]   ;;  %s5989_s4 = inlined_call_operand.vmem [shape: f32[1,128], index: 4, kind: input, shape index: {}]   ;;  %s5990_s6 = inlined_call_operand.vmem [shape: f32[64,128], index: 6, kind: output, shape index: {}]  }
   0x1   :  { %v37_v0 = vld [vmem:[%s5984_s1 + $0x8] sm:$0xff]  ;;  %v36_v2 = vld [vmem:[%s5984_s1] sm:$0xff]  ;;  %129 = vmatprep.mubr.bf16.mxu0 %v5993_v3  ;;  %159 = vmatprep.mubr.bf16.mxu1 %v5993_v3  ;;  %v30_v15 = vld [vmem:[%s5985_s0 + $0x30] sm:$0xff] }
   0x2   :  { %v45_v1 = vld [vmem:[%s5984_s1 + $0x48] sm:$0xff]  ;;  %v44_v5 = vld [vmem:[%s5984_s1 + $0x40] sm:$0xff]  ;;  %3675 = vset.pattern.permute.xlu0 %v5993_v3  ;;  %v31_v16 = vld [vmem:[%s5985_s0 + $0x38] sm:$0xff] }
   0x3   :  { %v69_v4 = vpack.c.bf16 %v45_v1, %v37_v0  ;;  %v53_v6 = vld [vmem:[%s5984_s1 + $0x88] sm:$0xff]  ;;  %v68_v8 = vpack.c.bf16 %v44_v5, %v36_v2  ;;  %v52_v10 = vld [vmem:[%s5984_s1 + $0x80] sm:$0xff]  ;;  %v39_v17 = vld [vmem:[%s5984_s1 + $0x18] sm:$0xff]  ;;  %v4127_v24 = vpack.c.bf16 %v31_v16, %v30_v15 }
   0x4   :  { %v61_v7 = vld [vmem:[%s5984_s1 + $0xc8] sm:$0xff]  ;;  %v60_v11 = vld [vmem:[%s5984_s1 + $0xc0] sm:$0xff]  ;;  %v47_v18 = vld [vmem:[%s5984_s1 + $0x58] sm:$0xff] }
   0x5   :  { %v77_v9 = vpack.c.bf16 %v61_v7, %v53_v6  ;;  %97 = vmatprep.subr.bf16.mxu0 %v69_v4  ;;  %3609 = vmatprep.subr.bf16.mxu1 %v69_v4  ;;  %v76_v12 = vpack.c.bf16 %v60_v11, %v52_v10  ;;  %v24_v13 = vld [vmem:[%s5985_s0] sm:$0xff]  ;;  %v25_v14 = vld [vmem:[%s5985_s0 + $0x8] sm:$0xff]  ;;  %v71_v19 = vpack.c.bf16 %v47_v18, %v39_v17  ;;  %v38_v20 = vld [vmem:[%s5984_s1 + $0x10] sm:$0xff] }
   0x6   :  { %98 = vmatpush1.bf16.msra.mxu0 %v68_v8  ;;  %3611 = vmatpush1.bf16.msra.mxu1 %v68_v8  ;;  %v46_v21 = vld [vmem:[%s5984_s1 + $0x50] sm:$0xff]  ;;  %v55_v22 = vld [vmem:[%s5984_s1 + $0x98] sm:$0xff]  ;;  %v4125_v23 = vpack.c.bf16 %v25_v14, %v24_v13  ;;  %v41_v29 = vld [vmem:[%s5984_s1 + $0x28] sm:$0xff] }
   0x7   :  { %99 = vmatprep.subr.bf16.mxu0 %v77_v9  ;;  %3610 = vmatprep.subr.bf16.mxu1 %v77_v9  ;;  %v63_v25 = vld [vmem:[%s5984_s1 + $0xd8] sm:$0xff]  ;;  %v54_v26 = vld [vmem:[%s5984_s1 + $0x90] sm:$0xff]  ;;  %v70_v28 = vpack.c.bf16 %v46_v21, %v38_v20  ;;  %v49_v30 = vld [vmem:[%s5984_s1 + $0x68] sm:$0xff] }
   0x8   :  { %v62_v27 = vld [vmem:[%s5984_s1 + $0xd0] sm:$0xff]  ;;  %v40_v31 = vld [vmem:[%s5984_s1 + $0x20] sm:$0xff]  ;;  %v79_v32 = vpack.c.bf16 %v63_v25, %v55_v22  ;;  %v57_v34 = vld [vmem:[%s5984_s1 + $0xa8] sm:$0xff]  ;;  %v73_v36 = vpack.c.bf16 %v49_v30, %v41_v29 }
   0x9   :  { %v48_v33 = vld [vmem:[%s5984_s1 + $0x60] sm:$0xff]  ;;  %v65_v35 = vld [vmem:[%s5984_s1 + $0xe8] sm:$0xff]  ;;  %v43_v37 = vld [vmem:[%s5984_s1 + $0x38] sm:$0xff]  ;;  %v78_v42 = vpack.c.bf16 %v62_v27, %v54_v26 }
   0xa   :  { %100 = vmatpush1.bf16.msra.mxu0 %v76_v12  ;;  %3612 = vmatpush1.bf16.msra.mxu1 %v76_v12  ;;  %v72_v38 = vpack.c.bf16 %v48_v33, %v40_v31  ;;  %v51_v39 = vld [vmem:[%s5984_s1 + $0x78] sm:$0xff]  ;;  %v26_v40 = vld [vmem:[%s5985_s0 + $0x10] sm:$0xff]  ;;  %v81_v43 = vpack.c.bf16 %v65_v35, %v57_v34  ;;  %v56_v44 = vld [vmem:[%s5984_s1 + $0xa0] sm:$0xff] }
   0xb   :  { %170 = vmatprep.subr.bf16.mxu1 %v71_v19  ;;  %v27_v41 = vld [vmem:[%s5985_s0 + $0x18] sm:$0xff]  ;;  %v75_v45 = vpack.c.bf16 %v51_v39, %v43_v37  ;;  %243 = vmatprep.subr.bf16.mxu0 %v73_v36  ;;  %v64_v46 = vld [vmem:[%s5984_s1 + $0xe0] sm:$0xff]  ;;  %v42_v47 = vld [vmem:[%s5984_s1 + $0x30] sm:$0xff] }
   0xc   :  { %v50_v48 = vld [vmem:[%s5984_s1 + $0x70] sm:$0xff]  ;;  %v33_v49 = vpack.c.bf16 %v27_v41, %v26_v40  ;;  %v59_v50 = vld [vmem:[%s5984_s1 + $0xb8] sm:$0xff]  ;;  %v80_v52 = vpack.c.bf16 %v64_v46, %v56_v44  ;;  %v422_v57 = vld [vmem:[%s5986_s3 + $0x8] sm:$0xff]  ;;  %v5991_v40 = vmov 1  }
   0xd   :  { %3304 = vmatmul.mubr.msk.bf16.vlgmr.msra.gmra.mrb[0].mxu0 %vm84_vm0, %v4125_v23  ;;  %3307 = vmatmul.mubr.msk.bf16.vlgmr.msra.gmra.mrb[0].mxu1 %vm84_vm0, %v4127_v24  ;;  %v67_v51 = vld [vmem:[%s5984_s1 + $0xf8] sm:$0xff]  ;;  %v74_v53 = vpack.c.bf16 %v50_v48, %v42_v47  ;;  %v58_v55 = vld [vmem:[%s5984_s1 + $0xb0] sm:$0xff]  ;;  %v28_v58 = vld [vmem:[%s5985_s0 + $0x20] sm:$0xff] }
   0xe   :  { %139 = vmatprep.mubr.bf16.mxu0 %v5993_v3  ;;  %171 = vmatpush1.bf16.msra.mxu1 %v70_v28  ;;  %v83_v54 = vpack.c.bf16 %v67_v51, %v59_v50  ;;  %v66_v56 = vld [vmem:[%s5984_s1 + $0xf0] sm:$0xff]  ;;  %v29_v59 = vld [vmem:[%s5985_s0 + $0x28] sm:$0xff]  ;;  %v421_v62 = vld [vmem:[%s5986_s3] sm:$0xff] }
   0xf   :  { %172 = vmatprep.subr.bf16.mxu1 %v79_v32  ;;  %202 = vmatprep.mubr.bf16.mxu1 %v5993_v3  ;;  %v82_v60 = vpack.c.bf16 %v66_v56, %v58_v55  ;;  %v34_v61 = vpack.c.bf16 %v29_v59, %v28_v58  ;;  %v424_v63 = vld [vmem:[%s5986_s3 + $0x18] sm:$0xff]  ;;  %v850_v0 = vld [vmem:[%s5987_s2 + $0x8] sm:$0xff]  ;;  %v423_v5 = vld [vmem:[%s5986_s3 + $0x10] sm:$0xff] }
  0x10   :  { %244 = vmatpush1.bf16.msra.mxu0 %v72_v38  ;;  %v426_v9 = vld [vmem:[%s5986_s3 + $0x28] sm:$0xff]  ;;  %3676 = vset.pattern.permute.xlu1 %v5991_v40  ;;  %v425_v55 = vld [vmem:[%s5986_s3 + $0x20] sm:$0xff]  ;;  %v428_v59 = vld [vmem:[%s5986_s3 + $0x38] sm:$0xff] }
  0x11   :  { %245 = vmatprep.subr.bf16.mxu0 %v81_v43 }
  0x12   :  { %173 = vmatpush1.bf16.msra.mxu1 %v78_v42 }
  0x13   :  { %316 = vmatprep.subr.bf16.mxu1 %v75_v45 }
  0x14   :  { %246 = vmatpush1.bf16.msra.mxu0 %v80_v52 }
  0x15   :  { %3305 = vmatmul.mubr.msk.bf16.gmra.mrb[4].mxu0 %vm84_vm0, %v33_v49  ;;  %3308 = vmatmul.mubr.msk.bf16.vlgmr.msra.gmra.mrb[4].mxu1 %vm84_vm0, %v4125_v23 }
  0x16   :  { %149 = vmatprep.mubr.bf16.mxu0 %v5993_v3  ;;  %212 = vmatprep.mubr.bf16.mxu1 %v5993_v3 }
  0x17   :  { %317 = vmatpush1.bf16.msra.mxu1 %v74_v53  ;;  %429 = vmatprep.subr.mxu0 %v422_v57 }
  0x18   :  { %318 = vmatprep.subr.bf16.mxu1 %v83_v54 }
  0x1b   :  { %319 = vmatpush1.bf16.msra.mxu1 %v82_v60 }
  0x1d   :  { %3306 = vmatmul.mubr.msk.bf16.gmra.mrb[8].mxu0 %vm84_vm0, %v34_v61  ;;  %3309 = vmatmul.mubr.msk.bf16.gmra.mrb[8].mxu1 %vm84_vm0, %v33_v49 }
  0x1e   :  { %222 = vmatprep.mubr.bf16.mxu1 %v5993_v3  ;;  %275 = vmatprep.mubr.bf16.mxu0 %v5993_v3 }
  0x25   :  { %3310 = vmatmul.mubr.msk.bf16.gmra.mrb[12].mxu1 %vm84_vm0, %v34_v61  ;;  %3312 = vmatmul.mubr.msk.bf16.vlgmr.msra.gmra.mrb[12].mxu0 %vm84_vm0, %v4125_v23 }
  0x26   :  { %232 = vmatprep.mubr.bf16.mxu1 %v5993_v3  ;;  %285 = vmatprep.mubr.bf16.mxu0 %v5993_v3 }
  0x27   :  { %430 = vmatpush1.xpose.msra.mxu0 %v421_v62 }
  0x28   :  { %534 = vmatprep.subr.mxu0 %v424_v63 }
  0x2d   :  { %3311 = vmatmul.mubr.msk.bf16.gmra.mrb[16].mxu1 %vm84_vm0, %v4127_v24  ;;  %3313 = vmatmul.mubr.msk.bf16.gmra.mrb[16].mxu0 %vm84_vm0, %v33_v49 }
  0x2e   :  { %295 = vmatprep.mubr.bf16.mxu0 %v5993_v3  ;;  %348 = vmatprep.mubr.bf16.mxu1 %v5993_v3 }
  0x35   :  { %3314 = vmatmul.mubr.msk.bf16.gmra.mrb[20].mxu0 %vm84_vm0, %v34_v61  ;;  %3316 = vmatmul.mubr.msk.bf16.vlgmr.msra.gmra.mrb[20].mxu1 %vm84_vm0, %v4125_v23 }
  0x36   :  { %305 = vmatprep.mubr.bf16.mxu0 %v5993_v3  ;;  %358 = vmatprep.mubr.bf16.mxu1 %v5993_v3 }
  0x3d   :  { %3315 = vmatmul.mubr.msk.bf16.gmra.mrb[24].mxu0 %vm84_vm0, %v4127_v24  ;;  %3317 = vmatmul.mubr.msk.bf16.gmra.mrb[24].mxu1 %vm84_vm0, %v33_v49 }
  0x3e   :  { %368 = vmatprep.mubr.bf16.mxu1 %v5993_v3 }
  0x45   :  { %3318 = vmatmul.mubr.msk.bf16.gmra.mrb[28].mxu1 %vm84_vm0, %v34_v61  ;;  %v849_v61 = vld [vmem:[%s5987_s2] sm:$0xff] }
  0x46   :  { %378 = vmatprep.mubr.bf16.mxu1 %v5993_v3 }
  0x4d   :  { %3319 = vmatmul.mubr.msk.bf16.gmra.mrb[32].mxu1 %vm84_vm0, %v4127_v24 }
  0x4e   :  { %921 = vmatprep.mubr.f32.mxu1 %v850_v0 }
  0xe0   :  { %v131_v1 = vpop.f32.mrb[0].mxu0  ;;  %v4248_v2 = vpop.f32.mrb[0].mxu1 }
  0xe1   :  { %v133_v4 = vpop.f32.mrb[1].mxu0  ;;  %v163_v6 = vpop.f32.mrb[1].mxu1 }
  0xe2   :  { %v135_v7 = vpop.f32.mrb[2].mxu0  ;;  %493 = vmatprep.mubr.f32.mxu0 %v133_v4  ;;  %v4253_v8 = vpop.f32.mrb[2].mxu1 }
  0xe3   :  { %v4258_v10 = vpack.c.bf16 %v135_v7, %v131_v1  ;;  %v137_v11 = vpop.f32.mrb[3].mxu0  ;;  %494 = vmatmul.mubr.f32.vlgmr.msra.gmra.mrb[28].mxu0 %v131_v1  ;;  %v4262_v12 = vpack.c.bf16 %v4253_v8, %v4248_v2  ;;  %v167_v13 = vpop.f32.mrb[3].mxu1 }
  0xe4   :  { %v4264_v14 = vpack.c.bf16 %v137_v11, %v133_v4  ;;  %535 = vmatpush1.xpose.msra.mxu0 %v423_v5  ;;  %498 = vmatprep.mubr.f32.mxu0 %v137_v11  ;;  %v4266_v15 = vpack.c.bf16 %v167_v13, %v163_v6  ;;  %v852_v5 = vld [vmem:[%s5987_s2 + $0x18] sm:$0xff] }
  0xe5   :  { %639 = vmatprep.subr.mxu0 %v426_v9 }
  0xe6   :  { %3546 = vmatprep.subr.bf16.mxu1 %v4264_v14 }
  0xe7   :  { %499 = vmatmul.mubr.f32.gmra.mrb[30].mxu0 %v135_v7  ;;  %3548 = vmatpush1.bf16.xpose.msra.mxu1 %v4258_v10 }
  0xe8   :  { %v141_v16 = vpop.f32.mrb[4].mxu0  ;;  %v4270_v17 = vpop.f32.mrb[4].mxu1 }
  0xe9   :  { %v143_v18 = vpop.f32.mrb[5].mxu0  ;;  %v206_v19 = vpop.f32.mrb[5].mxu1 }
  0xea   :  { %v145_v20 = vpop.f32.mrb[6].mxu0  ;;  %503 = vmatprep.mubr.f32.mxu0 %v143_v18  ;;  %v4272_v21 = vpop.f32.mrb[6].mxu1 }
  0xeb   :  { %v4274_v22 = vpack.c.bf16 %v145_v20, %v141_v16  ;;  %v147_v23 = vpop.f32.mrb[7].mxu0  ;;  %504 = vmatmul.mubr.f32.gmra.mrb[32].mxu0 %v141_v16  ;;  %v4278_v24 = vpack.c.bf16 %v4272_v21, %v4270_v17  ;;  %v210_v25 = vpop.f32.mrb[7].mxu1 }
  0xec   :  { %v4280_v26 = vpack.c.bf16 %v147_v23, %v143_v18  ;;  %508 = vmatprep.mubr.f32.mxu0 %v147_v23  ;;  %v4282_v27 = vpack.c.bf16 %v210_v25, %v206_v19 }
  0xed   :  { %6081 = vst [vmem:[#allocation2_spill] sm:$0xff] %v4278_v24 }
  0xee   :  { %6082 = vst [vmem:[#allocation3_spill] sm:$0xff] %v4282_v27  ;;  %3550 = vmatprep.subr.bf16.mxu1 %v4280_v26 }
  0xef   :  { %509 = vmatmul.mubr.f32.gmra.mrb[34].mxu0 %v145_v20  ;;  %3552 = vmatpush1.bf16.xpose.msra.mxu1 %v4274_v22 }
  0xf0   :  { %v151_v28 = vpop.f32.mrb[8].mxu0  ;;  %v4286_v29 = vpop.f32.mrb[8].mxu1 }
  0xf1   :  { %v153_v30 = vpop.f32.mrb[9].mxu0  ;;  %v216_v31 = vpop.f32.mrb[9].mxu1 }
  0xf2   :  { %v155_v32 = vpop.f32.mrb[10].mxu0  ;;  %513 = vmatprep.mubr.f32.mxu0 %v153_v30  ;;  %v4288_v33 = vpop.f32.mrb[10].mxu1 }
  0xf3   :  { %v4290_v34 = vpack.c.bf16 %v155_v32, %v151_v28  ;;  %v157_v35 = vpop.f32.mrb[11].mxu0  ;;  %514 = vmatmul.mubr.f32.gmra.mrb[36].mxu0 %v151_v28  ;;  %v4294_v36 = vpack.c.bf16 %v4288_v33, %v4286_v29  ;;  %v4296_v37 = vpop.f32.mrb[11].mxu1 }
  0xf4   :  { %v4298_v38 = vpack.c.bf16 %v157_v35, %v153_v30  ;;  %518 = vmatprep.mubr.f32.mxu0 %v157_v35  ;;  %v4301_v39 = vpack.c.bf16 %v4296_v37, %v216_v31 }
  0xf5   :  { %6083 = vst [vmem:[#allocation4_spill] sm:$0xff] %v4294_v36 }
  0xf6   :  { %6084 = vst [vmem:[#allocation5_spill] sm:$0xff] %v4301_v39  ;;  %3554 = vmatprep.subr.bf16.mxu1 %v4298_v38 }
  0xf7   :  { %519 = vmatmul.mubr.f32.gmra.mrb[38].mxu0 %v155_v32  ;;  %3556 = vmatpush1.bf16.xpose.msra.mxu1 %v4290_v34 }
  0xf8   :  { %523 = vmatprep.mubr.f32.mxu0 %v163_v6  ;;  %3558 = vmatprep.subr.bf16.mxu1 %v4266_v15  ;;  %v4307_v41 = vpop.f32.mrb[12].mxu1  ;;  %v4309_v42 = vpop.f32.mrb[12].mxu0 }
  0xf9   :  { %v226_v43 = vpop.f32.mrb[13].mxu1  ;;  %v4311_v44 = vpop.f32.mrb[13].mxu0 }
  0xfa   :  { %v4313_v45 = vpop.f32.mrb[14].mxu1  ;;  %v4315_v46 = vpop.f32.mrb[14].mxu0 }
  0xfb   :  { %524 = vmatmul.mubr.f32.gmra.mrb[40].mxu0 %v4248_v2  ;;  %v4320_v47 = vpack.c.bf16 %v4313_v45, %v4307_v41  ;;  %v4322_v48 = vpop.f32.mrb[15].mxu1  ;;  %v4326_v49 = vpack.c.bf16 %v4315_v46, %v4309_v42  ;;  %v4328_v50 = vpop.f32.mrb[15].mxu0 }
  0xfc   :  { %528 = vmatprep.mubr.f32.mxu0 %v167_v13  ;;  %v4331_v51 = vpack.c.bf16 %v4322_v48, %v226_v43  ;;  %v4335_v52 = vpack.c.bf16 %v4328_v50, %v4311_v44 }
  0xfd   :  { %6085 = vst [vmem:[#allocation6_spill] sm:$0xff] %v4320_v47  ;;  %6086 = vst [vmem:[#allocation7_spill] sm:$0xff] %v4326_v49 }
  0xfe   :  { %6087 = vst [vmem:[#allocation8_spill] sm:$0xff] %v4331_v51  ;;  %6088 = vst [vmem:[#allocation9_spill] sm:$0xff] %v4335_v52 }
  0xff   :  { %529 = vmatmul.mubr.f32.gmra.mrb[42].mxu0 %v4253_v8  ;;  %3560 = vmatpush1.bf16.xpose.msra.mxu1 %v4262_v12 }
 0x100   :  { %598 = vmatprep.mubr.f32.mxu0 %v206_v19  ;;  %3562 = vmatprep.subr.bf16.mxu1 %v4282_v27  ;;  %v4340_v53 = vpop.f32.mrb[16].mxu1  ;;  %v4342_v54 = vpop.f32.mrb[16].mxu0 }
 0x101   :  { %v236_v56 = vpop.f32.mrb[17].mxu1  ;;  %v4347_v57 = vpop.f32.mrb[17].mxu0 }
 0x102   :  { %v4349_v58 = vpop.f32.mrb[18].mxu1  ;;  %v4354_v60 = vpop.f32.mrb[18].mxu0 }
 0x103   :  { %599 = vmatmul.mubr.f32.vlgmr.msra.gmra.mrb[28].mxu0 %v4270_v17  ;;  %v4362_v62 = vpack.c.bf16 %v4349_v58, %v4340_v53  ;;  %v240_v63 = vpop.f32.mrb[19].mxu1  ;;  %v4366_v0 = vpack.c.bf16 %v4354_v60, %v4342_v54  ;;  %v4368_v1 = vpop.f32.mrb[19].mxu0 }
 0x104   :  { %640 = vmatpush1.xpose.msra.mxu0 %v425_v55  ;;  %603 = vmatprep.mubr.f32.mxu0 %v210_v25  ;;  %v4370_v2 = vpack.c.bf16 %v240_v63, %v236_v56  ;;  %v4374_v4 = vpack.c.bf16 %v4368_v1, %v4347_v57 }
 0x105   :  { %6089 = vst [vmem:[#allocation10_spill] sm:$0xff] %v4362_v62  ;;  %6090 = vst [vmem:[#allocation11_spill] sm:$0xff] %v4366_v0  ;;  %744 = vmatprep.subr.mxu0 %v428_v59 }
 0x106   :  { %6091 = vst [vmem:[#allocation12_spill] sm:$0xff] %v4370_v2  ;;  %6092 = vst [vmem:[#allocation13_spill] sm:$0xff] %v4374_v4  ;;  %922 = vmatmul.mubr.f32.vlgmr.msra.gmra.mrb[36].mxu1 %v849_v61 }
 0x107   :  { %604 = vmatmul.mubr.f32.gmra.mrb[30].mxu0 %v4272_v21  ;;  %3564 = vmatpush1.bf16.xpose.msra.mxu1 %v4278_v24 }
 0x108   :  { %608 = vmatprep.mubr.f32.mxu0 %v216_v31  ;;  %3566 = vmatprep.subr.bf16.mxu1 %v4301_v39  ;;  %v4382_v6 = vpop.f32.mrb[20].mxu0  ;;  %v4384_v7 = vpop.f32.mrb[20].mxu1 }
 0x109   :  { %991 = vmatprep.mubr.f32.mxu1 %v852_v5  ;;  %v4386_v8 = vpop.f32.mrb[21].mxu0  ;;  %v4388_v9 = vpop.f32.mrb[21].mxu1 }
 0x10a   :  { %v4390_v11 = vpop.f32.mrb[22].mxu0  ;;  %v4392_v13 = vpop.f32.mrb[22].mxu1 }
 0x10b   :  { %609 = vmatmul.mubr.f32.gmra.mrb[32].mxu0 %v4286_v29  ;;  %v4397_v16 = vpack.c.bf16 %v4390_v11, %v4382_v6  ;;  %v4399_v17 = vpop.f32.mrb[23].mxu0  ;;  %v4403_v18 = vpack.c.bf16 %v4392_v13, %v4384_v7  ;;  %v4405_v19 = vpop.f32.mrb[23].mxu1 }
 0x10c   :  { %613 = vmatprep.mubr.f32.mxu0 %v4296_v37  ;;  %v4410_v20 = vpack.c.bf16 %v4399_v17, %v4386_v8  ;;  %v4414_v21 = vpack.c.bf16 %v4405_v19, %v4388_v9 }
 0x10d   :  { %6093 = vst [vmem:[#allocation14_spill] sm:$0xff] %v4397_v16  ;;  %6094 = vst [vmem:[#allocation15_spill] sm:$0xff] %v4403_v18 }
 0x10e   :  { %6095 = vst [vmem:[#allocation16_spill] sm:$0xff] %v4410_v20  ;;  %6096 = vst [vmem:[#allocation17_spill] sm:$0xff] %v4414_v21 }
 0x10f   :  { %614 = vmatmul.mubr.f32.gmra.mrb[34].mxu0 %v4288_v33  ;;  %3568 = vmatpush1.bf16.xpose.msra.mxu1 %v4294_v36 }
 0x110   :  { %618 = vmatprep.mubr.f32.mxu0 %v226_v43  ;;  %3570 = vmatprep.subr.bf16.mxu1 %v4331_v51  ;;  %v307_v23 = vpop.f32.mrb[24].mxu0  ;;  %v4419_v25 = vpop.f32.mrb[24].mxu1 }
 0x111   :  { %v309_v28 = vpop.f32.mrb[25].mxu0  ;;  %v4421_v29 = vpop.f32.mrb[25].mxu1 }
 0x112   :  { %v311_v30 = vpop.f32.mrb[26].mxu0  ;;  %v4423_v31 = vpop.f32.mrb[26].mxu1 }
 0x113   :  { %619 = vmatmul.mubr.f32.gmra.mrb[36].mxu0 %v4307_v41  ;;  %v4426_v32 = vpack.c.bf16 %v311_v30, %v307_v23  ;;  %v313_v35 = vpop.f32.mrb[27].mxu0  ;;  %v4430_v33 = vpack.c.bf16 %v4423_v31, %v4419_v25  ;;  %v4432_v37 = vpop.f32.mrb[27].mxu1 }
 0x114   :  { %623 = vmatprep.mubr.f32.mxu0 %v4322_v48  ;;  %v4435_v43 = vpack.c.bf16 %v313_v35, %v309_v28  ;;  %v4439_v55 = vpack.c.bf16 %v4432_v37, %v4421_v29 }
 0x115   :  { %6097 = vst [vmem:[#allocation18_spill] sm:$0xff] %v4426_v32  ;;  %6098 = vst [vmem:[#allocation19_spill] sm:$0xff] %v4430_v33 }
 0x116   :  { %6099 = vst [vmem:[#allocation20_spill] sm:$0xff] %v4435_v43  ;;  %6100 = vst [vmem:[#allocation21_spill] sm:$0xff] %v4439_v55 }
 0x117   :  { %624 = vmatmul.mubr.f32.gmra.mrb[38].mxu0 %v4313_v45  ;;  %3572 = vmatpush1.bf16.xpose.msra.mxu1 %v4320_v47 }
 0x118   :  { %628 = vmatprep.mubr.f32.mxu0 %v236_v56  ;;  %3574 = vmatprep.subr.bf16.mxu1 %v4370_v2  ;;  %v4444_v41 = vpop.f32.mrb[28].mxu1  ;;  %v427_v56 = vld [vmem:[%s5986_s3 + $0x30] sm:$0xff] }
 0x119   :  { %v4446_v59 = vpop.f32.mrb[29].mxu1 }
 0x11a   :  { %v4448_v61 = vpop.f32.mrb[30].mxu1 }
 0x11b   :  { %629 = vmatmul.mubr.f32.gmra.mrb[40].mxu0 %v4340_v53  ;;  %v4453_v48 = vpack.c.bf16 %v4448_v61, %v4444_v41  ;;  %v4455_v5 = vpop.f32.mrb[31].mxu1 }
 0x11c   :  { %633 = vmatprep.mubr.f32.mxu0 %v240_v63  ;;  %v4459_v45 = vpack.c.bf16 %v4455_v5, %v4446_v59 }
 0x11d   :  { %6101 = vst [vmem:[#allocation22_spill] sm:$0xff] %v4453_v48 }
 0x11e   :  { %6102 = vst [vmem:[#allocation23_spill] sm:$0xff] %v4459_v45 }
 0x11f   :  { %634 = vmatmul.mubr.f32.gmra.mrb[42].mxu0 %v4349_v58  ;;  %3576 = vmatpush1.bf16.xpose.msra.mxu1 %v4362_v62  ;;  %v851_v58 = vld [vmem:[%s5987_s2 + $0x10] sm:$0xff] }
 0x120   :  { %703 = vmatprep.mubr.f32.mxu0 %v4311_v44  ;;  %3578 = vmatprep.subr.bf16.mxu1 %v4335_v52  ;;  %v4465_v53 = vpop.f32.mrb[32].mxu1 }
 0x121   :  { %v382_v40 = vpop.f32.mrb[33].mxu1 }
 0x122   :  { %v4470_v63 = vpop.f32.mrb[34].mxu1 }
 0x123   :  { %704 = vmatmul.mubr.f32.vlgmr.msra.gmra.mrb[28].mxu0 %v4309_v42  ;;  %v4478_v44 = vpack.c.bf16 %v4470_v63, %v4465_v53  ;;  %v386_v3 = vpop.f32.mrb[35].mxu1  ;;  %v854_v42 = vld [vmem:[%s5987_s2 + $0x28] sm:$0xff] }
 0x124   :  { %745 = vmatpush1.xpose.msra.mxu0 %v427_v56  ;;  %708 = vmatprep.mubr.f32.mxu0 %v4328_v50  ;;  %v4481_v52 = vpack.c.bf16 %v386_v3, %v382_v40  ;;  %v856_v50 = vld [vmem:[%s5987_s2 + $0x38] sm:$0xff] }
 0x125   :  { %6103 = vst [vmem:[#allocation24_spill] sm:$0xff] %v4478_v44  ;;  %3433 = vmatprep.subr.bf16.mxu0 %v4264_v14 }
 0x126   :  { %6104 = vst [vmem:[#allocation25_spill] sm:$0xff] %v4481_v52  ;;  %992 = vmatmul.mubr.f32.vlgmr.msra.gmra.mrb[36].mxu1 %v851_v58 }
 0x127   :  { %709 = vmatmul.mubr.f32.gmra.mrb[30].mxu0 %v4315_v46  ;;  %3580 = vmatpush1.bf16.xpose.msra.mxu1 %v4326_v49  ;;  %v853_v46 = vld [vmem:[%s5987_s2 + $0x20] sm:$0xff] }
 0x128   :  { %713 = vmatprep.mubr.f32.mxu0 %v4347_v57  ;;  %3582 = vmatprep.subr.bf16.mxu1 %v4374_v4 }
 0x129   :  { %1061 = vmatprep.mubr.f32.mxu1 %v854_v42 }
 0x12b   :  { %714 = vmatmul.mubr.f32.gmra.mrb[32].mxu0 %v4342_v54  ;;  %v6000_v54 = vmov 6  }
 0x12c   :  { %718 = vmatprep.mubr.f32.mxu0 %v4368_v1  ;;  %v6001_v1 = vmov 5  }
 0x12f   :  { %719 = vmatmul.mubr.f32.gmra.mrb[34].mxu0 %v4354_v60  ;;  %3584 = vmatpush1.bf16.xpose.msra.mxu1 %v4366_v0 }
 0x130   :  { %723 = vmatprep.mubr.f32.mxu0 %v4386_v8  ;;  %3586 = vmatprep.subr.bf16.mxu1 %v4410_v20 }
 0x133   :  { %724 = vmatmul.mubr.f32.gmra.mrb[36].mxu0 %v4382_v6  ;;  %v6105_v6 = vmov 0  }
 0x134   :  { %728 = vmatprep.mubr.f32.mxu0 %v4399_v17 }
 0x137   :  { %729 = vmatmul.mubr.f32.gmra.mrb[38].mxu0 %v4390_v11  ;;  %3588 = vmatpush1.bf16.xpose.msra.mxu1 %v4397_v16  ;;  %v6106_v11 = vmov 1  }
 0x138   :  { %733 = vmatprep.mubr.f32.mxu0 %v309_v28  ;;  %3590 = vmatprep.subr.bf16.mxu1 %v4435_v43 }
 0x13b   :  { %734 = vmatmul.mubr.f32.gmra.mrb[40].mxu0 %v307_v23 }
 0x13c   :  { %738 = vmatprep.mubr.f32.mxu0 %v313_v35 }
 0x13f   :  { %739 = vmatmul.mubr.f32.gmra.mrb[42].mxu0 %v311_v30  ;;  %3592 = vmatpush1.bf16.xpose.msra.mxu1 %v4426_v32 }
 0x140   :  { %808 = vmatprep.mubr.f32.mxu0 %v4388_v9  ;;  %3594 = vmatprep.subr.bf16.mxu1 %v4414_v21  ;;  %v5998_v9 = vmov 7  }
 0x143   :  { %809 = vmatmul.mubr.f32.vlgmr.msra.gmra.mrb[28].mxu0 %v4384_v7 }
 0x144   :  { %3434 = vmatpush3.bf16.msra.mxu0 %v4264_v14  ;;  %813 = vmatprep.mubr.f32.mxu0 %v4405_v19  ;;  %v855_v14 = vld [vmem:[%s5987_s2 + $0x30] sm:$0xff] }
 0x145   :  { %3435 = vmatprep.subr.bf16.mxu0 %v4280_v26 }
 0x146   :  { %1062 = vmatmul.mubr.f32.vlgmr.msra.gmra.mrb[36].mxu1 %v853_v46 }
 0x147   :  { %814 = vmatmul.mubr.f32.gmra.mrb[30].mxu0 %v4392_v13  ;;  %3596 = vmatpush1.bf16.xpose.msra.mxu1 %v4403_v18 }
 0x148   :  { %3436 = vmatpush3.bf16.msra.mxu0 %v4280_v26  ;;  %818 = vmatprep.mubr.f32.mxu0 %v4421_v29 }
 0x149   :  { %3437 = vmatprep.subr.bf16.mxu0 %v4298_v38  ;;  %3598 = vmatprep.subr.bf16.mxu1 %v4439_v55 }
 0x14a   :  { %1131 = vmatprep.mubr.f32.mxu1 %v856_v50 }
 0x14b   :  { %819 = vmatmul.mubr.f32.gmra.mrb[32].mxu0 %v4419_v25  ;;  %v5997_v25 = vlaneseq }
 0x14c   :  { %3438 = vmatpush3.bf16.msra.mxu0 %v4298_v38  ;;  %823 = vmatprep.mubr.f32.mxu0 %v4432_v37  ;;  %v6003_v38 = vmov 4  }
 0x14d   :  { %3439 = vmatprep.subr.bf16.mxu0 %v4266_v15  ;;  %v4576_v30 = vshrl.u32 %v5997_v25, 7 }
 0x14f   :  { %824 = vmatmul.mubr.f32.gmra.mrb[34].mxu0 %v4423_v31  ;;  %3600 = vmatpush1.bf16.xpose.msra.mxu1 %v4430_v33  ;;  %v2706_v31 = vsub.s32 6, %v4576_v30  ;;  %v2959_v35 = vsub.s32 7, %v4576_v30  ;;  %v1694_v56 = vsub.s32 2, %v4576_v30 }
 0x150   :  { %3440 = vmatpush3.bf16.msra.mxu0 %v4266_v15  ;;  %828 = vmatprep.mubr.f32.mxu0 %v4446_v59 }
 0x151   :  { %3465 = vmatprep.subr.bf16.mxu0 %v4282_v27  ;;  %3602 = vmatprep.subr.bf16.mxu1 %v4459_v45  ;;  %v6111_v45 = vmov 7  }
 0x153   :  { %829 = vmatmul.mubr.f32.gmra.mrb[36].mxu0 %v4444_v41 }
 0x154   :  { %833 = vmatprep.mubr.f32.mxu0 %v4455_v5  ;;  %v1187_v5 = vsub.s32 0, %v4576_v30 }
 0x157   :  { %834 = vmatmul.mubr.f32.gmra.mrb[38].mxu0 %v4448_v61  ;;  %3604 = vmatpush1.bf16.xpose.msra.mxu1 %v4453_v48 }
 0x158   :  { %838 = vmatprep.mubr.f32.mxu0 %v382_v40  ;;  %3606 = vmatprep.subr.bf16.mxu1 %v4481_v52 }
 0x15b   :  { %839 = vmatmul.mubr.f32.gmra.mrb[40].mxu0 %v4465_v53 }
 0x15c   :  { %843 = vmatprep.mubr.f32.mxu0 %v386_v3 }
 0x15f   :  { %844 = vmatmul.mubr.f32.gmra.mrb[42].mxu0 %v4470_v63  ;;  %3608 = vmatpush1.bf16.xpose.msra.mxu1 %v4478_v44 }
 0x160   :  { %3417 = vmatprep.subr.bf16.mxu1 %v4258_v10 }
 0x166   :  { %1132 = vmatmul.mubr.f32.vlgmr.msra.gmra.mrb[36].mxu1 %v855_v14  ;;  %v4669_v14 = vld [vmem:[%s5988_s5] sm:$0xff] }
 0x167   :  { %3418 = vmatpush3.bf16.msra.mxu1 %v4258_v10  ;;  %v4030_v10 = vmov 2  }
 0x168   :  { %3419 = vmatprep.subr.bf16.mxu1 %v4274_v22 }
 0x16b   :  { %3420 = vmatpush3.bf16.msra.mxu1 %v4274_v22 }
 0x16c   :  { %3421 = vmatprep.subr.bf16.mxu1 %v4290_v34 }
 0x16f   :  { %3422 = vmatpush3.bf16.msra.mxu1 %v4290_v34 }
 0x170   :  { %3423 = vmatprep.subr.bf16.mxu1 %v4262_v12 }
 0x173   :  { %3424 = vmatpush3.bf16.msra.mxu1 %v4262_v12  ;;  %v6006_v12 = vmov 3  }
 0x174   :  { %3449 = vmatprep.subr.bf16.mxu1 %v4278_v24 }
 0x216   :  { %v810_v3 = vpop.f32.mrb[28].mxu0 }
 0x217   :  { %1408 = vperm.xlu1 %3676, %v810_v3   ;;  %1147 = vperm.xlu0 %3675, %v810_v3   ;;  %v812_v15 = vpop.f32.mrb[29].mxu0 }
 0x21a   :  { %v815_v26 = vpop.f32.mrb[30].mxu0 }
 0x21b   :  { %3677 = vset.pattern.permute.xlu1 %v4030_v10  ;;  %3679 = vset.pattern.permute.xlu0 %v6003_v38  ;;  %v817_v22 = vpop.f32.mrb[31].mxu0 }
 0x21c   :  { %1661 = vperm.xlu1 %3677, %v810_v3   ;;  %2167 = vperm.xlu0 %3679, %v810_v3  }
 0x21e   :  { %v4553_v34 = vpop.f32.mrb[32].mxu0 }
 0x21f   :  { %v822_v40 = vpop.f32.mrb[33].mxu0 }
 0x220   :  { %3678 = vset.pattern.permute.xlu1 %v6006_v12  ;;  %3681 = vset.pattern.permute.xlu0 %v6000_v54 }
 0x221   :  { %1914 = vperm.xlu1 %3678, %v810_v3   ;;  %2673 = vperm.xlu0 %3681, %v810_v3  }
 0x222   :  { %v4557_v57 = vpop.f32.mrb[34].mxu0 }
 0x223   :  { %v827_v60 = vpop.f32.mrb[35].mxu0 }
 0x225   :  { %3680 = vset.pattern.permute.xlu1 %v6001_v1  ;;  %3683 = vset.pattern.permute.xlu0 %v6105_v6 }
 0x226   :  { %2420 = vperm.xlu1 %3680, %v810_v3   ;;  %1152 = vperm.xlu0 %3683, %v815_v26   ;;  %v4561_v7 = vpop.f32.mrb[36].mxu0 }
 0x227   :  { %v832_v8 = vpop.f32.mrb[37].mxu0 }
 0x22a   :  { %3682 = vset.pattern.permute.xlu1 %v5998_v9  ;;  %3684 = vset.pattern.permute.xlu0 %v6106_v11  ;;  %v4565_v13 = vpop.f32.mrb[38].mxu0 }
 0x22b   :  { %2926 = vperm.xlu1 %3682, %v810_v3   ;;  %1412 = vperm.xlu0 %3684, %v815_v26   ;;  %v837_v17 = vpop.f32.mrb[39].mxu0 }
 0x22e   :  { %v4567_v19 = vpop.f32.mrb[40].mxu0 }
 0x22f   :  { %3686 = vset.pattern.permute.xlu1 %v6006_v12  ;;  %3685 = vset.pattern.permute.xlu0 %v4030_v10  ;;  %v842_v23 = vpop.f32.mrb[41].mxu0 }
 0x230   :  { %1918 = vperm.xlu1 %3686, %v815_v26   ;;  %1665 = vperm.xlu0 %3685, %v815_v26  }
 0x232   :  { %v4571_v28 = vpop.f32.mrb[42].mxu0 }
 0x233   :  { %v847_v29 = vpop.f32.mrb[43].mxu0 }
 0x234   :  { %3687 = vset.pattern.permute.xlu1 %v6003_v38  ;;  %3688 = vset.pattern.permute.xlu0 %v6001_v1 }
 0x235   :  { %2171 = vperm.xlu1 %3687, %v815_v26   ;;  %2424 = vperm.xlu0 %3688, %v815_v26  }
 0x239   :  { %3689 = vset.pattern.permute.xlu1 %v6000_v54  ;;  %3690 = vset.pattern.permute.xlu0 %v5998_v9  ;;  %v4582_v37 = vpop.f32.mrb[36].mxu1 }
 0x23a   :  { %2677 = vperm.xlu1 %3689, %v815_v26   ;;  %2930 = vperm.xlu0 %3690, %v815_v26   ;;  %v1135_v41 = vpop.f32.mrb[37].mxu1  ;;  %v4585_v59 = vrot.slane %v4582_v37, %v2706_v31  ;;  %v4588_v61 = vrot.slane %v4582_v37, %v2959_v35  ;;  %v4654_v53 = vrot.slane %v4582_v37, %v1187_v5  ;;  %v1441_v35 = vsub.s32 1, %v4576_v30 }
 0x23b   :  { %v4662_v46 = vrot.slane %v4582_v37, %v1694_v56 }
 0x23e   :  { %3691 = vset.pattern.permute.xlu1 %v6105_v6  ;;  %3703 = vset.pattern.permute.xlu0 %v6003_v38 }
 0x23f   :  { %1157 = vperm.xlu1 %3691, %v4553_v34   ;;  %2179 = vperm.xlu0 %3703, %v4557_v57  }
 0x243   :  { %3692 = vset.pattern.permute.xlu1 %v6106_v11  ;;  %3705 = vset.pattern.permute.xlu0 %v6000_v54 }
 0x244   :  { %1416 = vperm.xlu1 %3692, %v4553_v34   ;;  %2685 = vperm.xlu0 %3705, %v4557_v57  }
 0x248   :  { %3693 = vset.pattern.permute.xlu1 %v4030_v10  ;;  %3707 = vset.pattern.permute.xlu0 %v6105_v6 }
 0x249   :  { %1669 = vperm.xlu1 %3693, %v4553_v34   ;;  %1167 = vperm.xlu0 %3707, %v4561_v7  }
 0x24d   :  { %3694 = vset.pattern.permute.xlu1 %v6006_v12  ;;  %3711 = vset.pattern.permute.xlu0 %v6003_v38 }
 0x24e   :  { %1922 = vperm.xlu1 %3694, %v4553_v34   ;;  %2183 = vperm.xlu0 %3711, %v4561_v7  }
 0x252   :  { %3695 = vset.pattern.permute.xlu1 %v6003_v38  ;;  %3713 = vset.pattern.permute.xlu0 %v6000_v54 }
 0x253   :  { %2175 = vperm.xlu1 %3695, %v4553_v34   ;;  %2689 = vperm.xlu0 %3713, %v4561_v7  }
 0x257   :  { %3696 = vset.pattern.permute.xlu1 %v6001_v1  ;;  %3717 = vset.pattern.permute.xlu0 %v4030_v10 }
 0x258   :  { %2428 = vperm.xlu1 %3696, %v4553_v34   ;;  %1681 = vperm.xlu0 %3717, %v4565_v13  }
 0x25c   :  { %3697 = vset.pattern.permute.xlu1 %v6000_v54  ;;  %3718 = vset.pattern.permute.xlu0 %v6006_v12 }
 0x25d   :  { %2681 = vperm.xlu1 %3697, %v4553_v34   ;;  %1934 = vperm.xlu0 %3718, %v4565_v13  }
 0x261   :  { %3698 = vset.pattern.permute.xlu1 %v5998_v9  ;;  %3720 = vset.pattern.permute.xlu0 %v6001_v1 }
 0x262   :  { %2934 = vperm.xlu1 %3698, %v4553_v34   ;;  %2440 = vperm.xlu0 %3720, %v4565_v13  }
 0x266   :  { %3699 = vset.pattern.permute.xlu1 %v6105_v6  ;;  %3722 = vset.pattern.permute.xlu0 %v5998_v9 }
 0x267   :  { %1162 = vperm.xlu1 %3699, %v4557_v57   ;;  %2946 = vperm.xlu0 %3722, %v4565_v13  }
 0x26b   :  { %3700 = vset.pattern.permute.xlu1 %v6106_v11  ;;  %3723 = vset.pattern.permute.xlu0 %v6105_v6 }
 0x26c   :  { %1420 = vperm.xlu1 %3700, %v4557_v57   ;;  %1177 = vperm.xlu0 %3723, %v4567_v19  }
 0x270   :  { %3701 = vset.pattern.permute.xlu1 %v4030_v10  ;;  %3733 = vset.pattern.permute.xlu0 %v4030_v10 }
 0x271   :  { %1673 = vperm.xlu1 %3701, %v4557_v57   ;;  %1689 = vperm.xlu0 %3733, %v4571_v28  }
 0x275   :  { %3702 = vset.pattern.permute.xlu1 %v6006_v12  ;;  %3735 = vset.pattern.permute.xlu0 %v6003_v38 }
 0x276   :  { %1926 = vperm.xlu1 %3702, %v4557_v57   ;;  %2195 = vperm.xlu0 %3735, %v4571_v28  }
 0x27a   :  { %3704 = vset.pattern.permute.xlu1 %v6001_v1  ;;  %3737 = vset.pattern.permute.xlu0 %v6000_v54 }
 0x27b   :  { %2432 = vperm.xlu1 %3704, %v4557_v57   ;;  %2701 = vperm.xlu0 %3737, %v4571_v28  }
 0x27f   :  { %3706 = vset.pattern.permute.xlu1 %v5998_v9  ;;  %3739 = vset.pattern.permute.xlu0 %v5998_v9 }
 0x280   :  { %2938 = vperm.xlu1 %3706, %v4557_v57  }
 0x284   :  { %3708 = vset.pattern.permute.xlu1 %v6106_v11 }
 0x285   :  { %1424 = vperm.xlu1 %3708, %v4561_v7  }
 0x289   :  { %3709 = vset.pattern.permute.xlu1 %v4030_v10 }
 0x28a   :  { %1677 = vperm.xlu1 %3709, %v4561_v7  }
 0x28e   :  { %3710 = vset.pattern.permute.xlu1 %v6006_v12 }
 0x28f   :  { %1930 = vperm.xlu1 %3710, %v4561_v7  }
 0x293   :  { %3712 = vset.pattern.permute.xlu1 %v6001_v1 }
 0x294   :  { %2436 = vperm.xlu1 %3712, %v4561_v7  }
 0x296   :  { %v4658_v63 = vpop.permute.xlu1 %1408  ;;  %v1148_v58 = vpop.permute.xlu0 %1147 }
 0x297   :  { %v1189_v42 = vadd.f32 %v4654_v53, %v1148_v58 }
 0x298   :  { %3714 = vset.pattern.permute.xlu1 %v5998_v9 }
 0x299   :  { %v1205_v50 = vmul.f32 0.2, %v1189_v42  ;;  %2942 = vperm.xlu1 %3714, %v4561_v7   ;;  %vm1197_vm1 = vcmp.gt.f32.partialorder %v1189_v42, 0.0 }
 0x29b   :  { %v1662_v3 = vpop.permute.xlu1 %1661  ;;  %v4671_v15 = vpop.permute.xlu0 %2167  ;;  %v1213_v26 = vsel %vm1197_vm1, %v1189_v42, %v1205_v50  ;;  %v4702_v42 = vrot.slane %v4582_v37, %v1441_v35  ;;  %v1947_v50 = vsub.s32 3, %v4576_v30 }
 0x29c   :  { %v1696_v22 = vadd.f32 %v4662_v46, %v1662_v3  ;;  %v4675_v34 = vadd.f32 %v1213_v26, %v4669_v14 }
 0x29d   :  { %3715 = vset.pattern.permute.xlu1 %v6105_v6 }
 0x29e   :  { %v1712_v40 = vmul.f32 0.2, %v1696_v22  ;;  %1172 = vperm.xlu1 %3715, %v4565_v13   ;;  %v1230_v57 = vsel %vm1229_vm2, %v4675_v34, -inf  ;;  %vm1704_vm3 = vcmp.gt.f32.partialorder %v1696_v22, 0.0 }
 0x29f   :  { %1231 = vmax.xlane.f32.xlu0 %v1230_v57 }
 0x2a0   :  { %v4681_v60 = vpop.permute.xlu1 %1914  ;;  %v2674_v7 = vpop.permute.xlu0 %2673  ;;  %v1720_v8 = vsel %vm1704_vm3, %v1696_v22, %v1712_v40 }
 0x2a1   :  { %v2708_v17 = vadd.f32 %v4585_v59, %v2674_v7  ;;  %v4685_v23 = vadd.f32 %v1720_v8, %v4669_v14  ;;  %v4710_v8 = vrot.slane %v4582_v37, %v1947_v50 }
 0x2a2   :  { %3716 = vset.pattern.permute.xlu1 %v6106_v11 }
 0x2a3   :  { %vm2716_vm4 = vcmp.gt.f32.partialorder %v2708_v17, 0.0  ;;  %v2724_v29 = vmul.f32 0.2, %v2708_v17  ;;  %1428 = vperm.xlu1 %3716, %v4565_v13   ;;  %v1736_v31 = vsel %vm1229_vm2, %v4685_v23, -inf }
 0x2a4   :  { %1737 = vmax.xlane.f32.xlu0 %v1736_v31 }
 0x2a5   :  { %v4692_v41 = vpop.permute.xlu1 %2420  ;;  %v4694_v5 = vpop.permute.xlu0 %1152  ;;  %v2732_v56 = vsel %vm2716_vm4, %v2708_v17, %v2724_v29  ;;  %v2200_v17 = vsub.s32 4, %v4576_v30  ;;  %v2453_v29 = vsub.s32 5, %v4576_v30 }
 0x2a6   :  { %v4697_v58 = vadd.f32 %v2732_v56, %v4669_v14  ;;  %v4719_v56 = vld [vmem:[%s5988_s5 + $0x8] sm:$0xff] }
 0x2a7   :  { %3719 = vset.pattern.permute.xlu1 %v6003_v38 }
 0x2a8   :  { %2187 = vperm.xlu1 %3719, %v4565_v13  }
 0x2aa   :  { %v2927_v3 = vpop.permute.xlu1 %2926  ;;  %v1413_v26 = vpop.permute.xlu0 %1412 }
 0x2ab   :  { %v2961_v22 = vadd.f32 %v4588_v61, %v2927_v3  ;;  %v1444_v40 = vadd.f32 %v4702_v42, %v1413_v26 }
 0x2ac   :  { %3721 = vset.pattern.permute.xlu1 %v6000_v54 }
 0x2ad   :  { %vm2969_vm5 = vcmp.gt.f32.partialorder %v2961_v22, 0.0  ;;  %v2977_v57 = vmul.f32 0.2, %v2961_v22  ;;  %v1460_v7 = vmul.f32 0.2, %v1444_v40  ;;  %2693 = vperm.xlu1 %3721, %v4565_v13   ;;  %vm1452_vm6 = vcmp.gt.f32.partialorder %v1444_v40, 0.0 }
 0x2af   :  { %v1919_v31 = vpop.permute.xlu1 %1918  ;;  %v4714_v35 = vpop.permute.xlu0 %1665  ;;  %v1468_v3 = vsel %vm1452_vm6, %v1444_v40, %v1460_v7  ;;  %v2985_v26 = vsel %vm2969_vm5, %v2961_v22, %v2977_v57  ;;  %v4733_v40 = vrot.slane %v4582_v37, %v2200_v17  ;;  %v4736_v22 = vrot.slane %v4582_v37, %v2453_v29 }
 0x2b0   :  { %v1950_v13 = vadd.f32 %v4710_v8, %v1919_v31  ;;  %v4723_v25 = vadd.f32 %v1468_v3, %v4719_v56  ;;  %v4726_v50 = vadd.f32 %v2985_v26, %v4669_v14 }
 0x2b1   :  { %3724 = vset.pattern.permute.xlu1 %v6106_v11 }
 0x2b2   :  { %v1966_v30 = vmul.f32 0.2, %v1950_v13  ;;  %1432 = vperm.xlu1 %3724, %v4567_v19   ;;  %v1486_v9 = vsel %vm1229_vm2, %v4723_v25, -inf  ;;  %vm1958_vm7 = vcmp.gt.f32.partialorder %v1950_v13, 0.0 }
 0x2b3   :  { %1487 = vmax.xlane.f32.xlu0 %v1486_v9 }
 0x2b4   :  { %v2172_v57 = vpop.permute.xlu1 %2171  ;;  %v2425_v7 = vpop.permute.xlu0 %2424  ;;  %v1974_v31 = vsel %vm1958_vm7, %v1950_v13, %v1966_v30 }
 0x2b5   :  { %v2203_v3 = vadd.f32 %v4733_v40, %v2172_v57  ;;  %v2456_v26 = vadd.f32 %v4736_v22, %v2425_v7  ;;  %v4741_v54 = vadd.f32 %v1974_v31, %v4719_v56 }
 0x2b6   :  { %3725 = vset.pattern.permute.xlu1 %v4030_v10 }
 0x2b7   :  { %v2219_v1 = vmul.f32 0.2, %v2203_v3  ;;  %v2472_v38 = vmul.f32 0.2, %v2456_v26  ;;  %1685 = vperm.xlu1 %3725, %v4567_v19   ;;  %v1992_v37 = vsel %vm1229_vm2, %v4741_v54, -inf  ;;  %vm2211_vm8 = vcmp.gt.f32.partialorder %v2203_v3, 0.0 }
 0x2b8   :  { %1993 = vmax.xlane.f32.xlu0 %v1992_v37  ;;  %vm2464_vm9 = vcmp.gt.f32.partialorder %v2456_v26, 0.0 }
 0x2b9   :  { %v2678_v9 = vpop.permute.xlu1 %2677  ;;  %v2931_v17 = vpop.permute.xlu0 %2930  ;;  %v2227_v29 = vsel %vm2211_vm8, %v2203_v3, %v2219_v1  ;;  %v2480_v13 = vsel %vm2464_vm9, %v2456_v26, %v2472_v38 }
 0x2ba   :  { %v2709_v30 = vadd.f32 %v4585_v59, %v2678_v9  ;;  %v2962_v57 = vadd.f32 %v4588_v61, %v2931_v17  ;;  %v4750_v10 = vadd.f32 %v2227_v29, %v4719_v56  ;;  %v4757_v52 = vadd.f32 %v2480_v13, %v4719_v56 }
 0x2bb   :  { %3726 = vset.pattern.permute.xlu1 %v6006_v12  ;;  %v6107_v29 = vmov 4  }
 0x2bc   :  { %v2725_v7 = vmul.f32 0.2, %v2709_v30  ;;  %v2978_v31 = vmul.f32 0.2, %v2962_v57  ;;  %1938 = vperm.xlu1 %3726, %v4567_v19   ;;  %v2245_v37 = vsel %vm1229_vm2, %v4750_v10, -inf  ;;  %vm2717_vm10 = vcmp.gt.f32.partialorder %v2709_v30, 0.0 }
 0x2bd   :  { %2246 = vmax.xlane.f32.xlu0 %v2245_v37  ;;  %vm2970_vm11 = vcmp.gt.f32.partialorder %v2962_v57, 0.0  ;;  %v2498_v13 = vsel %vm1229_vm2, %v4757_v52, -inf  ;;  %v6108_v37 = vmov 5  }
 0x2be   :  { %v1158_v38 = vpop.permute.xlu1 %1157  ;;  %v2733_v1 = vsel %vm2717_vm10, %v2709_v30, %v2725_v7  ;;  %v2986_v3 = vsel %vm2970_vm11, %v2962_v57, %v2978_v31  ;;  %v4773_v30 = vld [vmem:[%s5988_s5 + $0x10] sm:$0xff] }
 0x2bf   :  { %v1191_v26 = vadd.f32 %v4654_v53, %v1158_v38  ;;  %v4761_v9 = vadd.f32 %v2733_v1, %v4719_v56  ;;  %v4764_v17 = vadd.f32 %v2986_v3, %v4719_v56 }
 0x2c0   :  { %3727 = vset.pattern.permute.xlu1 %v6107_v29  ;;  %v6109_v29 = vmov 6  }
 0x2c1   :  { %v1207_v12 = vmul.f32 0.2, %v1191_v26  ;;  %2191 = vperm.xlu1 %3727, %v4567_v19   ;;  %2499 = vmax.xlane.f32.xlu0 %v2498_v13  ;;  %vm1199_vm12 = vcmp.gt.f32.partialorder %v1191_v26, 0.0 }
 0x2c3   :  { %v4775_v57 = vpop.permute.xlu1 %1416  ;;  %v1215_v7 = vsel %vm1199_vm12, %v1191_v26, %v1207_v12 }
 0x2c4   :  { %v4778_v31 = vadd.f32 %v1215_v7, %v4773_v30 }
 0x2c5   :  { %3728 = vset.pattern.permute.xlu1 %v6108_v37 }
 0x2c6   :  { %2444 = vperm.xlu1 %3728, %v4567_v19   ;;  %v1236_v38 = vsel %vm1229_vm2, %v4778_v31, -inf }
 0x2c7   :  { %1237 = vmax.xlane.f32.xlu0 %v1236_v38 }
 0x2c8   :  { %v1670_v1 = vpop.permute.xlu1 %1669 }
 0x2c9   :  { %v1698_v3 = vadd.f32 %v4662_v46, %v1670_v1 }
 0x2ca   :  { %3729 = vset.pattern.permute.xlu1 %v6109_v29 }
 0x2cb   :  { %v1714_v13 = vmul.f32 0.2, %v1698_v3  ;;  %2697 = vperm.xlu1 %3729, %v4567_v19   ;;  %vm1706_vm13 = vcmp.gt.f32.partialorder %v1698_v3, 0.0 }
 0x2cd   :  { %v4787_v12 = vpop.permute.xlu1 %1922  ;;  %v1722_v26 = vsel %vm1706_vm13, %v1698_v3, %v1714_v13 }
 0x2ce   :  { %v4790_v7 = vadd.f32 %v1722_v26, %v4773_v30 }
 0x2cf   :  { %3730 = vset.pattern.permute.xlu1 %v6111_v45 }
 0x2d0   :  { %6110 = vst [vmem:[#allocation26_spill] sm:$0xff] %v4790_v7  ;;  %2950 = vperm.xlu1 %3730, %v4567_v19   ;;  %v1742_v38 = vsel %vm1229_vm2, %v4790_v7, -inf  ;;  %v6112_v19 = vmov 3   ;;  %v1445_v7 = vadd.f32 %v4702_v42, %v4775_v57 }
 0x2d1   :  { %1743 = vmax.xlane.f32.xlu0 %v1742_v38 }
 0x2d2   :  { %v4796_v1 = vpop.permute.xlu1 %2175  ;;  %vm1453_vm13 = vcmp.gt.f32.partialorder %v1445_v7, 0.0 }
 0x2d4   :  { %3731 = vset.pattern.permute.xlu1 %v6105_v6 }
 0x2d5   :  { %1182 = vperm.xlu1 %3731, %v4571_v28  }
 0x2d7   :  { %v4800_v29 = vpop.permute.xlu1 %2428 }
 0x2d9   :  { %3732 = vset.pattern.permute.xlu1 %v6106_v11 }
 0x2da   :  { %1436 = vperm.xlu1 %3732, %v4571_v28  }
 0x2dc   :  { %v2682_v3 = vpop.permute.xlu1 %2681 }
 0x2dd   :  { %v2710_v13 = vadd.f32 %v4585_v59, %v2682_v3 }
 0x2de   :  { %3734 = vset.pattern.permute.xlu1 %v6112_v19 }
 0x2df   :  { %vm2718_vm14 = vcmp.gt.f32.partialorder %v2710_v13, 0.0  ;;  %v2726_v26 = vmul.f32 0.2, %v2710_v13  ;;  %1942 = vperm.xlu1 %3734, %v4571_v28  }
 0x2e1   :  { %v2935_v38 = vpop.permute.xlu1 %2934  ;;  %v2734_v44 = vsel %vm2718_vm14, %v2710_v13, %v2726_v26 }
 0x2e2   :  { %v2963_v6 = vadd.f32 %v4588_v61, %v2935_v38  ;;  %v4809_v55 = vadd.f32 %v2734_v44, %v4773_v30 }
 0x2e3   :  { %3736 = vset.pattern.permute.xlu1 %v6108_v37  ;;  %v4822_v37 = vld [vmem:[%s5988_s5 + $0x18] sm:$0xff] }
 0x2e4   :  { %vm2971_vm15 = vcmp.gt.f32.partialorder %v2963_v6, 0.0  ;;  %v2979_v11 = vmul.f32 0.2, %v2963_v6  ;;  %2448 = vperm.xlu1 %3736, %v4571_v28  }
 0x2e6   :  { %v1163_v3 = vpop.permute.xlu1 %1162  ;;  %v2987_v48 = vsel %vm2971_vm15, %v2963_v6, %v2979_v11  ;;  %v2180_v11 = vpop.permute.xlu0 %2179 }
 0x2e7   :  { %v1192_v19 = vadd.f32 %v4654_v53, %v1163_v3  ;;  %v4815_v21 = vadd.f32 %v2987_v48, %v4773_v30 }
 0x2e8   :  { %3738 = vset.pattern.permute.xlu1 %v6111_v45 }
 0x2e9   :  { %6113 = vst [vmem:[#allocation27_spill] sm:$0xff] %v4815_v21  ;;  %v1208_v13 = vmul.f32 0.2, %v1192_v19  ;;  %2954 = vperm.xlu1 %3738, %v4571_v28   ;;  %vm1200_vm0 = vcmp.gt.f32.partialorder %v1192_v19, 0.0 }
 0x2eb   :  { %v1421_v44 = vpop.permute.xlu1 %1420  ;;  %v1216_v26 = vsel %vm1200_vm0, %v1192_v19, %v1208_v13  ;;  %v2205_v19 = vadd.f32 %v4733_v40, %v2180_v11 }
 0x2ec   :  { %v1446_v38 = vadd.f32 %v4702_v42, %v1421_v44  ;;  %v4826_v6 = vadd.f32 %v1216_v26, %v4822_v37 }
 0x2ed   :  { %v2221_v20 = vmul.f32 0.2, %v2205_v19  ;;  %vm2213_vm4 = vcmp.gt.f32.partialorder %v2205_v19, 0.0 }
 0x2ee   :  { %v1462_v48 = vmul.f32 0.2, %v1446_v38  ;;  %v1239_v45 = vsel %vm1229_vm2, %v4826_v6, -inf  ;;  %vm1454_vm1 = vcmp.gt.f32.partialorder %v1446_v38, 0.0 }
 0x2ef   :  { %1240 = vmax.xlane.f32.xlu0 %v1239_v45  ;;  %v2229_v32 = vsel %vm2213_vm4, %v2205_v19, %v2221_v20 }
 0x2f0   :  { %v1674_v28 = vpop.permute.xlu1 %1673  ;;  %v1470_v3 = vsel %vm1454_vm1, %v1446_v38, %v1462_v48  ;;  %v4852_v4 = vadd.f32 %v2229_v32, %v4822_v37 }
 0x2f1   :  { %v1699_v33 = vadd.f32 %v4662_v46, %v1674_v28  ;;  %v4832_v43 = vadd.f32 %v1470_v3, %v4822_v37 }
 0x2f2   :  { %6116 = vst [vmem:[#allocation30_spill] sm:$0xff] %v4852_v4 }
 0x2f3   :  { %v1715_v13 = vmul.f32 0.2, %v1699_v33  ;;  %v1492_v44 = vsel %vm1229_vm2, %v4832_v43, -inf  ;;  %vm1707_vm3 = vcmp.gt.f32.partialorder %v1699_v33, 0.0 }
 0x2f4   :  { %1493 = vmax.xlane.f32.xlu0 %v1492_v44 }
 0x2f5   :  { %v1927_v26 = vpop.permute.xlu1 %1926  ;;  %v1723_v18 = vsel %vm1707_vm3, %v1699_v33, %v1715_v13  ;;  %v1443_v13 = vadd.f32 %v4702_v42, %v4658_v63 }
 0x2f6   :  { %v1952_v45 = vadd.f32 %v4710_v8, %v1927_v26  ;;  %v4839_v38 = vadd.f32 %v1723_v18, %v4822_v37 }
 0x2f7   :  { %v1459_v19 = vmul.f32 0.2, %v1443_v13  ;;  %vm1451_vm7 = vcmp.gt.f32.partialorder %v1443_v13, 0.0 }
 0x2f8   :  { %6114 = vst [vmem:[#allocation28_spill] sm:$0xff] %v4839_v38  ;;  %v1968_v48 = vmul.f32 0.2, %v1952_v45  ;;  %v1745_v28 = vsel %vm1229_vm2, %v4839_v38, -inf  ;;  %vm1960_vm5 = vcmp.gt.f32.partialorder %v1952_v45, 0.0 }
 0x2f9   :  { %1746 = vmax.xlane.f32.xlu0 %v1745_v28 }
 0x2fa   :  { %v2433_v11 = vpop.permute.xlu1 %2432  ;;  %v1976_v3 = vsel %vm1960_vm5, %v1952_v45, %v1968_v48  ;;  %v1949_v45 = vadd.f32 %v4710_v8, %v4681_v60  ;;  %v2251_v48 = vsel %vm1229_vm2, %v4852_v4, -inf  ;;  %v1467_v60 = vsel %vm1451_vm7, %v1443_v13, %v1459_v19 }
 0x2fb   :  { %v2458_v44 = vadd.f32 %v4736_v22, %v2433_v11  ;;  %v4845_v33 = vadd.f32 %v1976_v3, %v4822_v37  ;;  %v4863_v11 = vpop.permute.xlu0 %2685  ;;  %v2202_v3 = vadd.f32 %v4733_v40, %v4671_v15 }
 0x2fc   :  { %vm1957_vm8 = vcmp.gt.f32.partialorder %v1949_v45, 0.0 }
 0x2fd   :  { %6115 = vst [vmem:[#allocation29_spill] sm:$0xff] %v4845_v33  ;;  %v2474_v18 = vmul.f32 0.2, %v2458_v44  ;;  %v1998_v26 = vsel %vm1229_vm2, %v4845_v33, -inf  ;;  %vm2466_vm6 = vcmp.gt.f32.partialorder %v2458_v44, 0.0  ;;  %vm2210_vm9 = vcmp.gt.f32.partialorder %v2202_v3, 0.0 }
 0x2fe   :  { %1999 = vmax.xlane.f32.xlu0 %v1998_v26  ;;  %v2218_v16 = vmul.f32 0.2, %v2202_v3 }
 0x2ff   :  { %v4854_v28 = vpop.permute.xlu1 %2938  ;;  %v2482_v20 = vsel %vm2466_vm6, %v2458_v44, %v2474_v18  ;;  %v1965_v44 = vmul.f32 0.2, %v1949_v45  ;;  %v4871_v26 = vpop.permute.xlu0 %1167 }
 0x300   :  { %v4861_v63 = vadd.f32 %v2482_v20, %v4822_v37  ;;  %v4874_v20 = vadd.f32 %v1467_v60, %v4669_v14  ;;  %v2226_v60 = vsel %vm2210_vm9, %v2202_v3, %v2218_v16 }
 0x301   :  { %v1973_v4 = vsel %vm1957_vm8, %v1949_v45, %v1965_v44 }
 0x302   :  { %6117 = vst [vmem:[#allocation31_spill] sm:$0xff] %v4861_v63  ;;  %2252 = vmax.xlane.f32.xlu0 %v2251_v48  ;;  %v2504_v18 = vsel %vm1229_vm2, %v4861_v63, -inf  ;;  %v2455_v48 = vadd.f32 %v4736_v22, %v4692_v41  ;;  %v1483_v15 = vsel %vm1229_vm2, %v4874_v20, -inf  ;;  %v4883_v13 = vadd.f32 %v1973_v4, %v4669_v14 }
 0x303   :  { %v4887_v63 = vpop.permute.xlu0 %2183  ;;  %v1697_v41 = vadd.f32 %v4662_v46, %v4714_v35  ;;  %v4896_v4 = vadd.f32 %v2226_v60, %v4669_v14 }
 0x304   :  { %v4865_v32 = vpop.permute.xlu1 %1424  ;;  %v2471_v19 = vmul.f32 0.2, %v2455_v48  ;;  %vm2463_vm10 = vcmp.gt.f32.partialorder %v2455_v48, 0.0  ;;  %v1989_v45 = vsel %vm1229_vm2, %v4883_v13, -inf }
 0x305   :  { %v1713_v16 = vmul.f32 0.2, %v1697_v41  ;;  %vm1705_vm12 = vcmp.gt.f32.partialorder %v1697_v41, 0.0 }
 0x306   :  { %2505 = vmax.xlane.f32.xlu0 %v2504_v18  ;;  %v1190_v18 = vadd.f32 %v4654_v53, %v4694_v5  ;;  %v2479_v38 = vsel %vm2463_vm10, %v2455_v48, %v2471_v19  ;;  %v1951_v48 = vadd.f32 %v4710_v8, %v4787_v12  ;;  %v2204_v12 = vadd.f32 %v4733_v40, %v4796_v1 }
 0x307   :  { %v4900_v3 = vpop.permute.xlu0 %2689  ;;  %v4905_v35 = vadd.f32 %v2479_v38, %v4669_v14  ;;  %v1721_v49 = vsel %vm1705_vm12, %v1697_v41, %v1713_v16  ;;  %v1461_v14 = vmul.f32 0.2, %v1445_v7  ;;  %v2457_v1 = vadd.f32 %v4736_v22, %v4800_v29 }
 0x308   :  { %v1206_v44 = vmul.f32 0.2, %v1190_v18  ;;  %vm1198_vm11 = vcmp.gt.f32.partialorder %v1190_v18, 0.0  ;;  %v1967_v57 = vmul.f32 0.2, %v1951_v48  ;;  %vm1959_vm14 = vcmp.gt.f32.partialorder %v1951_v48, 0.0 }
 0x309   :  { %v4878_v0 = vpop.permute.xlu1 %1677  ;;  %vm2212_vm0 = vcmp.gt.f32.partialorder %v2204_v12, 0.0  ;;  %v1193_v29 = vadd.f32 %v4654_v53, %v4871_v26  ;;  %vm2465_vm4 = vcmp.gt.f32.partialorder %v2457_v1, 0.0 }
 0x30a   :  { %v1214_v60 = vsel %vm1198_vm11, %v1190_v18, %v1206_v44  ;;  %v4919_v18 = vadd.f32 %v1721_v49, %v4719_v56  ;;  %v1975_v51 = vsel %vm1959_vm14, %v1951_v48, %v1967_v57  ;;  %v2220_v49 = vmul.f32 0.2, %v2204_v12 }
 0x30b   :  { %v4916_v2 = vadd.f32 %v1214_v60, %v4719_v56  ;;  %v1682_v38 = vpop.permute.xlu0 %1681  ;;  %v1469_v60 = vsel %vm1453_vm13, %v1445_v7, %v1461_v14  ;;  %v4937_v14 = vld [vmem:[%s5988_s5 + $0x28] sm:$0xff]  ;;  %v4940_v48 = vadd.f32 %v1975_v51, %v4773_v30  ;;  %v1209_v24 = vmul.f32 0.2, %v1193_v29 }
 0x30c   :  { %v1701_v16 = vadd.f32 %v4662_v46, %v1682_v38  ;;  %v4930_v39 = vadd.f32 %v1469_v60, %v4773_v30  ;;  %v2228_v27 = vsel %vm2212_vm0, %v2204_v12, %v2220_v49  ;;  %vm1201_vm6 = vcmp.gt.f32.partialorder %v1193_v29, 0.0 }
 0x30d   :  { %1484 = vmax.xlane.f32.xlu1 %v1483_v15  ;;  %v2242_v15 = vsel %vm1229_vm2, %v4896_v4, -inf  ;;  %v1233_v44 = vsel %vm1229_vm2, %v4916_v2, -inf  ;;  %6118 = vst [vmem:[#allocation32_spill] sm:$0xff] %v4940_v48 }
 0x30e   :  { %v4889_v33 = vpop.permute.xlu1 %1930  ;;  %v1717_v57 = vmul.f32 0.2, %v1701_v16  ;;  %vm1709_vm1 = vcmp.gt.f32.partialorder %v1701_v16, 0.0 }
 0x30f   :  { %v1935_v56 = vpop.permute.xlu0 %1934 }
 0x310   :  { %v1725_v47 = vsel %vm1709_vm1, %v1701_v16, %v1717_v57 }
 0x311   :  { %1990 = vmax.xlane.f32.xlu1 %v1989_v45  ;;  %v2495_v45 = vsel %vm1229_vm2, %v4905_v35, -inf  ;;  %v4967_v57 = vadd.f32 %v1725_v47, %v4937_v14  ;;  %v1217_v47 = vsel %vm1201_vm6, %v1193_v29, %v1209_v24  ;;  %v1953_v24 = vadd.f32 %v4710_v8, %v4889_v33 }
 0x312   :  { %v2206_v33 = vadd.f32 %v4733_v40, %v4887_v63 }
 0x313   :  { %v4898_v5 = vpop.permute.xlu1 %2436  ;;  %v2441_v36 = vpop.permute.xlu0 %2440  ;;  %6121 = vst [vmem:[#allocation35_spill] sm:$0xff] %v4967_v57  ;;  %vm1961_vm11 = vcmp.gt.f32.partialorder %v1953_v24, 0.0 }
 0x314   :  { %v2459_v63 = vadd.f32 %v4736_v22, %v4898_v5  ;;  %vm2214_vm12 = vcmp.gt.f32.partialorder %v2206_v33, 0.0 }
 0x315   :  { %2243 = vmax.xlane.f32.xlu1 %v2242_v15 }
 0x316   :  { %vm2467_vm13 = vcmp.gt.f32.partialorder %v2459_v63, 0.0 }
 0x318   :  { %v4911_v19 = vpop.permute.xlu1 %2942 }
 0x319   :  { %2496 = vmax.xlane.f32.xlu1 %v2495_v45  ;;  %v1739_v45 = vsel %vm1229_vm2, %v4919_v18, -inf }
 0x31d   :  { %v1173_v15 = vpop.permute.xlu1 %1172  ;;  %1234 = vmax.xlane.f32.xlu1 %v1233_v44  ;;  %v1954_v44 = vadd.f32 %v4710_v8, %v1935_v56 }
 0x31e   :  { %v1194_v41 = vadd.f32 %v4654_v53, %v1173_v15 }
 0x31f   :  { %v1970_v56 = vmul.f32 0.2, %v1954_v44  ;;  %vm1962_vm5 = vcmp.gt.f32.partialorder %v1954_v44, 0.0 }
 0x320   :  { %v1210_v62 = vmul.f32 0.2, %v1194_v41  ;;  %vm1202_vm15 = vcmp.gt.f32.partialorder %v1194_v41, 0.0 }
 0x321   :  { %1740 = vmax.xlane.f32.xlu1 %v1739_v45  ;;  %v1489_v45 = vsel %vm1229_vm2, %v4930_v39, -inf }
 0x322   :  { %v1429_v7 = vpop.permute.xlu1 %1428  ;;  %v1218_v38 = vsel %vm1202_vm15, %v1194_v41, %v1210_v62  ;;  %v2473_v62 = vmul.f32 0.2, %v2457_v1 }
 0x323   :  { %v1448_v15 = vadd.f32 %v4702_v42, %v1429_v7  ;;  %v4945_v60 = vadd.f32 %v1218_v38, %v4937_v14  ;;  %v1995_v38 = vsel %vm1229_vm2, %v4940_v48, -inf }
 0x325   :  { %6119 = vst [vmem:[#allocation33_spill] sm:$0xff] %v4945_v60  ;;  %v1464_v41 = vmul.f32 0.2, %v1448_v15  ;;  %1490 = vmax.xlane.f32.xlu1 %v1489_v45  ;;  %v1245_v51 = vsel %vm1229_vm2, %v4945_v60, -inf  ;;  %vm1456_vm3 = vcmp.gt.f32.partialorder %v1448_v15, 0.0  ;;  %v4960_v45 = vadd.f32 %v2228_v27, %v4773_v30 }
 0x326   :  { %1246 = vmax.xlane.f32.xlu0 %v1245_v51  ;;  %v1447_v51 = vadd.f32 %v4702_v42, %v4865_v32  ;;  %v2481_v60 = vsel %vm2465_vm4, %v2457_v1, %v2473_v62  ;;  %v1978_v27 = vsel %vm1962_vm5, %v1954_v44, %v1970_v56  ;;  %v1700_v62 = vadd.f32 %v4662_v46, %v4878_v0 }
 0x327   :  { %v2188_v7 = vpop.permute.xlu1 %2187  ;;  %v1472_v26 = vsel %vm1456_vm3, %v1448_v15, %v1464_v41  ;;  %6120 = vst [vmem:[#allocation34_spill] sm:$0xff] %v4960_v45  ;;  %v2460_v15 = vadd.f32 %v4736_v22, %v2441_v36  ;;  %v4975_v32 = vadd.f32 %v2481_v60, %v4773_v30  ;;  %v4982_v36 = vld [vmem:[%s5988_s5 + $0x20] sm:$0xff]  ;;  %v1751_v44 = vsel %vm1229_vm2, %v4967_v57, -inf }
 0x328   :  { %v2207_v12 = vadd.f32 %v4733_v40, %v2188_v7  ;;  %v4957_v49 = vadd.f32 %v1472_v26, %v4937_v14  ;;  %v2248_v26 = vsel %vm1229_vm2, %v4960_v45, -inf  ;;  %v1463_v1 = vmul.f32 0.2, %v1447_v51 }
 0x329   :  { %1996 = vmax.xlane.f32.xlu1 %v1995_v38  ;;  %6122 = vst [vmem:[#allocation36_spill] sm:$0xff] %v4975_v32  ;;  %vm1455_vm8 = vcmp.gt.f32.partialorder %v1447_v51, 0.0  ;;  %v4987_v56 = vadd.f32 %v1978_v27, %v4937_v14  ;;  %v2476_v30 = vmul.f32 0.2, %v2460_v15  ;;  %v2501_v0 = vsel %vm1229_vm2, %v4975_v32, -inf }
 0x32a   :  { %v1498_v16 = vsel %vm1229_vm2, %v4957_v49, -inf  ;;  %v2223_v41 = vmul.f32 0.2, %v2207_v12  ;;  %vm2215_vm7 = vcmp.gt.f32.partialorder %v2207_v12, 0.0  ;;  %v4992_v38 = vadd.f32 %v1217_v47, %v4982_v36 }
 0x32b   :  { %1499 = vmax.xlane.f32.xlu0 %v1498_v16  ;;  %6123 = vst [vmem:[#allocation37_spill] sm:$0xff] %v4987_v56  ;;  %vm2468_vm9 = vcmp.gt.f32.partialorder %v2460_v15, 0.0  ;;  %v1716_v16 = vmul.f32 0.2, %v1700_v62  ;;  %vm1708_vm10 = vcmp.gt.f32.partialorder %v1700_v62, 0.0  ;;  %v2004_v27 = vsel %vm1229_vm2, %v4987_v56, -inf }
 0x32c   :  { %v4970_v7 = vpop.permute.xlu1 %2693  ;;  %v2231_v60 = vsel %vm2215_vm7, %v2207_v12, %v2223_v41  ;;  %v2484_v41 = vsel %vm2468_vm9, %v2460_v15, %v2476_v30  ;;  %v1242_v47 = vsel %vm1229_vm2, %v4992_v38, -inf  ;;  %v2475_v45 = vmul.f32 0.2, %v2459_v63 }
 0x32d   :  { %2249 = vmax.xlane.f32.xlu1 %v2248_v26  ;;  %v1471_v26 = vsel %vm1455_vm8, %v1447_v51, %v1463_v1  ;;  %v4999_v12 = vadd.f32 %v2231_v60, %v4937_v14  ;;  %v1969_v51 = vmul.f32 0.2, %v1953_v24  ;;  %v1724_v1 = vsel %vm1708_vm10, %v1700_v62, %v1716_v16 }
 0x32e   :  { %v5006_v32 = vadd.f32 %v1471_v26, %v4982_v36  ;;  %v5013_v15 = vadd.f32 %v2484_v41, %v4937_v14  ;;  %v5018_v26 = vadd.f32 %v1724_v1, %v4982_v36  ;;  %v2483_v56 = vsel %vm2467_vm13, %v2459_v63, %v2475_v45 }
 0x32f   :  { %1752 = vmax.xlane.f32.xlu0 %v1751_v44  ;;  %6124 = vst [vmem:[#allocation38_spill] sm:$0xff] %v4999_v12  ;;  %v5001_v44 = vpop.permute.xlu0 %2946  ;;  %v2257_v60 = vsel %vm1229_vm2, %v4999_v12, -inf  ;;  %v1977_v62 = vsel %vm1961_vm11, %v1953_v24, %v1969_v51 }
 0x330   :  { %6125 = vst [vmem:[#allocation39_spill] sm:$0xff] %v5013_v15  ;;  %v1495_v30 = vsel %vm1229_vm2, %v5006_v32, -inf  ;;  %6126 = vst [vmem:[#allocation40_spill] sm:$0xff] %v5018_v26  ;;  %v5027_v12 = vadd.f32 %v1977_v62, %v4982_v36 }
 0x331   :  { %v1433_v29 = vpop.permute.xlu1 %1432  ;;  %2502 = vmax.xlane.f32.xlu1 %v2501_v0 }
 0x332   :  { %6127 = vst [vmem:[#allocation41_spill] sm:$0xff] %v5027_v12  ;;  %v2001_v51 = vsel %vm1229_vm2, %v5027_v12, -inf }
 0x333   :  { %2005 = vmax.xlane.f32.xlu0 %v2004_v27  ;;  %v2222_v27 = vmul.f32 0.2, %v2206_v33  ;;  %v1178_v16 = vpop.permute.xlu0 %1177 }
 0x334   :  { %v1195_v1 = vadd.f32 %v4654_v53, %v1178_v16  ;;  %v5039_v16 = vadd.f32 %v2483_v56, %v4982_v36 }
 0x335   :  { %1243 = vmax.xlane.f32.xlu1 %v1242_v47  ;;  %v2510_v47 = vsel %vm1229_vm2, %v5013_v15, -inf  ;;  %v2230_v5 = vsel %vm2214_vm12, %v2206_v33, %v2222_v27  ;;  %v1449_v15 = vadd.f32 %v4702_v42, %v1433_v29 }
 0x336   :  { %v1686_v0 = vpop.permute.xlu1 %1685  ;;  %vm1203_vm14 = vcmp.gt.f32.partialorder %v1195_v1, 0.0  ;;  %6129 = vst [vmem:[#allocation43_spill] sm:$0xff] %v5039_v16  ;;  %v2507_v45 = vsel %vm1229_vm2, %v5039_v16, -inf }
 0x337   :  { %2258 = vmax.xlane.f32.xlu0 %v2257_v60  ;;  %v1748_v60 = vsel %vm1229_vm2, %v5018_v26, -inf  ;;  %v1465_v33 = vmul.f32 0.2, %v1449_v15  ;;  %vm1457_vm15 = vcmp.gt.f32.partialorder %v1449_v15, 0.0  ;;  %v1702_v63 = vadd.f32 %v4662_v46, %v1686_v0 }
 0x339   :  { %1496 = vmax.xlane.f32.xlu1 %v1495_v30  ;;  %v5033_v30 = vadd.f32 %v2230_v5, %v4982_v36  ;;  %v1473_v56 = vsel %vm1457_vm15, %v1449_v15, %v1465_v33  ;;  %vm1710_vm0 = vcmp.gt.f32.partialorder %v1702_v63, 0.0 }
 0x33b   :  { %v1939_v41 = vpop.permute.xlu1 %1938  ;;  %2511 = vmax.xlane.f32.xlu0 %v2510_v47  ;;  %6128 = vst [vmem:[#allocation42_spill] sm:$0xff] %v5033_v30  ;;  %v1211_v47 = vmul.f32 0.2, %v1195_v1  ;;  %v2254_v62 = vsel %vm1229_vm2, %v5033_v30, -inf }
 0x33d   :  { %1749 = vmax.xlane.f32.xlu1 %v1748_v60  ;;  %v5044_v60 = vld [vmem:[%s5988_s5 + $0x30] sm:$0xff]  ;;  %v1219_v5 = vsel %vm1203_vm14, %v1195_v1, %v1211_v47  ;;  %v1718_v47 = vmul.f32 0.2, %v1702_v63 }
 0x33e   :  { %v5049_v29 = vadd.f32 %v1219_v5, %v5044_v60  ;;  %v5058_v1 = vadd.f32 %v1473_v56, %v5044_v60 }
 0x340   :  { %v2192_v24 = vpop.permute.xlu1 %2191  ;;  %v1248_v30 = vsel %vm1229_vm2, %v5049_v29, -inf  ;;  %v1501_v0 = vsel %vm1229_vm2, %v5058_v1, -inf }
 0x341   :  { %2002 = vmax.xlane.f32.xlu1 %v2001_v51  ;;  %v2208_v15 = vadd.f32 %v4733_v40, %v2192_v24 }
 0x343   :  { %v2224_v12 = vmul.f32 0.2, %v2208_v15  ;;  %vm2216_vm3 = vcmp.gt.f32.partialorder %v2208_v15, 0.0 }
 0x345   :  { %v2445_v27 = vpop.permute.xlu1 %2444  ;;  %2255 = vmax.xlane.f32.xlu1 %v2254_v62  ;;  %v1955_v62 = vadd.f32 %v4710_v8, %v1939_v41  ;;  %v1726_v41 = vsel %vm1710_vm0, %v1702_v63, %v1718_v47 }
 0x346   :  { %v5068_v56 = vadd.f32 %v1726_v41, %v5044_v60  ;;  %v2461_v48 = vadd.f32 %v4736_v22, %v2445_v27 }
 0x347   :  { %v1971_v5 = vmul.f32 0.2, %v1955_v62  ;;  %vm1963_vm1 = vcmp.gt.f32.partialorder %v1955_v62, 0.0 }
 0x348   :  { %6130 = vst [vmem:[#allocation44_spill] sm:$0xff] %v5068_v56  ;;  %v1754_v63 = vsel %vm1229_vm2, %v5068_v56, -inf  ;;  %v2477_v47 = vmul.f32 0.2, %v2461_v48  ;;  %vm2469_vm5 = vcmp.gt.f32.partialorder %v2461_v48, 0.0 }
 0x349   :  { %2508 = vmax.xlane.f32.xlu1 %v2507_v45  ;;  %v2748_v45 = vsel %vm1229_vm2, %v4697_v58, -inf }
 0x34a   :  { %v5052_v51 = vpop.permute.xlu1 %2697 }
 0x34d   :  { %1249 = vmax.xlane.f32.xlu1 %v1248_v30  ;;  %v1979_v30 = vsel %vm1963_vm1, %v1955_v62, %v1971_v5  ;;  %v5080_v62 = vld [vmem:[%s5988_s5 + $0x38] sm:$0xff]  ;;  %v2711_v5 = vadd.f32 %v4585_v59, %v4863_v11  ;;  %v2485_v11 = vsel %vm2469_vm5, %v2461_v48, %v2477_v47 }
 0x34e   :  { %v5073_v24 = vadd.f32 %v1979_v30, %v5044_v60 }
 0x34f   :  { %v5060_v16 = vpop.permute.xlu1 %2950  ;;  %vm2719_vm7 = vcmp.gt.f32.partialorder %v2711_v5, 0.0 }
 0x350   :  { %6131 = vst [vmem:[#allocation45_spill] sm:$0xff] %v5073_v24  ;;  %v2007_v30 = vsel %vm1229_vm2, %v5073_v24, -inf  ;;  %v5102_v24 = vadd.f32 %v2485_v11, %v5044_v60 }
 0x351   :  { %1502 = vmax.xlane.f32.xlu1 %v1501_v0 }
 0x354   :  { %v1183_v33 = vpop.permute.xlu1 %1182 }
 0x355   :  { %v1196_v57 = vadd.f32 %v4654_v53, %v1183_v33  ;;  %2749 = vmax.xlane.f32.xlu1 %v2748_v45  ;;  %v2232_v53 = vsel %vm2216_vm3, %v2208_v15, %v2224_v12  ;;  %v1690_v45 = vpop.permute.xlu0 %1689  ;;  %v2727_v12 = vmul.f32 0.2, %v2711_v5 }
 0x357   :  { %v1212_v26 = vmul.f32 0.2, %v1196_v57  ;;  %vm1204_vm4 = vcmp.gt.f32.partialorder %v1196_v57, 0.0 }
 0x359   :  { %v1437_v0 = vpop.permute.xlu1 %1436  ;;  %1755 = vmax.xlane.f32.xlu1 %v1754_v63  ;;  %v1220_v27 = vsel %vm1204_vm4, %v1196_v57, %v1212_v26  ;;  %v5093_v57 = vadd.f32 %v2232_v53, %v5044_v60  ;;  %v2196_v47 = vpop.permute.xlu0 %2195  ;;  %v2735_v53 = vsel %vm2719_vm7, %v2711_v5, %v2727_v12  ;;  %v2714_v12 = vadd.f32 %v4585_v59, %v5052_v51 }
 0x35a   :  { %v1450_v41 = vadd.f32 %v4702_v42, %v1437_v0  ;;  %v5086_v33 = vadd.f32 %v1220_v27, %v5080_v62  ;;  %v1703_v42 = vadd.f32 %v4662_v46, %v1690_v45  ;;  %v2513_v45 = vsel %vm1229_vm2, %v5102_v24, -inf }
 0x35b   :  { %v2260_v27 = vsel %vm1229_vm2, %v5093_v57, -inf  ;;  %v2965_v51 = vadd.f32 %v4588_v61, %v4911_v19  ;;  %vm2722_vm11 = vcmp.gt.f32.partialorder %v2714_v12, 0.0  ;;  %v3007_v19 = vsel %vm1229_vm2, %v4815_v21, -inf }
 0x35c   :  { %v1466_v63 = vmul.f32 0.2, %v1450_v41  ;;  %v1251_v56 = vsel %vm1229_vm2, %v5086_v33, -inf  ;;  %vm1458_vm6 = vcmp.gt.f32.partialorder %v1450_v41, 0.0  ;;  %v1719_v48 = vmul.f32 0.2, %v1703_v42 }
 0x35d   :  { %2008 = vmax.xlane.f32.xlu1 %v2007_v30  ;;  %1252 = vmax.xlane.f32.xlu0 %v1251_v56  ;;  %vm1711_vm8 = vcmp.gt.f32.partialorder %v1703_v42, 0.0  ;;  %v2751_v30 = vsel %vm1229_vm2, %v4761_v9, -inf  ;;  %v5116_v5 = vpop.permute.xlu0 %2701  ;;  %vm2973_vm13 = vcmp.gt.f32.partialorder %v2965_v51, 0.0 }
 0x35e   :  { %v1474_v26 = vsel %vm1458_vm6, %v1450_v41, %v1466_v63  ;;  %v1943_v15 = vpop.permute.xlu1 %1942  ;;  %v2712_v41 = vadd.f32 %v4585_v59, %v4900_v3  ;;  %v5114_v63 = vadd.f32 %v2735_v53, %v4822_v37  ;;  %v2754_v3 = vsel %vm1229_vm2, %v4809_v55, -inf }
 0x35f   :  { %v5097_v0 = vadd.f32 %v1474_v26, %v5080_v62  ;;  %v1956_v46 = vadd.f32 %v4710_v8, %v1943_v15  ;;  %v1727_v26 = vsel %vm1711_vm8, %v1703_v42, %v1719_v48  ;;  %v2964_v42 = vadd.f32 %v4588_v61, %v4854_v28 }
 0x360   :  { %v2728_v8 = vmul.f32 0.2, %v2712_v41  ;;  %vm2720_vm10 = vcmp.gt.f32.partialorder %v2712_v41, 0.0  ;;  %v2757_v15 = vsel %vm1229_vm2, %v5114_v63, -inf  ;;  %v3001_v53 = vsel %vm1229_vm2, %v4726_v50, -inf }
 0x361   :  { %2261 = vmax.xlane.f32.xlu1 %v2260_v27  ;;  %v1504_v56 = vsel %vm1229_vm2, %v5097_v0, -inf  ;;  %v1972_v11 = vmul.f32 0.2, %v1956_v46  ;;  %vm1964_vm9 = vcmp.gt.f32.partialorder %v1956_v46, 0.0  ;;  %v5125_v27 = vadd.f32 %v1727_v26, %v5080_v62  ;;  %v1232_v48 = vpop.xlane.xlu0 %1231 }
 0x362   :  { %1505 = vmax.xlane.f32.xlu0 %v1504_v56  ;;  %v2209_v28 = vadd.f32 %v4733_v40, %v2196_v47  ;;  %vm2972_vm12 = vcmp.gt.f32.partialorder %v2964_v42, 0.0 }
 0x363   :  { %v1980_v56 = vsel %vm1964_vm9, %v1956_v46, %v1972_v11  ;;  %v1254_v46 = vsub.f32 %v4675_v34, %v1232_v48  ;;  %v2449_v11 = vpop.permute.xlu1 %2448 }
 0x364   :  { %v5136_v26 = vadd.f32 %v1980_v56, %v5080_v62  ;;  %v2967_v56 = vadd.f32 %v4588_v61, %v5060_v16  ;;  %v2462_v34 = vadd.f32 %v4736_v22, %v2449_v11  ;;  %vm2217_vm14 = vcmp.gt.f32.partialorder %v2209_v28, 0.0 }
 0x365   :  { %2514 = vmax.xlane.f32.xlu1 %v2513_v45  ;;  %v2736_v45 = vsel %vm2720_vm10, %v2712_v41, %v2728_v8  ;;  %v2981_v8 = vmul.f32 0.2, %v2965_v51  ;;  %v5155_v16 = vpop.xlane.xlu0 %1737 }
 0x366   :  { %2752 = vmax.xlane.f32.xlu0 %v2751_v30  ;;  %v2730_v30 = vmul.f32 0.2, %v2714_v12  ;;  %v5143_v41 = vadd.f32 %v2736_v45, %v4982_v36  ;;  %v2010_v40 = vsel %vm1229_vm2, %v5136_v26, -inf  ;;  %vm2975_vm15 = vcmp.gt.f32.partialorder %v2967_v56, 0.0 }
 0x367   :  { %v2989_v22 = vsel %vm2973_vm13, %v2965_v51, %v2981_v8  ;;  %vm2470_vm0 = vcmp.gt.f32.partialorder %v2462_v34, 0.0 }
 0x368   :  { %v2738_v47 = vsel %vm2722_vm11, %v2714_v12, %v2730_v30  ;;  %v2760_v45 = vsel %vm1229_vm2, %v5143_v41, -inf  ;;  %v3004_v12 = vsel %vm1229_vm2, %v4764_v17, -inf }
 0x369   :  { %2755 = vmax.xlane.f32.xlu1 %v2754_v3  ;;  %v1757_v3 = vsel %vm1229_vm2, %v5125_v27, -inf  ;;  %v5153_v21 = vadd.f32 %v2738_v47, %v5044_v60  ;;  %v1488_v47 = vpop.xlane.xlu0 %1487 }
 0x36a   :  { %2758 = vmax.xlane.f32.xlu0 %v2757_v15  ;;  %v2980_v15 = vmul.f32 0.2, %v2964_v42 }
 0x36b   :  { %6132 = vst [vmem:[#allocation46_spill] sm:$0xff] %v5153_v21  ;;  %v2766_v11 = vsel %vm1229_vm2, %v5153_v21, -inf  ;;  %v6156_v21 = vld [vmem:[#allocation40_spill] sm:$0xff] }
 0x36c   :  { %v2988_v48 = vsel %vm2972_vm12, %v2964_v42, %v2980_v15  ;;  %v2713_v42 = vadd.f32 %v4585_v59, %v4970_v7  ;;  %v2478_v15 = vmul.f32 0.2, %v2462_v34 }
 0x36d   :  { %3002 = vmax.xlane.f32.xlu1 %v3001_v53  ;;  %v2225_v53 = vmul.f32 0.2, %v2209_v28  ;;  %v5160_v30 = vadd.f32 %v2988_v48, %v4822_v37 }
 0x36e   :  { %1758 = vmax.xlane.f32.xlu0 %v1757_v3  ;;  %v1262_v3 = vmul.f32 1.442695, %v1254_v46  ;;  %v2729_v8 = vmul.f32 0.2, %v2713_v42  ;;  %vm2721_vm1 = vcmp.gt.f32.partialorder %v2713_v42, 0.0 }
 0x36f   :  { %v2233_v46 = vsel %vm2217_vm14, %v2209_v28, %v2225_v53  ;;  %v3010_v37 = vsel %vm1229_vm2, %v5160_v30, -inf  ;;  %v2966_v28 = vadd.f32 %v4588_v61, %v5001_v44  ;;  %v2486_v53 = vsel %vm2470_vm0, %v2462_v34, %v2478_v15 }
 0x370   :  { %3740 = vpow2.f32 %v1262_v3  ;;  %v5172_v51 = vadd.f32 %v2233_v46, %v5080_v62  ;;  %v2715_v44 = vadd.f32 %v4585_v59, %v5116_v5  ;;  %v2737_v34 = vsel %vm2721_vm1, %v2713_v42, %v2729_v8 }
 0x371   :  { %3008 = vmax.xlane.f32.xlu1 %v3007_v19  ;;  %v2983_v19 = vmul.f32 0.2, %v2967_v56  ;;  %vm2974_vm3 = vcmp.gt.f32.partialorder %v2966_v28, 0.0  ;;  %v5195_v46 = vadd.f32 %v2737_v34, %v4937_v14 }
 0x372   :  { %2011 = vmax.xlane.f32.xlu0 %v2010_v40  ;;  %v5167_v40 = vadd.f32 %v2989_v22, %v4982_v36  ;;  %v2263_v3 = vsel %vm1229_vm2, %v5172_v51, -inf  ;;  %vm2723_vm4 = vcmp.gt.f32.partialorder %v2715_v44, 0.0 }
 0x373   :  { %v2991_v7 = vsel %vm2975_vm15, %v2967_v56, %v2983_v19  ;;  %v2982_v56 = vmul.f32 0.2, %v2966_v28  ;;  %v1994_v19 = vpop.xlane.xlu0 %1993 }
 0x374   :  { %v3013_v36 = vsel %vm1229_vm2, %v5167_v40, -inf  ;;  %v5179_v48 = vadd.f32 %v2991_v7, %v5044_v60  ;;  %v2763_v7 = vsel %vm1229_vm2, %v5195_v46, -inf }
 0x375   :  { %2761 = vmax.xlane.f32.xlu1 %v2760_v45  ;;  %v5184_v45 = vadd.f32 %v2486_v53, %v5080_v62  ;;  %v2990_v5 = vsel %vm2974_vm3, %v2966_v28, %v2982_v56 }
 0x376   :  { %3005 = vmax.xlane.f32.xlu0 %v3004_v12  ;;  %6133 = vst [vmem:[#allocation47_spill] sm:$0xff] %v5179_v48  ;;  %v2955_v12 = vpop.permute.xlu1 %2954  ;;  %v3019_v60 = vsel %vm1229_vm2, %v5179_v48, -inf  ;;  %v5205_v8 = vadd.f32 %v2990_v5, %v4937_v14  ;;  %v6154_v48 = vld [vmem:[#allocation26_spill] sm:$0xff] }
 0x377   :  { %v2516_v15 = vsel %vm1229_vm2, %v5184_v45, -inf  ;;  %v2968_v59 = vadd.f32 %v4588_v61, %v2955_v12 }
 0x378   :  { %6134 = vst [vmem:[#allocation48_spill] sm:$0xff] %v5205_v8  ;;  %v3016_v61 = vsel %vm1229_vm2, %v5205_v8, -inf }
 0x379   :  { %2767 = vmax.xlane.f32.xlu1 %v2766_v11  ;;  %v2731_v11 = vmul.f32 0.2, %v2715_v44  ;;  %v2984_v53 = vmul.f32 0.2, %v2968_v59  ;;  %vm2976_vm5 = vcmp.gt.f32.partialorder %v2968_v59, 0.0 }
 0x37a   :  { %3011 = vmax.xlane.f32.xlu0 %v3010_v37  ;;  %v5190_v22 = vpop.eup %3740  ;;  %v5200_v37 = vpop.xlane.xlu0 %2246 }
 0x37b   :  { %v1278_v42 = vsel %vm1229_vm2, %v5190_v22, 0.0 }
 0x37d   :  { %3014 = vmax.xlane.f32.xlu1 %v3013_v36  ;;  %v2739_v36 = vsel %vm2723_vm4, %v2715_v44, %v2731_v11 }
 0x37e   :  { %2264 = vmax.xlane.f32.xlu0 %v2263_v3  ;;  %v5210_v28 = vadd.f32 %v2739_v36, %v5080_v62  ;;  %v2992_v3 = vsel %vm2976_vm5, %v2968_v59, %v2984_v53  ;;  %v5212_v56 = vpop.xlane.xlu0 %2499  ;;  %v1760_v59 = vsub.f32 %v4685_v23, %v5155_v16 }
 0x37f   :  { %v5217_v14 = vadd.f32 %v2992_v3, %v5080_v62 }
 0x380   :  { %6135 = vst [vmem:[#allocation49_spill] sm:$0xff] %v5210_v28  ;;  %v2769_v34 = vsel %vm1229_vm2, %v5210_v28, -inf  ;;  %v1768_v53 = vmul.f32 1.442695, %v1760_v59 }
 0x381   :  { %3020 = vmax.xlane.f32.xlu1 %v3019_v60  ;;  %6136 = vst [vmem:[#allocation50_spill] sm:$0xff] %v5217_v14  ;;  %v3022_v44 = vsel %vm1229_vm2, %v5217_v14, -inf }
 0x382   :  { %2517 = vmax.xlane.f32.xlu0 %v2516_v15  ;;  %v1238_v12 = vpop.xlane.xlu0 %1237  ;;  %v1508_v15 = vsub.f32 %v4723_v25, %v1488_v47 }
 0x384   :  { %v1517_v5 = vmul.f32 1.442695, %v1508_v15 }
 0x385   :  { %1279 = vadd.xlane.f32.xlu1 %v1278_v42  ;;  %v2014_v42 = vsub.f32 %v4741_v54, %v1994_v19 }
 0x386   :  { %2764 = vmax.xlane.f32.xlu0 %v2763_v7  ;;  %v5221_v60 = vpop.xlane.xlu0 %1743  ;;  %3742 = vpow2.f32 %v1517_v5  ;;  %v1256_v5 = vsub.f32 %v4778_v31, %v1238_v12 }
 0x387   :  { %v2023_v3 = vmul.f32 1.442695, %v2014_v42 }
 0x38a   :  { %3017 = vmax.xlane.f32.xlu0 %v3016_v61  ;;  %v1241_v11 = vpop.xlane.xlu0 %1240 }
 0x38e   :  { %2770 = vmax.xlane.f32.xlu0 %v2769_v34  ;;  %v1494_v36 = vpop.xlane.xlu0 %1493 }
 0x390   :  { %v5234_v59 = vpop.eup %3742 }
 0x392   :  { %3023 = vmax.xlane.f32.xlu0 %v3022_v44  ;;  %v5229_v23 = vpop.xlane.xlu0 %1746 }
 0x396   :  { %v5237_v42 = vpop.xlane.xlu0 %1999 }
 0x39a   :  { %v1485_v7 = vpop.xlane.xlu1 %1484 }
 0x39b   :  { %v1507_v62 = vsub.f32 %v4874_v20, %v1485_v7  ;;  %v1257_v20 = vsub.f32 %v4826_v6, %v1241_v11  ;;  %v1266_v11 = vmul.f32 1.442695, %v1256_v5  ;;  %v2267_v5 = vsub.f32 %v4750_v10, %v5200_v37 }
 0x39c   :  { %v2520_v10 = vsub.f32 %v4757_v52, %v5212_v56  ;;  %v6138_v56 = vld [vmem:[#allocation33_spill] sm:$0xff] }
 0x39d   :  { %v1515_v61 = vmul.f32 1.442695, %v1507_v62  ;;  %v1268_v62 = vmul.f32 1.442695, %v1257_v20 }
 0x39e   :  { %v1991_v34 = vpop.xlane.xlu1 %1990  ;;  %v2529_v52 = vmul.f32 1.442695, %v2520_v10 }
 0x39f   :  { %3744 = vpow2.f32 %v1515_v61  ;;  %v2013_v44 = vsub.f32 %v4883_v13, %v1991_v34  ;;  %v1510_v34 = vsub.f32 %v4832_v43, %v1494_v36 }
 0x3a0   :  { %3746 = vpow2.f32 %v1768_v53 }
 0x3a1   :  { %v2021_v25 = vmul.f32 1.442695, %v2013_v44  ;;  %3748 = vpow2.f32 %v2023_v3  ;;  %v1521_v20 = vmul.f32 1.442695, %v1510_v34 }
 0x3a2   :  { %v2244_v47 = vpop.xlane.xlu1 %2243 }
 0x3a3   :  { %3750 = vpow2.f32 %v2021_v25  ;;  %v2266_v54 = vsub.f32 %v4896_v4, %v2244_v47  ;;  %v5254_v47 = vpop.xlane.xlu0 %2252 }
 0x3a5   :  { %v2274_v16 = vmul.f32 1.442695, %v2266_v54 }
 0x3a6   :  { %v2497_v19 = vpop.xlane.xlu1 %2496 }
 0x3a7   :  { %v2519_v15 = vsub.f32 %v4905_v35, %v2497_v19  ;;  %3752 = vpow2.f32 %v2274_v16 }
 0x3a9   :  { %v3745_v13 = vpop.eup %3744  ;;  %v2527_v7 = vmul.f32 1.442695, %v2519_v15 }
 0x3aa   :  { %v1235_v53 = vpop.xlane.xlu1 %1234  ;;  %v1531_v61 = vsel %vm1229_vm2, %v3745_v13, 0.0  ;;  %v1555_v4 = vpack.c.bf16 %v5234_v59, %v3745_v13  ;;  %v5241_v3 = vpop.eup %3746 }
 0x3ab   :  { %v1255_v6 = vsub.f32 %v4916_v2, %v1235_v53  ;;  %1532 = vadd.xlane.f32.xlu1 %v1531_v61  ;;  %v5244_v35 = vpop.eup %3748  ;;  %3754 = vpow2.f32 %v2527_v7  ;;  %v1784_v25 = vsel %vm1229_vm2, %v5241_v3, 0.0  ;;  %v5264_v13 = vpop.xlane.xlu0 %2505 }
 0x3ac   :  { %3441 = vmatprep.mubr.msk.bf16.mxu0 %vm1229_vm2, %v1555_v4  ;;  %3756 = vpow2.f32 %v1268_v62  ;;  %v2276_v4 = vmul.f32 1.442695, %v2267_v5 }
 0x3ad   :  { %v5247_v31 = vpop.eup %3750  ;;  %v1264_v12 = vmul.f32 1.442695, %v1255_v6 }
 0x3ae   :  { %v1741_v44 = vpop.xlane.xlu1 %1740  ;;  %v2037_v43 = vsel %vm1229_vm2, %v5247_v31, 0.0 }
 0x3af   :  { %3758 = vpow2.f32 %v1264_v12  ;;  %v1761_v54 = vsub.f32 %v4919_v18, %v1741_v44  ;;  %1785 = vadd.xlane.f32.xlu1 %v1784_v25 }
 0x3b0   :  { %3760 = vpow2.f32 %v1266_v11 }
 0x3b1   :  { %v1770_v16 = vmul.f32 1.442695, %v1761_v54  ;;  %v5259_v36 = vpop.eup %3752 }
 0x3b2   :  { %v1491_v19 = vpop.xlane.xlu1 %1490  ;;  %v2290_v62 = vsel %vm1229_vm2, %v5259_v36, 0.0 }
 0x3b3   :  { %v1509_v15 = vsub.f32 %v4930_v39, %v1491_v19  ;;  %2038 = vadd.xlane.f32.xlu1 %v2037_v43  ;;  %3762 = vpow2.f32 %v1770_v16  ;;  %v1247_v37 = vpop.xlane.xlu0 %1246  ;;  %v6139_v16 = vld [vmem:[#allocation2_spill] sm:$0xff] }
 0x3b4   :  { %3764 = vpow2.f32 %v1521_v20  ;;  %v1259_v54 = vsub.f32 %v6138_v56, %v1247_v37  ;;  %v2040_v56 = vsel %vm1229_vm2, %v5244_v35, 0.0 }
 0x3b5   :  { %v1519_v18 = vmul.f32 1.442695, %v1509_v15  ;;  %v5270_v53 = vpop.eup %3754  ;;  %v6140_v15 = vld [vmem:[#allocation4_spill] sm:$0xff] }
 0x3b6   :  { %v5266_v7 = vpop.xlane.xlu1 %1996  ;;  %v5272_v61 = vpop.eup %3756  ;;  %v2543_v34 = vsel %vm1229_vm2, %v5270_v53, 0.0 }
 0x3b7   :  { %3766 = vpow2.f32 %v1519_v18  ;;  %2291 = vadd.xlane.f32.xlu1 %v2290_v62  ;;  %6137 = vst [vmem:[#allocation51_spill] sm:$0xff] %v5272_v61 }
 0x3b8   :  { %3768 = vpow2.f32 %v2276_v4  ;;  %v1500_v43 = vpop.xlane.xlu0 %1499 }
 0x3b9   :  { %v3759_v39 = vpop.eup %3758  ;;  %3770 = vpow2.f32 %v2529_v52  ;;  %v1512_v4 = vsub.f32 %v4957_v49, %v1500_v43  ;;  %v6144_v49 = vld [vmem:[#allocation5_spill] sm:$0xff]  ;;  %v6146_v43 = vld [vmem:[#allocation8_spill] sm:$0xff] }
 0x3ba   :  { %v5276_v6 = vpop.eup %3760  ;;  %v5278_v11 = vpop.xlane.xlu1 %2249  ;;  %v1281_v12 = vsel %vm1229_vm2, %v3759_v39, 0.0  ;;  %v1302_v44 = vpack.c.bf16 %v3759_v39, %v5190_v22  ;;  %v1534_v22 = vsel %vm1229_vm2, %v5234_v59, 0.0  ;;  %v1272_v39 = vmul.f32 1.442695, %v1259_v54 }
 0x3bb   :  { %1282 = vadd.xlane.f32.xlu0 %v1281_v12  ;;  %2544 = vadd.xlane.f32.xlu1 %v2543_v34  ;;  %v1303_v25 = vpack.c.bf16 %v5272_v61, %v5276_v6  ;;  %v6142_v12 = vld [vmem:[#allocation6_spill] sm:$0xff]  ;;  %v1762_v61 = vsub.f32 %v6154_v48, %v5221_v60 }
 0x3bc   :  { %3425 = vmatprep.mubr.msk.bf16.mxu1 %vm1229_vm2, %v1302_v44  ;;  %v6143_v44 = vld [vmem:[#allocation3_spill] sm:$0xff]  ;;  %3772 = vpow2.f32 %v1272_v39 }
 0x3bd   :  { %3426 = vmatmul.mubr.msk.bf16.vlgmr.msra.gmra.mrb[40].mxu1 %vm1229_vm2, %v1303_v25  ;;  %v5294_v19 = vpop.eup %3762  ;;  %v1525_v25 = vmul.f32 1.442695, %v1512_v4  ;;  %v6147_v4 = vld [vmem:[#allocation7_spill] sm:$0xff] }
 0x3be   :  { %3450 = vmatpush3.bf16.msra.mxu1 %v6139_v16  ;;  %v5290_v20 = vpop.xlane.xlu1 %2502  ;;  %v5297_v5 = vpop.eup %3764  ;;  %v1787_v10 = vsel %vm1229_vm2, %v5294_v19, 0.0  ;;  %v6145_v16 = vld [vmem:[#allocation10_spill] sm:$0xff] }
 0x3bf   :  { %3451 = vmatprep.subr.bf16.mxu1 %v6140_v15  ;;  %1535 = vadd.xlane.f32.xlu0 %v1534_v22  ;;  %6141 = vst [vmem:[#allocation33_spill] sm:$0xff] %v5297_v5 }
 0x3c1   :  { %v5299_v18 = vpop.eup %3766 }
 0x3c2   :  { %v1556_v62 = vpack.c.bf16 %v5297_v5, %v5299_v18  ;;  %3452 = vmatpush3.bf16.msra.mxu1 %v6140_v15  ;;  %v1244_v59 = vpop.xlane.xlu1 %1243  ;;  %v5315_v54 = vpop.eup %3768 }
 0x3c3   :  { %v1258_v37 = vsub.f32 %v4992_v38, %v1244_v59  ;;  %3453 = vmatprep.subr.bf16.mxu1 %v6142_v12  ;;  %1788 = vadd.xlane.f32.xlu0 %v1787_v10  ;;  %v5324_v39 = vpop.eup %3770 }
 0x3c4   :  { %3442 = vmatmul.mubr.msk.bf16.vlgmr.msra.gmra.mrb[44].mxu0 %vm1229_vm2, %v1556_v62  ;;  %v2293_v62 = vsel %vm1229_vm2, %v5315_v54, 0.0  ;;  %v2546_v10 = vsel %vm1229_vm2, %v5324_v39, 0.0 }
 0x3c5   :  { %v1270_v34 = vmul.f32 1.442695, %v1258_v37  ;;  %3466 = vmatpush3.bf16.msra.mxu0 %v6143_v44 }
 0x3c6   :  { %3454 = vmatpush3.bf16.msra.mxu1 %v6142_v12  ;;  %3467 = vmatprep.subr.bf16.mxu0 %v6144_v49  ;;  %v1497_v52 = vpop.xlane.xlu1 %1496  ;;  %v5333_v37 = vpop.eup %3772 }
 0x3c7   :  { %3774 = vpow2.f32 %v1270_v34  ;;  %v1511_v38 = vsub.f32 %v5006_v32, %v1497_v52  ;;  %3455 = vmatprep.subr.bf16.mxu1 %v6145_v16  ;;  %2041 = vadd.xlane.f32.xlu0 %v2040_v56  ;;  %v6148_v32 = vld [vmem:[#allocation12_spill] sm:$0xff]  ;;  %6149 = vst [vmem:[#allocation2_spill] sm:$0xff] %v5333_v37  ;;  %v6151_v34 = vld [vmem:[#allocation9_spill] sm:$0xff]  ;;  %v1753_v52 = vpop.xlane.xlu0 %1752 }
 0x3c8   :  { %3776 = vpow2.f32 %v1525_v25 }
 0x3c9   :  { %v1523_v22 = vmul.f32 1.442695, %v1511_v38  ;;  %3468 = vmatpush3.bf16.msra.mxu0 %v6144_v49 }
 0x3ca   :  { %3456 = vmatpush3.bf16.msra.mxu1 %v6145_v16  ;;  %3469 = vmatprep.subr.bf16.mxu0 %v6146_v43  ;;  %v1750_v15 = vpop.xlane.xlu1 %1749 }
 0x3cb   :  { %3778 = vpow2.f32 %v1523_v22  ;;  %3481 = vmatprep.subr.bf16.mxu1 %v6147_v4  ;;  %2294 = vadd.xlane.f32.xlu0 %v2293_v62  ;;  %v2006_v22 = vpop.xlane.xlu0 %2005 }
 0x3cd   :  { %3470 = vmatpush3.bf16.msra.mxu0 %v6146_v43 }
 0x3ce   :  { %3471 = vmatprep.subr.bf16.mxu0 %v6148_v32  ;;  %v5329_v59 = vpop.xlane.xlu1 %2002 }
 0x3cf   :  { %2547 = vadd.xlane.f32.xlu0 %v2546_v10 }
 0x3d1   :  { %v5335_v12 = vpop.eup %3774  ;;  %3472 = vmatpush3.bf16.msra.mxu0 %v6148_v32  ;;  %v5353_v32 = vpop.xlane.xlu0 %2258 }
 0x3d2   :  { %6150 = vst [vmem:[#allocation4_spill] sm:$0xff] %v5335_v12  ;;  %3497 = vmatprep.subr.bf16.mxu0 %v6151_v34  ;;  %v5339_v44 = vpop.xlane.xlu1 %2255  ;;  %v1304_v25 = vpack.c.bf16 %v5333_v37, %v5335_v12  ;;  %v5343_v49 = vpop.eup %3776 }
 0x3d3   :  { %6152 = vst [vmem:[#allocation6_spill] sm:$0xff] %v5343_v49 }
 0x3d4   :  { %3429 = vmatprep.mubr.msk.bf16.mxu1 %vm1229_vm2, %v1304_v25 }
 0x3d5   :  { %v5346_v56 = vpop.eup %3778  ;;  %v5356_v12 = vpop.xlane.xlu0 %2511 }
 0x3d6   :  { %6153 = vst [vmem:[#allocation3_spill] sm:$0xff] %v5346_v56  ;;  %v5348_v38 = vpop.xlane.xlu1 %2508  ;;  %v1557_v16 = vpack.c.bf16 %v5343_v49, %v5346_v56 }
 0x3d8   :  { %3445 = vmatprep.mubr.msk.bf16.mxu0 %vm1229_vm2, %v1557_v16 }
 0x3da   :  { %v1250_v43 = vpop.xlane.xlu1 %1249 }
 0x3db   :  { %v1260_v14 = vsub.f32 %v5049_v29, %v1250_v43  ;;  %v1764_v29 = vsub.f32 %v6156_v21, %v1750_v15  ;;  %v6160_v15 = vld [vmem:[#allocation29_spill] sm:$0xff] }
 0x3dd   :  { %v1274_v56 = vmul.f32 1.442695, %v1260_v14 }
 0x3de   :  { %v1503_v62 = vpop.xlane.xlu1 %1502 }
 0x3df   :  { %v1513_v16 = vsub.f32 %v5058_v1, %v1503_v62 }
 0x3e2   :  { %v2750_v10 = vpop.xlane.xlu1 %2749 }
 0x3e3   :  { %v2772_v2 = vsub.f32 %v4697_v58, %v2750_v10  ;;  %v6155_v58 = vld [vmem:[#allocation28_spill] sm:$0xff] }
 0x3e5   :  { %v2780_v37 = vmul.f32 1.442695, %v2772_v2  ;;  %v1763_v2 = vsub.f32 %v6155_v58, %v5229_v23 }
 0x3e6   :  { %v1756_v25 = vpop.xlane.xlu1 %1755 }
 0x3e7   :  { %3780 = vpow2.f32 %v2780_v37  ;;  %v1527_v37 = vmul.f32 1.442695, %v1513_v16  ;;  %v1774_v48 = vmul.f32 1.442695, %v1763_v2  ;;  %v6162_v2 = vld [vmem:[#allocation37_spill] sm:$0xff] }
 0x3e8   :  { %3782 = vpow2.f32 %v1274_v56  ;;  %v1776_v56 = vmul.f32 1.442695, %v1764_v29 }
 0x3ea   :  { %v5359_v5 = vpop.xlane.xlu1 %2008  ;;  %v1253_v49 = vpop.xlane.xlu0 %1252 }
 0x3eb   :  { %v1261_v28 = vsub.f32 %v5086_v33, %v1253_v49  ;;  %v1772_v33 = vmul.f32 1.442695, %v1762_v61  ;;  %v6158_v49 = vld [vmem:[#allocation35_spill] sm:$0xff]  ;;  %v6161_v61 = vld [vmem:[#allocation41_spill] sm:$0xff] }
 0x3ec   :  { %v1765_v62 = vsub.f32 %v6158_v49, %v1753_v52  ;;  %v2017_v52 = vsub.f32 %v6161_v61, %v5329_v59  ;;  %v6163_v49 = vld [vmem:[#allocation44_spill] sm:$0xff] }
 0x3ed   :  { %v1276_v8 = vmul.f32 1.442695, %v1261_v28  ;;  %v6159_v28 = vld [vmem:[#allocation32_spill] sm:$0xff] }
 0x3ee   :  { %v5367_v10 = vpop.xlane.xlu1 %2261  ;;  %v2015_v60 = vsub.f32 %v6159_v28, %v5266_v7  ;;  %v1778_v7 = vmul.f32 1.442695, %v1765_v62  ;;  %v1766_v28 = vsub.f32 %v6163_v49, %v1756_v25  ;;  %v6164_v25 = vld [vmem:[#allocation45_spill] sm:$0xff] }
 0x3ef   :  { %v1506_v43 = vpop.xlane.xlu0 %1505  ;;  %3784 = vpow2.f32 %v1276_v8  ;;  %v2016_v8 = vsub.f32 %v6160_v15, %v5237_v42 }
 0x3f0   :  { %v1514_v14 = vsub.f32 %v5097_v0, %v1506_v43  ;;  %3786 = vpow2.f32 %v1527_v37  ;;  %v2018_v43 = vsub.f32 %v6162_v2, %v2006_v22  ;;  %v1780_v22 = vmul.f32 1.442695, %v1766_v28 }
 0x3f1   :  { %v5371_v1 = vpop.eup %3780  ;;  %v2027_v29 = vmul.f32 1.442695, %v2016_v8  ;;  %v1808_v8 = vpack.c.bf16 %v5294_v19, %v5241_v3  ;;  %v6167_v19 = vld [vmem:[#allocation42_spill] sm:$0xff] }
 0x3f2   :  { %6157 = vst [vmem:[#allocation5_spill] sm:$0xff] %v5371_v1  ;;  %v1529_v23 = vmul.f32 1.442695, %v1514_v14  ;;  %v5376_v58 = vpop.xlane.xlu1 %2514  ;;  %v2796_v21 = vsel %vm1229_vm2, %v5371_v1, 0.0  ;;  %v2025_v14 = vmul.f32 1.442695, %v2015_v60  ;;  %v5391_v59 = vpop.eup %3782 }
 0x3f3   :  { %2797 = vadd.xlane.f32.xlu1 %v2796_v21  ;;  %v2753_v0 = vpop.xlane.xlu0 %2752  ;;  %v2029_v21 = vmul.f32 1.442695, %v2017_v52 }
 0x3f4   :  { %3788 = vpow2.f32 %v1529_v23  ;;  %v2773_v16 = vsub.f32 %v4761_v9, %v2753_v0  ;;  %v2031_v9 = vmul.f32 1.442695, %v2018_v43  ;;  %v6165_v0 = vld [vmem:[#allocation34_spill] sm:$0xff] }
 0x3f5   :  { %3790 = vpow2.f32 %v1772_v33  ;;  %v2268_v61 = vsub.f32 %v6165_v0, %v5278_v11  ;;  %v2270_v11 = vsub.f32 %v6167_v19, %v5339_v44 }
 0x3f6   :  { %3792 = vpow2.f32 %v1774_v48  ;;  %v2782_v1 = vmul.f32 1.442695, %v2773_v16  ;;  %v5387_v42 = vpop.xlane.xlu1 %2755  ;;  %v2019_v48 = vsub.f32 %v6164_v25, %v5359_v5  ;;  %v6166_v5 = vld [vmem:[#allocation30_spill] sm:$0xff] }
 0x3f7   :  { %3794 = vpow2.f32 %v1776_v56  ;;  %v5389_v37 = vpop.xlane.xlu0 %2758  ;;  %v2269_v16 = vsub.f32 %v6166_v5, %v5254_v47 }
 0x3f8   :  { %3796 = vpow2.f32 %v2782_v1  ;;  %v2033_v2 = vmul.f32 1.442695, %v2019_v48  ;;  %v6170_v48 = vld [vmem:[#allocation38_spill] sm:$0xff] }
 0x3f9   :  { %3798 = vpow2.f32 %v1778_v7  ;;  %v5393_v33 = vpop.eup %3784 }
 0x3fa   :  { %3800 = vpow2.f32 %v2025_v14  ;;  %v3003_v62 = vpop.xlane.xlu1 %3002  ;;  %v1305_v15 = vpack.c.bf16 %v5393_v33, %v5391_v59  ;;  %v5403_v56 = vpop.eup %3786 }
 0x3fb   :  { %3802 = vpow2.f32 %v2027_v29  ;;  %v3025_v60 = vsub.f32 %v4726_v50, %v3003_v62  ;;  %v1759_v23 = vpop.xlane.xlu0 %1758  ;;  %v2278_v29 = vmul.f32 1.442695, %v2268_v61  ;;  %v6169_v62 = vld [vmem:[#allocation31_spill] sm:$0xff] }
 0x3fc   :  { %3804 = vpow2.f32 %v2029_v21  ;;  %v1767_v1 = vsub.f32 %v5125_v27, %v1759_v23  ;;  %3430 = vmatmul.mubr.msk.bf16.gmra.mrb[44].mxu1 %vm1229_vm2, %v1305_v15  ;;  %v6168_v21 = vld [vmem:[#allocation36_spill] sm:$0xff]  ;;  %v2522_v25 = vsub.f32 %v6169_v62, %v5264_v13 }
 0x3fd   :  { %3806 = vpow2.f32 %v2031_v9  ;;  %v3033_v52 = vmul.f32 1.442695, %v3025_v60  ;;  %3457 = vmatprep.mubr.msk.bf16.mxu1 %vm1229_vm2, %v1808_v8  ;;  %v2521_v9 = vsub.f32 %v6168_v21, %v5290_v20  ;;  %v2271_v60 = vsub.f32 %v6170_v48, %v5353_v32  ;;  %v6172_v32 = vld [vmem:[#allocation43_spill] sm:$0xff] }
 0x3fe   :  { %v5408_v50 = vpop.eup %3788  ;;  %3808 = vpow2.f32 %v1780_v22  ;;  %v1782_v7 = vmul.f32 1.442695, %v1767_v1  ;;  %v5413_v27 = vpop.xlane.xlu1 %3008  ;;  %v2280_v22 = vmul.f32 1.442695, %v2269_v16  ;;  %v2282_v1 = vmul.f32 1.442695, %v2270_v11 }
 0x3ff   :  { %v5415_v3 = vpop.eup %3790  ;;  %3810 = vpow2.f32 %v3033_v52  ;;  %v2012_v43 = vpop.xlane.xlu0 %2011  ;;  %v1558_v14 = vpack.c.bf16 %v5408_v50, %v5403_v56  ;;  %v2523_v61 = vsub.f32 %v6172_v32, %v5348_v38  ;;  %v2531_v16 = vmul.f32 1.442695, %v2521_v9  ;;  %v6173_v38 = vld [vmem:[#allocation39_spill] sm:$0xff] }
 0x400   :  { %v5421_v49 = vpop.eup %3792  ;;  %3812 = vpow2.f32 %v1782_v7  ;;  %v2020_v47 = vsub.f32 %v5136_v26, %v2012_v43  ;;  %v6171_v26 = vpack.c.bf16 %v5244_v35, %v5247_v31  ;;  %v2284_v19 = vmul.f32 1.442695, %v2271_v60 }
 0x401   :  { %v5424_v28 = vpop.eup %3794  ;;  %3446 = vmatmul.mubr.msk.bf16.gmra.mrb[48].mxu0 %vm1229_vm2, %v1558_v14  ;;  %v1809_v20 = vpack.c.bf16 %v5421_v49, %v5415_v3  ;;  %3814 = vpow2.f32 %v2033_v2  ;;  %v2524_v11 = vsub.f32 %v6173_v38, %v5356_v12  ;;  %v2533_v43 = vmul.f32 1.442695, %v2522_v25 }
 0x402   :  { %v5429_v44 = vpop.eup %3796  ;;  %v2035_v23 = vmul.f32 1.442695, %v2020_v47  ;;  %3473 = vmatprep.mubr.msk.bf16.mxu0 %vm1229_vm2, %v6171_v26  ;;  %v5449_v35 = vpop.xlane.xlu1 %2761  ;;  %v2272_v47 = vsub.f32 %v5093_v57, %v5367_v10  ;;  %v2535_v9 = vmul.f32 1.442695, %v2523_v61  ;;  %v2525_v60 = vsub.f32 %v5102_v24, %v5376_v58 }
 0x403   :  { %v5439_v15 = vpop.eup %3798  ;;  %v3006_v8 = vpop.xlane.xlu0 %3005  ;;  %v2799_v13 = vsel %vm1229_vm2, %v5429_v44, 0.0  ;;  %v2537_v57 = vmul.f32 1.442695, %v2524_v11  ;;  %v2314_v24 = vpack.c.bf16 %v5315_v54, %v5259_v36  ;;  %v2775_v32 = vsub.f32 %v5114_v63, %v5389_v37  ;;  %v6177_v54 = vld [vmem:[#allocation18_spill] sm:$0xff] }
 0x404   :  { %v5445_v0 = vpop.eup %3800  ;;  %3816 = vpow2.f32 %v2035_v23  ;;  %v3026_v31 = vsub.f32 %v4764_v17, %v3006_v8  ;;  %2800 = vadd.xlane.f32.xlu0 %v2799_v13  ;;  %v1810_v52 = vpack.c.bf16 %v5439_v15, %v5424_v28  ;;  %3458 = vmatmul.mubr.msk.bf16.vlgmr.msra.gmra.mrb[48].mxu1 %vm1229_vm2, %v1809_v20  ;;  %v2286_v48 = vmul.f32 1.442695, %v2272_v47  ;;  %v6175_v23 = vld [vmem:[#allocation14_spill] sm:$0xff] }
 0x405   :  { %v5454_v5 = vpop.eup %3802  ;;  %3818 = vpow2.f32 %v2278_v29  ;;  %3482 = vmatpush3.bf16.msra.mxu1 %v6147_v4  ;;  %v6174_v29 = vld [vmem:[#allocation11_spill] sm:$0xff]  ;;  %v2774_v13 = vsub.f32 %v4809_v55, %v5387_v42  ;;  %v2539_v42 = vmul.f32 1.442695, %v2525_v60  ;;  %v2776_v36 = vsub.f32 %v5143_v41, %v5449_v35 }
 0x406   :  { %v5457_v7 = vpop.eup %3804  ;;  %3820 = vpow2.f32 %v2280_v22  ;;  %v3035_v2 = vmul.f32 1.442695, %v3026_v31  ;;  %3461 = vmatprep.mubr.msk.bf16.mxu1 %vm1229_vm2, %v1810_v52  ;;  %v2062_v14 = vpack.c.bf16 %v5454_v5, %v5445_v0  ;;  %3483 = vmatprep.subr.bf16.mxu1 %v6174_v29  ;;  %v5481_v10 = vpop.xlane.xlu1 %2767  ;;  %v6179_v35 = vld [vmem:[#allocation27_spill] sm:$0xff]  ;;  %v2567_v11 = vpack.c.bf16 %v5324_v39, %v5270_v53 }
 0x407   :  { %v5463_v17 = vpop.eup %3806  ;;  %3822 = vpow2.f32 %v2282_v1  ;;  %v5470_v21 = vpop.xlane.xlu0 %3011  ;;  %v6176_v1 = vld [vmem:[#allocation13_spill] sm:$0xff]  ;;  %v2784_v41 = vmul.f32 1.442695, %v2774_v13  ;;  %v3027_v38 = vsub.f32 %v6179_v35, %v5413_v27  ;;  %v2788_v53 = vmul.f32 1.442695, %v2776_v36  ;;  %v6180_v39 = vld [vmem:[#allocation15_spill] sm:$0xff] }
 0x408   :  { %v5472_v12 = vpop.eup %3808  ;;  %3824 = vpow2.f32 %v3035_v2  ;;  %v2063_v22 = vpack.c.bf16 %v5463_v17, %v5457_v7  ;;  %v1537_v2 = vsel %vm1229_vm2, %v5299_v18, 0.0  ;;  %v3028_v47 = vsub.f32 %v5160_v30, %v5470_v21  ;;  %v6187_v35 = vld [vmem:[#allocation47_spill] sm:$0xff] }
 0x409   :  { %v5474_v4 = vpop.eup %3810  ;;  %3826 = vpow2.f32 %v2531_v16  ;;  %3474 = vmatmul.mubr.msk.bf16.vlgmr.msra.gmra.mrb[52].mxu0 %vm1229_vm2, %v2062_v14  ;;  %3484 = vmatpush3.bf16.msra.mxu1 %v6174_v29 }
 0x40a   :  { %v5479_v62 = vpop.eup %3812  ;;  %3828 = vpow2.f32 %v2284_v19  ;;  %3498 = vmatpush3.bf16.msra.mxu0 %v6151_v34  ;;  %v3049_v25 = vsel %vm1229_vm2, %v5474_v4, 0.0  ;;  %3485 = vmatprep.subr.bf16.mxu1 %v6175_v23  ;;  %v3015_v52 = vpop.xlane.xlu1 %3014 }
 0x40b   :  { %3830 = vpow2.f32 %v2533_v43  ;;  %3477 = vmatprep.mubr.msk.bf16.mxu0 %vm1229_vm2, %v2063_v22  ;;  %v2265_v26 = vpop.xlane.xlu0 %2264  ;;  %v1811_v20 = vpack.c.bf16 %v5479_v62, %v5472_v12  ;;  %3499 = vmatprep.subr.bf16.mxu0 %v6176_v1  ;;  %v5495_v8 = vpop.eup %3814  ;;  %v3029_v18 = vsub.f32 %v5167_v40, %v3015_v52  ;;  %v3037_v40 = vmul.f32 1.442695, %v3027_v38 }
 0x40c   :  { %3832 = vpow2.f32 %v2535_v9  ;;  %3050 = vadd.xlane.f32.xlu1 %v3049_v25  ;;  %v2273_v34 = vsub.f32 %v5172_v51, %v2265_v26  ;;  %v1284_v51 = vsel %vm1229_vm2, %v5276_v6, 0.0  ;;  %v6178_v6 = vld [vmem:[#allocation16_spill] sm:$0xff] }
 0x40d   :  { %3462 = vmatmul.mubr.msk.bf16.gmra.mrb[52].mxu1 %vm1229_vm2, %v1811_v20  ;;  %3834 = vpow2.f32 %v2537_v57  ;;  %v6181_v9 = vld [vmem:[#allocation20_spill] sm:$0xff]  ;;  %v3041_v13 = vmul.f32 1.442695, %v3029_v18 }
 0x40e   :  { %v5502_v58 = vpop.eup %3816  ;;  %v2288_v61 = vmul.f32 1.442695, %v2273_v34  ;;  %3486 = vmatpush3.bf16.msra.mxu1 %v6175_v23  ;;  %3500 = vmatpush3.bf16.msra.mxu0 %v6176_v1  ;;  %3836 = vpow2.f32 %v2286_v48  ;;  %v3039_v23 = vmul.f32 1.442695, %v3028_v47  ;;  %v6182_v1 = vld [vmem:[#allocation46_spill] sm:$0xff]  ;;  %v6190_v47 = vld [vmem:[#allocation49_spill] sm:$0xff] }
 0x40f   :  { %v5510_v55 = vpop.eup %3818  ;;  %3487 = vmatprep.subr.bf16.mxu1 %v6177_v54  ;;  %3489 = vmatprep.mubr.msk.bf16.mxu1 %vm1229_vm2, %v2314_v24  ;;  %v2518_v63 = vpop.xlane.xlu0 %2517  ;;  %v2064_v37 = vpack.c.bf16 %v5502_v58, %v5495_v8  ;;  %v2778_v34 = vsub.f32 %v6182_v1, %v5481_v10  ;;  %v6183_v24 = vld [vmem:[#allocation19_spill] sm:$0xff]  ;;  %v6195_v1 = vld [vmem:[#allocation50_spill] sm:$0xff] }
 0x410   :  { %v5518_v31 = vpop.eup %3820  ;;  %3838 = vpow2.f32 %v2288_v61  ;;  %3501 = vmatprep.subr.bf16.mxu0 %v6178_v6  ;;  %1285 = vadd.xlane.f32.xlu1 %v1284_v51  ;;  %v2526_v16 = vsub.f32 %v5184_v45, %v2518_v63  ;;  %v2786_v45 = vmul.f32 1.442695, %v2775_v32  ;;  %v3021_v51 = vpop.xlane.xlu1 %3020 }
 0x411   :  { %v5522_v19 = vpop.eup %3822  ;;  %3478 = vmatmul.mubr.msk.bf16.gmra.mrb[56].mxu0 %vm1229_vm2, %v2064_v37  ;;  %v2315_v14 = vpack.c.bf16 %v5518_v31, %v5510_v55  ;;  %3840 = vpow2.f32 %v2539_v42  ;;  %v6184_v42 = vld [vmem:[#allocation17_spill] sm:$0xff]  ;;  %v3031_v38 = vsub.f32 %v6187_v35, %v3021_v51 }
 0x412   :  { %v5531_v43 = vpop.eup %3824  ;;  %v2541_v29 = vmul.f32 1.442695, %v2526_v16  ;;  %3488 = vmatpush3.bf16.msra.mxu1 %v6177_v54  ;;  %3502 = vmatpush3.bf16.msra.mxu0 %v6178_v6  ;;  %v6186_v54 = vld [vmem:[#allocation51_spill] sm:$0xff]  ;;  %v2043_v16 = vsel %vm1229_vm2, %v5445_v0, 0.0 }
 0x413   :  { %v5539_v27 = vpop.eup %3826  ;;  %3513 = vmatprep.subr.bf16.mxu1 %v6180_v39  ;;  %3503 = vmatprep.subr.bf16.mxu0 %v6181_v9  ;;  %v2765_v22 = vpop.xlane.xlu0 %2764  ;;  %v3052_v57 = vsel %vm1229_vm2, %v5531_v43, 0.0  ;;  %v1287_v63 = vsel %vm1229_vm2, %v6186_v54, 0.0  ;;  %v2046_v54 = vsel %vm1229_vm2, %v5454_v5, 0.0 }
 0x414   :  { %v5546_v30 = vpop.eup %3828  ;;  %3842 = vpow2.f32 %v2541_v29  ;;  %3505 = vmatprep.mubr.msk.bf16.mxu0 %vm1229_vm2, %v2567_v11  ;;  %1538 = vadd.xlane.f32.xlu1 %v1537_v2  ;;  %v2777_v21 = vsub.f32 %v5195_v46, %v2765_v22  ;;  %v1790_v46 = vsel %vm1229_vm2, %v5415_v3, 0.0  ;;  %v6185_v3 = vld [vmem:[#allocation48_spill] sm:$0xff]  ;;  %v6188_v11 = vld [vmem:[#allocation22_spill] sm:$0xff] }
 0x415   :  { %v5550_v25 = vpop.eup %3830  ;;  %3844 = vpow2.f32 %v2784_v41  ;;  %3053 = vadd.xlane.f32.xlu0 %v3052_v57  ;;  %3490 = vmatmul.mubr.msk.bf16.vlgmr.msra.gmra.mrb[56].mxu1 %vm1229_vm2, %v2315_v14  ;;  %v2316_v48 = vpack.c.bf16 %v5546_v30, %v5522_v19  ;;  %v2792_v41 = vmul.f32 1.442695, %v2778_v34 }
 0x416   :  { %v5555_v60 = vpop.eup %3832  ;;  %3846 = vpow2.f32 %v2786_v45  ;;  %v2790_v26 = vmul.f32 1.442695, %v2777_v21  ;;  %3504 = vmatpush3.bf16.msra.mxu0 %v6181_v9  ;;  %3514 = vmatpush3.bf16.msra.mxu1 %v6180_v39  ;;  %v2568_v20 = vpack.c.bf16 %v5550_v25, %v5539_v27  ;;  %v6189_v45 = vld [vmem:[#allocation21_spill] sm:$0xff] }
 0x417   :  { %3848 = vpow2.f32 %v2788_v53  ;;  %3493 = vmatprep.mubr.msk.bf16.mxu1 %vm1229_vm2, %v2316_v48  ;;  %3515 = vmatprep.subr.bf16.mxu1 %v6183_v24  ;;  %v3018_v32 = vpop.xlane.xlu0 %3017  ;;  %v5567_v61 = vpop.eup %3834  ;;  %v6191_v53 = vld [vmem:[#allocation33_spill] sm:$0xff]  ;;  %v6193_v48 = vld [vmem:[#allocation24_spill] sm:$0xff] }
 0x418   :  { %3850 = vpow2.f32 %v2790_v26  ;;  %3529 = vmatprep.subr.bf16.mxu0 %v6184_v42  ;;  %1791 = vadd.xlane.f32.xlu1 %v1790_v46  ;;  %v3030_v36 = vsub.f32 %v6185_v3, %v3018_v32  ;;  %v5573_v37 = vpop.eup %3836  ;;  %v2569_v10 = vpack.c.bf16 %v5567_v61, %v5555_v60  ;;  %v1540_v0 = vsel %vm1229_vm2, %v6191_v53, 0.0  ;;  %v6192_v39 = vld [vmem:[#allocation5_spill] sm:$0xff] }
 0x419   :  { %3852 = vpow2.f32 %v3037_v40  ;;  %1288 = vadd.xlane.f32.xlu0 %v1287_v63  ;;  %3506 = vmatmul.mubr.msk.bf16.vlgmr.msra.gmra.mrb[60].mxu0 %vm1229_vm2, %v2568_v20  ;;  %v2820_v9 = vpack.c.bf16 %v5429_v44, %v6192_v39  ;;  %v3045_v40 = vmul.f32 1.442695, %v3031_v38  ;;  %v6194_v20 = vld [vmem:[#allocation23_spill] sm:$0xff] }
 0x41a   :  { %v5578_v52 = vpop.eup %3838  ;;  %3854 = vpow2.f32 %v3039_v23  ;;  %v3043_v6 = vmul.f32 1.442695, %v3030_v36  ;;  %3516 = vmatpush3.bf16.msra.mxu1 %v6183_v24  ;;  %3530 = vmatpush3.bf16.msra.mxu0 %v6184_v42  ;;  %v2296_v23 = vsel %vm1229_vm2, %v5510_v55, 0.0  ;;  %v3073_v55 = vpack.c.bf16 %v5531_v43, %v5474_v4  ;;  %v6196_v36 = vld [vmem:[#allocation25_spill] sm:$0xff] }
 0x41b   :  { %3856 = vpow2.f32 %v3041_v13  ;;  %3509 = vmatprep.mubr.msk.bf16.mxu0 %vm1229_vm2, %v2569_v10  ;;  %3517 = vmatprep.subr.bf16.mxu1 %v6188_v11  ;;  %v2771_v2 = vpop.xlane.xlu0 %2770  ;;  %v2317_v14 = vpack.c.bf16 %v5578_v52, %v5573_v37  ;;  %v5593_v18 = vpop.eup %3840  ;;  %v1793_v13 = vsel %vm1229_vm2, %v5421_v49, 0.0  ;;  %v2549_v49 = vsel %vm1229_vm2, %v5539_v27, 0.0 }
 0x41c   :  { %3858 = vpow2.f32 %v3043_v6  ;;  %3531 = vmatprep.subr.bf16.mxu0 %v6189_v45  ;;  %2044 = vadd.xlane.f32.xlu1 %v2043_v16  ;;  %v2779_v29 = vsub.f32 %v6190_v47, %v2771_v2  ;;  %v2552_v2 = vsel %vm1229_vm2, %v5550_v25, 0.0  ;;  %v6198_v25 = vld [vmem:[#allocation3_spill] sm:$0xff] }
 0x41d   :  { %1541 = vadd.xlane.f32.xlu0 %v1540_v0  ;;  %3494 = vmatmul.mubr.msk.bf16.gmra.mrb[60].mxu1 %vm1229_vm2, %v2317_v14  ;;  %3860 = vpow2.f32 %v2792_v41  ;;  %v2299_v41 = vsel %vm1229_vm2, %v5518_v31, 0.0  ;;  %v1543_v0 = vsel %vm1229_vm2, %v6198_v25, 0.0 }
 0x41e   :  { %v5598_v22 = vpop.eup %3842  ;;  %v2794_v57 = vmul.f32 1.442695, %v2779_v29  ;;  %3518 = vmatpush3.bf16.msra.mxu1 %v6188_v11  ;;  %3532 = vmatpush3.bf16.msra.mxu0 %v6189_v45  ;;  %v6197_v45 = vld [vmem:[#allocation4_spill] sm:$0xff] }
 0x41f   :  { %v3845_v21 = vpop.eup %3844  ;;  %3519 = vmatprep.subr.bf16.mxu1 %v6193_v48  ;;  %3521 = vmatprep.mubr.msk.bf16.mxu1 %vm1229_vm2, %v2820_v9  ;;  %v3024_v26 = vpop.xlane.xlu0 %3023  ;;  %v2570_v44 = vpack.c.bf16 %v5598_v22, %v5593_v18  ;;  %v1290_v47 = vsel %vm1229_vm2, %v6197_v45, 0.0  ;;  %v1796_v9 = vsel %vm1229_vm2, %v5424_v28, 0.0  ;;  %v1799_v28 = vsel %vm1229_vm2, %v5439_v15, 0.0 }
 0x420   :  { %v3847_v46 = vpop.eup %3846  ;;  %3862 = vpow2.f32 %v2794_v57  ;;  %3533 = vmatprep.subr.bf16.mxu0 %v6194_v20  ;;  %2297 = vadd.xlane.f32.xlu1 %v2296_v23  ;;  %v3032_v34 = vsub.f32 %v6195_v1, %v3024_v26  ;;  %v2802_v27 = vsel %vm1229_vm2, %v3845_v21, 0.0  ;;  %v6199_v57 = vld [vmem:[#allocation2_spill] sm:$0xff]  ;;  %v2302_v26 = vsel %vm1229_vm2, %v5522_v19, 0.0 }
 0x421   :  { %v5612_v24 = vpop.eup %3848  ;;  %1794 = vadd.xlane.f32.xlu0 %v1793_v13  ;;  %3510 = vmatmul.mubr.msk.bf16.gmra.mrb[64].mxu0 %vm1229_vm2, %v2570_v44  ;;  %v2821_v3 = vpack.c.bf16 %v3847_v46, %v3845_v21  ;;  %3864 = vpow2.f32 %v3045_v40  ;;  %v2805_v53 = vsel %vm1229_vm2, %v3847_v46, 0.0  ;;  %v1293_v21 = vsel %vm1229_vm2, %v6199_v57, 0.0 }
 0x422   :  { %v5617_v32 = vpop.eup %3850  ;;  %v3047_v51 = vmul.f32 1.442695, %v3032_v34  ;;  %3520 = vmatpush3.bf16.msra.mxu1 %v6193_v48  ;;  %3534 = vmatpush3.bf16.msra.mxu0 %v6194_v20  ;;  %v2049_v40 = vsel %vm1229_vm2, %v5457_v7, 0.0  ;;  %v6200_v48 = vld [vmem:[#allocation6_spill] sm:$0xff]  ;;  %v2555_v44 = vsel %vm1229_vm2, %v5555_v60, 0.0  ;;  %v2052_v7 = vsel %vm1229_vm2, %v5463_v17, 0.0 }
 0x423   :  { %v3853_v42 = vpop.eup %3852  ;;  %3535 = vmatprep.subr.bf16.mxu0 %v6196_v36  ;;  %3537 = vmatprep.mubr.msk.bf16.mxu0 %vm1229_vm2, %v3073_v55  ;;  %v2822_v4 = vpack.c.bf16 %v5617_v32, %v5612_v24  ;;  %v1546_v23 = vsel %vm1229_vm2, %v6200_v48, 0.0  ;;  %v2808_v46 = vsel %vm1229_vm2, %v5612_v24, 0.0  ;;  %v2305_v19 = vsel %vm1229_vm2, %v5546_v30, 0.0  ;;  %v1280_v55 = vpop.xlane.xlu1 %1279 }
 0x424   :  { %v3855_v43 = vpop.eup %3854  ;;  %3866 = vpow2.f32 %v3047_v51  ;;  %2550 = vadd.xlane.f32.xlu1 %v2549_v49  ;;  %v3055_v38 = vsel %vm1229_vm2, %v3853_v42, 0.0  ;;  %v2558_v15 = vsel %vm1229_vm2, %v5567_v61, 0.0  ;;  %v1296_v60 = vsel %vm1229_vm2, %v5391_v59, 0.0 }
 0x425   :  { %v3857_v63 = vpop.eup %3856  ;;  %2047 = vadd.xlane.f32.xlu0 %v2046_v54  ;;  %3522 = vmatmul.mubr.msk.bf16.vlgmr.msra.gmra.mrb[64].mxu1 %vm1229_vm2, %v2821_v3  ;;  %v3074_v6 = vpack.c.bf16 %v3855_v43, %v3853_v42  ;;  %v3058_v39 = vsel %vm1229_vm2, %v3855_v43, 0.0  ;;  %v2811_v17 = vsel %vm1229_vm2, %v5617_v32, 0.0  ;;  %v1549_v1 = vsel %vm1229_vm2, %v5403_v56, 0.0 }
 0x426   :  { %v3859_v10 = vpop.eup %3858  ;;  %3536 = vmatpush3.bf16.msra.mxu0 %v6196_v36  ;;  %3525 = vmatprep.mubr.msk.bf16.mxu1 %vm1229_vm2, %v2822_v4  ;;  %v3061_v20 = vsel %vm1229_vm2, %v3857_v63, 0.0  ;;  %v1802_v34 = vsel %vm1229_vm2, %v5472_v12, 0.0  ;;  %v1299_v61 = vsel %vm1229_vm2, %v5393_v33, 0.0  ;;  %v2055_v59 = vsel %vm1229_vm2, %v5495_v8, 0.0 }
 0x427   :  { %v3075_v16 = vpack.c.bf16 %v3859_v10, %v3857_v63  ;;  %v5635_v35 = vpop.eup %3860  ;;  %v3064_v30 = vsel %vm1229_vm2, %v3859_v10, 0.0  ;;  %v1552_v13 = vsel %vm1229_vm2, %v5408_v50, 0.0  ;;  %v2308_v56 = vsel %vm1229_vm2, %v5573_v37, 0.0 }
 0x428   :  { %2803 = vadd.xlane.f32.xlu1 %v2802_v27  ;;  %v1805_v12 = vsel %vm1229_vm2, %v5479_v62, 0.0  ;;  %v2561_v33 = vsel %vm1229_vm2, %v5593_v18, 0.0  ;;  %v2058_v8 = vsel %vm1229_vm2, %v5502_v58, 0.0  ;;  %v2814_v50 = vsel %vm1229_vm2, %v5635_v35, 0.0 }
 0x429   :  { %2300 = vadd.xlane.f32.xlu0 %v2299_v41  ;;  %3538 = vmatmul.mubr.msk.bf16.vlgmr.msra.gmra.mrb[68].mxu0 %vm1229_vm2, %v3074_v6  ;;  %v2311_v37 = vsel %vm1229_vm2, %v5578_v52, 0.0  ;;  %v2564_v18 = vsel %vm1229_vm2, %v5598_v22, 0.0  ;;  %3868 = vrcp.f32 %v1280_v55 }
 0x42a   :  { %v5638_v5 = vpop.eup %3862  ;;  %3541 = vmatprep.mubr.msk.bf16.mxu0 %vm1229_vm2, %v3075_v16 }
 0x42b   :  { %v2823_v11 = vpack.c.bf16 %v5638_v5, %v5635_v35  ;;  %v5646_v14 = vpop.eup %3864  ;;  %v2817_v58 = vsel %vm1229_vm2, %v5638_v5, 0.0 }
 0x42c   :  { %3056 = vadd.xlane.f32.xlu1 %v3055_v38  ;;  %v3067_v62 = vsel %vm1229_vm2, %v5646_v14, 0.0 }
 0x42d   :  { %2553 = vadd.xlane.f32.xlu0 %v2552_v2  ;;  %3526 = vmatmul.mubr.msk.bf16.gmra.mrb[68].mxu1 %vm1229_vm2, %v2823_v11 }
 0x42e   :  { %v5649_v31 = vpop.eup %3866 }
 0x42f   :  { %v3076_v29 = vpack.c.bf16 %v5649_v31, %v5646_v14  ;;  %v3070_v24 = vsel %vm1229_vm2, %v5649_v31, 0.0 }
 0x430   :  { %1291 = vadd.xlane.f32.xlu1 %v1290_v47 }
 0x431   :  { %2806 = vadd.xlane.f32.xlu0 %v2805_v53  ;;  %3542 = vmatmul.mubr.msk.bf16.gmra.mrb[72].mxu0 %vm1229_vm2, %v3076_v29 }
 0x433   :  { %v3869_v43 = vpop.eup %3868 }
 0x434   :  { %1544 = vadd.xlane.f32.xlu1 %v1543_v0 }
 0x435   :  { %3059 = vadd.xlane.f32.xlu0 %v3058_v39 }
 0x438   :  { %1797 = vadd.xlane.f32.xlu1 %v1796_v9  ;;  %v1533_v32 = vpop.xlane.xlu1 %1532 }
 0x439   :  { %1294 = vadd.xlane.f32.xlu0 %v1293_v21 }
 0x43c   :  { %2050 = vadd.xlane.f32.xlu1 %v2049_v40  ;;  %v5718_v51 = vpop.xlane.xlu1 %1785 }
 0x43d   :  { %1547 = vadd.xlane.f32.xlu0 %v1546_v23 }
 0x440   :  { %2303 = vadd.xlane.f32.xlu1 %v2302_v26  ;;  %v5720_v3 = vpop.xlane.xlu1 %2038 }
 0x441   :  { %1800 = vadd.xlane.f32.xlu0 %v1799_v28 }
 0x444   :  { %2556 = vadd.xlane.f32.xlu1 %v2555_v44  ;;  %v5724_v22 = vpop.xlane.xlu1 %2291 }
 0x445   :  { %2053 = vadd.xlane.f32.xlu0 %v2052_v7 }
 0x448   :  { %2809 = vadd.xlane.f32.xlu1 %v2808_v46  ;;  %v1283_v52 = vpop.xlane.xlu0 %1282  ;;  %v2545_v54 = vpop.xlane.xlu1 %2544 }
 0x449   :  { %2306 = vadd.xlane.f32.xlu0 %v2305_v19  ;;  %3870 = vrcp.f32 %v1283_v52 }
 0x44a   :  { %3872 = vrcp.f32 %v1533_v32 }
 0x44c   :  { %3062 = vadd.xlane.f32.xlu1 %v3061_v20  ;;  %v1536_v42 = vpop.xlane.xlu0 %1535 }
 0x44d   :  { %2559 = vadd.xlane.f32.xlu0 %v2558_v15  ;;  %3874 = vrcp.f32 %v1536_v42 }
 0x450   :  { %1297 = vadd.xlane.f32.xlu1 %v1296_v60  ;;  %v5722_v36 = vpop.xlane.xlu0 %1788 }
 0x451   :  { %2812 = vadd.xlane.f32.xlu0 %v2811_v17 }
 0x453   :  { %v3871_v27 = vpop.eup %3870 }
 0x454   :  { %1550 = vadd.xlane.f32.xlu1 %v1549_v1  ;;  %v5726_v49 = vpop.xlane.xlu0 %2041  ;;  %v3873_v11 = vpop.eup %3872 }
 0x455   :  { %3065 = vadd.xlane.f32.xlu0 %v3064_v30 }
 0x457   :  { %v3875_v47 = vpop.eup %3874 }
 0x458   :  { %1803 = vadd.xlane.f32.xlu1 %v1802_v34  ;;  %v5728_v41 = vpop.xlane.xlu0 %2294 }
 0x459   :  { %1300 = vadd.xlane.f32.xlu0 %v1299_v61 }
 0x45c   :  { %2056 = vadd.xlane.f32.xlu1 %v2055_v59  ;;  %v5734_v29 = vpop.xlane.xlu0 %2547 }
 0x45d   :  { %1553 = vadd.xlane.f32.xlu0 %v1552_v13 }
 0x460   :  { %2309 = vadd.xlane.f32.xlu1 %v2308_v56 }
 0x461   :  { %1806 = vadd.xlane.f32.xlu0 %v1805_v12 }
 0x464   :  { %2562 = vadd.xlane.f32.xlu1 %v2561_v33 }
 0x465   :  { %2059 = vadd.xlane.f32.xlu0 %v2058_v8 }
 0x468   :  { %2815 = vadd.xlane.f32.xlu1 %v2814_v50 }
 0x469   :  { %2312 = vadd.xlane.f32.xlu0 %v2311_v37 }
 0x46c   :  { %3068 = vadd.xlane.f32.xlu1 %v3067_v62 }
 0x46d   :  { %2565 = vadd.xlane.f32.xlu0 %v2564_v18 }
 0x471   :  { %2818 = vadd.xlane.f32.xlu0 %v2817_v58 }
 0x475   :  { %3071 = vadd.xlane.f32.xlu0 %v3070_v24 }
 0x480   :  { %v5730_v5 = vpop.xlane.xlu1 %2797 }
 0x490   :  { %v3427_v4 = vpop.f32.mrb[40].mxu1 }
 0x491   :  { %v1352_v63 = vpop.f32.mrb[41].mxu1  ;;  %v5740_v57 = vpop.xlane.xlu0 %2800 }
 0x492   :  { %v1391_v10 = vmul.f32 %v3869_v43, %v1352_v63  ;;  %v3428_v6 = vpop.f32.mrb[42].mxu1 }
 0x493   :  { %v1355_v16 = vpop.f32.mrb[43].mxu1 }
 0x494   :  { %v1392_v35 = vmul.f32 %v3871_v27, %v1355_v16 }
 0x497   :  { %v3443_v38 = vpop.f32.mrb[44].mxu0 }
 0x498   :  { %v1605_v2 = vpop.f32.mrb[45].mxu0 }
 0x499   :  { %v5732_v14 = vpop.xlane.xlu1 %3050  ;;  %v1644_v31 = vmul.f32 %v3873_v11, %v1605_v2  ;;  %v3444_v45 = vpop.f32.mrb[46].mxu0 }
 0x49a   :  { %v1608_v53 = vpop.f32.mrb[47].mxu0 }
 0x49b   :  { %v5736_v25 = vadd.f32 %v1644_v31, %v1391_v10  ;;  %v1645_v0 = vmul.f32 %v3875_v47, %v1608_v53 }
 0x49d   :  { %v5738_v39 = vadd.f32 %v1645_v0, %v1392_v35  ;;  %v1286_v9 = vpop.xlane.xlu1 %1285 }
 0x49e   :  { %3876 = vrcp.f32 %v1286_v9 }
 0x4a1   :  { %v1539_v21 = vpop.xlane.xlu1 %1538 }
 0x4a2   :  { %3878 = vrcp.f32 %v1539_v21  ;;  %v5742_v40 = vpop.xlane.xlu0 %3053 }
 0x4a5   :  { %v1792_v48 = vpop.xlane.xlu1 %1791 }
 0x4a6   :  { %v1289_v23 = vpop.xlane.xlu0 %1288 }
 0x4a7   :  { %3880 = vrcp.f32 %v1289_v23 }
 0x4a8   :  { %v3877_v26 = vpop.eup %3876 }
 0x4a9   :  { %v2045_v28 = vpop.xlane.xlu1 %2044  ;;  %v1393_v44 = vmul.f32 %v3877_v26, %v3427_v4 }
 0x4aa   :  { %v1542_v7 = vpop.xlane.xlu0 %1541 }
 0x4ab   :  { %3882 = vrcp.f32 %v1542_v7 }
 0x4ac   :  { %v3879_v46 = vpop.eup %3878  ;;  %3884 = vrcp.f32 %v5718_v51 }
 0x4ad   :  { %v5744_v19 = vpop.xlane.xlu1 %2297  ;;  %v1646_v20 = vmul.f32 %v3879_v46, %v3443_v38  ;;  %3886 = vrcp.f32 %v5720_v3 }
 0x4ae   :  { %v1795_v15 = vpop.xlane.xlu0 %1794  ;;  %3888 = vrcp.f32 %v5724_v22 }
 0x4af   :  { %v5746_v60 = vadd.f32 %v1646_v20, %v1393_v44  ;;  %3890 = vrcp.f32 %v2545_v54 }
 0x4b1   :  { %v3881_v17 = vpop.eup %3880  ;;  %v5748_v1 = vpop.xlane.xlu1 %2550 }
 0x4b2   :  { %v2048_v30 = vpop.xlane.xlu0 %2047  ;;  %v1394_v34 = vmul.f32 %v3881_v17, %v3428_v6 }
 0x4b5   :  { %v3883_v61 = vpop.eup %3882  ;;  %v5750_v59 = vpop.xlane.xlu1 %2803 }
 0x4b6   :  { %v5752_v13 = vpop.xlane.xlu0 %2300  ;;  %v1647_v56 = vmul.f32 %v3883_v61, %v3444_v45  ;;  %v3885_v4 = vpop.eup %3884 }
 0x4b7   :  { %v5772_v3 = vpop.eup %3886 }
 0x4b8   :  { %v5754_v12 = vadd.f32 %v1647_v56, %v1394_v34  ;;  %v5777_v54 = vpop.eup %3888 }
 0x4b9   :  { %v5756_v33 = vpop.xlane.xlu1 %3056  ;;  %v5781_v6 = vpop.eup %3890 }
 0x4ba   :  { %v5758_v8 = vpop.xlane.xlu0 %2553 }
 0x4bd   :  { %v1292_v50 = vpop.xlane.xlu1 %1291 }
 0x4be   :  { %v5760_v37 = vpop.xlane.xlu0 %2806  ;;  %3892 = vrcp.f32 %v1292_v50 }
 0x4c1   :  { %v1545_v62 = vpop.xlane.xlu1 %1544 }
 0x4c2   :  { %v5762_v18 = vpop.xlane.xlu0 %3059  ;;  %3894 = vrcp.f32 %v1545_v62 }
 0x4c5   :  { %v1798_v58 = vpop.xlane.xlu1 %1797 }
 0x4c6   :  { %v1295_v24 = vpop.xlane.xlu0 %1294 }
 0x4c7   :  { %3896 = vrcp.f32 %v1295_v24 }
 0x4c8   :  { %v3893_v27 = vpop.eup %3892 }
 0x4c9   :  { %v2051_v55 = vpop.xlane.xlu1 %2050 }
 0x4ca   :  { %v1548_v32 = vpop.xlane.xlu0 %1547 }
 0x4cb   :  { %3898 = vrcp.f32 %v1548_v32 }
 0x4cc   :  { %3900 = vrcp.f32 %v1792_v48  ;;  %v3895_v35 = vpop.eup %3894 }
 0x4cd   :  { %v5767_v52 = vpop.xlane.xlu1 %2303  ;;  %3902 = vrcp.f32 %v5722_v36 }
 0x4ce   :  { %v1801_v42 = vpop.xlane.xlu0 %1800  ;;  %3904 = vrcp.f32 %v1795_v15 }
 0x4cf   :  { %v5770_v51 = vpop.f32.mrb[44].mxu1  ;;  %3906 = vrcp.f32 %v5726_v49 }
 0x4d0   :  { %v1368_v43 = vpop.f32.mrb[45].mxu1  ;;  %3908 = vrcp.f32 %v2045_v28 }
 0x4d1   :  { %v5775_v22 = vpop.xlane.xlu1 %2556  ;;  %v5779_v10 = vpop.f32.mrb[46].mxu1  ;;  %3910 = vrcp.f32 %v5728_v41  ;;  %v1395_v2 = vmul.f32 %v3893_v27, %v1368_v43 }
 0x4d2   :  { %v2054_v63 = vpop.xlane.xlu0 %2053  ;;  %v1371_v36 = vpop.f32.mrb[47].mxu1  ;;  %3912 = vrcp.f32 %v2048_v30 }
 0x4d3   :  { %3914 = vrcp.f32 %v5734_v29  ;;  %v3897_v11 = vpop.eup %3896 }
 0x4d4   :  { %v5784_v16 = vpop.f32.mrb[48].mxu0  ;;  %3916 = vrcp.f32 %v5730_v5  ;;  %v1396_v9 = vmul.f32 %v3897_v11, %v1371_v36 }
 0x4d5   :  { %v5787_v49 = vpop.xlane.xlu1 %2809  ;;  %v1621_v38 = vpop.f32.mrb[49].mxu0  ;;  %3918 = vrcp.f32 %v1798_v58 }
 0x4d6   :  { %v1648_v31 = vmul.f32 %v3895_v35, %v1621_v38  ;;  %v5790_v45 = vpop.xlane.xlu0 %2306  ;;  %v5792_v47 = vpop.f32.mrb[50].mxu0  ;;  %3920 = vrcp.f32 %v5740_v57 }
 0x4d7   :  { %v3899_v41 = vpop.eup %3898  ;;  %v1624_v53 = vpop.f32.mrb[51].mxu0  ;;  %3922 = vrcp.f32 %v1801_v42 }
 0x4d8   :  { %v3901_v0 = vpop.eup %3900  ;;  %v1656_v29 = vadd.f32 %v1648_v31, %v1395_v2  ;;  %v1649_v21 = vmul.f32 %v3899_v41, %v1624_v53  ;;  %v3459_v48 = vpop.f32.mrb[48].mxu1  ;;  %3924 = vrcp.f32 %v5732_v14 }
 0x4d9   :  { %v3903_v23 = vpop.eup %3902  ;;  %v1899_v26 = vmul.f32 %v3901_v0, %v3459_v48  ;;  %v5795_v5 = vpop.xlane.xlu1 %3062  ;;  %3926 = vrcp.f32 %v2051_v55 }
 0x4da   :  { %v1858_v28 = vpop.f32.mrb[49].mxu1  ;;  %v3905_v44 = vpop.eup %3904  ;;  %v1657_v7 = vadd.f32 %v1649_v21, %v1396_v9  ;;  %3928 = vrcp.f32 %v5742_v40 }
 0x4db   :  { %v1897_v46 = vmul.f32 %v3885_v4, %v1858_v28  ;;  %v5798_v20 = vpop.xlane.xlu0 %2559  ;;  %v3460_v15 = vpop.f32.mrb[50].mxu1  ;;  %v1907_v57 = vadd.f32 %v1899_v26, %v5746_v60  ;;  %3930 = vrcp.f32 %v2054_v63 }
 0x4dc   :  { %v3907_v17 = vpop.eup %3906  ;;  %v1900_v30 = vmul.f32 %v3905_v44, %v3460_v15  ;;  %v1861_v34 = vpop.f32.mrb[51].mxu1  ;;  %3932 = vrcp.f32 %v5744_v19 }
 0x4dd   :  { %v3909_v61 = vpop.eup %3908  ;;  %v1905_v56 = vadd.f32 %v1897_v46, %v5736_v25  ;;  %v1898_v50 = vmul.f32 %v3903_v23, %v1861_v34  ;;  %v3475_v62 = vpop.f32.mrb[52].mxu0  ;;  %3934 = vrcp.f32 %v5752_v13 }
 0x4de   :  { %v5803_v58 = vpop.eup %3910  ;;  %v1908_v14 = vadd.f32 %v1900_v30, %v5754_v12  ;;  %v1298_v24 = vpop.xlane.xlu1 %1297  ;;  %v2152_v32 = vmul.f32 %v3909_v61, %v3475_v62 }
 0x4df   :  { %v2111_v42 = vpop.f32.mrb[53].mxu0  ;;  %v3913_v55 = vpop.eup %3912  ;;  %v1906_v60 = vadd.f32 %v1898_v50, %v5738_v39  ;;  %3936 = vrcp.f32 %v1298_v24 }
 0x4e0   :  { %v2150_v4 = vmul.f32 %v5772_v3, %v2111_v42  ;;  %v5809_v40 = vpop.xlane.xlu0 %2812  ;;  %v3476_v25 = vpop.f32.mrb[54].mxu0  ;;  %v2160_v63 = vadd.f32 %v2152_v32, %v1907_v57  ;;  %3938 = vrcp.f32 %v5748_v1 }
 0x4e1   :  { %v5811_v43 = vpop.eup %3914  ;;  %v2153_v36 = vmul.f32 %v3913_v55, %v3476_v25  ;;  %v2114_v12 = vpop.f32.mrb[55].mxu0 }
 0x4e2   :  { %v5814_v27 = vpop.eup %3916  ;;  %v2158_v35 = vadd.f32 %v2150_v4, %v1905_v56  ;;  %v2151_v38 = vmul.f32 %v3907_v17, %v2114_v12  ;;  %v5816_v19 = vpop.f32.mrb[52].mxu1 }
 0x4e3   :  { %v3919_v39 = vpop.eup %3918  ;;  %v2161_v3 = vadd.f32 %v2153_v36, %v1908_v14  ;;  %v1551_v11 = vpop.xlane.xlu1 %1550 }
 0x4e4   :  { %v1874_v2 = vpop.f32.mrb[53].mxu1  ;;  %v5819_v31 = vpop.eup %3920  ;;  %v2159_v41 = vadd.f32 %v2151_v38, %v1906_v60  ;;  %3940 = vrcp.f32 %v1551_v11 }
 0x4e5   :  { %v5821_v13 = vpop.xlane.xlu0 %3065  ;;  %v1901_v53 = vmul.f32 %v3919_v39, %v1874_v2  ;;  %v5823_v0 = vpop.f32.mrb[54].mxu1  ;;  %3942 = vrcp.f32 %v5750_v59 }
 0x4e6   :  { %v3923_v9 = vpop.eup %3922  ;;  %v1877_v21 = vpop.f32.mrb[55].mxu1  ;;  %3944 = vrcp.f32 %v5758_v8 }
 0x4e7   :  { %v5826_v48 = vpop.eup %3924  ;;  %v1909_v1 = vadd.f32 %v1901_v53, %v1656_v29  ;;  %v1902_v23 = vmul.f32 %v3923_v9, %v1877_v21  ;;  %v5829_v26 = vpop.f32.mrb[56].mxu0  ;;  %3946 = vrcp.f32 %v5767_v52 }
 0x4e8   :  { %v3927_v28 = vpop.eup %3926  ;;  %v1804_v44 = vpop.xlane.xlu1 %1803 }
 0x4e9   :  { %v2127_v46 = vpop.f32.mrb[57].mxu0  ;;  %v5832_v15 = vpop.eup %3928  ;;  %v1910_v17 = vadd.f32 %v1902_v23, %v1657_v7  ;;  %3948 = vrcp.f32 %v1804_v44 }
 0x4ea   :  { %v2154_v57 = vmul.f32 %v3927_v28, %v2127_v46  ;;  %v1301_v59 = vpop.xlane.xlu0 %1300  ;;  %v5834_v30 = vpop.f32.mrb[58].mxu0  ;;  %3950 = vrcp.f32 %v5775_v22 }
 0x4eb   :  { %v3931_v34 = vpop.eup %3930  ;;  %v2130_v8 = vpop.f32.mrb[59].mxu0  ;;  %3952 = vrcp.f32 %v1301_v59 }
 0x4ec   :  { %v3933_v29 = vpop.eup %3932  ;;  %v5837_v61 = vadd.f32 %v2154_v57, %v1909_v1  ;;  %v2155_v56 = vmul.f32 %v3931_v34, %v2130_v8  ;;  %v3491_v52 = vpop.f32.mrb[56].mxu1  ;;  %3954 = vrcp.f32 %v5790_v45 }
 0x4ed   :  { %v3935_v50 = vpop.eup %3934  ;;  %v2057_v62 = vpop.xlane.xlu1 %2056  ;;  %v2405_v7 = vmul.f32 %v3933_v29, %v3491_v52 }
 0x4ee   :  { %v2364_v14 = vpop.f32.mrb[57].mxu1  ;;  %v3937_v24 = vpop.eup %3936  ;;  %v5840_v32 = vadd.f32 %v2155_v56, %v1910_v17  ;;  %3956 = vrcp.f32 %v2057_v62 }
 0x4ef   :  { %v1554_v42 = vpop.xlane.xlu0 %1553  ;;  %v2403_v22 = vmul.f32 %v5777_v54, %v2364_v14  ;;  %v3492_v55 = vpop.f32.mrb[58].mxu1  ;;  %v2413_v4 = vadd.f32 %v2405_v7, %v2160_v63  ;;  %v1397_v54 = vmul.f32 %v3937_v24, %v5770_v51 }
 0x4f0   :  { %v3939_v60 = vpop.eup %3938  ;;  %3958 = vrcp.f32 %v1554_v42  ;;  %v2406_v25 = vmul.f32 %v3935_v50, %v3492_v55  ;;  %v2367_v36 = vpop.f32.mrb[59].mxu1 }
 0x4f1   :  { %v3941_v12 = vpop.eup %3940  ;;  %3960 = vrcp.f32 %v5798_v20  ;;  %v2411_v45 = vadd.f32 %v2403_v22, %v2158_v35  ;;  %v2404_v38 = vmul.f32 %v5803_v58, %v2367_v36  ;;  %v3507_v39 = vpop.f32.mrb[60].mxu0 }
 0x4f2   :  { %v5845_v11 = vpop.eup %3942  ;;  %v2414_v2 = vadd.f32 %v2406_v25, %v2161_v3  ;;  %v2310_v53 = vpop.xlane.xlu1 %2309  ;;  %v2658_v9 = vmul.f32 %v3939_v60, %v3507_v39  ;;  %v1650_v63 = vmul.f32 %v3941_v12, %v5784_v16 }
 0x4f3   :  { %v2617_v21 = vpop.f32.mrb[61].mxu0  ;;  %v3945_v1 = vpop.eup %3944  ;;  %v2412_v23 = vadd.f32 %v2404_v38, %v2159_v41  ;;  %3962 = vrcp.f32 %v2310_v53 }
 0x4f4   :  { %v2656_v28 = vmul.f32 %v5781_v6, %v2617_v21  ;;  %v1807_v20 = vpop.xlane.xlu0 %1806  ;;  %v3508_v35 = vpop.f32.mrb[62].mxu0  ;;  %v5850_v58 = vadd.f32 %v2658_v9, %v2413_v4  ;;  %v1658_v17 = vadd.f32 %v1650_v63, %v1397_v54 }
 0x4f5   :  { %v3947_v44 = vpop.eup %3946  ;;  %3964 = vrcp.f32 %v1807_v20  ;;  %v2659_v46 = vmul.f32 %v3945_v1, %v3508_v35  ;;  %v2620_v3 = vpop.f32.mrb[63].mxu0 }
 0x4f6   :  { %v3949_v57 = vpop.eup %3948  ;;  %3966 = vrcp.f32 %v5760_v37  ;;  %v5853_v51 = vadd.f32 %v2656_v28, %v2411_v45  ;;  %v2657_v16 = vmul.f32 %v5811_v43, %v2620_v3  ;;  %v3495_v41 = vpop.f32.mrb[60].mxu1 }
 0x4f7   :  { %v3951_v59 = vpop.eup %3950  ;;  %3968 = vrcp.f32 %v5756_v33  ;;  %v5857_v6 = vadd.f32 %v2659_v46, %v2414_v2  ;;  %v2563_v34 = vpop.xlane.xlu1 %2562  ;;  %v1903_v8 = vmul.f32 %v3949_v57, %v5816_v19 }
 0x4f8   :  { %v2380_v29 = vpop.f32.mrb[61].mxu1  ;;  %v3953_v56 = vpop.eup %3952  ;;  %v5860_v52 = vadd.f32 %v2657_v16, %v2412_v23  ;;  %3970 = vrcp.f32 %v2563_v34 }
 0x4f9   :  { %v2060_v50 = vpop.xlane.xlu0 %2059  ;;  %v2407_v37 = vmul.f32 %v3947_v44, %v2380_v29  ;;  %v5862_v62 = vpop.f32.mrb[62].mxu1  ;;  %v1911_v43 = vadd.f32 %v1903_v8, %v1658_v17  ;;  %v1398_v55 = vmul.f32 %v3953_v56, %v5779_v10 }
 0x4fa   :  { %v3955_v7 = vpop.eup %3954  ;;  %3972 = vrcp.f32 %v2060_v50  ;;  %v2383_v14 = vpop.f32.mrb[63].mxu1 }
 0x4fb   :  { %v3957_v24 = vpop.eup %3956  ;;  %3974 = vrcp.f32 %v5762_v18  ;;  %v2415_v33 = vadd.f32 %v2407_v37, %v5837_v61  ;;  %v2408_v42 = vmul.f32 %v3955_v7, %v2383_v14  ;;  %v3511_v19 = vpop.f32.mrb[64].mxu0 }
 0x4fc   :  { %v3959_v22 = vpop.eup %3958  ;;  %3976 = vrcp.f32 %v5787_v49  ;;  %v2156_v60 = vmul.f32 %v3957_v24, %v5829_v26  ;;  %v2816_v4 = vpop.xlane.xlu1 %2815 }
 0x4fd   :  { %v2633_v25 = vpop.f32.mrb[65].mxu0  ;;  %v3961_v36 = vpop.eup %3960  ;;  %v1651_v12 = vmul.f32 %v3959_v22, %v5792_v47  ;;  %v2416_v45 = vadd.f32 %v2408_v42, %v5840_v32  ;;  %3978 = vrcp.f32 %v2816_v4 }
 0x4fe   :  { %v2660_v18 = vmul.f32 %v3951_v59, %v2633_v25  ;;  %v2313_v38 = vpop.xlane.xlu0 %2312  ;;  %v5871_v61 = vpop.f32.mrb[66].mxu0  ;;  %v2164_v39 = vadd.f32 %v2156_v60, %v1911_v43  ;;  %v6201_v59 = vlaneseq }
 0x4ff   :  { %3980 = vrcp.f32 %v2313_v38  ;;  %v2636_v2 = vpop.f32.mrb[67].mxu0  ;;  %v3963_v49 = vpop.eup %3962  ;;  %v1659_v9 = vadd.f32 %v1651_v12, %v1398_v55 }
 0x500   :  { %3982 = vrcp.f32 %v5795_v5  ;;  %v5874_v10 = vadd.f32 %v2660_v18, %v2415_v33  ;;  %v2661_v26 = vmul.f32 %v3961_v36, %v2636_v2  ;;  %v3523_v53 = vpop.f32.mrb[64].mxu1  ;;  %v3965_v21 = vpop.eup %3964  ;;  %v2409_v47 = vmul.f32 %v3963_v49, %v3495_v41 }
 0x501   :  { %3984 = vrcp.f32 %v5809_v40  ;;  %v3069_v32 = vpop.xlane.xlu1 %3068  ;;  %v2911_v54 = vmul.f32 %v5845_v11, %v3523_v53  ;;  %v2870_v63 = vpop.f32.mrb[65].mxu1  ;;  %v1904_v23 = vmul.f32 %v3965_v21, %v5823_v0  ;;  %v5886_v34 = vand.u32 127, %v6201_v59 }
 0x502   :  { %v3967_v1 = vpop.eup %3966  ;;  %v5879_v28 = vadd.f32 %v2661_v26, %v2416_v45  ;;  %3986 = vrcp.f32 %v3069_v32  ;;  %v2566_v5 = vpop.xlane.xlu0 %2565  ;;  %v2909_v20 = vmul.f32 %v5814_v27, %v2870_v63  ;;  %v2417_v46 = vadd.f32 %v2409_v47, %v2164_v39 }
 0x503   :  { %v3524_v35 = vpop.f32.mrb[66].mxu1  ;;  %v3969_v44 = vpop.eup %3968  ;;  %v2919_v3 = vadd.f32 %v2911_v54, %v5850_v58  ;;  %3988 = vrcp.f32 %v2566_v5  ;;  %v1912_v41 = vadd.f32 %v1904_v23, %v1659_v9  ;;  %vm3203_vm2 = vcmp.lt.s32.totalorder %v5886_v34, 8 }
 0x504   :  { %v2912_v40 = vmul.f32 %v3967_v1, %v3524_v35  ;;  %v2873_v17 = vpop.f32.mrb[67].mxu1  ;;  %v3971_v57 = vpop.eup %3970  ;;  %v2917_v11 = vadd.f32 %v2909_v20, %v5853_v51  ;;  %3990 = vrcp.f32 %v5821_v13 }
 0x505   :  { %v2910_v16 = vmul.f32 %v5819_v31, %v2873_v17  ;;  %v3539_v0 = vpop.f32.mrb[68].mxu0  ;;  %v3973_v8 = vpop.eup %3972  ;;  %v2662_v27 = vmul.f32 %v3971_v57, %v3511_v19 }
 0x506   :  { %v2920_v29 = vadd.f32 %v2912_v40, %v5857_v6  ;;  %v3164_v58 = vmul.f32 %v3969_v44, %v3539_v0  ;;  %v3123_v56 = vpop.f32.mrb[69].mxu0  ;;  %v3975_v50 = vpop.eup %3974  ;;  %v2157_v43 = vmul.f32 %v3973_v8, %v5834_v30 }
 0x507   :  { %v2918_v37 = vadd.f32 %v2910_v16, %v5860_v52  ;;  %v3162_v51 = vmul.f32 %v5826_v48, %v3123_v56  ;;  %v2819_v7 = vpop.xlane.xlu0 %2818  ;;  %v3540_v31 = vpop.f32.mrb[70].mxu0  ;;  %v2670_v24 = vadd.f32 %v2662_v27, %v2417_v46  ;;  %v5897_v48 = vld [vmem:[%s5989_s4] ss:$0 sm:$0xff] }
 0x508   :  { %v3977_v14 = vpop.eup %3976  ;;  %v3172_v33 = vadd.f32 %v3164_v58, %v2919_v3  ;;  %3992 = vrcp.f32 %v2819_v7  ;;  %v3165_v42 = vmul.f32 %v3975_v50, %v3540_v31  ;;  %v3126_v13 = vpop.f32.mrb[71].mxu0  ;;  %v2165_v60 = vadd.f32 %v2157_v43, %v1912_v41 }
 0x509   :  { %v3979_v19 = vpop.eup %3978  ;;  %v3170_v22 = vadd.f32 %v3162_v51, %v2917_v11  ;;  %v3163_v6 = vmul.f32 %v5832_v15, %v3126_v13  ;;  %v3527_v55 = vpop.f32.mrb[68].mxu1 }
 0x50a   :  { %v3981_v52 = vpop.eup %3980  ;;  %v3180_v4 = vmul.f32 0.125, %v3172_v33  ;;  %v3173_v30 = vadd.f32 %v3165_v42, %v2920_v29  ;;  %v2915_v25 = vmul.f32 %v3979_v19, %v3527_v55  ;;  %v2886_v36 = vpop.f32.mrb[69].mxu1 }
 0x50b   :  { %v3983_v12 = vpop.eup %3982  ;;  %v3178_v45 = vmul.f32 0.125, %v3170_v22  ;;  %v3171_v18 = vadd.f32 %v3163_v6, %v2918_v37  ;;  %v3072_v38 = vpop.xlane.xlu0 %3071  ;;  %v2913_v39 = vmul.f32 %v3977_v14, %v2886_v36  ;;  %v2410_v15 = vmul.f32 %v3981_v52, %v5862_v62 }
 0x50c   :  { %v3528_v2 = vpop.f32.mrb[70].mxu1  ;;  %v3985_v49 = vpop.eup %3984  ;;  %v3181_v26 = vmul.f32 0.125, %v3173_v30  ;;  %v2923_v53 = vadd.f32 %v2915_v25, %v2670_v24  ;;  %3994 = vrcp.f32 %v3072_v38  ;;  %v3195_v21 = vadd.f32 %v5897_v48, %v3180_v4 }
 0x50d   :  { %v2889_v9 = vpop.f32.mrb[71].mxu1  ;;  %v3987_v47 = vpop.eup %3986  ;;  %v3179_v32 = vmul.f32 0.125, %v3171_v18  ;;  %v2921_v54 = vadd.f32 %v2913_v39, %v5874_v10  ;;  %v2418_v63 = vadd.f32 %v2410_v15, %v2165_v60  ;;  %v3193_v46 = vadd.f32 %v5897_v48, %v3178_v45 }
 0x50e   :  { %v2914_v1 = vmul.f32 %v3985_v49, %v2889_v9  ;;  %v3543_v23 = vpop.f32.mrb[72].mxu0  ;;  %v3989_v5 = vpop.eup %3988  ;;  %v3206_v62 = vsel %vm3203_vm2, %v3195_v21, -1e+30  ;;  %v3196_v44 = vadd.f32 %v5897_v48, %v3181_v26 }
 0x50f   :  { %v3168_v20 = vmul.f32 %v3987_v47, %v3543_v23  ;;  %v3139_v35 = vpop.f32.mrb[73].mxu0  ;;  %v2663_v3 = vmul.f32 %v3989_v5, %v5871_v61  ;;  %3216 = vmax.xlane.f32.xlu1 %v3206_v62  ;;  %v3991_v10 = vpop.eup %3990  ;;  %v3194_v41 = vadd.f32 %v5897_v48, %v3179_v32  ;;  %v3204_v61 = vsel %vm3203_vm2, %v3193_v46, -1e+30 }
 0x510   :  { %v2922_v40 = vadd.f32 %v2914_v1, %v5879_v28  ;;  %v3166_v17 = vmul.f32 %v3983_v12, %v3139_v35  ;;  %v3544_v57 = vpop.f32.mrb[74].mxu0  ;;  %v3207_v0 = vsel %vm3203_vm2, %v3196_v44, -1e+30 }
 0x511   :  { %v3176_v11 = vadd.f32 %v3168_v20, %v2923_v53  ;;  %v3142_v16 = vpop.f32.mrb[75].mxu0  ;;  %v2671_v59 = vadd.f32 %v2663_v3, %v2418_v63  ;;  %3218 = vmax.xlane.f32.xlu0 %v3207_v0  ;;  %v3205_v37 = vsel %vm3203_vm2, %v3194_v41, -1e+30 }
 0x512   :  { %v3174_v8 = vadd.f32 %v3166_v17, %v2921_v54  ;;  %v3167_v27 = vmul.f32 %v3991_v10, %v3142_v16  ;;  %v3993_v29 = vpop.eup %3992 }
 0x513   :  { %v2916_v28 = vmul.f32 %v3993_v29, %v3528_v2  ;;  %v3184_v58 = vmul.f32 0.125, %v3176_v11  ;;  %3212 = vmax.xlane.f32.xlu1 %v3204_v61 }
 0x514   :  { %v3182_v56 = vmul.f32 0.125, %v3174_v8  ;;  %v3175_v50 = vadd.f32 %v3167_v27, %v2922_v40 }
 0x515   :  { %v2924_v51 = vadd.f32 %v2916_v28, %v2671_v59  ;;  %3214 = vmax.xlane.f32.xlu0 %v3205_v37  ;;  %v3199_v42 = vadd.f32 %v5897_v48, %v3184_v58 }
 0x516   :  { %v3183_v7 = vmul.f32 0.125, %v3175_v50  ;;  %v3197_v31 = vadd.f32 %v5897_v48, %v3182_v56  ;;  %v3995_v43 = vpop.eup %3994 }
 0x517   :  { %v3169_v14 = vmul.f32 %v3995_v43, %v3544_v57  ;;  %v3210_v6 = vsel %vm3203_vm2, %v3199_v42, -1e+30 }
 0x518   :  { %v3208_v24 = vsel %vm3203_vm2, %v3197_v31, -1e+30  ;;  %v3198_v33 = vadd.f32 %v5897_v48, %v3183_v7 }
 0x519   :  { %3220 = vmax.xlane.f32.xlu1 %v3208_v24  ;;  %v3177_v13 = vadd.f32 %v3169_v14, %v2924_v51 }
 0x51a   :  { %v3209_v19 = vsel %vm3203_vm2, %v3198_v33, -1e+30 }
 0x51b   :  { %3222 = vmax.xlane.f32.xlu0 %v3209_v19  ;;  %v3185_v22 = vmul.f32 0.125, %v3177_v13 }
 0x51d   :  { %3224 = vmax.xlane.f32.xlu1 %v3210_v6  ;;  %v3200_v55 = vadd.f32 %v5897_v48, %v3185_v22 }
 0x51f   :  { %v3211_v60 = vsel %vm3203_vm2, %v3200_v55, -1e+30 }
 0x520   :  { %3226 = vmax.xlane.f32.xlu0 %v3211_v60 }
 0x59c   :  { %v3217_v52 = vpop.xlane.xlu1 %3216 }
 0x59d   :  { %v5928_v4 = vsub.f32 %v3206_v62, %v3217_v52 }
 0x59e   :  { %v3219_v30 = vpop.xlane.xlu0 %3218 }
 0x59f   :  { %v3240_v25 = vmul.f32 1.442695, %v5928_v4  ;;  %v5931_v36 = vsub.f32 %v3207_v0, %v3219_v30 }
 0x5a0   :  { %v3213_v12 = vpop.xlane.xlu1 %3212 }
 0x5a1   :  { %3996 = vpow2.f32 %v3240_v25  ;;  %v3242_v45 = vmul.f32 1.442695, %v5931_v36  ;;  %v5934_v18 = vsub.f32 %v3204_v61, %v3213_v12 }
 0x5a2   :  { %v3215_v38 = vpop.xlane.xlu0 %3214 }
 0x5a3   :  { %3998 = vpow2.f32 %v3242_v45  ;;  %v3236_v34 = vmul.f32 1.442695, %v5934_v18  ;;  %v5937_v48 = vsub.f32 %v3205_v37, %v3215_v38 }
 0x5a5   :  { %4000 = vpow2.f32 %v3236_v34  ;;  %v3238_v39 = vmul.f32 1.442695, %v5937_v48 }
 0x5a6   :  { %v3221_v15 = vpop.xlane.xlu1 %3220 }
 0x5a7   :  { %v5940_v2 = vsub.f32 %v3208_v24, %v3221_v15  ;;  %4002 = vpow2.f32 %v3238_v39 }
 0x5a8   :  { %v3223_v49 = vpop.xlane.xlu0 %3222 }
 0x5a9   :  { %v3244_v26 = vmul.f32 1.442695, %v5940_v2  ;;  %v5943_v53 = vsub.f32 %v3209_v19, %v3223_v49 }
 0x5aa   :  { %v3225_v9 = vpop.xlane.xlu1 %3224 }
 0x5ab   :  { %4004 = vpow2.f32 %v3244_v26  ;;  %v3246_v21 = vmul.f32 1.442695, %v5943_v53  ;;  %v5946_v47 = vsub.f32 %v3210_v6, %v3225_v9  ;;  %v3997_v32 = vpop.eup %3996 }
 0x5ac   :  { %3256 = vadd.xlane.f32.xlu1 %v3997_v32 }
 0x5ad   :  { %4006 = vpow2.f32 %v3246_v21  ;;  %v3248_v54 = vmul.f32 1.442695, %v5946_v47  ;;  %v3999_v63 = vpop.eup %3998  ;;  %v3227_v1 = vpop.xlane.xlu0 %3226 }
 0x5ae   :  { %v5949_v23 = vsub.f32 %v3211_v60, %v3227_v1  ;;  %3258 = vadd.xlane.f32.xlu0 %v3999_v63 }
 0x5af   :  { %4008 = vpow2.f32 %v3248_v54  ;;  %v4001_v5 = vpop.eup %4000 }
 0x5b0   :  { %v3250_v20 = vmul.f32 1.442695, %v5949_v23  ;;  %3252 = vadd.xlane.f32.xlu1 %v4001_v5 }
 0x5b1   :  { %v4003_v35 = vpop.eup %4002 }
 0x5b2   :  { %4010 = vpow2.f32 %v3250_v20  ;;  %3254 = vadd.xlane.f32.xlu0 %v4003_v35 }
 0x5b5   :  { %v4005_v62 = vpop.eup %4004 }
 0x5b6   :  { %3260 = vadd.xlane.f32.xlu1 %v4005_v62 }
 0x5b7   :  { %v4007_v44 = vpop.eup %4006 }
 0x5b8   :  { %3262 = vadd.xlane.f32.xlu0 %v4007_v44 }
 0x5b9   :  { %v4009_v46 = vpop.eup %4008 }
 0x5ba   :  { %3264 = vadd.xlane.f32.xlu1 %v4009_v46 }
 0x5bc   :  { %v4011_v3 = vpop.eup %4010 }
 0x5bd   :  { %3266 = vadd.xlane.f32.xlu0 %v4011_v3 }
 0x639   :  { %v3257_v40 = vpop.xlane.xlu1 %3256 }
 0x63a   :  { %4012 = vlog2.f32 %v3257_v40 }
 0x63b   :  { %v3259_v17 = vpop.xlane.xlu0 %3258 }
 0x63c   :  { %4014 = vlog2.f32 %v3259_v17 }
 0x63d   :  { %v3253_v57 = vpop.xlane.xlu1 %3252 }
 0x63e   :  { %4016 = vlog2.f32 %v3253_v57 }
 0x63f   :  { %v3255_v10 = vpop.xlane.xlu0 %3254 }
 0x640   :  { %4018 = vlog2.f32 %v3255_v10 }
 0x643   :  { %v3261_v11 = vpop.xlane.xlu1 %3260 }
 0x644   :  { %4020 = vlog2.f32 %v3261_v11  ;;  %v4013_v16 = vpop.eup %4012 }
 0x645   :  { %v3263_v0 = vpop.xlane.xlu0 %3262  ;;  %v3273_v41 = vmul.f32 0.6931472, %v4013_v16 }
 0x646   :  { %4022 = vlog2.f32 %v3263_v0  ;;  %v4015_v59 = vpop.eup %4014 }
 0x647   :  { %v3265_v8 = vpop.xlane.xlu1 %3264  ;;  %v3286_v27 = vsub.f32 %v5928_v4, %v3273_v41  ;;  %v3275_v29 = vmul.f32 0.6931472, %v4015_v59 }
 0x648   :  { %4024 = vlog2.f32 %v3265_v8  ;;  %v4017_v61 = vpop.eup %4016 }
 0x649   :  { %3294 = vst [vmem:[%s5990_s6 + $0x10] sm:$0xff] %v3286_v27  ;;  %v3287_v28 = vsub.f32 %v5931_v36, %v3275_v29  ;;  %v3269_v58 = vmul.f32 0.6931472, %v4017_v61 }
 0x64a   :  { %v4019_v56 = vpop.eup %4018  ;;  %v3267_v50 = vpop.xlane.xlu0 %3266 }
 0x64b   :  { %3295 = vst [vmem:[%s5990_s6 + $0x18] sm:$0xff] %v3287_v28  ;;  %v3284_v37 = vsub.f32 %v5934_v18, %v3269_v58  ;;  %v3271_v51 = vmul.f32 0.6931472, %v4019_v56  ;;  %4026 = vlog2.f32 %v3267_v50 }
 0x64d   :  { %3292 = vst [vmem:[%s5990_s6] sm:$0xff] %v3284_v37  ;;  %v3285_v31 = vsub.f32 %v5937_v48, %v3271_v51 }
 0x64e   :  { %v4021_v7 = vpop.eup %4020 }
 0x64f   :  { %v3277_v43 = vmul.f32 0.6931472, %v4021_v7  ;;  %3293 = vst [vmem:[%s5990_s6 + $0x8] sm:$0xff] %v3285_v31 }
 0x650   :  { %v4023_v14 = vpop.eup %4022 }
 0x651   :  { %v3288_v24 = vsub.f32 %v5940_v2, %v3277_v43  ;;  %v3279_v33 = vmul.f32 0.6931472, %v4023_v14 }
 0x652   :  { %v4025_v42 = vpop.eup %4024 }
 0x653   :  { %3296 = vst [vmem:[%s5990_s6 + $0x20] sm:$0xff] %v3288_v24  ;;  %v3289_v13 = vsub.f32 %v5943_v53, %v3279_v33  ;;  %v3281_v19 = vmul.f32 0.6931472, %v4025_v42 }
 0x655   :  { %3297 = vst [vmem:[%s5990_s6 + $0x28] sm:$0xff] %v3289_v13  ;;  %v3290_v22 = vsub.f32 %v5946_v47, %v3281_v19  ;;  %v4027_v6 = vpop.eup %4026 }
 0x656   :  { %v3283_v55 = vmul.f32 0.6931472, %v4027_v6 }
 0x657   :  { %3298 = vst [vmem:[%s5990_s6 + $0x30] sm:$0xff] %v3290_v22 }
 0x658   :  { %v3291_v60 = vsub.f32 %v5949_v23, %v3283_v55 }
 0x65a   :  { %3299 = vst [vmem:[%s5990_s6 + $0x38] sm:$0xff] %v3291_v60 }

</bundles_post_ra>
